<compile_context>
chip_gen: v5e
topology: v5e:2x2
jax: 0.10.0
libtpu: 0.0.40
codegen_flags: <defaults>
</compile_context>

<pallas_src>
import math

import jax
import jax.numpy as jnp
import numpy as np
from jax import lax
from jax.experimental import pallas as pl
from jax.experimental.pallas import tpu as pltpu


def _round_up(x, m):
    return ((x + m - 1) // m) * m


def _vmem_capacity_bytes():
    try:
        return int(pltpu.get_tpu_info().vmem_capacity_bytes)
    except Exception:
        return 64 * 1024 * 1024          # conservative fallback (v7x per-core VMEM)


def _vmem_bytes_estimate(TC, SUB, B_blk, I, H_pad, L, comp_bytes):
    """Rough VMEM footprint (double-buffered weights assumed, conservative)."""
    w = 0
    for l in range(L):
        in_sz = I if l == 0 else H_pad
        w += (in_sz + H_pad) * 4 * H_pad * comp_bytes + 4 * H_pad * 4
    return (2 * w                                            # weights (x2 buffers)
            + 2 * TC * B_blk * I * comp_bytes                # x chunk (x2 buffers)
            + 2 * L * B_blk * H_pad * 4                      # h / c carried state
            + 2 * SUB * B_blk * 4 * H_pad * comp_bytes       # gate slots 0/1
            + TC * B_blk * H_pad * comp_bytes                # per-chunk layer outputs
            + 2 * B_blk * H_pad * 4                          # rep output (x2 buffers)
            + 2 * B_blk * 4 * 128)                           # lengths (padded tile)


def _make_lstm_kernel(L, TC, SUB, B, H, comp_dtype):
    """One (batch_block, time_chunk) grid step of an L-layer LSTM.

    Refs (PrefetchScalarGridSpec, num_scalar_prefetch=0):
      len_ref                       VMEM (B, 1) int32   valid length per row
      x_ref                         VMEM (TC*B, I)      current time chunk of x
      per layer: w_ih (in, 4H), w_hh (H, 4H), b (1, 4H)   (constant blocks)
      rep_ref                       VMEM out (B, H)     resident accumulator
      h_state, c_state              VMEM scratch (L, B, H)   carried over chunks
      gbuf0, gbuf1                  VMEM scratch (SUB*B, 4H) double-slot gates
      seq_buf                       VMEM scratch (TC*B, H)   per-chunk layer out
    """
    n_sub = TC // SUB
    rec_unroll = min(SUB, 4)

    def kernel(len_ref, x_ref, *rest):
        wrefs = rest[:3 * L]
        rep_ref = rest[3 * L]
        h_state = rest[3 * L + 1]
        c_state = rest[3 * L + 2]
        gbufs = (rest[3 * L + 3], rest[3 * L + 4])
        seq_buf = rest[3 * L + 5]

        t_chunk = pl.program_id(1)

        @pl.when(t_chunk == 0)
        def _init():                      # new batch block -> reset carried state
            h_state[...] = jnp.zeros_like(h_state)
            c_state[...] = jnp.zeros_like(c_state)
            rep_ref[...] = jnp.zeros_like(rep_ref)

        for layer in range(L):
            w_ih_ref = wrefs[3 * layer]
            w_hh_ref = wrefs[3 * layer + 1]
            b_ref = wrefs[3 * layer + 2]
            inp_ref = x_ref if layer == 0 else seq_buf

            def project(s, slot, _inp=inp_ref, _w=w_ih_ref, _b=b_ref):
                # Bulk input projection for one sub-chunk (hoisted off the
                # serial path; issued one sub-chunk ahead of the recurrence).
                rows = _inp[pl.ds(s * SUB * B, SUB * B), :]
                g = jnp.dot(rows, _w[...], preferred_element_type=jnp.float32)
                gbufs[slot][...] = (g + _b[...]).astype(gbufs[slot].dtype)

            project(0, 0)
            h = h_state[layer]
            c = c_state[layer]

            for s in range(n_sub):
                slot = s & 1
                if s + 1 < n_sub:
                    project(s + 1, 1 - slot)     # overlap next sub-chunk's MXU work

                def step(t, carry, _g=gbufs[slot], _w=w_hh_ref,
                         _base=s * SUB * B):
                    h, c = carry
                    goff = pl.multiple_of(t * B, B)
                    # TODO(synk): further win: hold W_hh in MXU staging across the
                    # chunk (pltpu.matmul_push_rhs / matmul_acc_lhs) instead of
                    # re-feeding it through jnp.dot every step.
                    gates = _g[pl.ds(goff, B), :] + jnp.dot(
                        h.astype(comp_dtype), _w[...],
                        preferred_element_type=jnp.float32)
                    # Per-gate nonlinearities on lane-aligned (B, H) slices.
                    i_g = jax.nn.sigmoid(gates[:, 0 * H:1 * H])
                    f_g = jax.nn.sigmoid(gates[:, 1 * H:2 * H])
                    g_g = jnp.tanh(gates[:, 2 * H:3 * H])
                    o_g = jax.nn.sigmoid(gates[:, 3 * H:4 * H])
                    c_new = f_g * c + i_g * g_g
                    h_new = o_g * jnp.tanh(c_new)
                    soff = pl.multiple_of(_base + t * B, B)
                    seq_buf[pl.ds(soff, B), :] = h_new.astype(seq_buf.dtype)
                    return (h_new, c_new)

                h, c = lax.fori_loop(0, SUB, step, (h, c), unroll=rec_unroll)

            h_state[layer] = h
            c_state[layer] = c

        # ---- pack/pad_packed "output[length-1, i]" gather: vectorised merge of
        #      the matching step's (B, H) row block into rep (full-tile selects,
        #      no per-row branches / masked 1-row stores). ----
        idx = jnp.broadcast_to(len_ref[...] - 1 - t_chunk * TC, (B, H))  # hoisted

        def merge(t, rep):
            off = pl.multiple_of(t * B, B)
            row = seq_buf[pl.ds(off, B), :].astype(rep.dtype)
            return jnp.where(idx == t, row, rep)

        rep_ref[...] = lax.fori_loop(0, TC, merge, rep_ref[...],
                                     unroll=min(TC, 4))

    return kernel


def lstm_transfer_forward(x, x_length, lstm_layers, fc_w, fc_b, *,
                          chunk=None, compute_dtype=jnp.float32):
    """x: (T, B, I); x_length: (B,) int in [1, T];
    lstm_layers: [(w_ih (4H,in), w_hh (4H,H), b_ih (4H,), b_hh (4H,)), ...];
    fc_w: (2, H); fc_b: (2,).  Returns (representation (B, H), logits (B, 2)).
    compute_dtype=bfloat16 runs the matmuls / buffers in bf16 (f32 cell state);
    rep then matches the f32 reference only to bf16 tolerance."""
    T, B, I = x.shape
    H = lstm_layers[0][1].shape[1]            # torch w_hh is (4H, H)
    L = len(lstm_layers)

    # pack_padded_sequence rejects length 0; the gather assumes 1 <= len <= T.
    lens_np = None
    try:
        lens_np = np.asarray(x_length)
    except Exception:
        lens_np = None                        # traced lengths: skip host check
    if lens_np is not None and lens_np.size:
        assert lens_np.min() >= 1 and lens_np.max() <= T, \
            "x_length must lie in [1, T]"

    comp_bytes = jnp.dtype(compute_dtype).itemsize
    H_pad = _round_up(H, 128)                 # lane-dense gate slices / stores
    B_pad = _round_up(B, 8)                   # sublane-pad the batch
    # v7x: split the batch into 2 blocks over the "parallel" grid axis.
    NB = 2 if (B_pad >= 16 and B_pad % 16 == 0) else 1
    B_blk = B_pad // NB

    # --- generation-aware chunk / VMEM sizing --------------------------------
    cap = _vmem_capacity_bytes()
    if chunk is not None:
        TC = int(chunk)
    else:
        tc_cap = _round_up(min(max(T, 1), 64), 8)
        TC = min(8, tc_cap)
        for cand in (64, 32, 16, 8):
            if cand > tc_cap:
                continue
            sub = math.gcd(cand, 8)
            if _vmem_bytes_estimate(cand, sub, B_blk, I, H_pad, L,
                                    comp_bytes) <= int(0.6 * cap):
                TC = cand
                break
    SUB = math.gcd(TC, 8)
    T_pad = _round_up(T, TC)
    n_tchunks = T_pad // TC

    need = _vmem_bytes_estimate(TC, SUB, B_blk, I, H_pad, L, comp_bytes)
    vmem_limit = int(max(32 * 1024 * 1024,
                         min(int(0.85 * cap), need + 16 * 1024 * 1024)))

    # --- data layout ----------------------------------------------------------
    xp = jnp.asarray(x, jnp.float32)
    xp = jnp.pad(xp, ((0, T_pad - T), (0, B_pad - B), (0, 0)))
    # row layout: ((nb*T_pad + t) * B_blk + b) so each (batch-block, chunk)
    # grid step streams one contiguous (TC*B_blk, I) slab.
    x_flat = (xp.reshape(T_pad, NB, B_blk, I)
                .transpose(1, 0, 2, 3)
                .reshape(NB * T_pad * B_blk, I)
                .astype(compute_dtype))

    # Padded batch rows get length 0 -> never merged -> sliced off below.
    lens = jnp.zeros((B_pad,), jnp.int32).at[:B].set(
        jnp.asarray(x_length, jnp.int32))
    lens_col = lens.reshape(NB * B_blk, 1)

    def pad_gate_rows(w):
        # (4H, X) -> (4H_pad, X), zero-padding each of the 4 gate blocks.
        Xc = w.shape[1]
        return jnp.pad(w.reshape(4, H, Xc),
                       ((0, 0), (0, H_pad - H), (0, 0))).reshape(4 * H_pad, Xc)

    weights = []
    for l, (w_ih, w_hh, b_ih, b_hh) in enumerate(lstm_layers):
        w_ih_p = pad_gate_rows(jnp.asarray(w_ih, jnp.float32))      # (4H_pad, in)
        if l > 0:                                                    # in == H -> pad cols
            w_ih_p = jnp.pad(w_ih_p, ((0, 0), (0, H_pad - H)))
        w_hh_p = jnp.pad(pad_gate_rows(jnp.asarray(w_hh, jnp.float32)),
                         ((0, 0), (0, H_pad - H)))                   # (4H_pad, H_pad)
        bias = jnp.asarray(b_ih, jnp.float32) + jnp.asarray(b_hh, jnp.float32)
        bias = jnp.pad(bias.reshape(4, H),
                       ((0, 0), (0, H_pad - H))).reshape(1, 4 * H_pad)
        weights += [w_ih_p.T.astype(compute_dtype),                  # (in, 4H_pad)
                    w_hh_p.T.astype(compute_dtype),                  # (H_pad, 4H_pad)
                    bias]                                            # f32 bias

    kernel = _make_lstm_kernel(L, TC, SUB, B_blk, H_pad, compute_dtype)

    def run(single_buffer_weights):
        # Weights/bias have constant index_maps -> single buffer saves VMEM.
        wkw = {"pipeline_mode": pl.Buffered(1)} if single_buffer_weights else {}
        in_specs = [
            pl.BlockSpec((B_blk, 1), lambda nb, t: (nb, 0)),
            pl.BlockSpec((TC * B_blk, I),
                         lambda nb, t: (nb * n_tchunks + t, 0)),
        ]
        for l in range(L):
            in_sz = I if l == 0 else H_pad
            in_specs.append(pl.BlockSpec((in_sz, 4 * H_pad),
                                         lambda nb, t: (0, 0), **wkw))
            in_specs.append(pl.BlockSpec((H_pad, 4 * H_pad),
                                         lambda nb, t: (0, 0), **wkw))
            in_specs.append(pl.BlockSpec((1, 4 * H_pad),
                                         lambda nb, t: (0, 0), **wkw))
        grid_spec = pltpu.PrefetchScalarGridSpec(
            num_scalar_prefetch=0,
            grid=(NB, n_tchunks),
            in_specs=in_specs,
            out_specs=pl.BlockSpec((B_blk, H_pad), lambda nb, t: (nb, 0)),
            scratch_shapes=[
                pltpu.VMEM((L, B_blk, H_pad), jnp.float32),            # h (carried)
                pltpu.VMEM((L, B_blk, H_pad), jnp.float32),            # c (carried)
                pltpu.VMEM((SUB * B_blk, 4 * H_pad), compute_dtype),   # gates slot 0
                pltpu.VMEM((SUB * B_blk, 4 * H_pad), compute_dtype),   # gates slot 1
                pltpu.VMEM((TC * B_blk, H_pad), compute_dtype),        # layer outputs
            ],
        )
        out = pl.pallas_call(
            kernel,
            out_shape=jax.ShapeDtypeStruct((NB * B_blk, H_pad), jnp.float32),
            grid_spec=grid_spec,
            compiler_params=pltpu.CompilerParams(
                dimension_semantics=("parallel", "arbitrary"),
                vmem_limit_bytes=vmem_limit),
        )(lens_col, x_flat, *weights)
        return jax.block_until_ready(out)

    try:
        rep_pad = run(True)           # single-buffered constant weight blocks
    except Exception:
        rep_pad = run(False)          # fallback: JAX without BlockSpec pipeline_mode

    rep = rep_pad[:B, :H]
    # Tiny fc (H -> 2) in XLA: a 2-lane in-kernel output would force masked stores.
    logits = rep @ jnp.asarray(fc_w, jnp.float32).T + jnp.asarray(fc_b, jnp.float32)
    # Dropout(p=0.8) -> identity in eval mode.
    # TODO(synk): training-mode dropout RNG cannot match PyTorch; left as identity.
    return rep, logits


def _ref_forward(x, x_length, lstm_layers, fc_w, fc_b):
    """Pure-JAX reference of the same forward pass (for verification)."""
    T, B, _ = x.shape
    H = lstm_layers[0][1].shape[1]
    inp = jnp.asarray(x, jnp.float32)
    for (w_ih, w_hh, b_ih, b_hh) in lstm_layers:
        h = jnp.zeros((B, H), jnp.float32)
        c = jnp.zeros((B, H), jnp.float32)
        outs = []
        for t in range(T):
            gates = inp[t] @ w_ih.T + b_ih + h @ w_hh.T + b_hh
            i_g = jax.nn.sigmoid(gates[:, :H])
            f_g = jax.nn.sigmoid(gates[:, H:2 * H])
            g_g = jnp.tanh(gates[:, 2 * H:3 * H])
            o_g = jax.nn.sigmoid(gates[:, 3 * H:])
            c = f_g * c + i_g * g_g
            h = o_g * jnp.tanh(c)
            outs.append(h)
        inp = jnp.stack(outs, axis=0)
    rep = inp[jnp.asarray(x_length) - 1, jnp.arange(B), :]
    logits = rep @ fc_w.T + fc_b
    return rep, logits


if __name__ == "__main__":
    input_size, hidden_size, layer_num = 16, 32, 2

    key = jax.random.PRNGKey(0)
    keys = jax.random.split(key, 4 * layer_num + 6)
    k = 1.0 / np.sqrt(hidden_size)

    lstm_layers = []
    ki = 0
    for l in range(layer_num):
        in_sz = input_size if l == 0 else hidden_size
        w_ih = jax.random.uniform(keys[ki], (4 * hidden_size, in_sz), jnp.float32, -k, k); ki += 1
        w_hh = jax.random.uniform(keys[ki], (4 * hidden_size, hidden_size), jnp.float32, -k, k); ki += 1
        b_ih = jax.random.uniform(keys[ki], (4 * hidden_size,), jnp.float32, -k, k); ki += 1
        b_hh = jax.random.uniform(keys[ki], (4 * hidden_size,), jnp.float32, -k, k); ki += 1
        lstm_layers.append((w_ih, w_hh, b_ih, b_hh))

    fc_w = jax.random.uniform(keys[ki], (2, hidden_size), jnp.float32, -k, k); ki += 1
    fc_b = jax.random.uniform(keys[ki], (2,), jnp.float32, -k, k); ki += 1
    # Unused-in-forward parameters (kept for parity with the PyTorch module).
    src_weight = jax.random.normal(keys[ki], (hidden_size, 128), jnp.float32); ki += 1
    tgt_weight = jax.random.normal(keys[ki], (hidden_size, 128), jnp.float32); ki += 1

    # --- Test 1: tiny batch, explicit small chunk (multi-chunk state carry) ---
    seq_len, batch = 8, 2
    x1 = jax.random.normal(keys[ki], (seq_len, batch, input_size), jnp.float32); ki += 1
    len1 = jnp.array([8, 5], dtype=jnp.int32)
    rep1, log1 = lstm_transfer_forward(x1, len1, lstm_layers, fc_w, fc_b, chunk=4)
    jax.block_until_ready((rep1, log1))
    rep1_r, log1_r = _ref_forward(x1, len1, lstm_layers, fc_w, fc_b)
    np.testing.assert_allclose(np.asarray(rep1), np.asarray(rep1_r), atol=2e-4, rtol=2e-4)
    np.testing.assert_allclose(np.asarray(log1), np.asarray(log1_r), atol=2e-4, rtol=2e-4)

    # --- Test 2: batch=16 -> two batch blocks on the "parallel" grid axis,
    #     auto (get_tpu_info-derived) chunk, sub-chunk-pipelined projection. ---
    seq_len2, batch2 = 12, 16
    x2 = jax.random.normal(keys[ki], (seq_len2, batch2, input_size), jnp.float32)
    len2 = jnp.array([12, 5, 1, 7, 12, 3, 9, 11, 2, 6, 10, 4, 8, 12, 1, 7],
                     dtype=jnp.int32)
    rep2, log2 = lstm_transfer_forward(x2, len2, lstm_layers, fc_w, fc_b)
    jax.block_until_ready((rep2, log2))
    rep2_r, log2_r = _ref_forward(x2, len2, lstm_layers, fc_w, fc_b)
    np.testing.assert_allclose(np.asarray(rep2), np.asarray(rep2_r), atol=2e-4, rtol=2e-4)
    np.testing.assert_allclose(np.asarray(log2), np.asarray(log2_r), atol=2e-4, rtol=2e-4)

    print("KERNEL_OK")
</pallas_src>

<mosaic_0001>
module attributes {stable_mosaic.version = 11 : i64} {
  func.func @kernel(%arg0: i32, %arg1: i32, %arg2: memref<8x1xi32, #tpu.memory_space<vmem>>, %arg3: memref<32x16xf32, #tpu.memory_space<vmem>>, %arg4: memref<16x512xf32, #tpu.memory_space<vmem>>, %arg5: memref<128x512xf32, #tpu.memory_space<vmem>>, %arg6: memref<1x512xf32, #tpu.memory_space<vmem>>, %arg7: memref<128x512xf32, #tpu.memory_space<vmem>>, %arg8: memref<128x512xf32, #tpu.memory_space<vmem>>, %arg9: memref<1x512xf32, #tpu.memory_space<vmem>>, %arg10: memref<8x128xf32, #tpu.memory_space<vmem>>, %arg11: memref<2x8x128xf32, #tpu.memory_space<vmem>>, %arg12: memref<2x8x128xf32, #tpu.memory_space<vmem>>, %arg13: memref<32x512xf32, #tpu.memory_space<vmem>>, %arg14: memref<32x512xf32, #tpu.memory_space<vmem>>, %arg15: memref<32x128xf32, #tpu.memory_space<vmem>>) attributes {dimension_semantics = [#tpu.dimension_semantics<parallel>, #tpu.dimension_semantics<arbitrary>], iteration_bounds = array<i64: 1, 2>, scalar_prefetch = 0 : i64, scratch_operands = 5 : i64, tpu.core_type = #tpu.core_type<tc>, window_params = [{transform_indices = @transform_0, window_bounds = array<i64: 8, 1>}, {transform_indices = @transform_1, window_bounds = array<i64: 32, 16>}, {pipeline_mode = #tpu.pipeline_mode<synchronous>, transform_indices = @transform_2, window_bounds = array<i64: 16, 512>}, {pipeline_mode = #tpu.pipeline_mode<synchronous>, transform_indices = @transform_3, window_bounds = array<i64: 128, 512>}, {pipeline_mode = #tpu.pipeline_mode<synchronous>, transform_indices = @transform_4, window_bounds = array<i64: 1, 512>}, {pipeline_mode = #tpu.pipeline_mode<synchronous>, transform_indices = @transform_5, window_bounds = array<i64: 128, 512>}, {pipeline_mode = #tpu.pipeline_mode<synchronous>, transform_indices = @transform_6, window_bounds = array<i64: 128, 512>}, {pipeline_mode = #tpu.pipeline_mode<synchronous>, transform_indices = @transform_7, window_bounds = array<i64: 1, 512>}, {transform_indices = @transform_8, window_bounds = array<i64: 8, 128>}]} {
    %c0_i32 = arith.constant 0 : i32
    %0 = arith.cmpi eq, %arg1, %c0_i32 : i32
    %1 = arith.extui %0 : i1 to i32
    %c0_i32_0 = arith.constant 0 : i32
    %2 = arith.cmpi ne, %1, %c0_i32_0 : i32
    scf.if %2 {
      %cst_154 = arith.constant 0.000000e+00 : f32
      %371 = vector.broadcast %cst_154 : f32 to vector<2x8x128xf32>
      %c0_155 = arith.constant 0 : index
      %c0_156 = arith.constant 0 : index
      %c0_157 = arith.constant 0 : index
      %372 = vector.load %arg11[%c0_155, %c0_156, %c0_157] : memref<2x8x128xf32, #tpu.memory_space<vmem>>, vector<2x8x128xf32>
      tpu.vector_store %arg11[%c0_155, %c0_156, %c0_157], %371 {strides = array<i32>} : memref<2x8x128xf32, #tpu.memory_space<vmem>>, vector<2x8x128xf32>,
      %cst_158 = arith.constant 0.000000e+00 : f32
      %373 = vector.broadcast %cst_158 : f32 to vector<2x8x128xf32>
      %c0_159 = arith.constant 0 : index
      %c0_160 = arith.constant 0 : index
      %c0_161 = arith.constant 0 : index
      %374 = vector.load %arg12[%c0_159, %c0_160, %c0_161] : memref<2x8x128xf32, #tpu.memory_space<vmem>>, vector<2x8x128xf32>
      tpu.vector_store %arg12[%c0_159, %c0_160, %c0_161], %373 {strides = array<i32>} : memref<2x8x128xf32, #tpu.memory_space<vmem>>, vector<2x8x128xf32>,
      %cst_162 = arith.constant 0.000000e+00 : f32
      %375 = vector.broadcast %cst_162 : f32 to vector<8x128xf32>
      %c0_163 = arith.constant 0 : index
      %c0_164 = arith.constant 0 : index
      %376 = vector.load %arg10[%c0_163, %c0_164] : memref<8x128xf32, #tpu.memory_space<vmem>>, vector<8x128xf32>
      tpu.vector_store %arg10[%c0_163, %c0_164], %375 {strides = array<i32>} : memref<8x128xf32, #tpu.memory_space<vmem>>, vector<8x128xf32>,
    } else {
    }
    %c0 = arith.constant 0 : index
    %c0_1 = arith.constant 0 : index
    %3 = vector.load %arg3[%c0, %c0_1] : memref<32x16xf32, #tpu.memory_space<vmem>>, vector<32x16xf32>
    %c0_2 = arith.constant 0 : index
    %c0_3 = arith.constant 0 : index
    %4 = vector.load %arg4[%c0_2, %c0_3] : memref<16x512xf32, #tpu.memory_space<vmem>>, vector<16x512xf32>
    %cst = arith.constant dense<0.000000e+00> : vector<32x512xf32>
    %5 = tpu.matmul %3, %4, %cst {dimension_numbers = #tpu.dot_dimension_numbers<[1], [0], [0], [1], [0, 0, 1, 1], [], []>} : vector<32x16xf32>, vector<16x512xf32>, vector<32x512xf32> -> vector<32x512xf32>
    %c0_4 = arith.constant 0 : index
    %c0_5 = arith.constant 0 : index
    %6 = vector.load %arg6[%c0_4, %c0_5] : memref<1x512xf32, #tpu.memory_space<vmem>>, vector<1x512xf32>
    %7 = vector.broadcast %6 : vector<1x512xf32> to vector<32x512xf32>
    %8 = arith.addf %5, %7 : vector<32x512xf32>
    %c0_6 = arith.constant 0 : index
    %c0_7 = arith.constant 0 : index
    %9 = vector.load %arg13[%c0_6, %c0_7] : memref<32x512xf32, #tpu.memory_space<vmem>>, vector<32x512xf32>
    tpu.vector_store %arg13[%c0_6, %c0_7], %8 {strides = array<i32>} : memref<32x512xf32, #tpu.memory_space<vmem>>, vector<32x512xf32>,
    %c0_8 = arith.constant 0 : index
    %c0_9 = arith.constant 0 : index
    %c0_10 = arith.constant 0 : index
    %10 = vector.load %arg11[%c0_8, %c0_9, %c0_10] : memref<2x8x128xf32, #tpu.memory_space<vmem>>, vector<1x8x128xf32>
    %11 = vector.shape_cast %10 : vector<1x8x128xf32> to vector<8x128xf32>
    %c0_11 = arith.constant 0 : index
    %c0_12 = arith.constant 0 : index
    %c0_13 = arith.constant 0 : index
    %12 = vector.load %arg12[%c0_11, %c0_12, %c0_13] : memref<2x8x128xf32, #tpu.memory_space<vmem>>, vector<1x8x128xf32>
    %13 = vector.shape_cast %12 : vector<1x8x128xf32> to vector<8x128xf32>
    %c0_i32_14 = arith.constant 0 : i32
    %c8_i32 = arith.constant 8 : i32
    %14 = arith.muli %c0_i32_14, %c8_i32 : i32
    %15 = tpu.assume_multiple %14, 8 : i32
    %16 = arith.index_cast %15 : i32 to index
    %c0_15 = arith.constant 0 : index
    %17 = vector.load %arg13[%16, %c0_15] : memref<32x512xf32, #tpu.memory_space<vmem>>, vector<8x512xf32>
    %c0_16 = arith.constant 0 : index
    %c0_17 = arith.constant 0 : index
    %18 = vector.load %arg5[%c0_16, %c0_17] : memref<128x512xf32, #tpu.memory_space<vmem>>, vector<128x512xf32>
    %cst_18 = arith.constant dense<0.000000e+00> : vector<8x512xf32>
    %19 = tpu.matmul %11, %18, %cst_18 {dimension_numbers = #tpu.dot_dimension_numbers<[1], [0], [0], [1], [0, 0, 1, 1], [], []>} : vector<8x128xf32>, vector<128x512xf32>, vector<8x512xf32> -> vector<8x512xf32>
    %20 = arith.addf %17, %19 : vector<8x512xf32>
    %21 = vector.extract_strided_slice %20 {offsets = [0, 0], sizes = [8, 128], strides = [1, 1]} : vector<8x512xf32> to vector<8x128xf32>
    %22 = arith.negf %21 : vector<8x128xf32>
    %23 = math.exp %22 : vector<8x128xf32>
    %cst_19 = arith.constant 1.000000e+00 : f32
    %24 = vector.broadcast %cst_19 : f32 to vector<8x128xf32>
    %25 = arith.addf %24, %23 : vector<8x128xf32>
    %26 = arith.divf %24, %25 : vector<8x128xf32>
    %27 = vector.extract_strided_slice %20 {offsets = [0, 128], sizes = [8, 128], strides = [1, 1]} : vector<8x512xf32> to vector<8x128xf32>
    %28 = arith.negf %27 : vector<8x128xf32>
    %29 = math.exp %28 : vector<8x128xf32>
    %cst_20 = arith.constant 1.000000e+00 : f32
    %30 = vector.broadcast %cst_20 : f32 to vector<8x128xf32>
    %31 = arith.addf %30, %29 : vector<8x128xf32>
    %32 = arith.divf %30, %31 : vector<8x128xf32>
    %33 = vector.extract_strided_slice %20 {offsets = [0, 256], sizes = [8, 128], strides = [1, 1]} : vector<8x512xf32> to vector<8x128xf32>
    %34 = math.tanh %33 : vector<8x128xf32>
    %35 = vector.extract_strided_slice %20 {offsets = [0, 384], sizes = [8, 128], strides = [1, 1]} : vector<8x512xf32> to vector<8x128xf32>
    %36 = arith.negf %35 : vector<8x128xf32>
    %37 = math.exp %36 : vector<8x128xf32>
    %cst_21 = arith.constant 1.000000e+00 : f32
    %38 = vector.broadcast %cst_21 : f32 to vector<8x128xf32>
    %39 = arith.addf %38, %37 : vector<8x128xf32>
    %40 = arith.divf %38, %39 : vector<8x128xf32>
    %41 = arith.mulf %32, %13 : vector<8x128xf32>
    %42 = arith.mulf %26, %34 : vector<8x128xf32>
    %43 = arith.addf %41, %42 : vector<8x128xf32>
    %44 = math.tanh %43 : vector<8x128xf32>
    %45 = arith.mulf %40, %44 : vector<8x128xf32>
    %c8_i32_22 = arith.constant 8 : i32
    %46 = arith.muli %c0_i32_14, %c8_i32_22 : i32
    %c0_i32_23 = arith.constant 0 : i32
    %47 = arith.addi %c0_i32_23, %46 : i32
    %48 = tpu.assume_multiple %47, 8 : i32
    %49 = arith.index_cast %48 : i32 to index
    %c0_24 = arith.constant 0 : index
    %50 = vector.load %arg15[%49, %c0_24] : memref<32x128xf32, #tpu.memory_space<vmem>>, vector<8x128xf32>
    tpu.vector_store %arg15[%49, %c0_24], %45 {strides = array<i32>} : memref<32x128xf32, #tpu.memory_space<vmem>>, vector<8x128xf32>,
    %c1_i32 = arith.constant 1 : i32
    %c8_i32_25 = arith.constant 8 : i32
    %51 = arith.muli %c1_i32, %c8_i32_25 : i32
    %52 = tpu.assume_multiple %51, 8 : i32
    %53 = arith.index_cast %52 : i32 to index
    %c0_26 = arith.constant 0 : index
    %54 = vector.load %arg13[%53, %c0_26] : memref<32x512xf32, #tpu.memory_space<vmem>>, vector<8x512xf32>
    %c0_27 = arith.constant 0 : index
    %c0_28 = arith.constant 0 : index
    %55 = vector.load %arg5[%c0_27, %c0_28] : memref<128x512xf32, #tpu.memory_space<vmem>>, vector<128x512xf32>
    %cst_29 = arith.constant dense<0.000000e+00> : vector<8x512xf32>
    %56 = tpu.matmul %45, %55, %cst_29 {dimension_numbers = #tpu.dot_dimension_numbers<[1], [0], [0], [1], [0, 0, 1, 1], [], []>} : vector<8x128xf32>, vector<128x512xf32>, vector<8x512xf32> -> vector<8x512xf32>
    %57 = arith.addf %54, %56 : vector<8x512xf32>
    %58 = vector.extract_strided_slice %57 {offsets = [0, 0], sizes = [8, 128], strides = [1, 1]} : vector<8x512xf32> to vector<8x128xf32>
    %59 = arith.negf %58 : vector<8x128xf32>
    %60 = math.exp %59 : vector<8x128xf32>
    %cst_30 = arith.constant 1.000000e+00 : f32
    %61 = vector.broadcast %cst_30 : f32 to vector<8x128xf32>
    %62 = arith.addf %61, %60 : vector<8x128xf32>
    %63 = arith.divf %61, %62 : vector<8x128xf32>
    %64 = vector.extract_strided_slice %57 {offsets = [0, 128], sizes = [8, 128], strides = [1, 1]} : vector<8x512xf32> to vector<8x128xf32>
    %65 = arith.negf %64 : vector<8x128xf32>
    %66 = math.exp %65 : vector<8x128xf32>
    %cst_31 = arith.constant 1.000000e+00 : f32
    %67 = vector.broadcast %cst_31 : f32 to vector<8x128xf32>
    %68 = arith.addf %67, %66 : vector<8x128xf32>
    %69 = arith.divf %67, %68 : vector<8x128xf32>
    %70 = vector.extract_strided_slice %57 {offsets = [0, 256], sizes = [8, 128], strides = [1, 1]} : vector<8x512xf32> to vector<8x128xf32>
    %71 = math.tanh %70 : vector<8x128xf32>
    %72 = vector.extract_strided_slice %57 {offsets = [0, 384], sizes = [8, 128], strides = [1, 1]} : vector<8x512xf32> to vector<8x128xf32>
    %73 = arith.negf %72 : vector<8x128xf32>
    %74 = math.exp %73 : vector<8x128xf32>
    %cst_32 = arith.constant 1.000000e+00 : f32
    %75 = vector.broadcast %cst_32 : f32 to vector<8x128xf32>
    %76 = arith.addf %75, %74 : vector<8x128xf32>
    %77 = arith.divf %75, %76 : vector<8x128xf32>
    %78 = arith.mulf %69, %43 : vector<8x128xf32>
    %79 = arith.mulf %63, %71 : vector<8x128xf32>
    %80 = arith.addf %78, %79 : vector<8x128xf32>
    %81 = math.tanh %80 : vector<8x128xf32>
    %82 = arith.mulf %77, %81 : vector<8x128xf32>
    %c8_i32_33 = arith.constant 8 : i32
    %83 = arith.muli %c1_i32, %c8_i32_33 : i32
    %c0_i32_34 = arith.constant 0 : i32
    %84 = arith.addi %c0_i32_34, %83 : i32
    %85 = tpu.assume_multiple %84, 8 : i32
    %86 = arith.index_cast %85 : i32 to index
    %c0_35 = arith.constant 0 : index
    %87 = vector.load %arg15[%86, %c0_35] : memref<32x128xf32, #tpu.memory_space<vmem>>, vector<8x128xf32>
    tpu.vector_store %arg15[%86, %c0_35], %82 {strides = array<i32>} : memref<32x128xf32, #tpu.memory_space<vmem>>, vector<8x128xf32>,
    %c2_i32 = arith.constant 2 : i32
    %c8_i32_36 = arith.constant 8 : i32
    %88 = arith.muli %c2_i32, %c8_i32_36 : i32
    %89 = tpu.assume_multiple %88, 8 : i32
    %90 = arith.index_cast %89 : i32 to index
    %c0_37 = arith.constant 0 : index
    %91 = vector.load %arg13[%90, %c0_37] : memref<32x512xf32, #tpu.memory_space<vmem>>, vector<8x512xf32>
    %c0_38 = arith.constant 0 : index
    %c0_39 = arith.constant 0 : index
    %92 = vector.load %arg5[%c0_38, %c0_39] : memref<128x512xf32, #tpu.memory_space<vmem>>, vector<128x512xf32>
    %cst_40 = arith.constant dense<0.000000e+00> : vector<8x512xf32>
    %93 = tpu.matmul %82, %92, %cst_40 {dimension_numbers = #tpu.dot_dimension_numbers<[1], [0], [0], [1], [0, 0, 1, 1], [], []>} : vector<8x128xf32>, vector<128x512xf32>, vector<8x512xf32> -> vector<8x512xf32>
    %94 = arith.addf %91, %93 : vector<8x512xf32>
    %95 = vector.extract_strided_slice %94 {offsets = [0, 0], sizes = [8, 128], strides = [1, 1]} : vector<8x512xf32> to vector<8x128xf32>
    %96 = arith.negf %95 : vector<8x128xf32>
    %97 = math.exp %96 : vector<8x128xf32>
    %cst_41 = arith.constant 1.000000e+00 : f32
    %98 = vector.broadcast %cst_41 : f32 to vector<8x128xf32>
    %99 = arith.addf %98, %97 : vector<8x128xf32>
    %100 = arith.divf %98, %99 : vector<8x128xf32>
    %101 = vector.extract_strided_slice %94 {offsets = [0, 128], sizes = [8, 128], strides = [1, 1]} : vector<8x512xf32> to vector<8x128xf32>
    %102 = arith.negf %101 : vector<8x128xf32>
    %103 = math.exp %102 : vector<8x128xf32>
    %cst_42 = arith.constant 1.000000e+00 : f32
    %104 = vector.broadcast %cst_42 : f32 to vector<8x128xf32>
    %105 = arith.addf %104, %103 : vector<8x128xf32>
    %106 = arith.divf %104, %105 : vector<8x128xf32>
    %107 = vector.extract_strided_slice %94 {offsets = [0, 256], sizes = [8, 128], strides = [1, 1]} : vector<8x512xf32> to vector<8x128xf32>
    %108 = math.tanh %107 : vector<8x128xf32>
    %109 = vector.extract_strided_slice %94 {offsets = [0, 384], sizes = [8, 128], strides = [1, 1]} : vector<8x512xf32> to vector<8x128xf32>
    %110 = arith.negf %109 : vector<8x128xf32>
    %111 = math.exp %110 : vector<8x128xf32>
    %cst_43 = arith.constant 1.000000e+00 : f32
    %112 = vector.broadcast %cst_43 : f32 to vector<8x128xf32>
    %113 = arith.addf %112, %111 : vector<8x128xf32>
    %114 = arith.divf %112, %113 : vector<8x128xf32>
    %115 = arith.mulf %106, %80 : vector<8x128xf32>
    %116 = arith.mulf %100, %108 : vector<8x128xf32>
    %117 = arith.addf %115, %116 : vector<8x128xf32>
    %118 = math.tanh %117 : vector<8x128xf32>
    %119 = arith.mulf %114, %118 : vector<8x128xf32>
    %c8_i32_44 = arith.constant 8 : i32
    %120 = arith.muli %c2_i32, %c8_i32_44 : i32
    %c0_i32_45 = arith.constant 0 : i32
    %121 = arith.addi %c0_i32_45, %120 : i32
    %122 = tpu.assume_multiple %121, 8 : i32
    %123 = arith.index_cast %122 : i32 to index
    %c0_46 = arith.constant 0 : index
    %124 = vector.load %arg15[%123, %c0_46] : memref<32x128xf32, #tpu.memory_space<vmem>>, vector<8x128xf32>
    tpu.vector_store %arg15[%123, %c0_46], %119 {strides = array<i32>} : memref<32x128xf32, #tpu.memory_space<vmem>>, vector<8x128xf32>,
    %c3_i32 = arith.constant 3 : i32
    %c8_i32_47 = arith.constant 8 : i32
    %125 = arith.muli %c3_i32, %c8_i32_47 : i32
    %126 = tpu.assume_multiple %125, 8 : i32
    %127 = arith.index_cast %126 : i32 to index
    %c0_48 = arith.constant 0 : index
    %128 = vector.load %arg13[%127, %c0_48] : memref<32x512xf32, #tpu.memory_space<vmem>>, vector<8x512xf32>
    %c0_49 = arith.constant 0 : index
    %c0_50 = arith.constant 0 : index
    %129 = vector.load %arg5[%c0_49, %c0_50] : memref<128x512xf32, #tpu.memory_space<vmem>>, vector<128x512xf32>
    %cst_51 = arith.constant dense<0.000000e+00> : vector<8x512xf32>
    %130 = tpu.matmul %119, %129, %cst_51 {dimension_numbers = #tpu.dot_dimension_numbers<[1], [0], [0], [1], [0, 0, 1, 1], [], []>} : vector<8x128xf32>, vector<128x512xf32>, vector<8x512xf32> -> vector<8x512xf32>
    %131 = arith.addf %128, %130 : vector<8x512xf32>
    %132 = vector.extract_strided_slice %131 {offsets = [0, 0], sizes = [8, 128], strides = [1, 1]} : vector<8x512xf32> to vector<8x128xf32>
    %133 = arith.negf %132 : vector<8x128xf32>
    %134 = math.exp %133 : vector<8x128xf32>
    %cst_52 = arith.constant 1.000000e+00 : f32
    %135 = vector.broadcast %cst_52 : f32 to vector<8x128xf32>
    %136 = arith.addf %135, %134 : vector<8x128xf32>
    %137 = arith.divf %135, %136 : vector<8x128xf32>
    %138 = vector.extract_strided_slice %131 {offsets = [0, 128], sizes = [8, 128], strides = [1, 1]} : vector<8x512xf32> to vector<8x128xf32>
    %139 = arith.negf %138 : vector<8x128xf32>
    %140 = math.exp %139 : vector<8x128xf32>
    %cst_53 = arith.constant 1.000000e+00 : f32
    %141 = vector.broadcast %cst_53 : f32 to vector<8x128xf32>
    %142 = arith.addf %141, %140 : vector<8x128xf32>
    %143 = arith.divf %141, %142 : vector<8x128xf32>
    %144 = vector.extract_strided_slice %131 {offsets = [0, 256], sizes = [8, 128], strides = [1, 1]} : vector<8x512xf32> to vector<8x128xf32>
    %145 = math.tanh %144 : vector<8x128xf32>
    %146 = vector.extract_strided_slice %131 {offsets = [0, 384], sizes = [8, 128], strides = [1, 1]} : vector<8x512xf32> to vector<8x128xf32>
    %147 = arith.negf %146 : vector<8x128xf32>
    %148 = math.exp %147 : vector<8x128xf32>
    %cst_54 = arith.constant 1.000000e+00 : f32
    %149 = vector.broadcast %cst_54 : f32 to vector<8x128xf32>
    %150 = arith.addf %149, %148 : vector<8x128xf32>
    %151 = arith.divf %149, %150 : vector<8x128xf32>
    %152 = arith.mulf %143, %117 : vector<8x128xf32>
    %153 = arith.mulf %137, %145 : vector<8x128xf32>
    %154 = arith.addf %152, %153 : vector<8x128xf32>
    %155 = math.tanh %154 : vector<8x128xf32>
    %156 = arith.mulf %151, %155 : vector<8x128xf32>
    %c8_i32_55 = arith.constant 8 : i32
    %157 = arith.muli %c3_i32, %c8_i32_55 : i32
    %c0_i32_56 = arith.constant 0 : i32
    %158 = arith.addi %c0_i32_56, %157 : i32
    %159 = tpu.assume_multiple %158, 8 : i32
    %160 = arith.index_cast %159 : i32 to index
    %c0_57 = arith.constant 0 : index
    %161 = vector.load %arg15[%160, %c0_57] : memref<32x128xf32, #tpu.memory_space<vmem>>, vector<8x128xf32>
    tpu.vector_store %arg15[%160, %c0_57], %156 {strides = array<i32>} : memref<32x128xf32, #tpu.memory_space<vmem>>, vector<8x128xf32>,
    %c4_i32 = arith.constant 4 : i32
    %c0_58 = arith.constant 0 : index
    %c0_59 = arith.constant 0 : index
    %c0_60 = arith.constant 0 : index
    %162 = vector.load %arg11[%c0_58, %c0_59, %c0_60] : memref<2x8x128xf32, #tpu.memory_space<vmem>>, vector<1x8x128xf32>
    %163 = vector.shape_cast %162 : vector<1x8x128xf32> to vector<8x128xf32>
    %164 = vector.shape_cast %156 : vector<8x128xf32> to vector<1x8x128xf32>
    tpu.vector_store %arg11[%c0_58, %c0_59, %c0_60], %164 {strides = array<i32>} : memref<2x8x128xf32, #tpu.memory_space<vmem>>, vector<1x8x128xf32>,
    %c0_61 = arith.constant 0 : index
    %c0_62 = arith.constant 0 : index
    %c0_63 = arith.constant 0 : index
    %165 = vector.load %arg12[%c0_61, %c0_62, %c0_63] : memref<2x8x128xf32, #tpu.memory_space<vmem>>, vector<1x8x128xf32>
    %166 = vector.shape_cast %165 : vector<1x8x128xf32> to vector<8x128xf32>
    %167 = vector.shape_cast %154 : vector<8x128xf32> to vector<1x8x128xf32>
    tpu.vector_store %arg12[%c0_61, %c0_62, %c0_63], %167 {strides = array<i32>} : memref<2x8x128xf32, #tpu.memory_space<vmem>>, vector<1x8x128xf32>,
    %c0_64 = arith.constant 0 : index
    %c0_65 = arith.constant 0 : index
    %168 = vector.load %arg15[%c0_64, %c0_65] : memref<32x128xf32, #tpu.memory_space<vmem>>, vector<32x128xf32>
    %c0_66 = arith.constant 0 : index
    %c0_67 = arith.constant 0 : index
    %169 = vector.load %arg7[%c0_66, %c0_67] : memref<128x512xf32, #tpu.memory_space<vmem>>, vector<128x512xf32>
    %cst_68 = arith.constant dense<0.000000e+00> : vector<32x512xf32>
    %170 = tpu.matmul %168, %169, %cst_68 {dimension_numbers = #tpu.dot_dimension_numbers<[1], [0], [0], [1], [0, 0, 1, 1], [], []>} : vector<32x128xf32>, vector<128x512xf32>, vector<32x512xf32> -> vector<32x512xf32>
    %c0_69 = arith.constant 0 : index
    %c0_70 = arith.constant 0 : index
    %171 = vector.load %arg9[%c0_69, %c0_70] : memref<1x512xf32, #tpu.memory_space<vmem>>, vector<1x512xf32>
    %172 = vector.broadcast %171 : vector<1x512xf32> to vector<32x512xf32>
    %173 = arith.addf %170, %172 : vector<32x512xf32>
    %c0_71 = arith.constant 0 : index
    %c0_72 = arith.constant 0 : index
    %174 = vector.load %arg13[%c0_71, %c0_72] : memref<32x512xf32, #tpu.memory_space<vmem>>, vector<32x512xf32>
    tpu.vector_store %arg13[%c0_71, %c0_72], %173 {strides = array<i32>} : memref<32x512xf32, #tpu.memory_space<vmem>>, vector<32x512xf32>,
    %c1 = arith.constant 1 : index
    %c0_73 = arith.constant 0 : index
    %c0_74 = arith.constant 0 : index
    %175 = vector.load %arg11[%c1, %c0_73, %c0_74] : memref<2x8x128xf32, #tpu.memory_space<vmem>>, vector<1x8x128xf32>
    %176 = vector.shape_cast %175 : vector<1x8x128xf32> to vector<8x128xf32>
    %c1_75 = arith.constant 1 : index
    %c0_76 = arith.constant 0 : index
    %c0_77 = arith.constant 0 : index
    %177 = vector.load %arg12[%c1_75, %c0_76, %c0_77] : memref<2x8x128xf32, #tpu.memory_space<vmem>>, vector<1x8x128xf32>
    %178 = vector.shape_cast %177 : vector<1x8x128xf32> to vector<8x128xf32>
    %c0_i32_78 = arith.constant 0 : i32
    %c8_i32_79 = arith.constant 8 : i32
    %179 = arith.muli %c0_i32_78, %c8_i32_79 : i32
    %180 = tpu.assume_multiple %179, 8 : i32
    %181 = arith.index_cast %180 : i32 to index
    %c0_80 = arith.constant 0 : index
    %182 = vector.load %arg13[%181, %c0_80] : memref<32x512xf32, #tpu.memory_space<vmem>>, vector<8x512xf32>
    %c0_81 = arith.constant 0 : index
    %c0_82 = arith.constant 0 : index
    %183 = vector.load %arg8[%c0_81, %c0_82] : memref<128x512xf32, #tpu.memory_space<vmem>>, vector<128x512xf32>
    %cst_83 = arith.constant dense<0.000000e+00> : vector<8x512xf32>
    %184 = tpu.matmul %176, %183, %cst_83 {dimension_numbers = #tpu.dot_dimension_numbers<[1], [0], [0], [1], [0, 0, 1, 1], [], []>} : vector<8x128xf32>, vector<128x512xf32>, vector<8x512xf32> -> vector<8x512xf32>
    %185 = arith.addf %182, %184 : vector<8x512xf32>
    %186 = vector.extract_strided_slice %185 {offsets = [0, 0], sizes = [8, 128], strides = [1, 1]} : vector<8x512xf32> to vector<8x128xf32>
    %187 = arith.negf %186 : vector<8x128xf32>
    %188 = math.exp %187 : vector<8x128xf32>
    %cst_84 = arith.constant 1.000000e+00 : f32
    %189 = vector.broadcast %cst_84 : f32 to vector<8x128xf32>
    %190 = arith.addf %189, %188 : vector<8x128xf32>
    %191 = arith.divf %189, %190 : vector<8x128xf32>
    %192 = vector.extract_strided_slice %185 {offsets = [0, 128], sizes = [8, 128], strides = [1, 1]} : vector<8x512xf32> to vector<8x128xf32>
    %193 = arith.negf %192 : vector<8x128xf32>
    %194 = math.exp %193 : vector<8x128xf32>
    %cst_85 = arith.constant 1.000000e+00 : f32
    %195 = vector.broadcast %cst_85 : f32 to vector<8x128xf32>
    %196 = arith.addf %195, %194 : vector<8x128xf32>
    %197 = arith.divf %195, %196 : vector<8x128xf32>
    %198 = vector.extract_strided_slice %185 {offsets = [0, 256], sizes = [8, 128], strides = [1, 1]} : vector<8x512xf32> to vector<8x128xf32>
    %199 = math.tanh %198 : vector<8x128xf32>
    %200 = vector.extract_strided_slice %185 {offsets = [0, 384], sizes = [8, 128], strides = [1, 1]} : vector<8x512xf32> to vector<8x128xf32>
    %201 = arith.negf %200 : vector<8x128xf32>
    %202 = math.exp %201 : vector<8x128xf32>
    %cst_86 = arith.constant 1.000000e+00 : f32
    %203 = vector.broadcast %cst_86 : f32 to vector<8x128xf32>
    %204 = arith.addf %203, %202 : vector<8x128xf32>
    %205 = arith.divf %203, %204 : vector<8x128xf32>
    %206 = arith.mulf %197, %178 : vector<8x128xf32>
    %207 = arith.mulf %191, %199 : vector<8x128xf32>
    %208 = arith.addf %206, %207 : vector<8x128xf32>
    %209 = math.tanh %208 : vector<8x128xf32>
    %210 = arith.mulf %205, %209 : vector<8x128xf32>
    %c8_i32_87 = arith.constant 8 : i32
    %211 = arith.muli %c0_i32_78, %c8_i32_87 : i32
    %c0_i32_88 = arith.constant 0 : i32
    %212 = arith.addi %c0_i32_88, %211 : i32
    %213 = tpu.assume_multiple %212, 8 : i32
    %214 = arith.index_cast %213 : i32 to index
    %c0_89 = arith.constant 0 : index
    %215 = vector.load %arg15[%214, %c0_89] : memref<32x128xf32, #tpu.memory_space<vmem>>, vector<8x128xf32>
    tpu.vector_store %arg15[%214, %c0_89], %210 {strides = array<i32>} : memref<32x128xf32, #tpu.memory_space<vmem>>, vector<8x128xf32>,
    %c1_i32_90 = arith.constant 1 : i32
    %c8_i32_91 = arith.constant 8 : i32
    %216 = arith.muli %c1_i32_90, %c8_i32_91 : i32
    %217 = tpu.assume_multiple %216, 8 : i32
    %218 = arith.index_cast %217 : i32 to index
    %c0_92 = arith.constant 0 : index
    %219 = vector.load %arg13[%218, %c0_92] : memref<32x512xf32, #tpu.memory_space<vmem>>, vector<8x512xf32>
    %c0_93 = arith.constant 0 : index
    %c0_94 = arith.constant 0 : index
    %220 = vector.load %arg8[%c0_93, %c0_94] : memref<128x512xf32, #tpu.memory_space<vmem>>, vector<128x512xf32>
    %cst_95 = arith.constant dense<0.000000e+00> : vector<8x512xf32>
    %221 = tpu.matmul %210, %220, %cst_95 {dimension_numbers = #tpu.dot_dimension_numbers<[1], [0], [0], [1], [0, 0, 1, 1], [], []>} : vector<8x128xf32>, vector<128x512xf32>, vector<8x512xf32> -> vector<8x512xf32>
    %222 = arith.addf %219, %221 : vector<8x512xf32>
    %223 = vector.extract_strided_slice %222 {offsets = [0, 0], sizes = [8, 128], strides = [1, 1]} : vector<8x512xf32> to vector<8x128xf32>
    %224 = arith.negf %223 : vector<8x128xf32>
    %225 = math.exp %224 : vector<8x128xf32>
    %cst_96 = arith.constant 1.000000e+00 : f32
    %226 = vector.broadcast %cst_96 : f32 to vector<8x128xf32>
    %227 = arith.addf %226, %225 : vector<8x128xf32>
    %228 = arith.divf %226, %227 : vector<8x128xf32>
    %229 = vector.extract_strided_slice %222 {offsets = [0, 128], sizes = [8, 128], strides = [1, 1]} : vector<8x512xf32> to vector<8x128xf32>
    %230 = arith.negf %229 : vector<8x128xf32>
    %231 = math.exp %230 : vector<8x128xf32>
    %cst_97 = arith.constant 1.000000e+00 : f32
    %232 = vector.broadcast %cst_97 : f32 to vector<8x128xf32>
    %233 = arith.addf %232, %231 : vector<8x128xf32>
    %234 = arith.divf %232, %233 : vector<8x128xf32>
    %235 = vector.extract_strided_slice %222 {offsets = [0, 256], sizes = [8, 128], strides = [1, 1]} : vector<8x512xf32> to vector<8x128xf32>
    %236 = math.tanh %235 : vector<8x128xf32>
    %237 = vector.extract_strided_slice %222 {offsets = [0, 384], sizes = [8, 128], strides = [1, 1]} : vector<8x512xf32> to vector<8x128xf32>
    %238 = arith.negf %237 : vector<8x128xf32>
    %239 = math.exp %238 : vector<8x128xf32>
    %cst_98 = arith.constant 1.000000e+00 : f32
    %240 = vector.broadcast %cst_98 : f32 to vector<8x128xf32>
    %241 = arith.addf %240, %239 : vector<8x128xf32>
    %242 = arith.divf %240, %241 : vector<8x128xf32>
    %243 = arith.mulf %234, %208 : vector<8x128xf32>
    %244 = arith.mulf %228, %236 : vector<8x128xf32>
    %245 = arith.addf %243, %244 : vector<8x128xf32>
    %246 = math.tanh %245 : vector<8x128xf32>
    %247 = arith.mulf %242, %246 : vector<8x128xf32>
    %c8_i32_99 = arith.constant 8 : i32
    %248 = arith.muli %c1_i32_90, %c8_i32_99 : i32
    %c0_i32_100 = arith.constant 0 : i32
    %249 = arith.addi %c0_i32_100, %248 : i32
    %250 = tpu.assume_multiple %249, 8 : i32
    %251 = arith.index_cast %250 : i32 to index
    %c0_101 = arith.constant 0 : index
    %252 = vector.load %arg15[%251, %c0_101] : memref<32x128xf32, #tpu.memory_space<vmem>>, vector<8x128xf32>
    tpu.vector_store %arg15[%251, %c0_101], %247 {strides = array<i32>} : memref<32x128xf32, #tpu.memory_space<vmem>>, vector<8x128xf32>,
    %c2_i32_102 = arith.constant 2 : i32
    %c8_i32_103 = arith.constant 8 : i32
    %253 = arith.muli %c2_i32_102, %c8_i32_103 : i32
    %254 = tpu.assume_multiple %253, 8 : i32
    %255 = arith.index_cast %254 : i32 to index
    %c0_104 = arith.constant 0 : index
    %256 = vector.load %arg13[%255, %c0_104] : memref<32x512xf32, #tpu.memory_space<vmem>>, vector<8x512xf32>
    %c0_105 = arith.constant 0 : index
    %c0_106 = arith.constant 0 : index
    %257 = vector.load %arg8[%c0_105, %c0_106] : memref<128x512xf32, #tpu.memory_space<vmem>>, vector<128x512xf32>
    %cst_107 = arith.constant dense<0.000000e+00> : vector<8x512xf32>
    %258 = tpu.matmul %247, %257, %cst_107 {dimension_numbers = #tpu.dot_dimension_numbers<[1], [0], [0], [1], [0, 0, 1, 1], [], []>} : vector<8x128xf32>, vector<128x512xf32>, vector<8x512xf32> -> vector<8x512xf32>
    %259 = arith.addf %256, %258 : vector<8x512xf32>
    %260 = vector.extract_strided_slice %259 {offsets = [0, 0], sizes = [8, 128], strides = [1, 1]} : vector<8x512xf32> to vector<8x128xf32>
    %261 = arith.negf %260 : vector<8x128xf32>
    %262 = math.exp %261 : vector<8x128xf32>
    %cst_108 = arith.constant 1.000000e+00 : f32
    %263 = vector.broadcast %cst_108 : f32 to vector<8x128xf32>
    %264 = arith.addf %263, %262 : vector<8x128xf32>
    %265 = arith.divf %263, %264 : vector<8x128xf32>
    %266 = vector.extract_strided_slice %259 {offsets = [0, 128], sizes = [8, 128], strides = [1, 1]} : vector<8x512xf32> to vector<8x128xf32>
    %267 = arith.negf %266 : vector<8x128xf32>
    %268 = math.exp %267 : vector<8x128xf32>
    %cst_109 = arith.constant 1.000000e+00 : f32
    %269 = vector.broadcast %cst_109 : f32 to vector<8x128xf32>
    %270 = arith.addf %269, %268 : vector<8x128xf32>
    %271 = arith.divf %269, %270 : vector<8x128xf32>
    %272 = vector.extract_strided_slice %259 {offsets = [0, 256], sizes = [8, 128], strides = [1, 1]} : vector<8x512xf32> to vector<8x128xf32>
    %273 = math.tanh %272 : vector<8x128xf32>
    %274 = vector.extract_strided_slice %259 {offsets = [0, 384], sizes = [8, 128], strides = [1, 1]} : vector<8x512xf32> to vector<8x128xf32>
    %275 = arith.negf %274 : vector<8x128xf32>
    %276 = math.exp %275 : vector<8x128xf32>
    %cst_110 = arith.constant 1.000000e+00 : f32
    %277 = vector.broadcast %cst_110 : f32 to vector<8x128xf32>
    %278 = arith.addf %277, %276 : vector<8x128xf32>
    %279 = arith.divf %277, %278 : vector<8x128xf32>
    %280 = arith.mulf %271, %245 : vector<8x128xf32>
    %281 = arith.mulf %265, %273 : vector<8x128xf32>
    %282 = arith.addf %280, %281 : vector<8x128xf32>
    %283 = math.tanh %282 : vector<8x128xf32>
    %284 = arith.mulf %279, %283 : vector<8x128xf32>
    %c8_i32_111 = arith.constant 8 : i32
    %285 = arith.muli %c2_i32_102, %c8_i32_111 : i32
    %c0_i32_112 = arith.constant 0 : i32
    %286 = arith.addi %c0_i32_112, %285 : i32
    %287 = tpu.assume_multiple %286, 8 : i32
    %288 = arith.index_cast %287 : i32 to index
    %c0_113 = arith.constant 0 : index
    %289 = vector.load %arg15[%288, %c0_113] : memref<32x128xf32, #tpu.memory_space<vmem>>, vector<8x128xf32>
    tpu.vector_store %arg15[%288, %c0_113], %284 {strides = array<i32>} : memref<32x128xf32, #tpu.memory_space<vmem>>, vector<8x128xf32>,
    %c3_i32_114 = arith.constant 3 : i32
    %c8_i32_115 = arith.constant 8 : i32
    %290 = arith.muli %c3_i32_114, %c8_i32_115 : i32
    %291 = tpu.assume_multiple %290, 8 : i32
    %292 = arith.index_cast %291 : i32 to index
    %c0_116 = arith.constant 0 : index
    %293 = vector.load %arg13[%292, %c0_116] : memref<32x512xf32, #tpu.memory_space<vmem>>, vector<8x512xf32>
    %c0_117 = arith.constant 0 : index
    %c0_118 = arith.constant 0 : index
    %294 = vector.load %arg8[%c0_117, %c0_118] : memref<128x512xf32, #tpu.memory_space<vmem>>, vector<128x512xf32>
    %cst_119 = arith.constant dense<0.000000e+00> : vector<8x512xf32>
    %295 = tpu.matmul %284, %294, %cst_119 {dimension_numbers = #tpu.dot_dimension_numbers<[1], [0], [0], [1], [0, 0, 1, 1], [], []>} : vector<8x128xf32>, vector<128x512xf32>, vector<8x512xf32> -> vector<8x512xf32>
    %296 = arith.addf %293, %295 : vector<8x512xf32>
    %297 = vector.extract_strided_slice %296 {offsets = [0, 0], sizes = [8, 128], strides = [1, 1]} : vector<8x512xf32> to vector<8x128xf32>
    %298 = arith.negf %297 : vector<8x128xf32>
    %299 = math.exp %298 : vector<8x128xf32>
    %cst_120 = arith.constant 1.000000e+00 : f32
    %300 = vector.broadcast %cst_120 : f32 to vector<8x128xf32>
    %301 = arith.addf %300, %299 : vector<8x128xf32>
    %302 = arith.divf %300, %301 : vector<8x128xf32>
    %303 = vector.extract_strided_slice %296 {offsets = [0, 128], sizes = [8, 128], strides = [1, 1]} : vector<8x512xf32> to vector<8x128xf32>
    %304 = arith.negf %303 : vector<8x128xf32>
    %305 = math.exp %304 : vector<8x128xf32>
    %cst_121 = arith.constant 1.000000e+00 : f32
    %306 = vector.broadcast %cst_121 : f32 to vector<8x128xf32>
    %307 = arith.addf %306, %305 : vector<8x128xf32>
    %308 = arith.divf %306, %307 : vector<8x128xf32>
    %309 = vector.extract_strided_slice %296 {offsets = [0, 256], sizes = [8, 128], strides = [1, 1]} : vector<8x512xf32> to vector<8x128xf32>
    %310 = math.tanh %309 : vector<8x128xf32>
    %311 = vector.extract_strided_slice %296 {offsets = [0, 384], sizes = [8, 128], strides = [1, 1]} : vector<8x512xf32> to vector<8x128xf32>
    %312 = arith.negf %311 : vector<8x128xf32>
    %313 = math.exp %312 : vector<8x128xf32>
    %cst_122 = arith.constant 1.000000e+00 : f32
    %314 = vector.broadcast %cst_122 : f32 to vector<8x128xf32>
    %315 = arith.addf %314, %313 : vector<8x128xf32>
    %316 = arith.divf %314, %315 : vector<8x128xf32>
    %317 = arith.mulf %308, %282 : vector<8x128xf32>
    %318 = arith.mulf %302, %310 : vector<8x128xf32>
    %319 = arith.addf %317, %318 : vector<8x128xf32>
    %320 = math.tanh %319 : vector<8x128xf32>
    %321 = arith.mulf %316, %320 : vector<8x128xf32>
    %c8_i32_123 = arith.constant 8 : i32
    %322 = arith.muli %c3_i32_114, %c8_i32_123 : i32
    %c0_i32_124 = arith.constant 0 : i32
    %323 = arith.addi %c0_i32_124, %322 : i32
    %324 = tpu.assume_multiple %323, 8 : i32
    %325 = arith.index_cast %324 : i32 to index
    %c0_125 = arith.constant 0 : index
    %326 = vector.load %arg15[%325, %c0_125] : memref<32x128xf32, #tpu.memory_space<vmem>>, vector<8x128xf32>
    tpu.vector_store %arg15[%325, %c0_125], %321 {strides = array<i32>} : memref<32x128xf32, #tpu.memory_space<vmem>>, vector<8x128xf32>,
    %c4_i32_126 = arith.constant 4 : i32
    %c1_127 = arith.constant 1 : index
    %c0_128 = arith.constant 0 : index
    %c0_129 = arith.constant 0 : index
    %327 = vector.load %arg11[%c1_127, %c0_128, %c0_129] : memref<2x8x128xf32, #tpu.memory_space<vmem>>, vector<1x8x128xf32>
    %328 = vector.shape_cast %327 : vector<1x8x128xf32> to vector<8x128xf32>
    %329 = vector.shape_cast %321 : vector<8x128xf32> to vector<1x8x128xf32>
    tpu.vector_store %arg11[%c1_127, %c0_128, %c0_129], %329 {strides = array<i32>} : memref<2x8x128xf32, #tpu.memory_space<vmem>>, vector<1x8x128xf32>,
    %c1_130 = arith.constant 1 : index
    %c0_131 = arith.constant 0 : index
    %c0_132 = arith.constant 0 : index
    %330 = vector.load %arg12[%c1_130, %c0_131, %c0_132] : memref<2x8x128xf32, #tpu.memory_space<vmem>>, vector<1x8x128xf32>
    %331 = vector.shape_cast %330 : vector<1x8x128xf32> to vector<8x128xf32>
    %332 = vector.shape_cast %319 : vector<8x128xf32> to vector<1x8x128xf32>
    tpu.vector_store %arg12[%c1_130, %c0_131, %c0_132], %332 {strides = array<i32>} : memref<2x8x128xf32, #tpu.memory_space<vmem>>, vector<1x8x128xf32>,
    %c0_133 = arith.constant 0 : index
    %c0_134 = arith.constant 0 : index
    %333 = vector.load %arg2[%c0_133, %c0_134] : memref<8x1xi32, #tpu.memory_space<vmem>>, vector<8x1xi32>
    %c1_i32_135 = arith.constant 1 : i32
    %334 = vector.broadcast %c1_i32_135 : i32 to vector<8x1xi32>
    %335 = arith.subi %333, %334 : vector<8x1xi32>
    %c4_i32_136 = arith.constant 4 : i32
    %336 = arith.muli %arg1, %c4_i32_136 : i32
    %337 = vector.broadcast %336 : i32 to vector<8x1xi32>
    %338 = arith.subi %335, %337 : vector<8x1xi32>
    %339 = vector.shape_cast %338 : vector<8x1xi32> to vector<8x1xi32>
    %340 = vector.broadcast %339 : vector<8x1xi32> to vector<8x128xi32>
    %c0_137 = arith.constant 0 : index
    %c0_138 = arith.constant 0 : index
    %341 = vector.load %arg10[%c0_137, %c0_138] : memref<8x128xf32, #tpu.memory_space<vmem>>, vector<8x128xf32>
    %c0_i32_139 = arith.constant 0 : i32
    %c8_i32_140 = arith.constant 8 : i32
    %342 = arith.muli %c0_i32_139, %c8_i32_140 : i32
    %343 = tpu.assume_multiple %342, 8 : i32
    %344 = arith.index_cast %343 : i32 to index
    %c0_141 = arith.constant 0 : index
    %345 = vector.load %arg15[%344, %c0_141] : memref<32x128xf32, #tpu.memory_space<vmem>>, vector<8x128xf32>
    %346 = vector.broadcast %c0_i32_139 : i32 to vector<8x128xi32>
    %347 = arith.cmpi eq, %340, %346 : vector<8x128xi32>
    %348 = arith.select %347, %345, %341 : vector<8x128xi1>, vector<8x128xf32>
    %c1_i32_142 = arith.constant 1 : i32
    %c8_i32_143 = arith.constant 8 : i32
    %349 = arith.muli %c1_i32_142, %c8_i32_143 : i32
    %350 = tpu.assume_multiple %349, 8 : i32
    %351 = arith.index_cast %350 : i32 to index
    %c0_144 = arith.constant 0 : index
    %352 = vector.load %arg15[%351, %c0_144] : memref<32x128xf32, #tpu.memory_space<vmem>>, vector<8x128xf32>
    %353 = vector.broadcast %c1_i32_142 : i32 to vector<8x128xi32>
    %354 = arith.cmpi eq, %340, %353 : vector<8x128xi32>
    %355 = arith.select %354, %352, %348 : vector<8x128xi1>, vector<8x128xf32>
    %c2_i32_145 = arith.constant 2 : i32
    %c8_i32_146 = arith.constant 8 : i32
    %356 = arith.muli %c2_i32_145, %c8_i32_146 : i32
    %357 = tpu.assume_multiple %356, 8 : i32
    %358 = arith.index_cast %357 : i32 to index
    %c0_147 = arith.constant 0 : index
    %359 = vector.load %arg15[%358, %c0_147] : memref<32x128xf32, #tpu.memory_space<vmem>>, vector<8x128xf32>
    %360 = vector.broadcast %c2_i32_145 : i32 to vector<8x128xi32>
    %361 = arith.cmpi eq, %340, %360 : vector<8x128xi32>
    %362 = arith.select %361, %359, %355 : vector<8x128xi1>, vector<8x128xf32>
    %c3_i32_148 = arith.constant 3 : i32
    %c8_i32_149 = arith.constant 8 : i32
    %363 = arith.muli %c3_i32_148, %c8_i32_149 : i32
    %364 = tpu.assume_multiple %363, 8 : i32
    %365 = arith.index_cast %364 : i32 to index
    %c0_150 = arith.constant 0 : index
    %366 = vector.load %arg15[%365, %c0_150] : memref<32x128xf32, #tpu.memory_space<vmem>>, vector<8x128xf32>
    %367 = vector.broadcast %c3_i32_148 : i32 to vector<8x128xi32>
    %368 = arith.cmpi eq, %340, %367 : vector<8x128xi32>
    %369 = arith.select %368, %366, %362 : vector<8x128xi1>, vector<8x128xf32>
    %c4_i32_151 = arith.constant 4 : i32
    %c0_152 = arith.constant 0 : index
    %c0_153 = arith.constant 0 : index
    %370 = vector.load %arg10[%c0_152, %c0_153] : memref<8x128xf32, #tpu.memory_space<vmem>>, vector<8x128xf32>
    tpu.vector_store %arg10[%c0_152, %c0_153], %369 {strides = array<i32>} : memref<8x128xf32, #tpu.memory_space<vmem>>, vector<8x128xf32>,
    return
  }
  func.func @transform_0(%arg0: i32, %arg1: i32) -> (i32, i32) {
    %c0_i32 = arith.constant 0 : i32
    %c0_i32_0 = arith.constant 0 : i32
    return %arg0, %c0_i32 : i32, i32
  }
  func.func @transform_1(%arg0: i32, %arg1: i32) -> (i32, i32) {
    %c2_i32 = arith.constant 2 : i32
    %0 = arith.muli %arg0, %c2_i32 : i32
    %1 = arith.addi %0, %arg1 : i32
    %c0_i32 = arith.constant 0 : i32
    %c0_i32_0 = arith.constant 0 : i32
    return %1, %c0_i32 : i32, i32
  }
  func.func @transform_2(%arg0: i32, %arg1: i32) -> (i32, i32) {
    %c0_i32 = arith.constant 0 : i32
    %c0_i32_0 = arith.constant 0 : i32
    %c0_i32_1 = arith.constant 0 : i32
    return %c0_i32, %c0_i32_0 : i32, i32
  }
  func.func @transform_3(%arg0: i32, %arg1: i32) -> (i32, i32) {
    %c0_i32 = arith.constant 0 : i32
    %c0_i32_0 = arith.constant 0 : i32
    %c0_i32_1 = arith.constant 0 : i32
    return %c0_i32, %c0_i32_0 : i32, i32
  }
  func.func @transform_4(%arg0: i32, %arg1: i32) -> (i32, i32) {
    %c0_i32 = arith.constant 0 : i32
    %c0_i32_0 = arith.constant 0 : i32
    %c0_i32_1 = arith.constant 0 : i32
    return %c0_i32, %c0_i32_0 : i32, i32
  }
  func.func @transform_5(%arg0: i32, %arg1: i32) -> (i32, i32) {
    %c0_i32 = arith.constant 0 : i32
    %c0_i32_0 = arith.constant 0 : i32
    %c0_i32_1 = arith.constant 0 : i32
    return %c0_i32, %c0_i32_0 : i32, i32
  }
  func.func @transform_6(%arg0: i32, %arg1: i32) -> (i32, i32) {
    %c0_i32 = arith.constant 0 : i32
    %c0_i32_0 = arith.constant 0 : i32
    %c0_i32_1 = arith.constant 0 : i32
    return %c0_i32, %c0_i32_0 : i32, i32
  }
  func.func @transform_7(%arg0: i32, %arg1: i32) -> (i32, i32) {
    %c0_i32 = arith.constant 0 : i32
    %c0_i32_0 = arith.constant 0 : i32
    %c0_i32_1 = arith.constant 0 : i32
    return %c0_i32, %c0_i32_0 : i32, i32
  }
  func.func @transform_8(%arg0: i32, %arg1: i32) -> (i32, i32) {
    %c0_i32 = arith.constant 0 : i32
    %c0_i32_0 = arith.constant 0 : i32
    return %arg0, %c0_i32 : i32, i32
  }
}

module attributes {stable_mosaic.version = 11 : i64} {
  func.func @kernel(%arg0: i32, %arg1: i32, %arg2: memref<8x1xi32, #tpu.memory_space<vmem>>, %arg3: memref<32x16xf32, #tpu.memory_space<vmem>>, %arg4: memref<16x512xf32, #tpu.memory_space<vmem>>, %arg5: memref<128x512xf32, #tpu.memory_space<vmem>>, %arg6: memref<1x512xf32, #tpu.memory_space<vmem>>, %arg7: memref<128x512xf32, #tpu.memory_space<vmem>>, %arg8: memref<128x512xf32, #tpu.memory_space<vmem>>, %arg9: memref<1x512xf32, #tpu.memory_space<vmem>>, %arg10: memref<8x128xf32, #tpu.memory_space<vmem>>, %arg11: memref<2x8x128xf32, #tpu.memory_space<vmem>>, %arg12: memref<2x8x128xf32, #tpu.memory_space<vmem>>, %arg13: memref<32x512xf32, #tpu.memory_space<vmem>>, %arg14: memref<32x512xf32, #tpu.memory_space<vmem>>, %arg15: memref<32x128xf32, #tpu.memory_space<vmem>>) attributes {dimension_semantics = [#tpu.dimension_semantics<parallel>, #tpu.dimension_semantics<arbitrary>], iteration_bounds = array<i64: 1, 2>, scalar_prefetch = 0 : i64, scratch_operands = 5 : i64, tpu.core_type = #tpu.core_type<tc>, window_params = [{transform_indices = @transform_0, window_bounds = array<i64: 8, 1>}, {transform_indices = @transform_1, window_bounds = array<i64: 32, 16>}, {pipeline_mode = #tpu.pipeline_mode<synchronous>, transform_indices = @transform_2, window_bounds = array<i64: 16, 512>}, {pipeline_mode = #tpu.pipeline_mode<synchronous>, transform_indices = @transform_3, window_bounds = array<i64: 128, 512>}, {pipeline_mode = #tpu.pipeline_mode<synchronous>, transform_indices = @transform_4, window_bounds = array<i64: 1, 512>}, {pipeline_mode = #tpu.pipeline_mode<synchronous>, transform_indices = @transform_5, window_bounds = array<i64: 128, 512>}, {pipeline_mode = #tpu.pipeline_mode<synchronous>, transform_indices = @transform_6, window_bounds = array<i64: 128, 512>}, {pipeline_mode = #tpu.pipeline_mode<synchronous>, transform_indices = @transform_7, window_bounds = array<i64: 1, 512>}, {transform_indices = @transform_8, window_bounds = array<i64: 8, 128>}]} {
    %c0_i32 = arith.constant 0 : i32
    %0 = arith.cmpi eq, %arg1, %c0_i32 : i32
    %1 = arith.extui %0 : i1 to i32
    %c0_i32_0 = arith.constant 0 : i32
    %2 = arith.cmpi ne, %1, %c0_i32_0 : i32
    scf.if %2 {
      %cst_154 = arith.constant 0.000000e+00 : f32
      %371 = vector.broadcast %cst_154 : f32 to vector<2x8x128xf32>
      %c0_155 = arith.constant 0 : index
      %c0_156 = arith.constant 0 : index
      %c0_157 = arith.constant 0 : index
      %372 = vector.load %arg11[%c0_155, %c0_156, %c0_157] : memref<2x8x128xf32, #tpu.memory_space<vmem>>, vector<2x8x128xf32>
      tpu.vector_store %arg11[%c0_155, %c0_156, %c0_157], %371 {strides = array<i32>} : memref<2x8x128xf32, #tpu.memory_space<vmem>>, vector<2x8x128xf32>,
      %cst_158 = arith.constant 0.000000e+00 : f32
      %373 = vector.broadcast %cst_158 : f32 to vector<2x8x128xf32>
      %c0_159 = arith.constant 0 : index
      %c0_160 = arith.constant 0 : index
      %c0_161 = arith.constant 0 : index
      %374 = vector.load %arg12[%c0_159, %c0_160, %c0_161] : memref<2x8x128xf32, #tpu.memory_space<vmem>>, vector<2x8x128xf32>
      tpu.vector_store %arg12[%c0_159, %c0_160, %c0_161], %373 {strides = array<i32>} : memref<2x8x128xf32, #tpu.memory_space<vmem>>, vector<2x8x128xf32>,
      %cst_162 = arith.constant 0.000000e+00 : f32
      %375 = vector.broadcast %cst_162 : f32 to vector<8x128xf32>
      %c0_163 = arith.constant 0 : index
      %c0_164 = arith.constant 0 : index
      %376 = vector.load %arg10[%c0_163, %c0_164] : memref<8x128xf32, #tpu.memory_space<vmem>>, vector<8x128xf32>
      tpu.vector_store %arg10[%c0_163, %c0_164], %375 {strides = array<i32>} : memref<8x128xf32, #tpu.memory_space<vmem>>, vector<8x128xf32>,
    } else {
    }
    %c0 = arith.constant 0 : index
    %c0_1 = arith.constant 0 : index
    %3 = vector.load %arg3[%c0, %c0_1] : memref<32x16xf32, #tpu.memory_space<vmem>>, vector<32x16xf32>
    %c0_2 = arith.constant 0 : index
    %c0_3 = arith.constant 0 : index
    %4 = vector.load %arg4[%c0_2, %c0_3] : memref<16x512xf32, #tpu.memory_space<vmem>>, vector<16x512xf32>
    %cst = arith.constant dense<0.000000e+00> : vector<32x512xf32>
    %5 = tpu.matmul %3, %4, %cst {dimension_numbers = #tpu.dot_dimension_numbers<[1], [0], [0], [1], [0, 0, 1, 1], [], []>} : vector<32x16xf32>, vector<16x512xf32>, vector<32x512xf32> -> vector<32x512xf32>
    %c0_4 = arith.constant 0 : index
    %c0_5 = arith.constant 0 : index
    %6 = vector.load %arg6[%c0_4, %c0_5] : memref<1x512xf32, #tpu.memory_space<vmem>>, vector<1x512xf32>
    %7 = vector.broadcast %6 : vector<1x512xf32> to vector<32x512xf32>
    %8 = arith.addf %5, %7 : vector<32x512xf32>
    %c0_6 = arith.constant 0 : index
    %c0_7 = arith.constant 0 : index
    %9 = vector.load %arg13[%c0_6, %c0_7] : memref<32x512xf32, #tpu.memory_space<vmem>>, vector<32x512xf32>
    tpu.vector_store %arg13[%c0_6, %c0_7], %8 {strides = array<i32>} : memref<32x512xf32, #tpu.memory_space<vmem>>, vector<32x512xf32>,
    %c0_8 = arith.constant 0 : index
    %c0_9 = arith.constant 0 : index
    %c0_10 = arith.constant 0 : index
    %10 = vector.load %arg11[%c0_8, %c0_9, %c0_10] : memref<2x8x128xf32, #tpu.memory_space<vmem>>, vector<1x8x128xf32>
    %11 = vector.shape_cast %10 : vector<1x8x128xf32> to vector<8x128xf32>
    %c0_11 = arith.constant 0 : index
    %c0_12 = arith.constant 0 : index
    %c0_13 = arith.constant 0 : index
    %12 = vector.load %arg12[%c0_11, %c0_12, %c0_13] : memref<2x8x128xf32, #tpu.memory_space<vmem>>, vector<1x8x128xf32>
    %13 = vector.shape_cast %12 : vector<1x8x128xf32> to vector<8x128xf32>
    %c0_i32_14 = arith.constant 0 : i32
    %c8_i32 = arith.constant 8 : i32
    %14 = arith.muli %c0_i32_14, %c8_i32 : i32
    %15 = tpu.assume_multiple %14, 8 : i32
    %16 = arith.index_cast %15 : i32 to index
    %c0_15 = arith.constant 0 : index
    %17 = vector.load %arg13[%16, %c0_15] : memref<32x512xf32, #tpu.memory_space<vmem>>, vector<8x512xf32>
    %c0_16 = arith.constant 0 : index
    %c0_17 = arith.constant 0 : index
    %18 = vector.load %arg5[%c0_16, %c0_17] : memref<128x512xf32, #tpu.memory_space<vmem>>, vector<128x512xf32>
    %cst_18 = arith.constant dense<0.000000e+00> : vector<8x512xf32>
    %19 = tpu.matmul %11, %18, %cst_18 {dimension_numbers = #tpu.dot_dimension_numbers<[1], [0], [0], [1], [0, 0, 1, 1], [], []>} : vector<8x128xf32>, vector<128x512xf32>, vector<8x512xf32> -> vector<8x512xf32>
    %20 = arith.addf %17, %19 : vector<8x512xf32>
    %21 = vector.extract_strided_slice %20 {offsets = [0, 0], sizes = [8, 128], strides = [1, 1]} : vector<8x512xf32> to vector<8x128xf32>
    %22 = arith.negf %21 : vector<8x128xf32>
    %23 = math.exp %22 : vector<8x128xf32>
    %cst_19 = arith.constant 1.000000e+00 : f32
    %24 = vector.broadcast %cst_19 : f32 to vector<8x128xf32>
    %25 = arith.addf %24, %23 : vector<8x128xf32>
    %26 = arith.divf %24, %25 : vector<8x128xf32>
    %27 = vector.extract_strided_slice %20 {offsets = [0, 128], sizes = [8, 128], strides = [1, 1]} : vector<8x512xf32> to vector<8x128xf32>
    %28 = arith.negf %27 : vector<8x128xf32>
    %29 = math.exp %28 : vector<8x128xf32>
    %cst_20 = arith.constant 1.000000e+00 : f32
    %30 = vector.broadcast %cst_20 : f32 to vector<8x128xf32>
    %31 = arith.addf %30, %29 : vector<8x128xf32>
    %32 = arith.divf %30, %31 : vector<8x128xf32>
    %33 = vector.extract_strided_slice %20 {offsets = [0, 256], sizes = [8, 128], strides = [1, 1]} : vector<8x512xf32> to vector<8x128xf32>
    %34 = math.tanh %33 : vector<8x128xf32>
    %35 = vector.extract_strided_slice %20 {offsets = [0, 384], sizes = [8, 128], strides = [1, 1]} : vector<8x512xf32> to vector<8x128xf32>
    %36 = arith.negf %35 : vector<8x128xf32>
    %37 = math.exp %36 : vector<8x128xf32>
    %cst_21 = arith.constant 1.000000e+00 : f32
    %38 = vector.broadcast %cst_21 : f32 to vector<8x128xf32>
    %39 = arith.addf %38, %37 : vector<8x128xf32>
    %40 = arith.divf %38, %39 : vector<8x128xf32>
    %41 = arith.mulf %32, %13 : vector<8x128xf32>
    %42 = arith.mulf %26, %34 : vector<8x128xf32>
    %43 = arith.addf %41, %42 : vector<8x128xf32>
    %44 = math.tanh %43 : vector<8x128xf32>
    %45 = arith.mulf %40, %44 : vector<8x128xf32>
    %c8_i32_22 = arith.constant 8 : i32
    %46 = arith.muli %c0_i32_14, %c8_i32_22 : i32
    %c0_i32_23 = arith.constant 0 : i32
    %47 = arith.addi %c0_i32_23, %46 : i32
    %48 = tpu.assume_multiple %47, 8 : i32
    %49 = arith.index_cast %48 : i32 to index
    %c0_24 = arith.constant 0 : index
    %50 = vector.load %arg15[%49, %c0_24] : memref<32x128xf32, #tpu.memory_space<vmem>>, vector<8x128xf32>
    tpu.vector_store %arg15[%49, %c0_24], %45 {strides = array<i32>} : memref<32x128xf32, #tpu.memory_space<vmem>>, vector<8x128xf32>,
    %c1_i32 = arith.constant 1 : i32
    %c8_i32_25 = arith.constant 8 : i32
    %51 = arith.muli %c1_i32, %c8_i32_25 : i32
    %52 = tpu.assume_multiple %51, 8 : i32
    %53 = arith.index_cast %52 : i32 to index
    %c0_26 = arith.constant 0 : index
    %54 = vector.load %arg13[%53, %c0_26] : memref<32x512xf32, #tpu.memory_space<vmem>>, vector<8x512xf32>
    %c0_27 = arith.constant 0 : index
    %c0_28 = arith.constant 0 : index
    %55 = vector.load %arg5[%c0_27, %c0_28] : memref<128x512xf32, #tpu.memory_space<vmem>>, vector<128x512xf32>
    %cst_29 = arith.constant dense<0.000000e+00> : vector<8x512xf32>
    %56 = tpu.matmul %45, %55, %cst_29 {dimension_numbers = #tpu.dot_dimension_numbers<[1], [0], [0], [1], [0, 0, 1, 1], [], []>} : vector<8x128xf32>, vector<128x512xf32>, vector<8x512xf32> -> vector<8x512xf32>
    %57 = arith.addf %54, %56 : vector<8x512xf32>
    %58 = vector.extract_strided_slice %57 {offsets = [0, 0], sizes = [8, 128], strides = [1, 1]} : vector<8x512xf32> to vector<8x128xf32>
    %59 = arith.negf %58 : vector<8x128xf32>
    %60 = math.exp %59 : vector<8x128xf32>
    %cst_30 = arith.constant 1.000000e+00 : f32
    %61 = vector.broadcast %cst_30 : f32 to vector<8x128xf32>
    %62 = arith.addf %61, %60 : vector<8x128xf32>
    %63 = arith.divf %61, %62 : vector<8x128xf32>
    %64 = vector.extract_strided_slice %57 {offsets = [0, 128], sizes = [8, 128], strides = [1, 1]} : vector<8x512xf32> to vector<8x128xf32>
    %65 = arith.negf %64 : vector<8x128xf32>
    %66 = math.exp %65 : vector<8x128xf32>
    %cst_31 = arith.constant 1.000000e+00 : f32
    %67 = vector.broadcast %cst_31 : f32 to vector<8x128xf32>
    %68 = arith.addf %67, %66 : vector<8x128xf32>
    %69 = arith.divf %67, %68 : vector<8x128xf32>
    %70 = vector.extract_strided_slice %57 {offsets = [0, 256], sizes = [8, 128], strides = [1, 1]} : vector<8x512xf32> to vector<8x128xf32>
    %71 = math.tanh %70 : vector<8x128xf32>
    %72 = vector.extract_strided_slice %57 {offsets = [0, 384], sizes = [8, 128], strides = [1, 1]} : vector<8x512xf32> to vector<8x128xf32>
    %73 = arith.negf %72 : vector<8x128xf32>
    %74 = math.exp %73 : vector<8x128xf32>
    %cst_32 = arith.constant 1.000000e+00 : f32
    %75 = vector.broadcast %cst_32 : f32 to vector<8x128xf32>
    %76 = arith.addf %75, %74 : vector<8x128xf32>
    %77 = arith.divf %75, %76 : vector<8x128xf32>
    %78 = arith.mulf %69, %43 : vector<8x128xf32>
    %79 = arith.mulf %63, %71 : vector<8x128xf32>
    %80 = arith.addf %78, %79 : vector<8x128xf32>
    %81 = math.tanh %80 : vector<8x128xf32>
    %82 = arith.mulf %77, %81 : vector<8x128xf32>
    %c8_i32_33 = arith.constant 8 : i32
    %83 = arith.muli %c1_i32, %c8_i32_33 : i32
    %c0_i32_34 = arith.constant 0 : i32
    %84 = arith.addi %c0_i32_34, %83 : i32
    %85 = tpu.assume_multiple %84, 8 : i32
    %86 = arith.index_cast %85 : i32 to index
    %c0_35 = arith.constant 0 : index
    %87 = vector.load %arg15[%86, %c0_35] : memref<32x128xf32, #tpu.memory_space<vmem>>, vector<8x128xf32>
    tpu.vector_store %arg15[%86, %c0_35], %82 {strides = array<i32>} : memref<32x128xf32, #tpu.memory_space<vmem>>, vector<8x128xf32>,
    %c2_i32 = arith.constant 2 : i32
    %c8_i32_36 = arith.constant 8 : i32
    %88 = arith.muli %c2_i32, %c8_i32_36 : i32
    %89 = tpu.assume_multiple %88, 8 : i32
    %90 = arith.index_cast %89 : i32 to index
    %c0_37 = arith.constant 0 : index
    %91 = vector.load %arg13[%90, %c0_37] : memref<32x512xf32, #tpu.memory_space<vmem>>, vector<8x512xf32>
    %c0_38 = arith.constant 0 : index
    %c0_39 = arith.constant 0 : index
    %92 = vector.load %arg5[%c0_38, %c0_39] : memref<128x512xf32, #tpu.memory_space<vmem>>, vector<128x512xf32>
    %cst_40 = arith.constant dense<0.000000e+00> : vector<8x512xf32>
    %93 = tpu.matmul %82, %92, %cst_40 {dimension_numbers = #tpu.dot_dimension_numbers<[1], [0], [0], [1], [0, 0, 1, 1], [], []>} : vector<8x128xf32>, vector<128x512xf32>, vector<8x512xf32> -> vector<8x512xf32>
    %94 = arith.addf %91, %93 : vector<8x512xf32>
    %95 = vector.extract_strided_slice %94 {offsets = [0, 0], sizes = [8, 128], strides = [1, 1]} : vector<8x512xf32> to vector<8x128xf32>
    %96 = arith.negf %95 : vector<8x128xf32>
    %97 = math.exp %96 : vector<8x128xf32>
    %cst_41 = arith.constant 1.000000e+00 : f32
    %98 = vector.broadcast %cst_41 : f32 to vector<8x128xf32>
    %99 = arith.addf %98, %97 : vector<8x128xf32>
    %100 = arith.divf %98, %99 : vector<8x128xf32>
    %101 = vector.extract_strided_slice %94 {offsets = [0, 128], sizes = [8, 128], strides = [1, 1]} : vector<8x512xf32> to vector<8x128xf32>
    %102 = arith.negf %101 : vector<8x128xf32>
    %103 = math.exp %102 : vector<8x128xf32>
    %cst_42 = arith.constant 1.000000e+00 : f32
    %104 = vector.broadcast %cst_42 : f32 to vector<8x128xf32>
    %105 = arith.addf %104, %103 : vector<8x128xf32>
    %106 = arith.divf %104, %105 : vector<8x128xf32>
    %107 = vector.extract_strided_slice %94 {offsets = [0, 256], sizes = [8, 128], strides = [1, 1]} : vector<8x512xf32> to vector<8x128xf32>
    %108 = math.tanh %107 : vector<8x128xf32>
    %109 = vector.extract_strided_slice %94 {offsets = [0, 384], sizes = [8, 128], strides = [1, 1]} : vector<8x512xf32> to vector<8x128xf32>
    %110 = arith.negf %109 : vector<8x128xf32>
    %111 = math.exp %110 : vector<8x128xf32>
    %cst_43 = arith.constant 1.000000e+00 : f32
    %112 = vector.broadcast %cst_43 : f32 to vector<8x128xf32>
    %113 = arith.addf %112, %111 : vector<8x128xf32>
    %114 = arith.divf %112, %113 : vector<8x128xf32>
    %115 = arith.mulf %106, %80 : vector<8x128xf32>
    %116 = arith.mulf %100, %108 : vector<8x128xf32>
    %117 = arith.addf %115, %116 : vector<8x128xf32>
    %118 = math.tanh %117 : vector<8x128xf32>
    %119 = arith.mulf %114, %118 : vector<8x128xf32>
    %c8_i32_44 = arith.constant 8 : i32
    %120 = arith.muli %c2_i32, %c8_i32_44 : i32
    %c0_i32_45 = arith.constant 0 : i32
    %121 = arith.addi %c0_i32_45, %120 : i32
    %122 = tpu.assume_multiple %121, 8 : i32
    %123 = arith.index_cast %122 : i32 to index
    %c0_46 = arith.constant 0 : index
    %124 = vector.load %arg15[%123, %c0_46] : memref<32x128xf32, #tpu.memory_space<vmem>>, vector<8x128xf32>
    tpu.vector_store %arg15[%123, %c0_46], %119 {strides = array<i32>} : memref<32x128xf32, #tpu.memory_space<vmem>>, vector<8x128xf32>,
    %c3_i32 = arith.constant 3 : i32
    %c8_i32_47 = arith.constant 8 : i32
    %125 = arith.muli %c3_i32, %c8_i32_47 : i32
    %126 = tpu.assume_multiple %125, 8 : i32
    %127 = arith.index_cast %126 : i32 to index
    %c0_48 = arith.constant 0 : index
    %128 = vector.load %arg13[%127, %c0_48] : memref<32x512xf32, #tpu.memory_space<vmem>>, vector<8x512xf32>
    %c0_49 = arith.constant 0 : index
    %c0_50 = arith.constant 0 : index
    %129 = vector.load %arg5[%c0_49, %c0_50] : memref<128x512xf32, #tpu.memory_space<vmem>>, vector<128x512xf32>
    %cst_51 = arith.constant dense<0.000000e+00> : vector<8x512xf32>
    %130 = tpu.matmul %119, %129, %cst_51 {dimension_numbers = #tpu.dot_dimension_numbers<[1], [0], [0], [1], [0, 0, 1, 1], [], []>} : vector<8x128xf32>, vector<128x512xf32>, vector<8x512xf32> -> vector<8x512xf32>
    %131 = arith.addf %128, %130 : vector<8x512xf32>
    %132 = vector.extract_strided_slice %131 {offsets = [0, 0], sizes = [8, 128], strides = [1, 1]} : vector<8x512xf32> to vector<8x128xf32>
    %133 = arith.negf %132 : vector<8x128xf32>
    %134 = math.exp %133 : vector<8x128xf32>
    %cst_52 = arith.constant 1.000000e+00 : f32
    %135 = vector.broadcast %cst_52 : f32 to vector<8x128xf32>
    %136 = arith.addf %135, %134 : vector<8x128xf32>
    %137 = arith.divf %135, %136 : vector<8x128xf32>
    %138 = vector.extract_strided_slice %131 {offsets = [0, 128], sizes = [8, 128], strides = [1, 1]} : vector<8x512xf32> to vector<8x128xf32>
    %139 = arith.negf %138 : vector<8x128xf32>
    %140 = math.exp %139 : vector<8x128xf32>
    %cst_53 = arith.constant 1.000000e+00 : f32
    %141 = vector.broadcast %cst_53 : f32 to vector<8x128xf32>
    %142 = arith.addf %141, %140 : vector<8x128xf32>
    %143 = arith.divf %141, %142 : vector<8x128xf32>
    %144 = vector.extract_strided_slice %131 {offsets = [0, 256], sizes = [8, 128], strides = [1, 1]} : vector<8x512xf32> to vector<8x128xf32>
    %145 = math.tanh %144 : vector<8x128xf32>
    %146 = vector.extract_strided_slice %131 {offsets = [0, 384], sizes = [8, 128], strides = [1, 1]} : vector<8x512xf32> to vector<8x128xf32>
    %147 = arith.negf %146 : vector<8x128xf32>
    %148 = math.exp %147 : vector<8x128xf32>
    %cst_54 = arith.constant 1.000000e+00 : f32
    %149 = vector.broadcast %cst_54 : f32 to vector<8x128xf32>
    %150 = arith.addf %149, %148 : vector<8x128xf32>
    %151 = arith.divf %149, %150 : vector<8x128xf32>
    %152 = arith.mulf %143, %117 : vector<8x128xf32>
    %153 = arith.mulf %137, %145 : vector<8x128xf32>
    %154 = arith.addf %152, %153 : vector<8x128xf32>
    %155 = math.tanh %154 : vector<8x128xf32>
    %156 = arith.mulf %151, %155 : vector<8x128xf32>
    %c8_i32_55 = arith.constant 8 : i32
    %157 = arith.muli %c3_i32, %c8_i32_55 : i32
    %c0_i32_56 = arith.constant 0 : i32
    %158 = arith.addi %c0_i32_56, %157 : i32
    %159 = tpu.assume_multiple %158, 8 : i32
    %160 = arith.index_cast %159 : i32 to index
    %c0_57 = arith.constant 0 : index
    %161 = vector.load %arg15[%160, %c0_57] : memref<32x128xf32, #tpu.memory_space<vmem>>, vector<8x128xf32>
    tpu.vector_store %arg15[%160, %c0_57], %156 {strides = array<i32>} : memref<32x128xf32, #tpu.memory_space<vmem>>, vector<8x128xf32>,
    %c4_i32 = arith.constant 4 : i32
    %c0_58 = arith.constant 0 : index
    %c0_59 = arith.constant 0 : index
    %c0_60 = arith.constant 0 : index
    %162 = vector.load %arg11[%c0_58, %c0_59, %c0_60] : memref<2x8x128xf32, #tpu.memory_space<vmem>>, vector<1x8x128xf32>
    %163 = vector.shape_cast %162 : vector<1x8x128xf32> to vector<8x128xf32>
    %164 = vector.shape_cast %156 : vector<8x128xf32> to vector<1x8x128xf32>
    tpu.vector_store %arg11[%c0_58, %c0_59, %c0_60], %164 {strides = array<i32>} : memref<2x8x128xf32, #tpu.memory_space<vmem>>, vector<1x8x128xf32>,
    %c0_61 = arith.constant 0 : index
    %c0_62 = arith.constant 0 : index
    %c0_63 = arith.constant 0 : index
    %165 = vector.load %arg12[%c0_61, %c0_62, %c0_63] : memref<2x8x128xf32, #tpu.memory_space<vmem>>, vector<1x8x128xf32>
    %166 = vector.shape_cast %165 : vector<1x8x128xf32> to vector<8x128xf32>
    %167 = vector.shape_cast %154 : vector<8x128xf32> to vector<1x8x128xf32>
    tpu.vector_store %arg12[%c0_61, %c0_62, %c0_63], %167 {strides = array<i32>} : memref<2x8x128xf32, #tpu.memory_space<vmem>>, vector<1x8x128xf32>,
    %c0_64 = arith.constant 0 : index
    %c0_65 = arith.constant 0 : index
    %168 = vector.load %arg15[%c0_64, %c0_65] : memref<32x128xf32, #tpu.memory_space<vmem>>, vector<32x128xf32>
    %c0_66 = arith.constant 0 : index
    %c0_67 = arith.constant 0 : index
    %169 = vector.load %arg7[%c0_66, %c0_67] : memref<128x512xf32, #tpu.memory_space<vmem>>, vector<128x512xf32>
    %cst_68 = arith.constant dense<0.000000e+00> : vector<32x512xf32>
    %170 = tpu.matmul %168, %169, %cst_68 {dimension_numbers = #tpu.dot_dimension_numbers<[1], [0], [0], [1], [0, 0, 1, 1], [], []>} : vector<32x128xf32>, vector<128x512xf32>, vector<32x512xf32> -> vector<32x512xf32>
    %c0_69 = arith.constant 0 : index
    %c0_70 = arith.constant 0 : index
    %171 = vector.load %arg9[%c0_69, %c0_70] : memref<1x512xf32, #tpu.memory_space<vmem>>, vector<1x512xf32>
    %172 = vector.broadcast %171 : vector<1x512xf32> to vector<32x512xf32>
    %173 = arith.addf %170, %172 : vector<32x512xf32>
    %c0_71 = arith.constant 0 : index
    %c0_72 = arith.constant 0 : index
    %174 = vector.load %arg13[%c0_71, %c0_72] : memref<32x512xf32, #tpu.memory_space<vmem>>, vector<32x512xf32>
    tpu.vector_store %arg13[%c0_71, %c0_72], %173 {strides = array<i32>} : memref<32x512xf32, #tpu.memory_space<vmem>>, vector<32x512xf32>,
    %c1 = arith.constant 1 : index
    %c0_73 = arith.constant 0 : index
    %c0_74 = arith.constant 0 : index
    %175 = vector.load %arg11[%c1, %c0_73, %c0_74] : memref<2x8x128xf32, #tpu.memory_space<vmem>>, vector<1x8x128xf32>
    %176 = vector.shape_cast %175 : vector<1x8x128xf32> to vector<8x128xf32>
    %c1_75 = arith.constant 1 : index
    %c0_76 = arith.constant 0 : index
    %c0_77 = arith.constant 0 : index
    %177 = vector.load %arg12[%c1_75, %c0_76, %c0_77] : memref<2x8x128xf32, #tpu.memory_space<vmem>>, vector<1x8x128xf32>
    %178 = vector.shape_cast %177 : vector<1x8x128xf32> to vector<8x128xf32>
    %c0_i32_78 = arith.constant 0 : i32
    %c8_i32_79 = arith.constant 8 : i32
    %179 = arith.muli %c0_i32_78, %c8_i32_79 : i32
    %180 = tpu.assume_multiple %179, 8 : i32
    %181 = arith.index_cast %180 : i32 to index
    %c0_80 = arith.constant 0 : index
    %182 = vector.load %arg13[%181, %c0_80] : memref<32x512xf32, #tpu.memory_space<vmem>>, vector<8x512xf32>
    %c0_81 = arith.constant 0 : index
    %c0_82 = arith.constant 0 : index
    %183 = vector.load %arg8[%c0_81, %c0_82] : memref<128x512xf32, #tpu.memory_space<vmem>>, vector<128x512xf32>
    %cst_83 = arith.constant dense<0.000000e+00> : vector<8x512xf32>
    %184 = tpu.matmul %176, %183, %cst_83 {dimension_numbers = #tpu.dot_dimension_numbers<[1], [0], [0], [1], [0, 0, 1, 1], [], []>} : vector<8x128xf32>, vector<128x512xf32>, vector<8x512xf32> -> vector<8x512xf32>
    %185 = arith.addf %182, %184 : vector<8x512xf32>
    %186 = vector.extract_strided_slice %185 {offsets = [0, 0], sizes = [8, 128], strides = [1, 1]} : vector<8x512xf32> to vector<8x128xf32>
    %187 = arith.negf %186 : vector<8x128xf32>
    %188 = math.exp %187 : vector<8x128xf32>
    %cst_84 = arith.constant 1.000000e+00 : f32
    %189 = vector.broadcast %cst_84 : f32 to vector<8x128xf32>
    %190 = arith.addf %189, %188 : vector<8x128xf32>
    %191 = arith.divf %189, %190 : vector<8x128xf32>
    %192 = vector.extract_strided_slice %185 {offsets = [0, 128], sizes = [8, 128], strides = [1, 1]} : vector<8x512xf32> to vector<8x128xf32>
    %193 = arith.negf %192 : vector<8x128xf32>
    %194 = math.exp %193 : vector<8x128xf32>
    %cst_85 = arith.constant 1.000000e+00 : f32
    %195 = vector.broadcast %cst_85 : f32 to vector<8x128xf32>
    %196 = arith.addf %195, %194 : vector<8x128xf32>
    %197 = arith.divf %195, %196 : vector<8x128xf32>
    %198 = vector.extract_strided_slice %185 {offsets = [0, 256], sizes = [8, 128], strides = [1, 1]} : vector<8x512xf32> to vector<8x128xf32>
    %199 = math.tanh %198 : vector<8x128xf32>
    %200 = vector.extract_strided_slice %185 {offsets = [0, 384], sizes = [8, 128], strides = [1, 1]} : vector<8x512xf32> to vector<8x128xf32>
    %201 = arith.negf %200 : vector<8x128xf32>
    %202 = math.exp %201 : vector<8x128xf32>
    %cst_86 = arith.constant 1.000000e+00 : f32
    %203 = vector.broadcast %cst_86 : f32 to vector<8x128xf32>
    %204 = arith.addf %203, %202 : vector<8x128xf32>
    %205 = arith.divf %203, %204 : vector<8x128xf32>
    %206 = arith.mulf %197, %178 : vector<8x128xf32>
    %207 = arith.mulf %191, %199 : vector<8x128xf32>
    %208 = arith.addf %206, %207 : vector<8x128xf32>
    %209 = math.tanh %208 : vector<8x128xf32>
    %210 = arith.mulf %205, %209 : vector<8x128xf32>
    %c8_i32_87 = arith.constant 8 : i32
    %211 = arith.muli %c0_i32_78, %c8_i32_87 : i32
    %c0_i32_88 = arith.constant 0 : i32
    %212 = arith.addi %c0_i32_88, %211 : i32
    %213 = tpu.assume_multiple %212, 8 : i32
    %214 = arith.index_cast %213 : i32 to index
    %c0_89 = arith.constant 0 : index
    %215 = vector.load %arg15[%214, %c0_89] : memref<32x128xf32, #tpu.memory_space<vmem>>, vector<8x128xf32>
    tpu.vector_store %arg15[%214, %c0_89], %210 {strides = array<i32>} : memref<32x128xf32, #tpu.memory_space<vmem>>, vector<8x128xf32>,
    %c1_i32_90 = arith.constant 1 : i32
    %c8_i32_91 = arith.constant 8 : i32
    %216 = arith.muli %c1_i32_90, %c8_i32_91 : i32
    %217 = tpu.assume_multiple %216, 8 : i32
    %218 = arith.index_cast %217 : i32 to index
    %c0_92 = arith.constant 0 : index
    %219 = vector.load %arg13[%218, %c0_92] : memref<32x512xf32, #tpu.memory_space<vmem>>, vector<8x512xf32>
    %c0_93 = arith.constant 0 : index
    %c0_94 = arith.constant 0 : index
    %220 = vector.load %arg8[%c0_93, %c0_94] : memref<128x512xf32, #tpu.memory_space<vmem>>, vector<128x512xf32>
    %cst_95 = arith.constant dense<0.000000e+00> : vector<8x512xf32>
    %221 = tpu.matmul %210, %220, %cst_95 {dimension_numbers = #tpu.dot_dimension_numbers<[1], [0], [0], [1], [0, 0, 1, 1], [], []>} : vector<8x128xf32>, vector<128x512xf32>, vector<8x512xf32> -> vector<8x512xf32>
    %222 = arith.addf %219, %221 : vector<8x512xf32>
    %223 = vector.extract_strided_slice %222 {offsets = [0, 0], sizes = [8, 128], strides = [1, 1]} : vector<8x512xf32> to vector<8x128xf32>
    %224 = arith.negf %223 : vector<8x128xf32>
    %225 = math.exp %224 : vector<8x128xf32>
    %cst_96 = arith.constant 1.000000e+00 : f32
    %226 = vector.broadcast %cst_96 : f32 to vector<8x128xf32>
    %227 = arith.addf %226, %225 : vector<8x128xf32>
    %228 = arith.divf %226, %227 : vector<8x128xf32>
    %229 = vector.extract_strided_slice %222 {offsets = [0, 128], sizes = [8, 128], strides = [1, 1]} : vector<8x512xf32> to vector<8x128xf32>
    %230 = arith.negf %229 : vector<8x128xf32>
    %231 = math.exp %230 : vector<8x128xf32>
    %cst_97 = arith.constant 1.000000e+00 : f32
    %232 = vector.broadcast %cst_97 : f32 to vector<8x128xf32>
    %233 = arith.addf %232, %231 : vector<8x128xf32>
    %234 = arith.divf %232, %233 : vector<8x128xf32>
    %235 = vector.extract_strided_slice %222 {offsets = [0, 256], sizes = [8, 128], strides = [1, 1]} : vector<8x512xf32> to vector<8x128xf32>
    %236 = math.tanh %235 : vector<8x128xf32>
    %237 = vector.extract_strided_slice %222 {offsets = [0, 384], sizes = [8, 128], strides = [1, 1]} : vector<8x512xf32> to vector<8x128xf32>
    %238 = arith.negf %237 : vector<8x128xf32>
    %239 = math.exp %238 : vector<8x128xf32>
    %cst_98 = arith.constant 1.000000e+00 : f32
    %240 = vector.broadcast %cst_98 : f32 to vector<8x128xf32>
    %241 = arith.addf %240, %239 : vector<8x128xf32>
    %242 = arith.divf %240, %241 : vector<8x128xf32>
    %243 = arith.mulf %234, %208 : vector<8x128xf32>
    %244 = arith.mulf %228, %236 : vector<8x128xf32>
    %245 = arith.addf %243, %244 : vector<8x128xf32>
    %246 = math.tanh %245 : vector<8x128xf32>
    %247 = arith.mulf %242, %246 : vector<8x128xf32>
    %c8_i32_99 = arith.constant 8 : i32
    %248 = arith.muli %c1_i32_90, %c8_i32_99 : i32
    %c0_i32_100 = arith.constant 0 : i32
    %249 = arith.addi %c0_i32_100, %248 : i32
    %250 = tpu.assume_multiple %249, 8 : i32
    %251 = arith.index_cast %250 : i32 to index
    %c0_101 = arith.constant 0 : index
    %252 = vector.load %arg15[%251, %c0_101] : memref<32x128xf32, #tpu.memory_space<vmem>>, vector<8x128xf32>
    tpu.vector_store %arg15[%251, %c0_101], %247 {strides = array<i32>} : memref<32x128xf32, #tpu.memory_space<vmem>>, vector<8x128xf32>,
    %c2_i32_102 = arith.constant 2 : i32
    %c8_i32_103 = arith.constant 8 : i32
    %253 = arith.muli %c2_i32_102, %c8_i32_103 : i32
    %254 = tpu.assume_multiple %253, 8 : i32
    %255 = arith.index_cast %254 : i32 to index
    %c0_104 = arith.constant 0 : index
    %256 = vector.load %arg13[%255, %c0_104] : memref<32x512xf32, #tpu.memory_space<vmem>>, vector<8x512xf32>
    %c0_105 = arith.constant 0 : index
    %c0_106 = arith.constant 0 : index
    %257 = vector.load %arg8[%c0_105, %c0_106] : memref<128x512xf32, #tpu.memory_space<vmem>>, vector<128x512xf32>
    %cst_107 = arith.constant dense<0.000000e+00> : vector<8x512xf32>
    %258 = tpu.matmul %247, %257, %cst_107 {dimension_numbers = #tpu.dot_dimension_numbers<[1], [0], [0], [1], [0, 0, 1, 1], [], []>} : vector<8x128xf32>, vector<128x512xf32>, vector<8x512xf32> -> vector<8x512xf32>
    %259 = arith.addf %256, %258 : vector<8x512xf32>
    %260 = vector.extract_strided_slice %259 {offsets = [0, 0], sizes = [8, 128], strides = [1, 1]} : vector<8x512xf32> to vector<8x128xf32>
    %261 = arith.negf %260 : vector<8x128xf32>
    %262 = math.exp %261 : vector<8x128xf32>
    %cst_108 = arith.constant 1.000000e+00 : f32
    %263 = vector.broadcast %cst_108 : f32 to vector<8x128xf32>
    %264 = arith.addf %263, %262 : vector<8x128xf32>
    %265 = arith.divf %263, %264 : vector<8x128xf32>
    %266 = vector.extract_strided_slice %259 {offsets = [0, 128], sizes = [8, 128], strides = [1, 1]} : vector<8x512xf32> to vector<8x128xf32>
    %267 = arith.negf %266 : vector<8x128xf32>
    %268 = math.exp %267 : vector<8x128xf32>
    %cst_109 = arith.constant 1.000000e+00 : f32
    %269 = vector.broadcast %cst_109 : f32 to vector<8x128xf32>
    %270 = arith.addf %269, %268 : vector<8x128xf32>
    %271 = arith.divf %269, %270 : vector<8x128xf32>
    %272 = vector.extract_strided_slice %259 {offsets = [0, 256], sizes = [8, 128], strides = [1, 1]} : vector<8x512xf32> to vector<8x128xf32>
    %273 = math.tanh %272 : vector<8x128xf32>
    %274 = vector.extract_strided_slice %259 {offsets = [0, 384], sizes = [8, 128], strides = [1, 1]} : vector<8x512xf32> to vector<8x128xf32>
    %275 = arith.negf %274 : vector<8x128xf32>
    %276 = math.exp %275 : vector<8x128xf32>
    %cst_110 = arith.constant 1.000000e+00 : f32
    %277 = vector.broadcast %cst_110 : f32 to vector<8x128xf32>
    %278 = arith.addf %277, %276 : vector<8x128xf32>
    %279 = arith.divf %277, %278 : vector<8x128xf32>
    %280 = arith.mulf %271, %245 : vector<8x128xf32>
    %281 = arith.mulf %265, %273 : vector<8x128xf32>
    %282 = arith.addf %280, %281 : vector<8x128xf32>
    %283 = math.tanh %282 : vector<8x128xf32>
    %284 = arith.mulf %279, %283 : vector<8x128xf32>
    %c8_i32_111 = arith.constant 8 : i32
    %285 = arith.muli %c2_i32_102, %c8_i32_111 : i32
    %c0_i32_112 = arith.constant 0 : i32
    %286 = arith.addi %c0_i32_112, %285 : i32
    %287 = tpu.assume_multiple %286, 8 : i32
    %288 = arith.index_cast %287 : i32 to index
    %c0_113 = arith.constant 0 : index
    %289 = vector.load %arg15[%288, %c0_113] : memref<32x128xf32, #tpu.memory_space<vmem>>, vector<8x128xf32>
    tpu.vector_store %arg15[%288, %c0_113], %284 {strides = array<i32>} : memref<32x128xf32, #tpu.memory_space<vmem>>, vector<8x128xf32>,
    %c3_i32_114 = arith.constant 3 : i32
    %c8_i32_115 = arith.constant 8 : i32
    %290 = arith.muli %c3_i32_114, %c8_i32_115 : i32
    %291 = tpu.assume_multiple %290, 8 : i32
    %292 = arith.index_cast %291 : i32 to index
    %c0_116 = arith.constant 0 : index
    %293 = vector.load %arg13[%292, %c0_116] : memref<32x512xf32, #tpu.memory_space<vmem>>, vector<8x512xf32>
    %c0_117 = arith.constant 0 : index
    %c0_118 = arith.constant 0 : index
    %294 = vector.load %arg8[%c0_117, %c0_118] : memref<128x512xf32, #tpu.memory_space<vmem>>, vector<128x512xf32>
    %cst_119 = arith.constant dense<0.000000e+00> : vector<8x512xf32>
    %295 = tpu.matmul %284, %294, %cst_119 {dimension_numbers = #tpu.dot_dimension_numbers<[1], [0], [0], [1], [0, 0, 1, 1], [], []>} : vector<8x128xf32>, vector<128x512xf32>, vector<8x512xf32> -> vector<8x512xf32>
    %296 = arith.addf %293, %295 : vector<8x512xf32>
    %297 = vector.extract_strided_slice %296 {offsets = [0, 0], sizes = [8, 128], strides = [1, 1]} : vector<8x512xf32> to vector<8x128xf32>
    %298 = arith.negf %297 : vector<8x128xf32>
    %299 = math.exp %298 : vector<8x128xf32>
    %cst_120 = arith.constant 1.000000e+00 : f32
    %300 = vector.broadcast %cst_120 : f32 to vector<8x128xf32>
    %301 = arith.addf %300, %299 : vector<8x128xf32>
    %302 = arith.divf %300, %301 : vector<8x128xf32>
    %303 = vector.extract_strided_slice %296 {offsets = [0, 128], sizes = [8, 128], strides = [1, 1]} : vector<8x512xf32> to vector<8x128xf32>
    %304 = arith.negf %303 : vector<8x128xf32>
    %305 = math.exp %304 : vector<8x128xf32>
    %cst_121 = arith.constant 1.000000e+00 : f32
    %306 = vector.broadcast %cst_121 : f32 to vector<8x128xf32>
    %307 = arith.addf %306, %305 : vector<8x128xf32>
    %308 = arith.divf %306, %307 : vector<8x128xf32>
    %309 = vector.extract_strided_slice %296 {offsets = [0, 256], sizes = [8, 128], strides = [1, 1]} : vector<8x512xf32> to vector<8x128xf32>
    %310 = math.tanh %309 : vector<8x128xf32>
    %311 = vector.extract_strided_slice %296 {offsets = [0, 384], sizes = [8, 128], strides = [1, 1]} : vector<8x512xf32> to vector<8x128xf32>
    %312 = arith.negf %311 : vector<8x128xf32>
    %313 = math.exp %312 : vector<8x128xf32>
    %cst_122 = arith.constant 1.000000e+00 : f32
    %314 = vector.broadcast %cst_122 : f32 to vector<8x128xf32>
    %315 = arith.addf %314, %313 : vector<8x128xf32>
    %316 = arith.divf %314, %315 : vector<8x128xf32>
    %317 = arith.mulf %308, %282 : vector<8x128xf32>
    %318 = arith.mulf %302, %310 : vector<8x128xf32>
    %319 = arith.addf %317, %318 : vector<8x128xf32>
    %320 = math.tanh %319 : vector<8x128xf32>
    %321 = arith.mulf %316, %320 : vector<8x128xf32>
    %c8_i32_123 = arith.constant 8 : i32
    %322 = arith.muli %c3_i32_114, %c8_i32_123 : i32
    %c0_i32_124 = arith.constant 0 : i32
    %323 = arith.addi %c0_i32_124, %322 : i32
    %324 = tpu.assume_multiple %323, 8 : i32
    %325 = arith.index_cast %324 : i32 to index
    %c0_125 = arith.constant 0 : index
    %326 = vector.load %arg15[%325, %c0_125] : memref<32x128xf32, #tpu.memory_space<vmem>>, vector<8x128xf32>
    tpu.vector_store %arg15[%325, %c0_125], %321 {strides = array<i32>} : memref<32x128xf32, #tpu.memory_space<vmem>>, vector<8x128xf32>,
    %c4_i32_126 = arith.constant 4 : i32
    %c1_127 = arith.constant 1 : index
    %c0_128 = arith.constant 0 : index
    %c0_129 = arith.constant 0 : index
    %327 = vector.load %arg11[%c1_127, %c0_128, %c0_129] : memref<2x8x128xf32, #tpu.memory_space<vmem>>, vector<1x8x128xf32>
    %328 = vector.shape_cast %327 : vector<1x8x128xf32> to vector<8x128xf32>
    %329 = vector.shape_cast %321 : vector<8x128xf32> to vector<1x8x128xf32>
    tpu.vector_store %arg11[%c1_127, %c0_128, %c0_129], %329 {strides = array<i32>} : memref<2x8x128xf32, #tpu.memory_space<vmem>>, vector<1x8x128xf32>,
    %c1_130 = arith.constant 1 : index
    %c0_131 = arith.constant 0 : index
    %c0_132 = arith.constant 0 : index
    %330 = vector.load %arg12[%c1_130, %c0_131, %c0_132] : memref<2x8x128xf32, #tpu.memory_space<vmem>>, vector<1x8x128xf32>
    %331 = vector.shape_cast %330 : vector<1x8x128xf32> to vector<8x128xf32>
    %332 = vector.shape_cast %319 : vector<8x128xf32> to vector<1x8x128xf32>
    tpu.vector_store %arg12[%c1_130, %c0_131, %c0_132], %332 {strides = array<i32>} : memref<2x8x128xf32, #tpu.memory_space<vmem>>, vector<1x8x128xf32>,
    %c0_133 = arith.constant 0 : index
    %c0_134 = arith.constant 0 : index
    %333 = vector.load %arg2[%c0_133, %c0_134] : memref<8x1xi32, #tpu.memory_space<vmem>>, vector<8x1xi32>
    %c1_i32_135 = arith.constant 1 : i32
    %334 = vector.broadcast %c1_i32_135 : i32 to vector<8x1xi32>
    %335 = arith.subi %333, %334 : vector<8x1xi32>
    %c4_i32_136 = arith.constant 4 : i32
    %336 = arith.muli %arg1, %c4_i32_136 : i32
    %337 = vector.broadcast %336 : i32 to vector<8x1xi32>
    %338 = arith.subi %335, %337 : vector<8x1xi32>
    %339 = vector.shape_cast %338 : vector<8x1xi32> to vector<8x1xi32>
    %340 = vector.broadcast %339 : vector<8x1xi32> to vector<8x128xi32>
    %c0_137 = arith.constant 0 : index
    %c0_138 = arith.constant 0 : index
    %341 = vector.load %arg10[%c0_137, %c0_138] : memref<8x128xf32, #tpu.memory_space<vmem>>, vector<8x128xf32>
    %c0_i32_139 = arith.constant 0 : i32
    %c8_i32_140 = arith.constant 8 : i32
    %342 = arith.muli %c0_i32_139, %c8_i32_140 : i32
    %343 = tpu.assume_multiple %342, 8 : i32
    %344 = arith.index_cast %343 : i32 to index
    %c0_141 = arith.constant 0 : index
    %345 = vector.load %arg15[%344, %c0_141] : memref<32x128xf32, #tpu.memory_space<vmem>>, vector<8x128xf32>
    %346 = vector.broadcast %c0_i32_139 : i32 to vector<8x128xi32>
    %347 = arith.cmpi eq, %340, %346 : vector<8x128xi32>
    %348 = arith.select %347, %345, %341 : vector<8x128xi1>, vector<8x128xf32>
    %c1_i32_142 = arith.constant 1 : i32
    %c8_i32_143 = arith.constant 8 : i32
    %349 = arith.muli %c1_i32_142, %c8_i32_143 : i32
    %350 = tpu.assume_multiple %349, 8 : i32
    %351 = arith.index_cast %350 : i32 to index
    %c0_144 = arith.constant 0 : index
    %352 = vector.load %arg15[%351, %c0_144] : memref<32x128xf32, #tpu.memory_space<vmem>>, vector<8x128xf32>
    %353 = vector.broadcast %c1_i32_142 : i32 to vector<8x128xi32>
    %354 = arith.cmpi eq, %340, %353 : vector<8x128xi32>
    %355 = arith.select %354, %352, %348 : vector<8x128xi1>, vector<8x128xf32>
    %c2_i32_145 = arith.constant 2 : i32
    %c8_i32_146 = arith.constant 8 : i32
    %356 = arith.muli %c2_i32_145, %c8_i32_146 : i32
    %357 = tpu.assume_multiple %356, 8 : i32
    %358 = arith.index_cast %357 : i32 to index
    %c0_147 = arith.constant 0 : index
    %359 = vector.load %arg15[%358, %c0_147] : memref<32x128xf32, #tpu.memory_space<vmem>>, vector<8x128xf32>
    %360 = vector.broadcast %c2_i32_145 : i32 to vector<8x128xi32>
    %361 = arith.cmpi eq, %340, %360 : vector<8x128xi32>
    %362 = arith.select %361, %359, %355 : vector<8x128xi1>, vector<8x128xf32>
    %c3_i32_148 = arith.constant 3 : i32
    %c8_i32_149 = arith.constant 8 : i32
    %363 = arith.muli %c3_i32_148, %c8_i32_149 : i32
    %364 = tpu.assume_multiple %363, 8 : i32
    %365 = arith.index_cast %364 : i32 to index
    %c0_150 = arith.constant 0 : index
    %366 = vector.load %arg15[%365, %c0_150] : memref<32x128xf32, #tpu.memory_space<vmem>>, vector<8x128xf32>
    %367 = vector.broadcast %c3_i32_148 : i32 to vector<8x128xi32>
    %368 = arith.cmpi eq, %340, %367 : vector<8x128xi32>
    %369 = arith.select %368, %366, %362 : vector<8x128xi1>, vector<8x128xf32>
    %c4_i32_151 = arith.constant 4 : i32
    %c0_152 = arith.constant 0 : index
    %c0_153 = arith.constant 0 : index
    %370 = vector.load %arg10[%c0_152, %c0_153] : memref<8x128xf32, #tpu.memory_space<vmem>>, vector<8x128xf32>
    tpu.vector_store %arg10[%c0_152, %c0_153], %369 {strides = array<i32>} : memref<8x128xf32, #tpu.memory_space<vmem>>, vector<8x128xf32>,
    return
  }
  func.func @transform_0(%arg0: i32, %arg1: i32) -> (i32, i32) {
    %c0_i32 = arith.constant 0 : i32
    %c0_i32_0 = arith.constant 0 : i32
    return %arg0, %c0_i32 : i32, i32
  }
  func.func @transform_1(%arg0: i32, %arg1: i32) -> (i32, i32) {
    %c2_i32 = arith.constant 2 : i32
    %0 = arith.muli %arg0, %c2_i32 : i32
    %1 = arith.addi %0, %arg1 : i32
    %c0_i32 = arith.constant 0 : i32
    %c0_i32_0 = arith.constant 0 : i32
    return %1, %c0_i32 : i32, i32
  }
  func.func @transform_2(%arg0: i32, %arg1: i32) -> (i32, i32) {
    %c0_i32 = arith.constant 0 : i32
    %c0_i32_0 = arith.constant 0 : i32
    %c0_i32_1 = arith.constant 0 : i32
    return %c0_i32, %c0_i32_0 : i32, i32
  }
  func.func @transform_3(%arg0: i32, %arg1: i32) -> (i32, i32) {
    %c0_i32 = arith.constant 0 : i32
    %c0_i32_0 = arith.constant 0 : i32
    %c0_i32_1 = arith.constant 0 : i32
    return %c0_i32, %c0_i32_0 : i32, i32
  }
  func.func @transform_4(%arg0: i32, %arg1: i32) -> (i32, i32) {
    %c0_i32 = arith.constant 0 : i32
    %c0_i32_0 = arith.constant 0 : i32
    %c0_i32_1 = arith.constant 0 : i32
    return %c0_i32, %c0_i32_0 : i32, i32
  }
  func.func @transform_5(%arg0: i32, %arg1: i32) -> (i32, i32) {
    %c0_i32 = arith.constant 0 : i32
    %c0_i32_0 = arith.constant 0 : i32
    %c0_i32_1 = arith.constant 0 : i32
    return %c0_i32, %c0_i32_0 : i32, i32
  }
  func.func @transform_6(%arg0: i32, %arg1: i32) -> (i32, i32) {
    %c0_i32 = arith.constant 0 : i32
    %c0_i32_0 = arith.constant 0 : i32
    %c0_i32_1 = arith.constant 0 : i32
    return %c0_i32, %c0_i32_0 : i32, i32
  }
  func.func @transform_7(%arg0: i32, %arg1: i32) -> (i32, i32) {
    %c0_i32 = arith.constant 0 : i32
    %c0_i32_0 = arith.constant 0 : i32
    %c0_i32_1 = arith.constant 0 : i32
    return %c0_i32, %c0_i32_0 : i32, i32
  }
  func.func @transform_8(%arg0: i32, %arg1: i32) -> (i32, i32) {
    %c0_i32 = arith.constant 0 : i32
    %c0_i32_0 = arith.constant 0 : i32
    return %arg0, %c0_i32 : i32, i32
  }
}

</mosaic_0001>

<bundles_post_ra>
// kernel: tpu_custom_call.1
= control target key start
LH: loop header
LB: loop body
LE: loop exit
PB: predicated region body
PF: predicated region fallthrough
CT: control target
= control target key end

     0   :  { %13 = vsyncpa [#allocation8], 0  ;;  %s4139_s0 = inlined_call_operand.vmem [shape: s32[8,1], index: 0, kind: input, shape index: {}]   ;;  %s4140_s1 = inlined_call_operand.vmem [shape: f32[64,16], index: 1, kind: input, shape index: {}]   ;;  %s4141_s2 = inlined_call_operand.vmem [shape: f32[16,512], index: 2, kind: input, shape index: {}]   ;;  %s4142_s3 = inlined_call_operand.hbm [shape: f32[128,512], index: 3, kind: input, shape index: {}]   ;;  %s4143_s4 = inlined_call_operand.vmem [shape: f32[1,512], index: 4, kind: input, shape index: {}]   ;;  %s4144_s5 = inlined_call_operand.hbm [shape: f32[128,512], index: 5, kind: input, shape index: {}]   ;;  %s4145_s6 = inlined_call_operand.hbm [shape: f32[128,512], index: 6, kind: input, shape index: {}]   ;;  %s4146_s7 = inlined_call_operand.vmem [shape: f32[1,512], index: 7, kind: input, shape index: {}]   ;;  %s4147_s8 = inlined_call_operand.hbm [shape: f32[8,128], index: 8, kind: output, shape index: {}]  }
   0x1   :  { %14 = vsyncpa [#allocation11], 0 }
   0x2   :  { %15 = vsyncpa [#allocation9], 0  ;;  %s3125_s27 = smov 0   ;;  %s3127_s28 = smov 0  }
   0x3   :  { %s3129_s29 = smov 0  }
   0x4 LB: > { %s2663_s30 = sadd.s32 4294967295, %s3070_s29   ;;  %p2664_p0 = scmp.ge.s32.totalorder %s3070_s29, 1  ;;  %s3070_s29 = sphi %s3129_s29, %s21_s29   ;;  %s3066_s28 = sphi %s3127_s28, %s4234_s28   ;;  %s3062_s27 = sphi %s3125_s27, %s4233_s27  }
   0x5   : > { %p246_p1 = scmp.lt.s32.totalorder %s3070_s29, 3  ;;  %p3145_p2 = scmp.eq.s32.totalorder %s2663_s30, 0 }
   0x6   : > { %s284_s12 = sshll.u32 %s4144_s5, 4  ;;  %s3072_s14 = smov [#allocation10]   ;;  %s285_s12 = int_to_ptr.hbm [resolvable:$true] %s284_s12 }
   0x7   : > { %p3152_p3 = pnand %p2664_p0, %p246_p1  ;;  %s286_s15 = sshll.u32 %s3072_s14, 4  ;;  %s287_s15 = int_to_ptr.vmem [resolvable:$true] %s286_s15 }
   0x8   : > { %s30_s17 = sadd.s32 1, %s3066_s28  ;;  %s3073_s18 = smov 512  }
   0x9   : > { %p2739_p4 = pneg %p3152_p3  ;;  %p31_p6 = scmp.ge.s32.totalorder %s30_s17, 2 }
   0xa   : > { %s3074_s19 = smov 32   ;;  %s267_s22 = sshll.u32 %s4142_s3, 4  ;;  %s268_s22 = int_to_ptr.hbm [resolvable:$true] %s267_s22 }
   0xb   : > { %p3160_p5 = pnand %p3145_p2, %p2739_p4  ;;  %s4236_s17 = smov (%p31_p6, %s30_s17), 0 }
   0xc   : > { %s3075_s23 = smov [#allocation7]   ;;  %s298_s10 = sshll.u32 %s4145_s6, 4  ;;  %s299_s10 = int_to_ptr.hbm [resolvable:$true] %s298_s10 }
   0xd   : > { %2745 = dma.hbm_to_vmem [thread:$0]  (!%p3160_p5), %s285_s12, 8192, %s287_s15, [#allocation11], %s3073_s18, %s3073_s18, %s3074_s19  }
   0xe   : > { %s269_s24 = sshll.u32 %s3075_s23, 4  ;;  %s3076_s11 = smov [#allocation12]   ;;  %s270_s24 = int_to_ptr.vmem [resolvable:$true] %s269_s24 }
   0xf   : > { %2742 = dma.hbm_to_vmem [thread:$0]  (!%p3160_p5), %s268_s22, 8192, %s270_s24, [#allocation8], %s3073_s18, %s3073_s18, %s3074_s19  }
  0x10   : > { %s300_s14 = sshll.u32 %s3076_s11, 4  ;;  %332 = sbr.rel (%p3152_p3) target bundleno = 1455 (0x5af), region = 52  ;;  %s301_s14 = int_to_ptr.vmem [resolvable:$true] %s300_s14 }
  0x11   : > { %2748 = dma.hbm_to_vmem [thread:$0]  (!%p3160_p5), %s299_s10, 8192, %s301_s14, [#allocation11], %s3073_s18, %s3073_s18, %s3074_s19  }
  0x15   : > { %3049 = dma.done.wait (%p3145_p2), [#allocation8], 8192  }
  0x16   : > { %3051 = vsyncadd (%p3145_p2), [#allocation8], 4294959104 }
  0x17   : > { %3053 = dma.done.wait (%p3145_p2), [#allocation11], 16384  }
  0x18   : > { %3055 = vsyncadd (%p3145_p2), [#allocation11], 4294950912  ;;  %s3190_s12 = sshll.u32 %s3062_s27, 2  ;;  %p2676_p8 = scmp.ne.s32.totalorder %s3062_s27, 0 }
  0x19   : > { %p385_p7 = scmp.lt.s32.totalorder %s3190_s12, 7 }
  0x1a   : > { %395 = sbr.rel (%p2676_p8) target bundleno = 37 (0x25), region = 68 }
  0x1b   : > { %s386_s13 = scalar_select %p385_p7, %s3190_s12, 7 }
  0x1d   : > { %s2675_s15 = sshll.u32 %s386_s13, 3 }
  0x1e   : > { %s3197_s19 = scalar_lea.vmem %s4140_s1, %s2675_s15 }
  0x1f   : > { %v3077_v0 = vmov 0.0  }
  0x20   : > { %396 = vst [vmem:[#allocation2] sm:$0xff] %v3077_v0 }
  0x21   : > { %397 = vst [vmem:[#allocation2 + $0x8] sm:$0xff] %v3077_v0 }
  0x22   : > { %398 = vst [vmem:[#allocation3 + $0x8] sm:$0xff] %v3077_v0 }
  0x23   : > { %399 = vst [vmem:[#allocation3] sm:$0xff] %v3077_v0 }
  0x24   : > { %400 = vst [vmem:[#allocation13] sm:$0xff] %v3077_v0 }
  0x25 PF: > { %v409_v1 = vld [vmem:[%s4141_s2 + $0x20] sm:$0xff]  ;;  %v410_v2 = vld [vmem:[%s4141_s2 + $0x28] sm:$0xff]  ;;  %v411_v3 = vld [vmem:[%s4141_s2 + $0x30] sm:$0xff]  ;;  %vm423_vm0 = vcmask 130048   ;;  %s3079_s23 = smov [#allocation13]   ;;  %s2563_s26 = sshll.u32 %s4147_s8, 4  ;;  %s2564_s26 = int_to_ptr.hbm [resolvable:$true] %s2563_s26 }
  0x26   : > { %450 = vmatpush.msra.mxu0 %v409_v1  ;;  %479 = vmatpush.msra.mxu1 %v410_v2  ;;  %v412_v4 = vld [vmem:[%s4141_s2 + $0x38] sm:$0xff]  ;;  %v405_v5 = vld [vmem:[%s4141_s2] sm:$0xff]  ;;  %v406_v6 = vld [vmem:[%s4141_s2 + $0x8] sm:$0xff]  ;;  %s2561_s24 = sshll.u32 %s3079_s23, 4  ;;  %p2755_p9 = scmp.eq.s32.totalorder %s2663_s30, 1  ;;  %s2562_s24 = int_to_ptr.vmem [resolvable:$true] %s2561_s24 }
  0x27   : > { %508 = vmatpush.msra.mxu2 %v411_v3  ;;  %537 = vmatpush.msra.mxu3 %v412_v4  ;;  %v407_v7 = vld [vmem:[%s4141_s2 + $0x10] sm:$0xff]  ;;  %v408_v8 = vld [vmem:[%s4141_s2 + $0x18] sm:$0xff]  ;;  %v401_v9 = vld [vmem:[%s3197_s19] sm:$0xff] }
  0x28   : > { %451 = vmatpush.msra.mxu0 %v405_v5  ;;  %480 = vmatpush.msra.mxu1 %v406_v6  ;;  %v3225_v10 = vld [vmem:[#allocation7 + $0x1e0] sm:$0xff]  ;;  %v3227_v11 = vld [vmem:[#allocation7 + $0x1e8] sm:$0xff]  ;;  %v3231_v12 = vld [vmem:[#allocation7 + $0x1f0] sm:$0xff] }
  0x29   : > { %509 = vmatpush.msra.mxu2 %v407_v7  ;;  %538 = vmatpush.msra.mxu3 %v408_v8  ;;  %v3233_v13 = vld [vmem:[#allocation7 + $0x1f8] sm:$0xff]  ;;  %v3237_v14 = vld [vmem:[#allocation7 + $0x1c0] sm:$0xff]  ;;  %v3239_v15 = vld [vmem:[#allocation7 + $0x1c8] sm:$0xff] }
  0x2a   : > { %2677 = vmatmul.msk.f32.vlgmr.msra.gmra.mxu0 %vm423_vm0, %v401_v9  ;;  %2681 = vmatmul.msk.f32.vlgmr.msra.gmra.mxu1 %vm423_vm0, %v401_v9  ;;  %v3243_v16 = vld [vmem:[#allocation7 + $0x1d0] sm:$0xff]  ;;  %v3245_v17 = vld [vmem:[#allocation7 + $0x1d8] sm:$0xff]  ;;  %v3249_v18 = vld [vmem:[#allocation7 + $0x1a0] sm:$0xff] }
  0x2b   : > { %2685 = vmatmul.msk.f32.vlgmr.msra.gmra.mxu2 %vm423_vm0, %v401_v9  ;;  %2689 = vmatmul.msk.f32.vlgmr.msra.gmra.mxu3 %vm423_vm0, %v401_v9  ;;  %v3251_v19 = vld [vmem:[#allocation7 + $0x1a8] sm:$0xff]  ;;  %v3255_v20 = vld [vmem:[#allocation7 + $0x1b0] sm:$0xff]  ;;  %v3257_v21 = vld [vmem:[#allocation7 + $0x1b8] sm:$0xff] }
  0x2c   : > { %641 = vmatpush.msrb.mxu0 %v3225_v10  ;;  %661 = vmatpush.msrb.mxu1 %v3227_v11  ;;  %v3261_v22 = vld [vmem:[#allocation7 + $0x180] sm:$0xff]  ;;  %v3263_v23 = vld [vmem:[#allocation7 + $0x188] sm:$0xff]  ;;  %v3267_v24 = vld [vmem:[#allocation7 + $0x190] sm:$0xff] }
  0x2d   : > { %681 = vmatpush.msrb.mxu2 %v3231_v12  ;;  %701 = vmatpush.msrb.mxu3 %v3233_v13  ;;  %v3269_v25 = vld [vmem:[#allocation7 + $0x198] sm:$0xff]  ;;  %v402_v26 = vld [vmem:[%s3197_s19 + $0x8] sm:$0xff]  ;;  %v3278_v27 = vld [vmem:[#allocation7 + $0x160] sm:$0xff] }
  0x2e   : > { %642 = vmatpush.msrb.mxu0 %v3237_v14  ;;  %662 = vmatpush.msrb.mxu1 %v3239_v15  ;;  %v3280_v28 = vld [vmem:[#allocation7 + $0x168] sm:$0xff]  ;;  %v3284_v29 = vld [vmem:[#allocation7 + $0x170] sm:$0xff]  ;;  %v3286_v30 = vld [vmem:[#allocation7 + $0x178] sm:$0xff] }
  0x2f   : > { %682 = vmatpush.msrb.mxu2 %v3243_v16  ;;  %702 = vmatpush.msrb.mxu3 %v3245_v17  ;;  %v3290_v31 = vld [vmem:[#allocation7 + $0x140] sm:$0xff]  ;;  %v3292_v32 = vld [vmem:[#allocation7 + $0x148] sm:$0xff]  ;;  %v3296_v33 = vld [vmem:[#allocation7 + $0x150] sm:$0xff] }
  0x30   : > { %643 = vmatpush.msrb.mxu0 %v3249_v18  ;;  %663 = vmatpush.msrb.mxu1 %v3251_v19  ;;  %v3298_v34 = vld [vmem:[#allocation7 + $0x158] sm:$0xff]  ;;  %v3302_v35 = vld [vmem:[#allocation7 + $0x120] sm:$0xff]  ;;  %v3304_v36 = vld [vmem:[#allocation7 + $0x128] sm:$0xff] }
  0x31   : > { %683 = vmatpush.msrb.mxu2 %v3255_v20  ;;  %703 = vmatpush.msrb.mxu3 %v3257_v21  ;;  %v3308_v37 = vld [vmem:[#allocation7 + $0x130] sm:$0xff]  ;;  %v3310_v38 = vld [vmem:[#allocation7 + $0x138] sm:$0xff]  ;;  %v3314_v39 = vld [vmem:[#allocation7 + $0x100] sm:$0xff] }
  0x32   : > { %644 = vmatpush.msrb.mxu0 %v3261_v22  ;;  %664 = vmatpush.msrb.mxu1 %v3263_v23  ;;  %v3316_v40 = vld [vmem:[#allocation7 + $0x108] sm:$0xff]  ;;  %v3320_v41 = vld [vmem:[#allocation7 + $0x110] sm:$0xff]  ;;  %v3322_v42 = vld [vmem:[#allocation7 + $0x118] sm:$0xff] }
  0x33   : > { %684 = vmatpush.msrb.mxu2 %v3267_v24  ;;  %704 = vmatpush.msrb.mxu3 %v3269_v25  ;;  %v403_v43 = vld [vmem:[%s3197_s19 + $0x10] sm:$0xff]  ;;  %v3331_v44 = vld [vmem:[#allocation7 + $0xe0] sm:$0xff]  ;;  %v3333_v45 = vld [vmem:[#allocation7 + $0xe8] sm:$0xff] }
  0x34   : > { %2678 = vmatmul.msk.f32.gmra.mxu0 %vm423_vm0, %v402_v26  ;;  %2682 = vmatmul.msk.f32.gmra.mxu1 %vm423_vm0, %v402_v26  ;;  %v3337_v46 = vld [vmem:[#allocation7 + $0xf0] sm:$0xff]  ;;  %v3339_v47 = vld [vmem:[#allocation7 + $0xf8] sm:$0xff]  ;;  %v3343_v48 = vld [vmem:[#allocation7 + $0xc0] sm:$0xff] }
  0x35   : > { %2686 = vmatmul.msk.f32.gmra.mxu2 %vm423_vm0, %v402_v26  ;;  %2690 = vmatmul.msk.f32.gmra.mxu3 %vm423_vm0, %v402_v26  ;;  %v3345_v49 = vld [vmem:[#allocation7 + $0xc8] sm:$0xff]  ;;  %v3349_v50 = vld [vmem:[#allocation7 + $0xd0] sm:$0xff]  ;;  %v3351_v51 = vld [vmem:[#allocation7 + $0xd8] sm:$0xff] }
  0x36   : > { %645 = vmatpush.msrb.mxu0 %v3278_v27  ;;  %665 = vmatpush.msrb.mxu1 %v3280_v28  ;;  %v3355_v52 = vld [vmem:[#allocation7 + $0xa0] sm:$0xff]  ;;  %v3357_v53 = vld [vmem:[#allocation7 + $0xa8] sm:$0xff]  ;;  %v3361_v54 = vld [vmem:[#allocation7 + $0xb0] sm:$0xff] }
  0x37   : > { %685 = vmatpush.msrb.mxu2 %v3284_v29  ;;  %705 = vmatpush.msrb.mxu3 %v3286_v30  ;;  %v3363_v55 = vld [vmem:[#allocation7 + $0xb8] sm:$0xff]  ;;  %v3367_v56 = vld [vmem:[#allocation7 + $0x80] sm:$0xff]  ;;  %v3369_v57 = vld [vmem:[#allocation7 + $0x88] sm:$0xff] }
  0x38   : > { %646 = vmatpush.msrb.mxu0 %v3290_v31  ;;  %666 = vmatpush.msrb.mxu1 %v3292_v32  ;;  %v3373_v58 = vld [vmem:[#allocation7 + $0x90] sm:$0xff]  ;;  %v3375_v59 = vld [vmem:[#allocation7 + $0x98] sm:$0xff]  ;;  %v3384_v61 = vld [vmem:[#allocation7 + $0x60] sm:$0xff] }
  0x39   : > { %686 = vmatpush.msrb.mxu2 %v3296_v33  ;;  %706 = vmatpush.msrb.mxu3 %v3298_v34  ;;  %v404_v60 = vld [vmem:[%s3197_s19 + $0x18] sm:$0xff]  ;;  %v3386_v62 = vld [vmem:[#allocation7 + $0x68] sm:$0xff]  ;;  %v3390_v63 = vld [vmem:[#allocation7 + $0x70] sm:$0xff] }
  0x3a   : > { %647 = vmatpush.msrb.mxu0 %v3302_v35  ;;  %667 = vmatpush.msrb.mxu1 %v3304_v36  ;;  %v3392_v0 = vld [vmem:[#allocation7 + $0x78] sm:$0xff]  ;;  %v3396_v1 = vld [vmem:[#allocation7 + $0x40] sm:$0xff]  ;;  %v3398_v2 = vld [vmem:[#allocation7 + $0x48] sm:$0xff] }
  0x3b   : > { %687 = vmatpush.msrb.mxu2 %v3308_v37  ;;  %707 = vmatpush.msrb.mxu3 %v3310_v38  ;;  %4191 = vst [vmem:[#allocation17_spill] sm:$0xff] %v3398_v2  ;;  %v3402_v3 = vld [vmem:[#allocation7 + $0x50] sm:$0xff]  ;;  %v3404_v4 = vld [vmem:[#allocation7 + $0x58] sm:$0xff]  ;;  %v3408_v5 = vld [vmem:[#allocation7 + $0x20] sm:$0xff] }
  0x3c   : > { %648 = vmatpush.msrb.mxu0 %v3314_v39  ;;  %668 = vmatpush.msrb.mxu1 %v3316_v40  ;;  %v3410_v6 = vld [vmem:[#allocation7 + $0x28] sm:$0xff]  ;;  %v3414_v7 = vld [vmem:[#allocation7 + $0x30] sm:$0xff]  ;;  %v3416_v8 = vld [vmem:[#allocation7 + $0x38] sm:$0xff] }
  0x3d   : > { %688 = vmatpush.msrb.mxu2 %v3320_v41  ;;  %708 = vmatpush.msrb.mxu3 %v3322_v42  ;;  %v3420_v9 = vld [vmem:[#allocation7] sm:$0xff]  ;;  %v3422_v26 = vld [vmem:[#allocation7 + $0x8] sm:$0xff] }
  0x3e   : > { %2679 = vmatmul.msk.f32.gmra.mxu0 %vm423_vm0, %v403_v43  ;;  %2683 = vmatmul.msk.f32.gmra.mxu1 %vm423_vm0, %v403_v43 }
  0x3f   : > { %2687 = vmatmul.msk.f32.gmra.mxu2 %vm423_vm0, %v403_v43  ;;  %2691 = vmatmul.msk.f32.gmra.mxu3 %vm423_vm0, %v403_v43  ;;  %v3426_v43 = vld [vmem:[#allocation7 + $0x10] sm:$0xff] }
  0x40   : > { %649 = vmatpush.msrb.mxu0 %v3331_v44  ;;  %669 = vmatpush.msrb.mxu1 %v3333_v45 }
  0x41   : > { %689 = vmatpush.msrb.mxu2 %v3337_v46  ;;  %709 = vmatpush.msrb.mxu3 %v3339_v47 }
  0x42   : > { %650 = vmatpush.msrb.mxu0 %v3343_v48  ;;  %670 = vmatpush.msrb.mxu1 %v3345_v49 }
  0x43   : > { %690 = vmatpush.msrb.mxu2 %v3349_v50  ;;  %710 = vmatpush.msrb.mxu3 %v3351_v51 }
  0x44   : > { %651 = vmatpush.msrb.mxu0 %v3355_v52  ;;  %671 = vmatpush.msrb.mxu1 %v3357_v53 }
  0x45   : > { %691 = vmatpush.msrb.mxu2 %v3361_v54  ;;  %711 = vmatpush.msrb.mxu3 %v3363_v55 }
  0x46   : > { %652 = vmatpush.msrb.mxu0 %v3367_v56  ;;  %672 = vmatpush.msrb.mxu1 %v3369_v57 }
  0x47   : > { %692 = vmatpush.msrb.mxu2 %v3373_v58  ;;  %712 = vmatpush.msrb.mxu3 %v3375_v59 }
  0x48   : > { %2680 = vmatmul.msk.f32.gmra.mxu0 %vm423_vm0, %v404_v60  ;;  %2684 = vmatmul.msk.f32.gmra.mxu1 %vm423_vm0, %v404_v60 }
  0x49   : > { %2688 = vmatmul.msk.f32.gmra.mxu2 %vm423_vm0, %v404_v60  ;;  %2692 = vmatmul.msk.f32.gmra.mxu3 %vm423_vm0, %v404_v60  ;;  %v3428_v60 = vld [vmem:[#allocation7 + $0x18] sm:$0xff] }
  0x4a   : > { %653 = vmatpush.msrb.mxu0 %v3384_v61  ;;  %673 = vmatpush.msrb.mxu1 %v3386_v62 }
  0x4b   : > { %693 = vmatpush.msrb.mxu2 %v3390_v63  ;;  %713 = vmatpush.msrb.mxu3 %v3392_v0 }
  0x4c   : > { %654 = vmatpush.msrb.mxu0 %v3396_v1  ;;  %674 = vmatpush.msrb.mxu1 %v3398_v2  ;;  %v568_v2 = vld [vmem:[#allocation2] sm:$0xff] }
  0x4d   : > { %694 = vmatpush.msrb.mxu2 %v3402_v3  ;;  %714 = vmatpush.msrb.mxu3 %v3404_v4 }
  0x4e   : > { %655 = vmatpush.msrb.mxu0 %v3408_v5  ;;  %675 = vmatpush.msrb.mxu1 %v3410_v6 }
  0x4f   : > { %695 = vmatpush.msrb.mxu2 %v3414_v7  ;;  %715 = vmatpush.msrb.mxu3 %v3416_v8 }
  0x50   : > { %656 = vmatpush.msrb.mxu0 %v3420_v9  ;;  %676 = vmatpush.msrb.mxu1 %v3422_v26 }
  0x51   : > { %696 = vmatpush.msrb.mxu2 %v3426_v43  ;;  %716 = vmatpush.msrb.mxu3 %v3428_v60 }
  0x52   : > { %657 = vmatmul.f32.vlgmr.msrb.gmra.mxu0 %v568_v2  ;;  %677 = vmatmul.f32.vlgmr.msrb.gmra.mxu1 %v568_v2 }
  0x53   : > { %697 = vmatmul.f32.vlgmr.msrb.gmra.mxu2 %v568_v2  ;;  %717 = vmatmul.f32.vlgmr.msrb.gmra.mxu3 %v568_v2  ;;  %v4192_v2 = vld [vmem:[#allocation17_spill] sm:$0xff] }
  0x54   : > { %860 = vmatpush.msra.mxu0 %v3225_v10  ;;  %880 = vmatpush.msra.mxu1 %v3227_v11 }
  0x55   : > { %900 = vmatpush.msra.mxu2 %v3231_v12  ;;  %920 = vmatpush.msra.mxu3 %v3233_v13 }
  0x56   : > { %861 = vmatpush.msra.mxu0 %v3237_v14  ;;  %881 = vmatpush.msra.mxu1 %v3239_v15 }
  0x57   : > { %901 = vmatpush.msra.mxu2 %v3243_v16  ;;  %921 = vmatpush.msra.mxu3 %v3245_v17 }
  0x58   : > { %862 = vmatpush.msra.mxu0 %v3249_v18  ;;  %882 = vmatpush.msra.mxu1 %v3251_v19 }
  0x59   : > { %902 = vmatpush.msra.mxu2 %v3255_v20  ;;  %922 = vmatpush.msra.mxu3 %v3257_v21 }
  0x5a   : > { %863 = vmatpush.msra.mxu0 %v3261_v22  ;;  %883 = vmatpush.msra.mxu1 %v3263_v23 }
  0x5b   : > { %903 = vmatpush.msra.mxu2 %v3267_v24  ;;  %923 = vmatpush.msra.mxu3 %v3269_v25 }
  0x5c   : > { %864 = vmatpush.msra.mxu0 %v3278_v27  ;;  %884 = vmatpush.msra.mxu1 %v3280_v28 }
  0x5d   : > { %904 = vmatpush.msra.mxu2 %v3284_v29  ;;  %924 = vmatpush.msra.mxu3 %v3286_v30 }
  0x5e   : > { %865 = vmatpush.msra.mxu0 %v3290_v31  ;;  %885 = vmatpush.msra.mxu1 %v3292_v32 }
  0x5f   : > { %905 = vmatpush.msra.mxu2 %v3296_v33  ;;  %925 = vmatpush.msra.mxu3 %v3298_v34 }
  0x60   : > { %866 = vmatpush.msra.mxu0 %v3302_v35  ;;  %886 = vmatpush.msra.mxu1 %v3304_v36 }
  0x61   : > { %906 = vmatpush.msra.mxu2 %v3308_v37  ;;  %926 = vmatpush.msra.mxu3 %v3310_v38 }
  0x62   : > { %867 = vmatpush.msra.mxu0 %v3314_v39  ;;  %887 = vmatpush.msra.mxu1 %v3316_v40 }
  0x63   : > { %907 = vmatpush.msra.mxu2 %v3320_v41  ;;  %927 = vmatpush.msra.mxu3 %v3322_v42 }
  0x64   : > { %868 = vmatpush.msra.mxu0 %v3331_v44  ;;  %888 = vmatpush.msra.mxu1 %v3333_v45 }
  0x65   : > { %908 = vmatpush.msra.mxu2 %v3337_v46  ;;  %928 = vmatpush.msra.mxu3 %v3339_v47 }
  0x66   : > { %869 = vmatpush.msra.mxu0 %v3343_v48  ;;  %889 = vmatpush.msra.mxu1 %v3345_v49 }
  0x67   : > { %909 = vmatpush.msra.mxu2 %v3349_v50  ;;  %929 = vmatpush.msra.mxu3 %v3351_v51 }
  0x68   : > { %870 = vmatpush.msra.mxu0 %v3355_v52  ;;  %890 = vmatpush.msra.mxu1 %v3357_v53 }
  0x69   : > { %910 = vmatpush.msra.mxu2 %v3361_v54  ;;  %930 = vmatpush.msra.mxu3 %v3363_v55 }
  0x6a   : > { %871 = vmatpush.msra.mxu0 %v3367_v56  ;;  %891 = vmatpush.msra.mxu1 %v3369_v57 }
  0x6b   : > { %911 = vmatpush.msra.mxu2 %v3373_v58  ;;  %931 = vmatpush.msra.mxu3 %v3375_v59 }
  0x6c   : > { %872 = vmatpush.msra.mxu0 %v3384_v61  ;;  %892 = vmatpush.msra.mxu1 %v3386_v62 }
  0x6d   : > { %912 = vmatpush.msra.mxu2 %v3390_v63  ;;  %932 = vmatpush.msra.mxu3 %v3392_v0 }
  0x6e   : > { %873 = vmatpush.msra.mxu0 %v3396_v1  ;;  %893 = vmatpush.msra.mxu1 %v4192_v2 }
  0x6f   : > { %913 = vmatpush.msra.mxu2 %v3402_v3  ;;  %933 = vmatpush.msra.mxu3 %v3404_v4 }
  0x70   : > { %874 = vmatpush.msra.mxu0 %v3408_v5  ;;  %894 = vmatpush.msra.mxu1 %v3410_v6 }
  0x71   : > { %914 = vmatpush.msra.mxu2 %v3414_v7  ;;  %934 = vmatpush.msra.mxu3 %v3416_v8 }
  0x72   : > { %875 = vmatpush.msra.mxu0 %v3420_v9  ;;  %895 = vmatpush.msra.mxu1 %v3422_v26 }
  0x73   : > { %915 = vmatpush.msra.mxu2 %v3426_v43  ;;  %935 = vmatpush.msra.mxu3 %v3428_v60 }
  0x74   : > { %1080 = vmatpush.msrb.mxu0 %v3225_v10  ;;  %1100 = vmatpush.msrb.mxu1 %v3227_v11 }
  0x75   : > { %1120 = vmatpush.msrb.mxu2 %v3231_v12  ;;  %1140 = vmatpush.msrb.mxu3 %v3233_v13  ;;  %v413_v12 = vld [vmem:[%s4143_s4] sm:$0xf] }
  0x76   : > { %1081 = vmatpush.msrb.mxu0 %v3237_v14  ;;  %1101 = vmatpush.msrb.mxu1 %v3239_v15  ;;  %v415_v15 = vperm.slane %v413_v12, 0 }
  0x77   : > { %1121 = vmatpush.msrb.mxu2 %v3243_v16  ;;  %1141 = vmatpush.msrb.mxu3 %v3245_v17  ;;  %v416_v16 = vperm.slane %v413_v12, 1 }
  0x78   : > { %1082 = vmatpush.msrb.mxu0 %v3249_v18  ;;  %1102 = vmatpush.msrb.mxu1 %v3251_v19 }
  0x79   : > { %1122 = vmatpush.msrb.mxu2 %v3255_v20  ;;  %1142 = vmatpush.msrb.mxu3 %v3257_v21  ;;  %v417_v21 = vperm.slane %v413_v12, 2 }
  0x7a   : > { %1083 = vmatpush.msrb.mxu0 %v3261_v22  ;;  %1103 = vmatpush.msrb.mxu1 %v3263_v23  ;;  %v418_v22 = vperm.slane %v413_v12, 3 }
  0x7b   : > { %1123 = vmatpush.msrb.mxu2 %v3267_v24  ;;  %1143 = vmatpush.msrb.mxu3 %v3269_v25 }
  0x7c   : > { %1084 = vmatpush.msrb.mxu0 %v3278_v27  ;;  %1104 = vmatpush.msrb.mxu1 %v3280_v28 }
  0x7d   : > { %1124 = vmatpush.msrb.mxu2 %v3284_v29  ;;  %1144 = vmatpush.msrb.mxu3 %v3286_v30 }
  0x7e   : > { %1085 = vmatpush.msrb.mxu0 %v3290_v31  ;;  %1105 = vmatpush.msrb.mxu1 %v3292_v32 }
  0x7f   : > { %1125 = vmatpush.msrb.mxu2 %v3296_v33  ;;  %1145 = vmatpush.msrb.mxu3 %v3298_v34 }
  0x80   : > { %1086 = vmatpush.msrb.mxu0 %v3302_v35  ;;  %1106 = vmatpush.msrb.mxu1 %v3304_v36 }
  0x81   : > { %1126 = vmatpush.msrb.mxu2 %v3308_v37  ;;  %1146 = vmatpush.msrb.mxu3 %v3310_v38 }
  0x82   : > { %1087 = vmatpush.msrb.mxu0 %v3314_v39  ;;  %1107 = vmatpush.msrb.mxu1 %v3316_v40 }
  0x83   : > { %1127 = vmatpush.msrb.mxu2 %v3320_v41  ;;  %1147 = vmatpush.msrb.mxu3 %v3322_v42 }
  0x84   : > { %1088 = vmatpush.msrb.mxu0 %v3331_v44  ;;  %1108 = vmatpush.msrb.mxu1 %v3333_v45 }
  0x85   : > { %1128 = vmatpush.msrb.mxu2 %v3337_v46  ;;  %1148 = vmatpush.msrb.mxu3 %v3339_v47 }
  0x86   : > { %1089 = vmatpush.msrb.mxu0 %v3343_v48  ;;  %1109 = vmatpush.msrb.mxu1 %v3345_v49 }
  0x87   : > { %1129 = vmatpush.msrb.mxu2 %v3349_v50  ;;  %1149 = vmatpush.msrb.mxu3 %v3351_v51 }
  0x88   : > { %1090 = vmatpush.msrb.mxu0 %v3355_v52  ;;  %1110 = vmatpush.msrb.mxu1 %v3357_v53 }
  0x89   : > { %1130 = vmatpush.msrb.mxu2 %v3361_v54  ;;  %1150 = vmatpush.msrb.mxu3 %v3363_v55 }
  0x8a   : > { %1091 = vmatpush.msrb.mxu0 %v3367_v56  ;;  %1111 = vmatpush.msrb.mxu1 %v3369_v57 }
  0x8b   : > { %1131 = vmatpush.msrb.mxu2 %v3373_v58  ;;  %1151 = vmatpush.msrb.mxu3 %v3375_v59 }
  0x8c   : > { %1092 = vmatpush.msrb.mxu0 %v3384_v61  ;;  %1112 = vmatpush.msrb.mxu1 %v3386_v62 }
  0x8d   : > { %1132 = vmatpush.msrb.mxu2 %v3390_v63  ;;  %1152 = vmatpush.msrb.mxu3 %v3392_v0 }
  0x8e   : > { %1093 = vmatpush.msrb.mxu0 %v3396_v1  ;;  %1113 = vmatpush.msrb.mxu1 %v4192_v2 }
  0x8f   : > { %1133 = vmatpush.msrb.mxu2 %v3402_v3  ;;  %1153 = vmatpush.msrb.mxu3 %v3404_v4 }
  0x90   : > { %1094 = vmatpush.msrb.mxu0 %v3408_v5  ;;  %1114 = vmatpush.msrb.mxu1 %v3410_v6 }
  0x91   : > { %1134 = vmatpush.msrb.mxu2 %v3414_v7  ;;  %1154 = vmatpush.msrb.mxu3 %v3416_v8 }
  0x92   : > { %1095 = vmatpush.msrb.mxu0 %v3420_v9  ;;  %1115 = vmatpush.msrb.mxu1 %v3422_v26 }
  0x93   : > { %1135 = vmatpush.msrb.mxu2 %v3426_v43  ;;  %1155 = vmatpush.msrb.mxu3 %v3428_v60 }
  0xa7   : > { %v453_v10 = vpop.f32.mrf.mxu0  ;;  %v482_v11 = vpop.f32.mrf.mxu1 }
  0xa8   : > { %v454_v45 = vadd.f32 %v453_v10, %v415_v15  ;;  %v483_v46 = vadd.f32 %v482_v11, %v416_v16 }
  0xae   : > { %v511_v13 = vpop.f32.mrf.mxu2  ;;  %v540_v14 = vpop.f32.mrf.mxu3 }
  0xaf   : > { %v541_v53 = vadd.f32 %v540_v14, %v418_v22  ;;  %v512_v0 = vadd.f32 %v511_v13, %v417_v21 }
  0xb1   : > { %v456_v17 = vpop.f32.mrf.mxu0  ;;  %v485_v18 = vpop.f32.mrf.mxu1 }
  0xb2   : > { %v3567_v19 = vadd.f32 %v456_v17, %v415_v15  ;;  %v3569_v20 = vadd.f32 %v485_v18, %v416_v16  ;;  %v569_v18 = vld [vmem:[#allocation3 + $0x8] sm:$0xff] }
  0xb8   : > { %v514_v23 = vpop.f32.mrf.mxu2  ;;  %v543_v24 = vpop.f32.mrf.mxu3 }
  0xb9   : > { %v3571_v25 = vadd.f32 %v514_v23, %v417_v21  ;;  %v3573_v27 = vadd.f32 %v543_v24, %v418_v22 }
  0xbb   : > { %v459_v28 = vpop.f32.mrf.mxu0  ;;  %v488_v29 = vpop.f32.mrf.mxu1 }
  0xbc   : > { %v3575_v30 = vadd.f32 %v459_v28, %v415_v15  ;;  %v3577_v31 = vadd.f32 %v488_v29, %v416_v16 }
  0xc2   : > { %v517_v32 = vpop.f32.mrf.mxu2  ;;  %v546_v33 = vpop.f32.mrf.mxu3 }
  0xc3   : > { %v3579_v34 = vadd.f32 %v517_v32, %v417_v21  ;;  %v3581_v35 = vadd.f32 %v546_v33, %v418_v22 }
  0xc5   : > { %v462_v36 = vpop.f32.mrf.mxu0  ;;  %v491_v37 = vpop.f32.mrf.mxu1 }
  0xc6   : > { %v3583_v38 = vadd.f32 %v462_v36, %v415_v15  ;;  %v3585_v39 = vadd.f32 %v491_v37, %v416_v16 }
  0xcc   : > { %v520_v40 = vpop.f32.mrf.mxu2  ;;  %v549_v41 = vpop.f32.mrf.mxu3 }
  0xcd   : > { %v3587_v42 = vadd.f32 %v520_v40, %v417_v21  ;;  %v3589_v44 = vadd.f32 %v549_v41, %v418_v22 }
  0xcf   : > { %v658_v47 = vpop.f32.mrf.mxu0  ;;  %v678_v48 = vpop.f32.mrf.mxu1 }
  0xd0   : > { %v721_v49 = vadd.f32 %v658_v47, %v454_v45  ;;  %v722_v50 = vadd.f32 %v678_v48, %v483_v46 }
  0xd2   : > { %v2693_v51 = vmul.f32 -1.442695, %v721_v49  ;;  %v2694_v52 = vmul.f32 -1.442695, %v722_v50 }
  0xd4   : > { %2790 = vpow2.f32 %v2693_v51 }
  0xd5   : > { %2792 = vpow2.f32 %v2694_v52 }
  0xd6   : > { %v718_v54 = vpop.f32.mrf.mxu3  ;;  %v698_v62 = vpop.f32.mrf.mxu2 }
  0xd7   : > { %v724_v55 = vadd.f32 %v718_v54, %v541_v53  ;;  %v723_v4 = vadd.f32 %v698_v62, %v512_v0 }
  0xd9   : > { %v2695_v56 = vmul.f32 -1.442695, %v724_v55 }
  0xda   : > { %v2791_v57 = vpop.eup %2790 }
  0xdb   : > { %v2793_v58 = vpop.eup %2792  ;;  %v728_v59 = vadd.f32 1.0, %v2791_v57  ;;  %2794 = vpow2.f32 %v2695_v56 }
  0xdc   : > { %v747_v61 = vadd.f32 1.0, %v2793_v58 }
  0xdd   : > { %2796 = vrcp.f32 %v728_v59  ;;  %v740_v26 = vand.u32 2147483648, %v728_v59  ;;  %v738_v2 = vand.u32 2147483647, %v728_v59  ;;  %vm734_vm3 = vweird.f32 %v728_v59 }
  0xde   : > { %2798 = vrcp.f32 %v747_v61  ;;  %v759_v43 = vand.u32 2147483648, %v747_v61  ;;  %v757_v11 = vand.u32 2147483647, %v747_v61  ;;  %vm753_vm4 = vweird.f32 %v747_v61 }
  0xdf   : > { %v741_v14 = vor.u32 1.1754944e-38, %v740_v26  ;;  %vm739_vm7 = vcmp.eq.f32.partialorder %v738_v2, 8.507059e+37  ;;  %v1290_v26 = vld [vmem:[#allocation7 + $0x1b0] sm:$0xff]  ;;  %v1284_v2 = vld [vmem:[#allocation7 + $0x180] sm:$0xff] }
  0xe0   : > { %v760_v17 = vor.u32 1.1754944e-38, %v759_v43  ;;  %vm758_vm8 = vcmp.eq.f32.partialorder %v757_v11, 8.507059e+37  ;;  %v1291_v43 = vld [vmem:[#allocation7 + $0x1b8] sm:$0xff] }
  0xe1   : > { %v2795_v63 = vpop.eup %2794 }
  0xe2   : > { %v767_v1 = vadd.f32 1.0, %v2795_v63 }
  0xe3   : > { %v2797_v3 = vpop.eup %2796 }
  0xe4   : > { %v2799_v5 = vpop.eup %2798  ;;  %v730_v6 = vmul.f32 %v2797_v3, %v728_v59  ;;  %2800 = vrcp.f32 %v767_v1  ;;  %vm735_vm1 = vweird.f32 %v2797_v3  ;;  %v779_v41 = vand.u32 2147483648, %v767_v1 }
  0xe5   : > { %v749_v7 = vmul.f32 %v2799_v5, %v747_v61  ;;  %2802 = vtanh.f32 %v723_v4  ;;  %vm754_vm2 = vweird.f32 %v2799_v5  ;;  %vm736_vm5 = vmor %vm734_vm3, %vm735_vm1  ;;  %vm773_vm10 = vweird.f32 %v767_v1  ;;  %v1292_v4 = vld [vmem:[#allocation7 + $0x1c0] sm:$0xff] }
  0xe6   : > { %v731_v8 = vsub.f32 1.0, %v730_v6  ;;  %vm755_vm6 = vmor %vm753_vm4, %vm754_vm2  ;;  %v777_v45 = vand.u32 2147483647, %v767_v1  ;;  %v780_v47 = vor.u32 1.1754944e-38, %v779_v41  ;;  %v1295_v6 = vld [vmem:[#allocation7 + $0x1d8] sm:$0xff] }
  0xe7   : > { %v750_v9 = vsub.f32 1.0, %v749_v7  ;;  %v1288_v7 = vld [vmem:[#allocation7 + $0x1a0] sm:$0xff] }
  0xe8   : > { %v732_v60 = vmul.f32 %v2797_v3, %v731_v8  ;;  %vm778_vm12 = vcmp.eq.f32.partialorder %v777_v45, 8.507059e+37 }
  0xe9   : > { %v751_v10 = vmul.f32 %v2799_v5, %v750_v9  ;;  %v1289_v9 = vld [vmem:[#allocation7 + $0x1a8] sm:$0xff] }
  0xea   : > { %v2801_v12 = vpop.eup %2800  ;;  %v733_v13 = vadd.f32 %v2797_v3, %v732_v60 }
  0xeb   : > { %v752_v15 = vadd.f32 %v2799_v5, %v751_v10  ;;  %v769_v16 = vmul.f32 %v2801_v12, %v767_v1  ;;  %v2803_v22 = vpop.eup %2802  ;;  %vm774_vm9 = vweird.f32 %v2801_v12  ;;  %v1297_v1 = vld [vmem:[#allocation7 + $0x1e8] sm:$0xff] }
  0xec   : > { %v737_v21 = vsel %vm736_vm5, %v2797_v3, %v733_v13  ;;  %vm775_vm11 = vmor %vm773_vm10, %vm774_vm9  ;;  %v1299_v3 = vld [vmem:[#allocation7 + $0x1f8] sm:$0xff]  ;;  %v1285_v10 = vld [vmem:[#allocation7 + $0x188] sm:$0xff] }
  0xed   : > { %v742_v23 = vsel %vm739_vm7, %v741_v14, %v737_v21  ;;  %v756_v24 = vsel %vm755_vm6, %v2799_v5, %v752_v15  ;;  %v770_v28 = vsub.f32 1.0, %v769_v16  ;;  %v1294_v5 = vld [vmem:[#allocation7 + $0x1d0] sm:$0xff]  ;;  %v1287_v13 = vld [vmem:[#allocation7 + $0x198] sm:$0xff]  ;;  %v1280_v16 = vld [vmem:[#allocation7 + $0x160] sm:$0xff] }
  0xee   : > { %v761_v29 = vsel %vm758_vm8, %v760_v17, %v756_v24  ;;  %v784_v32 = vmul.f32 %v2803_v22, %v742_v23  ;;  %v1281_v17 = vld [vmem:[#allocation7 + $0x168] sm:$0xff]  ;;  %v1282_v22 = vld [vmem:[#allocation7 + $0x170] sm:$0xff]  ;;  %v1283_v23 = vld [vmem:[#allocation7 + $0x178] sm:$0xff] }
  0xef   : > { %v783_v33 = vmul.f32 %v761_v29, %v569_v18  ;;  %v771_v36 = vmul.f32 %v2801_v12, %v770_v28 }
  0xf1   : > { %v3591_v37 = vadd.f32 %v784_v32, %v783_v33  ;;  %v772_v40 = vadd.f32 %v2801_v12, %v771_v36 }
  0xf3   : > { %2804 = vtanh.f32 %v3591_v37  ;;  %v776_v46 = vsel %vm775_vm11, %v2801_v12, %v772_v40  ;;  %v1286_v12 = vld [vmem:[#allocation7 + $0x190] sm:$0xff] }
  0xf4   : > { %v781_v49 = vsel %vm778_vm12, %v780_v47, %v776_v46 }
  0xf9   : > { %v2805_v48 = vpop.eup %2804 }
  0xfa   : > { %v3594_v50 = vmul.f32 %v2805_v48, %v781_v49 }
  0xfc   : > { %876 = vmatmul.f32.vlgmr.msra.gmra.mxu0 %v3594_v50  ;;  %896 = vmatmul.f32.vlgmr.msra.gmra.mxu1 %v3594_v50 }
  0xfd   : > { %916 = vmatmul.f32.vlgmr.msra.gmra.mxu2 %v3594_v50  ;;  %936 = vmatmul.f32.vlgmr.msra.gmra.mxu3 %v3594_v50 }
  0xfe   : > { %1320 = vmatpush.msra.mxu1 %v1297_v1  ;;  %1360 = vmatpush.msra.mxu3 %v1299_v3 }
 0x100   : > { %1361 = vmatpush.msra.mxu3 %v1295_v6  ;;  %v1278_v6 = vld [vmem:[#allocation7 + $0x150] sm:$0xff] }
 0x102   : > { %1362 = vmatpush.msra.mxu3 %v1291_v43  ;;  %v1275_v43 = vld [vmem:[#allocation7 + $0x138] sm:$0xff] }
 0x104   : > { %1363 = vmatpush.msra.mxu3 %v1287_v13  ;;  %v1265_v13 = vld [vmem:[#allocation7 + $0xe8] sm:$0xff] }
 0x106   : > { %1364 = vmatpush.msra.mxu3 %v1283_v23  ;;  %v1257_v23 = vld [vmem:[#allocation7 + $0xa8] sm:$0xff] }
 0x179   : > { %v877_v51 = vpop.f32.mrf.mxu0  ;;  %v897_v52 = vpop.f32.mrf.mxu1 }
 0x17a   : > { %v940_v53 = vadd.f32 %v877_v51, %v3567_v19  ;;  %v941_v54 = vadd.f32 %v897_v52, %v3569_v20  ;;  %v1296_v19 = vld [vmem:[#allocation7 + $0x1e0] sm:$0xff]  ;;  %v1298_v20 = vld [vmem:[#allocation7 + $0x1f0] sm:$0xff] }
 0x17b   : > { %1300 = vmatpush.msra.mxu0 %v1296_v19  ;;  %1340 = vmatpush.msra.mxu2 %v1298_v20 }
 0x17c   : > { %v2696_v55 = vmul.f32 -1.442695, %v940_v53  ;;  %v2697_v56 = vmul.f32 -1.442695, %v941_v54 }
 0x17d   : > { %1301 = vmatpush.msra.mxu0 %v1292_v4  ;;  %1341 = vmatpush.msra.mxu2 %v1294_v5  ;;  %v1277_v5 = vld [vmem:[#allocation7 + $0x148] sm:$0xff] }
 0x17e   : > { %2806 = vpow2.f32 %v2696_v55 }
 0x17f   : > { %2808 = vpow2.f32 %v2697_v56  ;;  %1302 = vmatpush.msra.mxu0 %v1288_v7  ;;  %1342 = vmatpush.msra.mxu2 %v1290_v26  ;;  %v1279_v7 = vld [vmem:[#allocation7 + $0x158] sm:$0xff]  ;;  %v1274_v26 = vld [vmem:[#allocation7 + $0x130] sm:$0xff] }
 0x180   : > { %v937_v57 = vpop.f32.mrf.mxu3  ;;  %v917_v8 = vpop.f32.mrf.mxu2  ;;  %1365 = vmatpush.msra.mxu3 %v1279_v7  ;;  %v1503_v7 = vld [vmem:[#allocation10 + $0x180] sm:$0xff] }
 0x181   : > { %v943_v58 = vadd.f32 %v937_v57, %v3573_v27  ;;  %v1293_v27 = vld [vmem:[#allocation7 + $0x1c8] sm:$0xff]  ;;  %v942_v15 = vadd.f32 %v917_v8, %v3571_v25  ;;  %1303 = vmatpush.msra.mxu0 %v1284_v2  ;;  %1343 = vmatpush.msra.mxu2 %v1286_v12  ;;  %v1272_v8 = vld [vmem:[#allocation7 + $0x120] sm:$0xff] }
 0x182   : > { %1321 = vmatpush.msra.mxu1 %v1293_v27  ;;  %v1276_v27 = vld [vmem:[#allocation7 + $0x140] sm:$0xff]  ;;  %1366 = vmatpush.msra.mxu3 %v1275_v43  ;;  %v1269_v2 = vld [vmem:[#allocation7 + $0x108] sm:$0xff] }
 0x183   : > { %v2698_v59 = vmul.f32 -1.442695, %v943_v58  ;;  %1304 = vmatpush.msra.mxu0 %v1280_v16  ;;  %1344 = vmatpush.msra.mxu2 %v1282_v22  ;;  %v1264_v12 = vld [vmem:[#allocation7 + $0xe0] sm:$0xff] }
 0x184   : > { %v2807_v61 = vpop.eup %2806  ;;  %1322 = vmatpush.msra.mxu1 %v1289_v9  ;;  %v1273_v9 = vld [vmem:[#allocation7 + $0x128] sm:$0xff]  ;;  %v1260_v16 = vld [vmem:[#allocation7 + $0xc0] sm:$0xff] }
 0x185   : > { %v2809_v62 = vpop.eup %2808  ;;  %v3603_v63 = vadd.f32 1.0, %v2807_v61  ;;  %2810 = vpow2.f32 %v2698_v59  ;;  %1305 = vmatpush.msra.mxu0 %v1276_v27  ;;  %1345 = vmatpush.msra.mxu2 %v1278_v6  ;;  %v1256_v22 = vld [vmem:[#allocation7 + $0xa0] sm:$0xff]  ;;  %v1508_v27 = vld [vmem:[#allocation10 + $0x1a8] sm:$0xff]  ;;  %v1510_v6 = vld [vmem:[#allocation10 + $0x1b8] sm:$0xff] }
 0x186   : > { %v3605_v0 = vadd.f32 1.0, %v2809_v62  ;;  %1323 = vmatpush.msra.mxu1 %v1285_v10  ;;  %v1270_v10 = vld [vmem:[#allocation7 + $0x110] sm:$0xff]  ;;  %v1499_v43 = vld [vmem:[#allocation10 + $0x160] sm:$0xff] }
 0x187   : > { %2812 = vrcp.f32 %v3603_v63  ;;  %v959_v29 = vand.u32 2147483648, %v3603_v63  ;;  %v957_v36 = vand.u32 2147483647, %v3603_v63  ;;  %vm953_vm15 = vweird.f32 %v3603_v63  ;;  %1306 = vmatpush.msra.mxu0 %v1272_v8  ;;  %1346 = vmatpush.msra.mxu2 %v1274_v26  ;;  %v1504_v8 = vld [vmem:[#allocation10 + $0x188] sm:$0xff]  ;;  %v1506_v26 = vld [vmem:[#allocation10 + $0x198] sm:$0xff] }
 0x188   : > { %2814 = vrcp.f32 %v3605_v0  ;;  %1324 = vmatpush.msra.mxu1 %v1281_v17  ;;  %v978_v32 = vand.u32 2147483648, %v3605_v0  ;;  %v976_v41 = vand.u32 2147483647, %v3605_v0  ;;  %vm972_vm0 = vweird.f32 %v3605_v0  ;;  %v1261_v17 = vld [vmem:[#allocation7 + $0xc8] sm:$0xff] }
 0x189   : > { %v960_v47 = vor.u32 1.1754944e-38, %v959_v29  ;;  %vm958_vm3 = vcmp.eq.f32.partialorder %v957_v36, 8.507059e+37  ;;  %1347 = vmatpush.msra.mxu2 %v1270_v10  ;;  %v1253_v29 = vld [vmem:[#allocation7 + $0x88] sm:$0xff]  ;;  %v1248_v36 = vld [vmem:[#allocation7 + $0x60] sm:$0xff]  ;;  %v1502_v10 = vld [vmem:[#allocation10 + $0x178] sm:$0xff] }
 0x18a   : > { %v979_v51 = vor.u32 1.1754944e-38, %v978_v32  ;;  %vm977_vm4 = vcmp.eq.f32.partialorder %v976_v41, 8.507059e+37  ;;  %1325 = vmatpush.msra.mxu1 %v1277_v5  ;;  %v1254_v32 = vld [vmem:[#allocation7 + $0x90] sm:$0xff] }
 0x18b   : > { %v2811_v60 = vpop.eup %2810  ;;  %v1250_v41 = vld [vmem:[#allocation7 + $0x70] sm:$0xff] }
 0x18c   : > { %v3609_v11 = vadd.f32 1.0, %v2811_v60  ;;  %1326 = vmatpush.msra.mxu1 %v1273_v9  ;;  %v1268_v60 = vld [vmem:[#allocation7 + $0x100] sm:$0xff]  ;;  %v1509_v5 = vld [vmem:[#allocation10 + $0x1b0] sm:$0xff] }
 0x18d   : > { %v2813_v14 = vpop.eup %2812  ;;  %1307 = vmatpush.msra.mxu0 %v1268_v60  ;;  %v1505_v9 = vld [vmem:[#allocation10 + $0x190] sm:$0xff]  ;;  %v1500_v60 = vld [vmem:[#allocation10 + $0x168] sm:$0xff] }
 0x18e   : > { %v2815_v18 = vpop.eup %2814  ;;  %v949_v21 = vmul.f32 %v2813_v14, %v3603_v63  ;;  %2816 = vrcp.f32 %v3609_v11  ;;  %vm954_vm13 = vweird.f32 %v2813_v14  ;;  %vm992_vm6 = vweird.f32 %v3609_v11  ;;  %1327 = vmatpush.msra.mxu1 %v1269_v2  ;;  %v1501_v2 = vld [vmem:[#allocation10 + $0x170] sm:$0xff] }
 0x18f   : > { %v968_v24 = vmul.f32 %v2815_v18, %v3605_v0  ;;  %2818 = vtanh.f32 %v942_v15  ;;  %vm973_vm14 = vweird.f32 %v2815_v18  ;;  %vm955_vm1 = vmor %vm953_vm15, %vm954_vm13  ;;  %v998_v0 = vand.u32 2147483648, %v3609_v11  ;;  %1308 = vmatpush.msra.mxu0 %v1264_v12  ;;  %v1267_v15 = vld [vmem:[#allocation7 + $0xf8] sm:$0xff] }
 0x190   : > { %v950_v28 = vsub.f32 1.0, %v949_v21  ;;  %vm974_vm2 = vmor %vm972_vm0, %vm973_vm14  ;;  %v996_v19 = vand.u32 2147483647, %v3609_v11  ;;  %1328 = vmatpush.msra.mxu1 %v1265_v13  ;;  %v1263_v21 = vld [vmem:[#allocation7 + $0xd8] sm:$0xff]  ;;  %v1495_v13 = vld [vmem:[#allocation10 + $0x140] sm:$0xff] }
 0x191   : > { %v969_v25 = vsub.f32 1.0, %v968_v24  ;;  %v999_v20 = vor.u32 1.1754944e-38, %v998_v0  ;;  %1309 = vmatpush.msra.mxu0 %v1260_v16  ;;  %v1258_v24 = vld [vmem:[#allocation7 + $0xb0] sm:$0xff]  ;;  %v1518_v0 = vld [vmem:[#allocation10 + $0x1f8] sm:$0xff] }
 0x192   : > { %v951_v33 = vmul.f32 %v2813_v14, %v950_v28  ;;  %vm997_vm8 = vcmp.eq.f32.partialorder %v996_v19, 8.507059e+37  ;;  %1329 = vmatpush.msra.mxu1 %v1261_v17  ;;  %v1259_v28 = vld [vmem:[#allocation7 + $0xb8] sm:$0xff]  ;;  %v1511_v19 = vld [vmem:[#allocation10 + $0x1c0] sm:$0xff] }
 0x193   : > { %v970_v40 = vmul.f32 %v2815_v18, %v969_v25  ;;  %1310 = vmatpush.msra.mxu0 %v1256_v22  ;;  %v1252_v25 = vld [vmem:[#allocation7 + $0x80] sm:$0xff]  ;;  %v1492_v22 = vld [vmem:[#allocation10 + $0x128] sm:$0xff] }
 0x194   : > { %v2817_v45 = vpop.eup %2816  ;;  %v952_v46 = vadd.f32 %v2813_v14, %v951_v33  ;;  %1330 = vmatpush.msra.mxu1 %v1257_v23  ;;  %v1255_v33 = vld [vmem:[#allocation7 + $0x98] sm:$0xff]  ;;  %v1493_v23 = vld [vmem:[#allocation10 + $0x130] sm:$0xff] }
 0x195   : > { %v971_v48 = vadd.f32 %v2815_v18, %v970_v40  ;;  %v988_v49 = vmul.f32 %v2817_v45, %v3609_v11  ;;  %v2819_v53 = vpop.eup %2818  ;;  %vm993_vm5 = vweird.f32 %v2817_v45  ;;  %v1271_v11 = vld [vmem:[#allocation7 + $0x118] sm:$0xff]  ;;  %1311 = vmatpush.msra.mxu0 %v1252_v25  ;;  %v1249_v40 = vld [vmem:[#allocation7 + $0x68] sm:$0xff] }
 0x196   : > { %v956_v52 = vsel %vm955_vm1, %v2813_v14, %v952_v46  ;;  %vm994_vm7 = vmor %vm992_vm6, %vm993_vm5  ;;  %1367 = vmatpush.msra.mxu3 %v1271_v11  ;;  %v1266_v14 = vld [vmem:[#allocation7 + $0xf0] sm:$0xff]  ;;  %1331 = vmatpush.msra.mxu1 %v1253_v29  ;;  %v1244_v46 = vld [vmem:[#allocation7 + $0x40] sm:$0xff] }
 0x197   : > { %v961_v54 = vsel %vm958_vm3, %v960_v47, %v956_v52  ;;  %v975_v55 = vsel %vm974_vm2, %v2815_v18, %v971_v48  ;;  %v989_v56 = vsub.f32 1.0, %v988_v49  ;;  %1348 = vmatpush.msra.mxu2 %v1266_v14  ;;  %v1262_v18 = vld [vmem:[#allocation7 + $0xd0] sm:$0xff]  ;;  %1312 = vmatpush.msra.mxu0 %v1248_v36  ;;  %v1245_v47 = vld [vmem:[#allocation7 + $0x48] sm:$0xff]  ;;  %v1247_v49 = vld [vmem:[#allocation7 + $0x58] sm:$0xff] }
 0x198   : > { %v980_v57 = vsel %vm977_vm4, %v979_v51, %v975_v55  ;;  %v1003_v58 = vmul.f32 %v2819_v53, %v961_v54  ;;  %1368 = vmatpush.msra.mxu3 %v1267_v15  ;;  %1332 = vmatpush.msra.mxu1 %v1249_v40  ;;  %v1246_v48 = vld [vmem:[#allocation7 + $0x50] sm:$0xff]  ;;  %v1240_v51 = vld [vmem:[#allocation7 + $0x20] sm:$0xff]  ;;  %v1241_v52 = vld [vmem:[#allocation7 + $0x28] sm:$0xff] }
 0x199   : > { %v1002_v59 = vmul.f32 %v980_v57, %v3591_v37  ;;  %v990_v61 = vmul.f32 %v2817_v45, %v989_v56  ;;  %1349 = vmatpush.msra.mxu2 %v1262_v18  ;;  %1313 = vmatpush.msra.mxu0 %v1244_v46  ;;  %v1242_v53 = vld [vmem:[#allocation7 + $0x30] sm:$0xff]  ;;  %v1243_v54 = vld [vmem:[#allocation7 + $0x38] sm:$0xff]  ;;  %v1236_v55 = vld [vmem:[#allocation7] sm:$0xff] }
 0x19a   : > { %1369 = vmatpush.msra.mxu3 %v1263_v21  ;;  %1333 = vmatpush.msra.mxu1 %v1245_v47  ;;  %v1237_v56 = vld [vmem:[#allocation7 + $0x8] sm:$0xff]  ;;  %v1238_v57 = vld [vmem:[#allocation7 + $0x10] sm:$0xff]  ;;  %v1498_v18 = vld [vmem:[#allocation10 + $0x158] sm:$0xff] }
 0x19b   : > { %v3623_v62 = vadd.f32 %v1003_v58, %v1002_v59  ;;  %v991_v63 = vadd.f32 %v2817_v45, %v990_v61  ;;  %1350 = vmatpush.msra.mxu2 %v1258_v24  ;;  %1314 = vmatpush.msra.mxu0 %v1240_v51  ;;  %v1239_v58 = vld [vmem:[#allocation7 + $0x18] sm:$0xff]  ;;  %v1515_v59 = vld [vmem:[#allocation10 + $0x1e0] sm:$0xff]  ;;  %v1516_v61 = vld [vmem:[#allocation10 + $0x1e8] sm:$0xff] }
 0x19c   : > { %1370 = vmatpush.msra.mxu3 %v1259_v28  ;;  %1334 = vmatpush.msra.mxu1 %v1241_v52  ;;  %v1496_v14 = vld [vmem:[#allocation10 + $0x148] sm:$0xff]  ;;  %v1497_v15 = vld [vmem:[#allocation10 + $0x150] sm:$0xff]  ;;  %v1491_v21 = vld [vmem:[#allocation10 + $0x120] sm:$0xff] }
 0x19d   : > { %2820 = vtanh.f32 %v3623_v62  ;;  %v995_v1 = vsel %vm994_vm7, %v2817_v45, %v991_v63  ;;  %1351 = vmatpush.msra.mxu2 %v1254_v32  ;;  %v1251_v45 = vld [vmem:[#allocation7 + $0x78] sm:$0xff]  ;;  %1315 = vmatpush.msra.mxu0 %v1236_v55  ;;  %v1517_v63 = vld [vmem:[#allocation10 + $0x1f0] sm:$0xff]  ;;  %v1487_v29 = vld [vmem:[#allocation10 + $0x100] sm:$0xff] }
 0x19e   : > { %v1000_v4 = vsel %vm997_vm8, %v999_v20, %v995_v1  ;;  %1371 = vmatpush.msra.mxu3 %v1255_v33  ;;  %1335 = vmatpush.msra.mxu1 %v1237_v56  ;;  %v1512_v1 = vld [vmem:[#allocation10 + $0x1c8] sm:$0xff]  ;;  %v1513_v20 = vld [vmem:[#allocation10 + $0x1d0] sm:$0xff]  ;;  %v1494_v25 = vld [vmem:[#allocation10 + $0x138] sm:$0xff] }
 0x19f   : > { %1352 = vmatpush.msra.mxu2 %v1250_v41  ;;  %v1488_v32 = vld [vmem:[#allocation10 + $0x108] sm:$0xff]  ;;  %v1483_v33 = vld [vmem:[#allocation10 + $0xe0] sm:$0xff]  ;;  %v1485_v40 = vld [vmem:[#allocation10 + $0xf0] sm:$0xff] }
 0x1a0   : > { %1372 = vmatpush.msra.mxu3 %v1251_v45  ;;  %v1484_v36 = vld [vmem:[#allocation10 + $0xe8] sm:$0xff]  ;;  %v1486_v45 = vld [vmem:[#allocation10 + $0xf8] sm:$0xff]  ;;  %v1479_v47 = vld [vmem:[#allocation10 + $0xc0] sm:$0xff] }
 0x1a1   : > { %1353 = vmatpush.msra.mxu2 %v1246_v48  ;;  %v1480_v48 = vld [vmem:[#allocation10 + $0xc8] sm:$0xff]  ;;  %v1482_v51 = vld [vmem:[#allocation10 + $0xd8] sm:$0xff]  ;;  %v1477_v55 = vld [vmem:[#allocation10 + $0xb0] sm:$0xff] }
 0x1a2   : > { %1373 = vmatpush.msra.mxu3 %v1247_v49  ;;  %v1481_v49 = vld [vmem:[#allocation10 + $0xd0] sm:$0xff] }
 0x1a3   : > { %v2821_v3 = vpop.eup %2820  ;;  %1354 = vmatpush.msra.mxu2 %v1242_v53  ;;  %v1475_v53 = vld [vmem:[#allocation10 + $0xa0] sm:$0xff] }
 0x1a4   : > { %v3629_v37 = vmul.f32 %v2821_v3, %v1000_v4  ;;  %1374 = vmatpush.msra.mxu3 %v1243_v54  ;;  %v1514_v3 = vld [vmem:[#allocation10 + $0x1d8] sm:$0xff]  ;;  %v1507_v4 = vld [vmem:[#allocation10 + $0x1a0] sm:$0xff]  ;;  %v1476_v54 = vld [vmem:[#allocation10 + $0xa8] sm:$0xff] }
 0x1a5   : > { %1355 = vmatpush.msra.mxu2 %v1238_v57  ;;  %v1478_v57 = vld [vmem:[#allocation10 + $0xb8] sm:$0xff] }
 0x1a6   : > { %1096 = vmatmul.f32.vlgmr.msrb.gmra.mxu0 %v3629_v37  ;;  %1116 = vmatmul.f32.vlgmr.msrb.gmra.mxu1 %v3629_v37 }
 0x1a7   : > { %1136 = vmatmul.f32.vlgmr.msrb.gmra.mxu2 %v3629_v37  ;;  %1156 = vmatmul.f32.vlgmr.msrb.gmra.mxu3 %v3629_v37 }
 0x1a8   : > { %1375 = vmatpush.msra.mxu3 %v1239_v58  ;;  %1529 = vmatpush.msrb.mxu0 %v1515_v59  ;;  %v1471_v58 = vld [vmem:[#allocation10 + $0x80] sm:$0xff] }
 0x1a9   : > { %1558 = vmatpush.msrb.mxu1 %v1516_v61  ;;  %1587 = vmatpush.msrb.mxu2 %v1517_v63  ;;  %v1473_v63 = vld [vmem:[#allocation10 + $0x90] sm:$0xff] }
 0x1aa   : > { %1616 = vmatpush.msrb.mxu3 %v1518_v0  ;;  %1530 = vmatpush.msrb.mxu0 %v1511_v19  ;;  %v1474_v0 = vld [vmem:[#allocation10 + $0x98] sm:$0xff] }
 0x1ab   : > { %1559 = vmatpush.msrb.mxu1 %v1512_v1  ;;  %1588 = vmatpush.msrb.mxu2 %v1513_v20  ;;  %v1467_v1 = vld [vmem:[#allocation10 + $0x60] sm:$0xff]  ;;  %v1468_v20 = vld [vmem:[#allocation10 + $0x68] sm:$0xff] }
 0x1ac   : > { %1617 = vmatpush.msrb.mxu3 %v1514_v3  ;;  %1531 = vmatpush.msrb.mxu0 %v1507_v4  ;;  %v1469_v3 = vld [vmem:[#allocation10 + $0x70] sm:$0xff]  ;;  %v1470_v4 = vld [vmem:[#allocation10 + $0x78] sm:$0xff] }
 0x1ad   : > { %1560 = vmatpush.msrb.mxu1 %v1508_v27  ;;  %1589 = vmatpush.msrb.mxu2 %v1509_v5  ;;  %v1463_v27 = vld [vmem:[#allocation10 + $0x40] sm:$0xff]  ;;  %v1464_v5 = vld [vmem:[#allocation10 + $0x48] sm:$0xff] }
 0x1ae   : > { %1618 = vmatpush.msrb.mxu3 %v1510_v6  ;;  %1532 = vmatpush.msrb.mxu0 %v1503_v7  ;;  %v1465_v6 = vld [vmem:[#allocation10 + $0x50] sm:$0xff]  ;;  %v1466_v7 = vld [vmem:[#allocation10 + $0x58] sm:$0xff] }
 0x1af   : > { %1561 = vmatpush.msrb.mxu1 %v1504_v8  ;;  %1590 = vmatpush.msrb.mxu2 %v1505_v9  ;;  %v1459_v9 = vld [vmem:[#allocation10 + $0x20] sm:$0xff] }
 0x1b0   : > { %1619 = vmatpush.msrb.mxu3 %v1506_v26  ;;  %1533 = vmatpush.msrb.mxu0 %v1499_v43  ;;  %v1460_v26 = vld [vmem:[#allocation10 + $0x28] sm:$0xff] }
 0x1b1   : > { %1562 = vmatpush.msrb.mxu1 %v1500_v60  ;;  %1591 = vmatpush.msrb.mxu2 %v1501_v2  ;;  %v1461_v60 = vld [vmem:[#allocation10 + $0x30] sm:$0xff]  ;;  %v1462_v2 = vld [vmem:[#allocation10 + $0x38] sm:$0xff] }
 0x1b2   : > { %1620 = vmatpush.msrb.mxu3 %v1502_v10  ;;  %1534 = vmatpush.msrb.mxu0 %v1495_v13 }
 0x1b3   : > { %1563 = vmatpush.msrb.mxu1 %v1496_v14  ;;  %1592 = vmatpush.msrb.mxu2 %v1497_v15  ;;  %v1457_v15 = vld [vmem:[#allocation10 + $0x10] sm:$0xff] }
 0x1b4   : > { %1621 = vmatpush.msrb.mxu3 %v1498_v18  ;;  %1535 = vmatpush.msrb.mxu0 %v1491_v21 }
 0x1b5   : > { %1564 = vmatpush.msrb.mxu1 %v1492_v22  ;;  %1593 = vmatpush.msrb.mxu2 %v1493_v23 }
 0x1b6   : > { %1622 = vmatpush.msrb.mxu3 %v1494_v25  ;;  %1536 = vmatpush.msrb.mxu0 %v1487_v29 }
 0x1b7   : > { %1565 = vmatpush.msrb.mxu1 %v1488_v32 }
 0x1b8   : > { %1537 = vmatpush.msrb.mxu0 %v1483_v33 }
 0x1b9   : > { %1566 = vmatpush.msrb.mxu1 %v1484_v36 }
 0x1ba   : > { %1538 = vmatpush.msrb.mxu0 %v1479_v47 }
 0x1bb   : > { %1567 = vmatpush.msrb.mxu1 %v1480_v48 }
 0x1bc   : > { %1539 = vmatpush.msrb.mxu0 %v1475_v53 }
 0x1bd   : > { %1568 = vmatpush.msrb.mxu1 %v1476_v54 }
 0x1be   : > { %1540 = vmatpush.msrb.mxu0 %v1471_v58 }
 0x1c0   : > { %1541 = vmatpush.msrb.mxu0 %v1467_v1  ;;  %v3676_v1 = vld [vmem:[#allocation12 + $0x1f0] sm:$0xff] }
 0x1c2   : > { %1542 = vmatpush.msrb.mxu0 %v1463_v27  ;;  %v3696_v27 = vld [vmem:[#allocation12 + $0x1a0] sm:$0xff] }
 0x1c3   : > { %4194 = vst [vmem:[#allocation18_spill] sm:$0xff] %v3696_v27 }
 0x1c4   : > { %1543 = vmatpush.msrb.mxu0 %v1459_v9  ;;  %v3710_v9 = vld [vmem:[#allocation12 + $0x188] sm:$0xff] }
 0x223   : > { %v1097_v11 = vpop.f32.mrf.mxu0  ;;  %v1117_v12 = vpop.f32.mrf.mxu1 }
 0x224   : > { %v1160_v16 = vadd.f32 %v1097_v11, %v3575_v30  ;;  %v1161_v17 = vadd.f32 %v1117_v12, %v3577_v31  ;;  %v1489_v30 = vld [vmem:[#allocation10 + $0x110] sm:$0xff]  ;;  %v1490_v31 = vld [vmem:[#allocation10 + $0x118] sm:$0xff]  ;;  %v1455_v11 = vld [vmem:[#allocation10] sm:$0xff] }
 0x225   : > { %1594 = vmatpush.msrb.mxu2 %v1489_v30  ;;  %1623 = vmatpush.msrb.mxu3 %v1490_v31  ;;  %v1456_v12 = vld [vmem:[#allocation10 + $0x8] sm:$0xff] }
 0x226   : > { %v2699_v24 = vmul.f32 -1.442695, %v1160_v16  ;;  %v2700_v28 = vmul.f32 -1.442695, %v1161_v17  ;;  %v1458_v16 = vld [vmem:[#allocation10 + $0x18] sm:$0xff]  ;;  %1544 = vmatpush.msrb.mxu0 %v1455_v11 }
 0x227   : > { %1595 = vmatpush.msrb.mxu2 %v1485_v40  ;;  %1624 = vmatpush.msrb.mxu3 %v1486_v45  ;;  %v3728_v11 = vld [vmem:[#allocation12 + $0x178] sm:$0xff] }
 0x228   : > { %2822 = vpow2.f32 %v2699_v24 }
 0x229   : > { %2824 = vpow2.f32 %v2700_v28  ;;  %1596 = vmatpush.msrb.mxu2 %v1481_v49  ;;  %1625 = vmatpush.msrb.mxu3 %v1482_v51 }
 0x22a   : > { %v1157_v41 = vpop.f32.mrf.mxu3  ;;  %v1137_v8 = vpop.f32.mrf.mxu2 }
 0x22b   : > { %v1163_v46 = vadd.f32 %v1157_v41, %v3581_v35  ;;  %v1472_v35 = vld [vmem:[#allocation10 + $0x88] sm:$0xff]  ;;  %1597 = vmatpush.msrb.mxu2 %v1477_v55  ;;  %1626 = vmatpush.msrb.mxu3 %v1478_v57  ;;  %v1162_v14 = vadd.f32 %v1137_v8, %v3579_v34  ;;  %v3708_v8 = vld [vmem:[#allocation12 + $0x180] sm:$0xff] }
 0x22c   : > { %1569 = vmatpush.msrb.mxu1 %v1472_v35 }
 0x22d   : > { %v2701_v52 = vmul.f32 -1.442695, %v1163_v46  ;;  %1598 = vmatpush.msrb.mxu2 %v1473_v63  ;;  %1627 = vmatpush.msrb.mxu3 %v1474_v0  ;;  %v3672_v0 = vld [vmem:[#allocation12 + $0x1e0] sm:$0xff] }
 0x22e   : > { %v2823_v56 = vpop.eup %2822  ;;  %1570 = vmatpush.msrb.mxu1 %v1468_v20  ;;  %v3686_v20 = vld [vmem:[#allocation12 + $0x1c8] sm:$0xff] }
 0x22f   : > { %v2825_v59 = vpop.eup %2824  ;;  %v3638_v61 = vadd.f32 1.0, %v2823_v56  ;;  %2826 = vpow2.f32 %v2701_v52  ;;  %1599 = vmatpush.msrb.mxu2 %v1469_v3  ;;  %1628 = vmatpush.msrb.mxu3 %v1470_v4  ;;  %v3688_v3 = vld [vmem:[#allocation12 + $0x1d0] sm:$0xff]  ;;  %v3692_v4 = vld [vmem:[#allocation12 + $0x1d8] sm:$0xff] }
 0x230   : > { %v3640_v19 = vadd.f32 1.0, %v2825_v59  ;;  %1571 = vmatpush.msrb.mxu1 %v1464_v5  ;;  %v3698_v5 = vld [vmem:[#allocation12 + $0x1a8] sm:$0xff] }
 0x231   : > { %2828 = vrcp.f32 %v3638_v61  ;;  %1600 = vmatpush.msrb.mxu2 %v1465_v6  ;;  %1629 = vmatpush.msrb.mxu3 %v1466_v7  ;;  %v1179_v34 = vand.u32 2147483648, %v3638_v61  ;;  %v1177_v25 = vand.u32 2147483647, %v3638_v61  ;;  %vm1173_vm11 = vweird.f32 %v3638_v61  ;;  %v3700_v6 = vld [vmem:[#allocation12 + $0x1b0] sm:$0xff]  ;;  %v3704_v7 = vld [vmem:[#allocation12 + $0x1b8] sm:$0xff] }
 0x232   : > { %2830 = vrcp.f32 %v3640_v19  ;;  %1572 = vmatpush.msrb.mxu1 %v1460_v26  ;;  %v1198_v24 = vand.u32 2147483648, %v3640_v19  ;;  %v1196_v32 = vand.u32 2147483647, %v3640_v19  ;;  %vm1192_vm12 = vweird.f32 %v3640_v19  ;;  %v3712_v26 = vld [vmem:[#allocation12 + $0x190] sm:$0xff] }
 0x233   : > { %1601 = vmatpush.msrb.mxu2 %v1461_v60  ;;  %1630 = vmatpush.msrb.mxu3 %v1462_v2  ;;  %v1180_v33 = vor.u32 1.1754944e-38, %v1179_v34  ;;  %vm1178_vm15 = vcmp.eq.f32.partialorder %v1177_v25, 8.507059e+37  ;;  %v3720_v60 = vld [vmem:[#allocation12 + $0x160] sm:$0xff]  ;;  %v3722_v2 = vld [vmem:[#allocation12 + $0x168] sm:$0xff]  ;;  %v3750_v34 = vld [vmem:[#allocation12 + $0x130] sm:$0xff] }
 0x234   : > { %1573 = vmatpush.msrb.mxu1 %v1456_v12  ;;  %v1199_v41 = vor.u32 1.1754944e-38, %v1198_v24  ;;  %vm1197_vm0 = vcmp.eq.f32.partialorder %v1196_v32, 8.507059e+37  ;;  %v3760_v25 = vld [vmem:[#allocation12 + $0x108] sm:$0xff]  ;;  %v3766_v32 = vld [vmem:[#allocation12 + $0x118] sm:$0xff] }
 0x235   : > { %v2827_v43 = vpop.eup %2826  ;;  %1602 = vmatpush.msrb.mxu2 %v1457_v15  ;;  %1631 = vmatpush.msrb.mxu3 %v1458_v16  ;;  %v3734_v15 = vld [vmem:[#allocation12 + $0x148] sm:$0xff]  ;;  %v3736_v16 = vld [vmem:[#allocation12 + $0x150] sm:$0xff] }
 0x236   : > { %v3644_v10 = vadd.f32 1.0, %v2827_v43  ;;  %v3716_v43 = vld [vmem:[#allocation12 + $0x198] sm:$0xff] }
 0x237   : > { %v2829_v13 = vpop.eup %2828 }
 0x238   : > { %v2831_v17 = vpop.eup %2830  ;;  %v1169_v18 = vmul.f32 %v2829_v13, %v3638_v61  ;;  %2832 = vrcp.f32 %v3644_v10  ;;  %vm1174_vm9 = vweird.f32 %v2829_v13  ;;  %v1218_v57 = vand.u32 2147483648, %v3644_v10 }
 0x239   : > { %v1188_v21 = vmul.f32 %v2831_v17, %v3640_v19  ;;  %2834 = vtanh.f32 %v1162_v14  ;;  %vm1193_vm10 = vweird.f32 %v2831_v17  ;;  %vm1175_vm13 = vmor %vm1173_vm11, %vm1174_vm9  ;;  %vm1212_vm2 = vweird.f32 %v3644_v10  ;;  %v3674_v19 = vld [vmem:[#allocation12 + $0x1e8] sm:$0xff]  ;;  %v3732_v14 = vld [vmem:[#allocation12 + $0x140] sm:$0xff] }
 0x23a   : > { %v1170_v22 = vsub.f32 1.0, %v1169_v18  ;;  %vm1194_vm14 = vmor %vm1192_vm12, %vm1193_vm10  ;;  %v1216_v58 = vand.u32 2147483647, %v3644_v10  ;;  %v1219_v59 = vor.u32 1.1754944e-38, %v1218_v57  ;;  %4193 = vst [vmem:[#allocation17_spill] sm:$0xff] %v3674_v19 }
 0x23b   : > { %v1189_v23 = vsub.f32 1.0, %v1188_v21  ;;  %v3742_v21 = vld [vmem:[#allocation12 + $0x158] sm:$0xff] }
 0x23c   : > { %v1171_v28 = vmul.f32 %v2829_v13, %v1170_v22  ;;  %vm1217_vm4 = vcmp.eq.f32.partialorder %v1216_v58, 8.507059e+37  ;;  %v3746_v22 = vld [vmem:[#allocation12 + $0x120] sm:$0xff]  ;;  %v3809_v58 = vld [vmem:[#allocation12 + $0x90] sm:$0xff] }
 0x23d   : > { %v1190_v29 = vmul.f32 %v2831_v17, %v1189_v23  ;;  %v3748_v23 = vld [vmem:[#allocation12 + $0x128] sm:$0xff]  ;;  %4195 = vst [vmem:[#allocation19_spill] sm:$0xff] %v3809_v58 }
 0x23e   : > { %v2833_v30 = vpop.eup %2832  ;;  %v1172_v31 = vadd.f32 %v2829_v13, %v1171_v28  ;;  %v3758_v28 = vld [vmem:[#allocation12 + $0x100] sm:$0xff] }
 0x23f   : > { %v1191_v36 = vadd.f32 %v2831_v17, %v1190_v29  ;;  %v1208_v40 = vmul.f32 %v2833_v30, %v3644_v10  ;;  %v2835_v46 = vpop.eup %2834  ;;  %vm1213_vm1 = vweird.f32 %v2833_v30  ;;  %v3724_v10 = vld [vmem:[#allocation12 + $0x170] sm:$0xff] }
 0x240   : > { %v1176_v45 = vsel %vm1175_vm13, %v2829_v13, %v1172_v31  ;;  %vm1214_vm3 = vmor %vm1212_vm2, %vm1213_vm1  ;;  %v3762_v29 = vld [vmem:[#allocation12 + $0x110] sm:$0xff]  ;;  %v3770_v31 = vld [vmem:[#allocation12 + $0xe8] sm:$0xff] }
 0x241   : > { %v1181_v47 = vsel %vm1178_vm15, %v1180_v33, %v1176_v45  ;;  %v1195_v48 = vsel %vm1194_vm14, %v2831_v17, %v1191_v36  ;;  %v1209_v49 = vsub.f32 1.0, %v1208_v40  ;;  %v3774_v33 = vld [vmem:[#allocation12 + $0xf0] sm:$0xff]  ;;  %v3776_v36 = vld [vmem:[#allocation12 + $0xf8] sm:$0xff]  ;;  %v3778_v40 = vld [vmem:[#allocation12 + $0xc0] sm:$0xff] }
 0x242   : > { %v1200_v51 = vsel %vm1197_vm0, %v1199_v41, %v1195_v48  ;;  %v1223_v52 = vmul.f32 %v2835_v46, %v1181_v47  ;;  %v3782_v45 = vld [vmem:[#allocation12 + $0xc8] sm:$0xff]  ;;  %v3784_v46 = vld [vmem:[#allocation12 + $0xd0] sm:$0xff]  ;;  %v3786_v47 = vld [vmem:[#allocation12 + $0xd8] sm:$0xff] }
 0x243   : > { %v1222_v53 = vmul.f32 %v1200_v51, %v3623_v62  ;;  %v1210_v54 = vmul.f32 %v2833_v30, %v1209_v49  ;;  %v3791_v49 = vld [vmem:[#allocation12 + $0xa0] sm:$0xff]  ;;  %v3793_v51 = vld [vmem:[#allocation12 + $0xa8] sm:$0xff] }
 0x245   : > { %v3658_v55 = vadd.f32 %v1223_v52, %v1222_v53  ;;  %v1211_v56 = vadd.f32 %v2833_v30, %v1210_v54  ;;  %v3797_v52 = vld [vmem:[#allocation12 + $0xb0] sm:$0xff]  ;;  %v3799_v53 = vld [vmem:[#allocation12 + $0xb8] sm:$0xff] }
 0x247   : > { %2836 = vtanh.f32 %v3658_v55  ;;  %v1215_v35 = vsel %vm1214_vm3, %v2833_v30, %v1211_v56  ;;  %v3768_v30 = vld [vmem:[#allocation12 + $0xe0] sm:$0xff]  ;;  %v3805_v56 = vld [vmem:[#allocation12 + $0x88] sm:$0xff] }
 0x248   : > { %v1220_v63 = vsel %vm1217_vm4, %v1219_v59, %v1215_v35  ;;  %v3811_v35 = vld [vmem:[#allocation12 + $0x98] sm:$0xff] }
 0x249   : > { %4196 = vst [vmem:[#allocation20_spill] sm:$0xff] %v3811_v35 }
 0x24d   : > { %v2837_v61 = vpop.eup %2836 }
 0x24e   : > { %v1226_v62 = vmul.f32 %v2837_v61, %v1220_v63 }
 0x250   : > { %1316 = vmatmul.f32.vlgmr.msra.gmra.mxu0 %v1226_v62  ;;  %1336 = vmatmul.f32.vlgmr.msra.gmra.mxu1 %v1226_v62 }
 0x251   : > { %1356 = vmatmul.f32.vlgmr.msra.gmra.mxu2 %v1226_v62  ;;  %1376 = vmatmul.f32.vlgmr.msra.gmra.mxu3 %v1226_v62 }
 0x252   : > { %1733 = vmatpush.msra.mxu0 %v3672_v0  ;;  %1753 = vmatpush.msra.mxu1 %v3674_v19 }
 0x253   : > { %1773 = vmatpush.msra.mxu2 %v3676_v1 }
 0x254   : > { %1754 = vmatpush.msra.mxu1 %v3686_v20 }
 0x255   : > { %1774 = vmatpush.msra.mxu2 %v3688_v3 }
 0x256   : > { %1755 = vmatpush.msra.mxu1 %v3698_v5 }
 0x257   : > { %1775 = vmatpush.msra.mxu2 %v3700_v6 }
 0x258   : > { %1545 = vmatmul.f32.vlgmr.msrb.gmra.mxu0 %v3594_v50  ;;  %1574 = vmatmul.f32.vlgmr.msrb.gmra.mxu1 %v3594_v50 }
 0x259   : > { %1603 = vmatmul.f32.vlgmr.msrb.gmra.mxu2 %v3594_v50  ;;  %1632 = vmatmul.f32.vlgmr.msrb.gmra.mxu3 %v3594_v50  ;;  %v3680_v50 = vld [vmem:[#allocation12 + $0x1f8] sm:$0xff] }
 0x25a   : > { %1793 = vmatpush.msra.mxu3 %v3680_v50  ;;  %1756 = vmatpush.msra.mxu1 %v3710_v9 }
 0x25b   : > { %1776 = vmatpush.msra.mxu2 %v3712_v26 }
 0x25c   : > { %1794 = vmatpush.msra.mxu3 %v3692_v4  ;;  %1757 = vmatpush.msra.mxu1 %v3722_v2 }
 0x25d   : > { %1777 = vmatpush.msra.mxu2 %v3724_v10 }
 0x25e   : > { %1795 = vmatpush.msra.mxu3 %v3704_v7  ;;  %1758 = vmatpush.msra.mxu1 %v3734_v15 }
 0x25f   : > { %1778 = vmatpush.msra.mxu2 %v3736_v16 }
 0x260   : > { %1548 = vmatmul.f32.gmra.mxu0 %v3629_v37  ;;  %1577 = vmatmul.f32.gmra.mxu1 %v3629_v37 }
 0x261   : > { %1606 = vmatmul.f32.gmra.mxu2 %v3629_v37  ;;  %1635 = vmatmul.f32.gmra.mxu3 %v3629_v37  ;;  %v3684_v37 = vld [vmem:[#allocation12 + $0x1c0] sm:$0xff] }
 0x262   : > { %1734 = vmatpush.msra.mxu0 %v3684_v37  ;;  %1796 = vmatpush.msra.mxu3 %v3716_v43 }
 0x263   : > { %1759 = vmatpush.msra.mxu1 %v3748_v23  ;;  %1779 = vmatpush.msra.mxu2 %v3750_v34 }
 0x264   : > { %1735 = vmatpush.msra.mxu0 %v3696_v27  ;;  %1797 = vmatpush.msra.mxu3 %v3728_v11 }
 0x265   : > { %1760 = vmatpush.msra.mxu1 %v3760_v25  ;;  %1780 = vmatpush.msra.mxu2 %v3762_v29 }
 0x266   : > { %1736 = vmatpush.msra.mxu0 %v3708_v8  ;;  %1798 = vmatpush.msra.mxu3 %v3742_v21 }
 0x267   : > { %1761 = vmatpush.msra.mxu1 %v3770_v31  ;;  %1781 = vmatpush.msra.mxu2 %v3774_v33 }
 0x268   : > { %1551 = vmatmul.f32.gmra.mxu0 %v1226_v62  ;;  %1580 = vmatmul.f32.gmra.mxu1 %v1226_v62 }
 0x269   : > { %1609 = vmatmul.f32.gmra.mxu2 %v1226_v62  ;;  %1638 = vmatmul.f32.gmra.mxu3 %v1226_v62  ;;  %v3824_v62 = vld [vmem:[#allocation12 + $0x60] sm:$0xff] }
 0x26a   : > { %1737 = vmatpush.msra.mxu0 %v3720_v60  ;;  %1762 = vmatpush.msra.mxu1 %v3782_v45  ;;  %4197 = vst [vmem:[#allocation21_spill] sm:$0xff] %v3824_v62 }
 0x26b   : > { %1782 = vmatpush.msra.mxu2 %v3784_v46 }
 0x26c   : > { %1738 = vmatpush.msra.mxu0 %v3732_v14  ;;  %1763 = vmatpush.msra.mxu1 %v3793_v51 }
 0x26d   : > { %1783 = vmatpush.msra.mxu2 %v3797_v52 }
 0x26e   : > { %1739 = vmatpush.msra.mxu0 %v3746_v22  ;;  %1764 = vmatpush.msra.mxu1 %v3805_v56 }
 0x26f   : > { %1784 = vmatpush.msra.mxu2 %v3809_v58 }
 0x270   : > { %1740 = vmatpush.msra.mxu0 %v3758_v28 }
 0x272   : > { %1741 = vmatpush.msra.mxu0 %v3768_v30 }
 0x274   : > { %1742 = vmatpush.msra.mxu0 %v3778_v40 }
 0x276   : > { %1743 = vmatpush.msra.mxu0 %v3791_v49 }
 0x2cd   : > { %v1317_v12 = vpop.f32.mrf.mxu0  ;;  %v1337_v13 = vpop.f32.mrf.mxu1 }
 0x2ce   : > { %v1380_v17 = vadd.f32 %v1317_v12, %v3583_v38  ;;  %v1381_v18 = vadd.f32 %v1337_v13, %v3585_v39  ;;  %v3754_v39 = vld [vmem:[#allocation12 + $0x138] sm:$0xff]  ;;  %v3826_v12 = vld [vmem:[#allocation12 + $0x68] sm:$0xff]  ;;  %v3828_v13 = vld [vmem:[#allocation12 + $0x70] sm:$0xff] }
 0x2cf   : > { %1799 = vmatpush.msra.mxu3 %v3754_v39  ;;  %4198 = vst [vmem:[#allocation22_spill] sm:$0xff] %v3826_v12  ;;  %1765 = vmatpush.msra.mxu1 %v3826_v12  ;;  %v3853_v12 = vld [vmem:[#allocation12 + $0x38] sm:$0xff] }
 0x2d0   : > { %v2702_v24 = vmul.f32 -1.442695, %v1380_v17  ;;  %v2703_v38 = vmul.f32 -1.442695, %v1381_v18  ;;  %4199 = vst [vmem:[#allocation23_spill] sm:$0xff] %v3828_v13  ;;  %v3833_v17 = vld [vmem:[#allocation12 + $0x78] sm:$0xff]  ;;  %1785 = vmatpush.msra.mxu2 %v3828_v13 }
 0x2d1   : > { %1800 = vmatpush.msra.mxu3 %v3766_v32  ;;  %4200 = vst [vmem:[#allocation24_spill] sm:$0xff] %v3833_v17  ;;  %v3835_v18 = vld [vmem:[#allocation12 + $0x40] sm:$0xff] }
 0x2d2   : > { %2838 = vpow2.f32 %v2702_v24  ;;  %4201 = vst [vmem:[#allocation25_spill] sm:$0xff] %v3835_v18  ;;  %v3837_v24 = vld [vmem:[#allocation12 + $0x48] sm:$0xff] }
 0x2d3   : > { %2840 = vpow2.f32 %v2703_v38  ;;  %1801 = vmatpush.msra.mxu3 %v3776_v36  ;;  %4202 = vst [vmem:[#allocation26_spill] sm:$0xff] %v3837_v24  ;;  %v3841_v38 = vld [vmem:[#allocation12 + $0x50] sm:$0xff]  ;;  %1766 = vmatpush.msra.mxu1 %v3837_v24 }
 0x2d4   : > { %v1377_v41 = vpop.f32.mrf.mxu3  ;;  %4203 = vst [vmem:[#allocation27_spill] sm:$0xff] %v3841_v38  ;;  %1786 = vmatpush.msra.mxu2 %v3841_v38  ;;  %v3865_v24 = vld [vmem:[#allocation12 + $0x10] sm:$0xff] }
 0x2d5   : > { %v1383_v48 = vadd.f32 %v1377_v41, %v3589_v44  ;;  %1802 = vmatpush.msra.mxu3 %v3786_v47  ;;  %v3803_v44 = vld [vmem:[#allocation12 + $0x80] sm:$0xff]  ;;  %v3843_v41 = vld [vmem:[#allocation12 + $0x58] sm:$0xff]  ;;  %4208 = vst [vmem:[#allocation32_spill] sm:$0xff] %v3853_v12 }
 0x2d6   : > { %1744 = vmatpush.msra.mxu0 %v3803_v44  ;;  %4204 = vst [vmem:[#allocation28_spill] sm:$0xff] %v3843_v41 }
 0x2d7   : > { %v2704_v54 = vmul.f32 -1.442695, %v1383_v48  ;;  %1803 = vmatpush.msra.mxu3 %v3799_v53  ;;  %v3845_v48 = vld [vmem:[#allocation12 + $0x20] sm:$0xff]  ;;  %4211 = vst [vmem:[#allocation35_spill] sm:$0xff] %v3865_v24 }
 0x2d8   : > { %v2839_v57 = vpop.eup %2838  ;;  %1745 = vmatpush.msra.mxu0 %v3824_v62  ;;  %4205 = vst [vmem:[#allocation29_spill] sm:$0xff] %v3845_v48  ;;  %v3859_v62 = vld [vmem:[#allocation12 + $0x8] sm:$0xff] }
 0x2d9   : > { %v2841_v59 = vpop.eup %2840  ;;  %v3813_v61 = vadd.f32 1.0, %v2839_v57  ;;  %2842 = vpow2.f32 %v2704_v54  ;;  %1804 = vmatpush.msra.mxu3 %v3811_v35  ;;  %v1357_v54 = vpop.f32.mrf.mxu2  ;;  %v3849_v57 = vld [vmem:[#allocation12 + $0x28] sm:$0xff]  ;;  %4210 = vst [vmem:[#allocation34_spill] sm:$0xff] %v3859_v62 }
 0x2da   : > { %v3817_v63 = vadd.f32 1.0, %v2841_v59  ;;  %1746 = vmatpush.msra.mxu0 %v3835_v18  ;;  %4206 = vst [vmem:[#allocation30_spill] sm:$0xff] %v3849_v57  ;;  %v3851_v59 = vld [vmem:[#allocation12 + $0x30] sm:$0xff]  ;;  %1767 = vmatpush.msra.mxu1 %v3849_v57  ;;  %v3867_v18 = vld [vmem:[#allocation12 + $0x18] sm:$0xff]  ;;  %v1382_v38 = vadd.f32 %v1357_v54, %v3587_v42  ;;  %v2531_v42 = vld [vmem:[%s4139_s0] sm:$0xff] }
 0x2db   : > { %2844 = vrcp.f32 %v3813_v61  ;;  %1805 = vmatpush.msra.mxu3 %v3833_v17  ;;  %4207 = vst [vmem:[#allocation31_spill] sm:$0xff] %v3851_v59  ;;  %v3857_v17 = vld [vmem:[#allocation12] sm:$0xff]  ;;  %1787 = vmatpush.msra.mxu2 %v3851_v59  ;;  %v2534_v59 = vstv %s3190_s12  ;;  %vm1393_vm7 = vweird.f32 %v3813_v61 }
 0x2dc   : > { %2846 = vrcp.f32 %v3817_v63  ;;  %4209 = vst [vmem:[#allocation33_spill] sm:$0xff] %v3857_v17  ;;  %1747 = vmatpush.msra.mxu0 %v3845_v48  ;;  %1768 = vmatpush.msra.mxu1 %v3859_v62  ;;  %v1399_v62 = vand.u32 2147483648, %v3813_v61  ;;  %v3078_v48 = vmov 0   ;;  %vm1412_vm8 = vweird.f32 %v3817_v63 }
 0x2dd   : > { %1806 = vmatpush.msra.mxu3 %v3843_v41  ;;  %4212 = vst [vmem:[#allocation36_spill] sm:$0xff] %v3867_v18  ;;  %1788 = vmatpush.msra.mxu2 %v3865_v24 }
 0x2de   : > { %1748 = vmatpush.msra.mxu0 %v3857_v17  ;;  %1969 = vmatpush.msrb.mxu1 %v3674_v19 }
 0x2df   : > { %v2843_v13 = vpop.eup %2842  ;;  %1807 = vmatpush.msra.mxu3 %v3853_v12  ;;  %v2717_v12 = vadd.s32 4294967295, %v2531_v42  ;;  %2789 = vset.pattern.permute.xlu0 %v3078_v48 }
 0x2e0   : > { %v3861_v35 = vadd.f32 1.0, %v2843_v13  ;;  %1949 = vmatpush.msrb.mxu0 %v3672_v0  ;;  %1989 = vmatpush.msrb.mxu2 %v3676_v1 }
 0x2e1   : > { %v2845_v58 = vpop.eup %2844  ;;  %1808 = vmatpush.msra.mxu3 %v3867_v18  ;;  %v1418_v18 = vand.u32 2147483648, %v3817_v63  ;;  %v2535_v19 = vsub.s32 %v2717_v12, %v2534_v59  ;;  %1970 = vmatpush.msrb.mxu1 %v3686_v20 }
 0x2e2   : > { %v2847_v41 = vpop.eup %2846  ;;  %v1389_v13 = vmul.f32 %v2845_v58, %v3813_v61  ;;  %2848 = vrcp.f32 %v3861_v35  ;;  %vm1394_vm5 = vweird.f32 %v2845_v58  ;;  %1950 = vmatpush.msrb.mxu0 %v3684_v37  ;;  %1990 = vmatpush.msrb.mxu2 %v3688_v3  ;;  %vm1432_vm14 = vweird.f32 %v3861_v35 }
 0x2e3   : > { %v1408_v57 = vmul.f32 %v2847_v41, %v3817_v63  ;;  %2850 = vtanh.f32 %v1382_v38  ;;  %2009 = vmatpush.msrb.mxu3 %v3680_v50  ;;  %vm1413_vm6 = vweird.f32 %v2847_v41  ;;  %vm1395_vm9 = vmor %vm1393_vm7, %vm1394_vm5  ;;  %2537 = vperm.xlu0 %2789, %v2535_v19  }
 0x2e4   : > { %v1390_v54 = vsub.f32 1.0, %v1389_v13  ;;  %v1397_v13 = vand.u32 2147483647, %v3813_v61  ;;  %1951 = vmatpush.msrb.mxu0 %v3696_v27  ;;  %1971 = vmatpush.msrb.mxu1 %v3698_v5  ;;  %vm1414_vm10 = vmor %vm1412_vm8, %vm1413_vm6 }
 0x2e5   : > { %v1409_v17 = vsub.f32 1.0, %v1408_v57  ;;  %v1416_v57 = vand.u32 2147483647, %v3817_v63  ;;  %2010 = vmatpush.msrb.mxu3 %v3692_v4  ;;  %1991 = vmatpush.msrb.mxu2 %v3700_v6 }
 0x2e6   : > { %v1391_v24 = vmul.f32 %v2845_v58, %v1390_v54  ;;  %vm1398_vm11 = vcmp.eq.f32.partialorder %v1397_v13, 8.507059e+37  ;;  %1952 = vmatpush.msrb.mxu0 %v3708_v8  ;;  %1972 = vmatpush.msrb.mxu1 %v3710_v9  ;;  %v1436_v13 = vand.u32 2147483647, %v3861_v35 }
 0x2e7   : > { %v1410_v42 = vmul.f32 %v2847_v41, %v1409_v17  ;;  %v1400_v17 = vor.u32 1.1754944e-38, %v1399_v62  ;;  %2011 = vmatpush.msrb.mxu3 %v3704_v7  ;;  %vm1417_vm12 = vcmp.eq.f32.partialorder %v1416_v57, 8.507059e+37  ;;  %1992 = vmatpush.msrb.mxu2 %v3712_v26 }
 0x2e8   : > { %v3894_v38 = vpop.eup %2848  ;;  %v1392_v48 = vadd.f32 %v2845_v58, %v1391_v24  ;;  %v1419_v24 = vor.u32 1.1754944e-38, %v1418_v18  ;;  %1953 = vmatpush.msrb.mxu0 %v3720_v60  ;;  %1973 = vmatpush.msrb.mxu1 %v3722_v2  ;;  %vm1437_vm0 = vcmp.eq.f32.partialorder %v1436_v13, 8.507059e+37  ;;  %v4226_v13 = vld [vmem:[#allocation32_spill] sm:$0xff] }
 0x2e9   : > { %v1411_v54 = vadd.f32 %v2847_v41, %v1410_v42  ;;  %v1428_v12 = vmul.f32 %v3894_v38, %v3861_v35  ;;  %v2851_v63 = vpop.eup %2850  ;;  %2012 = vmatpush.msrb.mxu3 %v3716_v43  ;;  %1993 = vmatpush.msrb.mxu2 %v3724_v10  ;;  %vm1433_vm13 = vweird.f32 %v3894_v38 }
 0x2ea   : > { %v1396_v61 = vsel %vm1395_vm9, %v2845_v58, %v1392_v48  ;;  %1954 = vmatpush.msrb.mxu0 %v3732_v14  ;;  %1974 = vmatpush.msrb.mxu1 %v3734_v15  ;;  %vm1434_vm15 = vmor %vm1432_vm14, %vm1433_vm13 }
 0x2eb   : > { %v1401_v59 = vsel %vm1398_vm11, %v1400_v17, %v1396_v61  ;;  %v1415_v27 = vsel %vm1414_vm10, %v2847_v41, %v1411_v54  ;;  %v1429_v62 = vsub.f32 1.0, %v1428_v12  ;;  %2013 = vmatpush.msrb.mxu3 %v3728_v11  ;;  %1994 = vmatpush.msrb.mxu2 %v3736_v16  ;;  %v4213_v54 = vld [vmem:[#allocation19_spill] sm:$0xff]  ;;  %v1662_v12 = vld [vmem:[#allocation2 + $0x8] sm:$0xff] }
 0x2ec   : > { %v1420_v19 = vsel %vm1417_vm12, %v1419_v24, %v1415_v27  ;;  %v1443_v42 = vmul.f32 %v2851_v63, %v1401_v59  ;;  %1955 = vmatpush.msrb.mxu0 %v3746_v22  ;;  %1975 = vmatpush.msrb.mxu1 %v3748_v23  ;;  %v4214_v24 = vld [vmem:[#allocation20_spill] sm:$0xff]  ;;  %v4215_v61 = vld [vmem:[#allocation21_spill] sm:$0xff]  ;;  %v4216_v63 = vld [vmem:[#allocation22_spill] sm:$0xff] }
 0x2ed   : > { %v1442_v58 = vmul.f32 %v1420_v19, %v3658_v55  ;;  %v1430_v18 = vmul.f32 %v3894_v38, %v1429_v62  ;;  %v1438_v55 = vand.u32 2147483648, %v3861_v35  ;;  %2014 = vmatpush.msrb.mxu3 %v3742_v21  ;;  %1995 = vmatpush.msrb.mxu2 %v3750_v34  ;;  %v4217_v59 = vld [vmem:[#allocation23_spill] sm:$0xff]  ;;  %v4218_v62 = vld [vmem:[#allocation24_spill] sm:$0xff]  ;;  %v4219_v19 = vld [vmem:[#allocation25_spill] sm:$0xff] }
 0x2ee   : > { %1956 = vmatpush.msrb.mxu0 %v3758_v28  ;;  %1976 = vmatpush.msrb.mxu1 %v3760_v25 }
 0x2ef   : > { %v1444_v41 = vadd.f32 %v1443_v42, %v1442_v58  ;;  %v1431_v27 = vadd.f32 %v3894_v38, %v1430_v18  ;;  %2015 = vmatpush.msrb.mxu3 %v3754_v39  ;;  %1996 = vmatpush.msrb.mxu2 %v3762_v29  ;;  %v1439_v48 = vor.u32 1.1754944e-38, %v1438_v55  ;;  %v4220_v42 = vld [vmem:[#allocation26_spill] sm:$0xff]  ;;  %v4221_v58 = vld [vmem:[#allocation27_spill] sm:$0xff]  ;;  %v4222_v18 = vld [vmem:[#allocation28_spill] sm:$0xff] }
 0x2f0   : > { %1957 = vmatpush.msrb.mxu0 %v3768_v30  ;;  %1977 = vmatpush.msrb.mxu1 %v3770_v31  ;;  %v4225_v55 = vld [vmem:[#allocation31_spill] sm:$0xff] }
 0x2f1   : > { %2852 = vtanh.f32 %v1444_v41  ;;  %1450 = vst [vmem:[#allocation3 + $0x8] sm:$0xff] %v1444_v41  ;;  %v1435_v57 = vsel %vm1434_vm15, %v3894_v38, %v1431_v27  ;;  %2016 = vmatpush.msrb.mxu3 %v3766_v32  ;;  %1997 = vmatpush.msrb.mxu2 %v3774_v33  ;;  %v4223_v41 = vld [vmem:[#allocation29_spill] sm:$0xff]  ;;  %v4224_v27 = vld [vmem:[#allocation30_spill] sm:$0xff] }
 0x2f2   : > { %v1440_v17 = vsel %vm1437_vm0, %v1439_v48, %v1435_v57  ;;  %1958 = vmatpush.msrb.mxu0 %v3778_v40  ;;  %1978 = vmatpush.msrb.mxu1 %v3782_v45  ;;  %v4227_v57 = vld [vmem:[#allocation33_spill] sm:$0xff]  ;;  %v4228_v48 = vld [vmem:[#allocation34_spill] sm:$0xff] }
 0x2f3   : > { %2017 = vmatpush.msrb.mxu3 %v3776_v36  ;;  %1998 = vmatpush.msrb.mxu2 %v3784_v46 }
 0x2f4   : > { %1959 = vmatpush.msrb.mxu0 %v3791_v49  ;;  %1979 = vmatpush.msrb.mxu1 %v3793_v51 }
 0x2f5   : > { %2018 = vmatpush.msrb.mxu3 %v3786_v47  ;;  %1999 = vmatpush.msrb.mxu2 %v3797_v52 }
 0x2f6   : > { %1960 = vmatpush.msrb.mxu0 %v3803_v44  ;;  %1980 = vmatpush.msrb.mxu1 %v3805_v56 }
 0x2f7   : > { %v2853_v35 = vpop.eup %2852  ;;  %2019 = vmatpush.msrb.mxu3 %v3799_v53  ;;  %2000 = vmatpush.msrb.mxu2 %v4213_v54 }
 0x2f8   : > { %v1446_v38 = vmul.f32 %v2853_v35, %v1440_v17  ;;  %1961 = vmatpush.msrb.mxu0 %v4215_v61  ;;  %1981 = vmatpush.msrb.mxu1 %v4216_v63  ;;  %v4229_v35 = vld [vmem:[#allocation35_spill] sm:$0xff]  ;;  %v4230_v17 = vld [vmem:[#allocation36_spill] sm:$0xff] }
 0x2f9   : > { %2020 = vmatpush.msrb.mxu3 %v4214_v24  ;;  %2001 = vmatpush.msrb.mxu2 %v4217_v59 }
 0x2fa   : > { %1449 = vst [vmem:[#allocation2] sm:$0xff] %v1446_v38  ;;  %1554 = vmatmul.f32.gmra.mxu0 %v1446_v38  ;;  %1583 = vmatmul.f32.gmra.mxu1 %v1446_v38 }
 0x2fb   : > { %1612 = vmatmul.f32.gmra.mxu2 %v1446_v38  ;;  %1641 = vmatmul.f32.gmra.mxu3 %v1446_v38  ;;  %v4231_v38 = vld [vmem:[#allocation17_spill] sm:$0xff] }
 0x2fc   : > { %2021 = vmatpush.msrb.mxu3 %v4218_v62  ;;  %1962 = vmatpush.msrb.mxu0 %v4219_v19 }
 0x2fd   : > { %1982 = vmatpush.msrb.mxu1 %v4220_v42  ;;  %2002 = vmatpush.msrb.mxu2 %v4221_v58 }
 0x2fe   : > { %2022 = vmatpush.msrb.mxu3 %v4222_v18  ;;  %1963 = vmatpush.msrb.mxu0 %v4223_v41 }
 0x2ff   : > { %1983 = vmatpush.msrb.mxu1 %v4224_v27  ;;  %2003 = vmatpush.msrb.mxu2 %v4225_v55 }
 0x300   : > { %2023 = vmatpush.msrb.mxu3 %v4226_v13  ;;  %1964 = vmatpush.msrb.mxu0 %v4227_v57 }
 0x301   : > { %1984 = vmatpush.msrb.mxu1 %v4228_v48  ;;  %2004 = vmatpush.msrb.mxu2 %v4229_v35 }
 0x302   : > { %1749 = vmatmul.f32.vlgmr.msra.gmra.mxu0 %v1662_v12  ;;  %1769 = vmatmul.f32.vlgmr.msra.gmra.mxu1 %v1662_v12 }
 0x303   : > { %1789 = vmatmul.f32.vlgmr.msra.gmra.mxu2 %v1662_v12  ;;  %1809 = vmatmul.f32.vlgmr.msra.gmra.mxu3 %v1662_v12  ;;  %v4232_v12 = vld [vmem:[#allocation18_spill] sm:$0xff] }
 0x304   : > { %2024 = vmatpush.msrb.mxu3 %v4230_v17  ;;  %2165 = vmatpush.msra.mxu0 %v3672_v0  ;;  %v1546_v0 = vpop.f32.mrf.mxu0 }
 0x305   : > { %2185 = vmatpush.msra.mxu1 %v4231_v38  ;;  %2205 = vmatpush.msra.mxu2 %v3676_v1  ;;  %v1575_v1 = vpop.f32.mrf.mxu1 }
 0x306   : > { %2225 = vmatpush.msra.mxu3 %v3680_v50  ;;  %2166 = vmatpush.msra.mxu0 %v3684_v37  ;;  %v1633_v50 = vpop.f32.mrf.mxu3 }
 0x307   : > { %2186 = vmatpush.msra.mxu1 %v3686_v20  ;;  %2206 = vmatpush.msra.mxu2 %v3688_v3  ;;  %v1604_v3 = vpop.f32.mrf.mxu2 }
 0x308   : > { %2226 = vmatpush.msra.mxu3 %v3692_v4  ;;  %2167 = vmatpush.msra.mxu0 %v4232_v12 }
 0x309   : > { %2187 = vmatpush.msra.mxu1 %v3698_v5  ;;  %2207 = vmatpush.msra.mxu2 %v3700_v6 }
 0x30a   : > { %2227 = vmatpush.msra.mxu3 %v3704_v7  ;;  %2168 = vmatpush.msra.mxu0 %v3708_v8 }
 0x30b   : > { %2188 = vmatpush.msra.mxu1 %v3710_v9  ;;  %2208 = vmatpush.msra.mxu2 %v3712_v26  ;;  %v1519_v9 = vld [vmem:[%s4146_s7] sm:$0xf] }
 0x30c   : > { %2228 = vmatpush.msra.mxu3 %v3716_v43  ;;  %2169 = vmatpush.msra.mxu0 %v3720_v60  ;;  %v4031_v37 = vpop.f32.mrf.mxu0  ;;  %v4052_v60 = vperm.slane %v1519_v9, 0 }
 0x30d   : > { %2189 = vmatpush.msra.mxu1 %v3722_v2  ;;  %2209 = vmatpush.msra.mxu2 %v3724_v10  ;;  %v4033_v20 = vpop.f32.mrf.mxu1  ;;  %v4054_v2 = vperm.slane %v1519_v9, 1 }
 0x30e   : > { %2229 = vmatpush.msra.mxu3 %v3728_v11  ;;  %2170 = vmatpush.msra.mxu0 %v3732_v14  ;;  %v4035_v4 = vpop.f32.mrf.mxu3  ;;  %v1547_v10 = vadd.f32 %v1546_v0, %v4052_v60 }
 0x30f   : > { %2190 = vmatpush.msra.mxu1 %v3734_v15  ;;  %2210 = vmatpush.msra.mxu2 %v3736_v16  ;;  %v4041_v7 = vpop.f32.mrf.mxu2  ;;  %v1576_v11 = vadd.f32 %v1575_v1, %v4054_v2 }
 0x310   : > { %2230 = vmatpush.msra.mxu3 %v3742_v21  ;;  %2171 = vmatpush.msra.mxu0 %v3746_v22 }
 0x311   : > { %2191 = vmatpush.msra.mxu1 %v3748_v23  ;;  %2211 = vmatpush.msra.mxu2 %v3750_v34  ;;  %v4062_v34 = vperm.slane %v1519_v9, 3 }
 0x312   : > { %2231 = vmatpush.msra.mxu3 %v3754_v39  ;;  %2172 = vmatpush.msra.mxu0 %v3758_v28 }
 0x313   : > { %2192 = vmatpush.msra.mxu1 %v3760_v25  ;;  %2212 = vmatpush.msra.mxu2 %v3762_v29  ;;  %v1634_v25 = vadd.f32 %v1633_v50, %v4062_v34 }
 0x314   : > { %2232 = vmatpush.msra.mxu3 %v3766_v32  ;;  %2173 = vmatpush.msra.mxu0 %v3768_v30  ;;  %v4037_v5 = vpop.f32.mrf.mxu0 }
 0x315   : > { %2193 = vmatpush.msra.mxu1 %v3770_v31  ;;  %2213 = vmatpush.msra.mxu2 %v3774_v33  ;;  %v4039_v6 = vpop.f32.mrf.mxu1 }
 0x316   : > { %2233 = vmatpush.msra.mxu3 %v3776_v36  ;;  %2174 = vmatpush.msra.mxu0 %v3778_v40  ;;  %v4043_v8 = vpop.f32.mrf.mxu3 }
 0x317   : > { %2194 = vmatpush.msra.mxu1 %v3782_v45  ;;  %2214 = vmatpush.msra.mxu2 %v3784_v46  ;;  %v4058_v14 = vpop.f32.mrf.mxu2  ;;  %v4067_v46 = vperm.slane %v1519_v9, 2 }
 0x318   : > { %2234 = vmatpush.msra.mxu3 %v3786_v47  ;;  %2175 = vmatpush.msra.mxu0 %v3791_v49 }
 0x319   : > { %2195 = vmatpush.msra.mxu1 %v3793_v51  ;;  %2215 = vmatpush.msra.mxu2 %v3797_v52  ;;  %v1605_v51 = vadd.f32 %v1604_v3, %v4067_v46 }
 0x31a   : > { %2235 = vmatpush.msra.mxu3 %v3799_v53  ;;  %2176 = vmatpush.msra.mxu0 %v3803_v44 }
 0x31b   : > { %2196 = vmatpush.msra.mxu1 %v3805_v56  ;;  %2216 = vmatpush.msra.mxu2 %v4213_v54 }
 0x31c   : > { %2236 = vmatpush.msra.mxu3 %v4214_v24  ;;  %2177 = vmatpush.msra.mxu0 %v4215_v61 }
 0x31d   : > { %2197 = vmatpush.msra.mxu1 %v4216_v63  ;;  %2217 = vmatpush.msra.mxu2 %v4217_v59 }
 0x31e   : > { %2237 = vmatpush.msra.mxu3 %v4218_v62  ;;  %2178 = vmatpush.msra.mxu0 %v4219_v19 }
 0x31f   : > { %2198 = vmatpush.msra.mxu1 %v4220_v42  ;;  %2218 = vmatpush.msra.mxu2 %v4221_v58 }
 0x320   : > { %2238 = vmatpush.msra.mxu3 %v4222_v18  ;;  %2179 = vmatpush.msra.mxu0 %v4223_v41 }
 0x321   : > { %2199 = vmatpush.msra.mxu1 %v4224_v27  ;;  %2219 = vmatpush.msra.mxu2 %v4225_v55 }
 0x322   : > { %2239 = vmatpush.msra.mxu3 %v4226_v13  ;;  %2180 = vmatpush.msra.mxu0 %v4227_v57 }
 0x323   : > { %2200 = vmatpush.msra.mxu1 %v4228_v48  ;;  %2220 = vmatpush.msra.mxu2 %v4229_v35  ;;  %v1664_v35 = vld [vmem:[#allocation3] sm:$0xff] }
 0x324   : > { %2240 = vmatpush.msra.mxu3 %v4230_v17 }
 0x377   : > { %v4048_v26 = vpop.f32.mrf.mxu0  ;;  %v4050_v43 = vpop.f32.mrf.mxu1 }
 0x37e   : > { %v4060_v15 = vpop.f32.mrf.mxu3  ;;  %v4065_v29 = vpop.f32.mrf.mxu2 }
 0x37f   : > { %v1750_v16 = vpop.f32.mrf.mxu0  ;;  %v1770_v21 = vpop.f32.mrf.mxu1 }
 0x380   : > { %v1813_v22 = vadd.f32 %v1750_v16, %v1547_v10  ;;  %v1814_v23 = vadd.f32 %v1770_v21, %v1576_v11 }
 0x382   : > { %v2705_v39 = vmul.f32 -1.442695, %v1813_v22  ;;  %v2706_v28 = vmul.f32 -1.442695, %v1814_v23 }
 0x384   : > { %2854 = vpow2.f32 %v2705_v39 }
 0x385   : > { %2856 = vpow2.f32 %v2706_v28 }
 0x386   : > { %v1810_v32 = vpop.f32.mrf.mxu3  ;;  %v1790_v47 = vpop.f32.mrf.mxu2 }
 0x387   : > { %v1816_v30 = vadd.f32 %v1810_v32, %v1634_v25  ;;  %v1815_v44 = vadd.f32 %v1790_v47, %v1605_v51  ;;  %v1637_v51 = vadd.f32 %v4035_v4, %v4062_v34 }
 0x389   : > { %v2707_v31 = vmul.f32 -1.442695, %v1816_v30  ;;  %v1550_v30 = vadd.f32 %v4031_v37, %v4052_v60 }
 0x38a   : > { %v2855_v33 = vpop.eup %2854 }
 0x38b   : > { %v2857_v36 = vpop.eup %2856  ;;  %v1820_v40 = vadd.f32 1.0, %v2855_v33  ;;  %2858 = vpow2.f32 %v2707_v31  ;;  %v1579_v31 = vadd.f32 %v4033_v20, %v4054_v2 }
 0x38c   : > { %v1839_v45 = vadd.f32 1.0, %v2857_v36 }
 0x38d   : > { %2860 = vrcp.f32 %v1820_v40  ;;  %v1832_v59 = vand.u32 2147483648, %v1820_v40  ;;  %v1830_v42 = vand.u32 2147483647, %v1820_v40  ;;  %vm1826_vm3 = vweird.f32 %v1820_v40 }
 0x38e   : > { %2862 = vrcp.f32 %v1839_v45  ;;  %v1851_v62 = vand.u32 2147483648, %v1839_v45  ;;  %v1849_v18 = vand.u32 2147483647, %v1839_v45  ;;  %vm1845_vm4 = vweird.f32 %v1839_v45 }
 0x38f   : > { %v1833_v55 = vor.u32 1.1754944e-38, %v1832_v59  ;;  %vm1831_vm7 = vcmp.eq.f32.partialorder %v1830_v42, 8.507059e+37 }
 0x390   : > { %v1852_v48 = vor.u32 1.1754944e-38, %v1851_v62  ;;  %vm1850_vm8 = vcmp.eq.f32.partialorder %v1849_v18, 8.507059e+37 }
 0x391   : > { %v2859_v49 = vpop.eup %2858 }
 0x392   : > { %v1859_v52 = vadd.f32 1.0, %v2859_v49 }
 0x393   : > { %v2861_v53 = vpop.eup %2860 }
 0x394   : > { %v2863_v56 = vpop.eup %2862  ;;  %v1822_v54 = vmul.f32 %v2861_v53, %v1820_v40  ;;  %2864 = vrcp.f32 %v1859_v52  ;;  %vm1827_vm1 = vweird.f32 %v2861_v53  ;;  %v1871_v21 = vand.u32 2147483648, %v1859_v52 }
 0x395   : > { %v1841_v24 = vmul.f32 %v2863_v56, %v1839_v45  ;;  %2866 = vtanh.f32 %v1815_v44  ;;  %vm1846_vm2 = vweird.f32 %v2863_v56  ;;  %vm1828_vm5 = vmor %vm1826_vm3, %vm1827_vm1  ;;  %vm1865_vm10 = vweird.f32 %v1859_v52 }
 0x396   : > { %v1823_v61 = vsub.f32 1.0, %v1822_v54  ;;  %vm1847_vm6 = vmor %vm1845_vm4, %vm1846_vm2  ;;  %v1869_v22 = vand.u32 2147483647, %v1859_v52  ;;  %v1872_v39 = vor.u32 1.1754944e-38, %v1871_v21 }
 0x397   : > { %v1842_v63 = vsub.f32 1.0, %v1841_v24 }
 0x398   : > { %v1824_v19 = vmul.f32 %v2861_v53, %v1823_v61  ;;  %vm1870_vm12 = vcmp.eq.f32.partialorder %v1869_v22, 8.507059e+37 }
 0x399   : > { %v1843_v58 = vmul.f32 %v2863_v56, %v1842_v63  ;;  %v1608_v63 = vadd.f32 %v4041_v7, %v4067_v46 }
 0x39a   : > { %v2865_v41 = vpop.eup %2864  ;;  %v1825_v27 = vadd.f32 %v2861_v53, %v1824_v19 }
 0x39b   : > { %v1844_v13 = vadd.f32 %v2863_v56, %v1843_v58  ;;  %v1861_v57 = vmul.f32 %v2865_v41, %v1859_v52  ;;  %v2867_v38 = vpop.eup %2866  ;;  %vm1866_vm9 = vweird.f32 %v2865_v41 }
 0x39c   : > { %v1829_v17 = vsel %vm1828_vm5, %v2861_v53, %v1825_v27  ;;  %vm1867_vm11 = vmor %vm1865_vm10, %vm1866_vm9 }
 0x39d   : > { %v1834_v12 = vsel %vm1831_vm7, %v1833_v55, %v1829_v17  ;;  %v1848_v0 = vsel %vm1847_vm6, %v2863_v56, %v1844_v13  ;;  %v1862_v1 = vsub.f32 1.0, %v1861_v57 }
 0x39e   : > { %v1853_v50 = vsel %vm1850_vm8, %v1852_v48, %v1848_v0  ;;  %v1876_v3 = vmul.f32 %v2867_v38, %v1834_v12 }
 0x39f   : > { %v1875_v9 = vmul.f32 %v1853_v50, %v1664_v35  ;;  %v1863_v10 = vmul.f32 %v2865_v41, %v1862_v1 }
 0x3a1   : > { %v4070_v11 = vadd.f32 %v1876_v3, %v1875_v9  ;;  %v1864_v16 = vadd.f32 %v2865_v41, %v1863_v10 }
 0x3a3   : > { %2868 = vtanh.f32 %v4070_v11  ;;  %v1868_v23 = vsel %vm1867_vm11, %v2865_v41, %v1864_v16 }
 0x3a4   : > { %v1873_v25 = vsel %vm1870_vm12, %v1872_v39, %v1868_v23 }
 0x3a9   : > { %v2869_v28 = vpop.eup %2868 }
 0x3aa   : > { %v4073_v32 = vmul.f32 %v2869_v28, %v1873_v25 }
 0x3ac   : > { %1965 = vmatmul.f32.vlgmr.msrb.gmra.mxu0 %v4073_v32  ;;  %1985 = vmatmul.f32.vlgmr.msrb.gmra.mxu1 %v4073_v32 }
 0x3ad   : > { %2005 = vmatmul.f32.vlgmr.msrb.gmra.mxu2 %v4073_v32  ;;  %2025 = vmatmul.f32.vlgmr.msrb.gmra.mxu3 %v4073_v32 }
 0x429   : > { %v1966_v33 = vpop.f32.mrf.mxu0  ;;  %v1986_v36 = vpop.f32.mrf.mxu1 }
 0x42a   : > { %v2029_v40 = vadd.f32 %v1966_v33, %v1550_v30  ;;  %v2030_v45 = vadd.f32 %v1986_v36, %v1579_v31  ;;  %v4091_v33 = vpop.permute.xlu0 %2537 }
 0x42b   : > { %vm2541_vm8 = vcmp.eq.s32.totalorder %v4091_v33, 0  ;;  %vm2544_vm10 = vcmp.eq.s32.totalorder %v4091_v33, 1 }
 0x42c   : > { %v2708_v47 = vmul.f32 -1.442695, %v2029_v40  ;;  %v2709_v49 = vmul.f32 -1.442695, %v2030_v45  ;;  %v2539_v45 = vld [vmem:[#allocation13] sm:$0xff] }
 0x42e   : > { %2870 = vpow2.f32 %v2708_v47 }
 0x42f   : > { %2872 = vpow2.f32 %v2709_v49 }
 0x430   : > { %v2026_v52 = vpop.f32.mrf.mxu3  ;;  %v2006_v20 = vpop.f32.mrf.mxu2 }
 0x431   : > { %v2032_v53 = vadd.f32 %v2026_v52, %v1637_v51  ;;  %v2031_v19 = vadd.f32 %v2006_v20, %v1608_v63  ;;  %v2542_v51 = vsel %vm2541_vm8, %v4073_v32, %v2539_v45  ;;  %v2375_v20 = vld [vmem:[#allocation12 + $0x1d0] sm:$0xff]  ;;  %v2376_v32 = vld [vmem:[#allocation12 + $0x1d8] sm:$0xff]  ;;  %v2370_v63 = vld [vmem:[#allocation12 + $0x1a8] sm:$0xff] }
 0x433   : > { %v2710_v44 = vmul.f32 -1.442695, %v2032_v53  ;;  %v2377_v53 = vld [vmem:[#allocation12 + $0x1e0] sm:$0xff] }
 0x434   : > { %v2871_v56 = vpop.eup %2870  ;;  %2381 = vmatpush.msrb.mxu0 %v2377_v53  ;;  %v2340_v53 = vld [vmem:[#allocation12 + $0xb8] sm:$0xff] }
 0x435   : > { %v2873_v54 = vpop.eup %2872  ;;  %v2036_v37 = vadd.f32 1.0, %v2871_v56  ;;  %2874 = vpow2.f32 %v2710_v44  ;;  %v2378_v44 = vld [vmem:[#allocation12 + $0x1e8] sm:$0xff]  ;;  %v2379_v56 = vld [vmem:[#allocation12 + $0x1f0] sm:$0xff] }
 0x436   : > { %v2055_v24 = vadd.f32 1.0, %v2873_v54  ;;  %2401 = vmatpush.msrb.mxu1 %v2378_v44  ;;  %v2380_v54 = vld [vmem:[#allocation12 + $0x1f8] sm:$0xff]  ;;  %2421 = vmatpush.msrb.mxu2 %v2379_v56  ;;  %v2333_v44 = vld [vmem:[#allocation12 + $0x80] sm:$0xff]  ;;  %v2334_v56 = vld [vmem:[#allocation12 + $0x88] sm:$0xff] }
 0x437   : > { %2876 = vrcp.f32 %v2036_v37  ;;  %v2048_v27 = vand.u32 2147483648, %v2036_v37  ;;  %v2046_v57 = vand.u32 2147483647, %v2036_v37  ;;  %vm2042_vm15 = vweird.f32 %v2036_v37  ;;  %2441 = vmatpush.msrb.mxu3 %v2380_v54  ;;  %v2335_v54 = vld [vmem:[#allocation12 + $0x90] sm:$0xff] }
 0x438   : > { %2878 = vrcp.f32 %v2055_v24  ;;  %v2067_v55 = vand.u32 2147483648, %v2055_v24  ;;  %v2065_v35 = vand.u32 2147483647, %v2055_v24  ;;  %vm2061_vm0 = vweird.f32 %v2055_v24  ;;  %2422 = vmatpush.msrb.mxu2 %v2375_v20  ;;  %v2330_v20 = vld [vmem:[#allocation12 + $0x68] sm:$0xff] }
 0x439   : > { %v2049_v38 = vor.u32 1.1754944e-38, %v2048_v27  ;;  %vm2047_vm3 = vcmp.eq.f32.partialorder %v2046_v57, 8.507059e+37  ;;  %2442 = vmatpush.msrb.mxu3 %v2376_v32  ;;  %v2363_v27 = vld [vmem:[#allocation12 + $0x170] sm:$0xff]  ;;  %v2358_v57 = vld [vmem:[#allocation12 + $0x148] sm:$0xff]  ;;  %v1640_v32 = vadd.f32 %v4043_v8, %v4062_v34 }
 0x43a   : > { %v2068_v1 = vor.u32 1.1754944e-38, %v2067_v55  ;;  %vm2066_vm4 = vcmp.eq.f32.partialorder %v2065_v35, 8.507059e+37  ;;  %v2364_v55 = vld [vmem:[#allocation12 + $0x178] sm:$0xff]  ;;  %v2323_v8 = vld [vmem:[#allocation12 + $0x30] sm:$0xff] }
 0x43b   : > { %v2875_v61 = vpop.eup %2874  ;;  %v2360_v35 = vld [vmem:[#allocation12 + $0x158] sm:$0xff] }
 0x43c   : > { %v2075_v59 = vadd.f32 1.0, %v2875_v61  ;;  %v2369_v61 = vld [vmem:[#allocation12 + $0x1a0] sm:$0xff] }
 0x43d   : > { %v2877_v62 = vpop.eup %2876 }
 0x43e   : > { %v2879_v4 = vpop.eup %2878  ;;  %v2038_v42 = vmul.f32 %v2877_v62, %v2036_v37  ;;  %2880 = vrcp.f32 %v2075_v59  ;;  %vm2043_vm13 = vweird.f32 %v2877_v62  ;;  %v2087_v30 = vand.u32 2147483648, %v2075_v59  ;;  %v2373_v37 = vld [vmem:[#allocation12 + $0x1c0] sm:$0xff] }
 0x43f   : > { %v2057_v58 = vmul.f32 %v2879_v4, %v2055_v24  ;;  %2882 = vtanh.f32 %v2031_v19  ;;  %vm2062_vm14 = vweird.f32 %v2879_v4  ;;  %vm2044_vm1 = vmor %vm2042_vm15, %vm2043_vm13  ;;  %vm2081_vm6 = vweird.f32 %v2075_v59  ;;  %v2374_v24 = vld [vmem:[#allocation12 + $0x1c8] sm:$0xff]  ;;  %2382 = vmatpush.msrb.mxu0 %v2373_v37  ;;  %v2365_v19 = vld [vmem:[#allocation12 + $0x180] sm:$0xff] }
 0x440   : > { %v2039_v18 = vsub.f32 1.0, %v2038_v42  ;;  %vm2063_vm2 = vmor %vm2061_vm0, %vm2062_vm14  ;;  %v2085_v31 = vand.u32 2147483647, %v2075_v59  ;;  %v2088_v40 = vor.u32 1.1754944e-38, %v2087_v30  ;;  %2402 = vmatpush.msrb.mxu1 %v2374_v24  ;;  %v2367_v42 = vld [vmem:[#allocation12 + $0x190] sm:$0xff]  ;;  %v2341_v30 = vld [vmem:[#allocation12 + $0xc0] sm:$0xff] }
 0x441   : > { %v2058_v41 = vsub.f32 1.0, %v2057_v58  ;;  %2383 = vmatpush.msrb.mxu0 %v2369_v61  ;;  %v2368_v58 = vld [vmem:[#allocation12 + $0x198] sm:$0xff]  ;;  %v2329_v24 = vld [vmem:[#allocation12 + $0x60] sm:$0xff]  ;;  %v2331_v61 = vld [vmem:[#allocation12 + $0x70] sm:$0xff] }
 0x442   : > { %v2040_v13 = vmul.f32 %v2877_v62, %v2039_v18  ;;  %vm2086_vm9 = vcmp.eq.f32.partialorder %v2085_v31, 8.507059e+37  ;;  %2403 = vmatpush.msrb.mxu1 %v2370_v63  ;;  %v2361_v18 = vld [vmem:[#allocation12 + $0x160] sm:$0xff]  ;;  %v2342_v31 = vld [vmem:[#allocation12 + $0xc8] sm:$0xff]  ;;  %v2336_v37 = vld [vmem:[#allocation12 + $0x98] sm:$0xff] }
 0x443   : > { %v2059_v48 = vmul.f32 %v2879_v4, %v2058_v41  ;;  %2384 = vmatpush.msrb.mxu0 %v2365_v19  ;;  %v2362_v41 = vld [vmem:[#allocation12 + $0x168] sm:$0xff]  ;;  %v2332_v63 = vld [vmem:[#allocation12 + $0x78] sm:$0xff] }
 0x444   : > { %v2881_v17 = vpop.eup %2880  ;;  %v2041_v7 = vadd.f32 %v2877_v62, %v2040_v13  ;;  %v2357_v13 = vld [vmem:[#allocation12 + $0x140] sm:$0xff]  ;;  %v2326_v19 = vld [vmem:[#allocation12 + $0x48] sm:$0xff] }
 0x445   : > { %v2060_v12 = vadd.f32 %v2879_v4, %v2059_v48  ;;  %v2077_v0 = vmul.f32 %v2881_v17, %v2075_v59  ;;  %v2883_v3 = vpop.eup %2882  ;;  %vm2082_vm5 = vweird.f32 %v2881_v17  ;;  %v2371_v59 = vld [vmem:[#allocation12 + $0x1b0] sm:$0xff]  ;;  %2385 = vmatpush.msrb.mxu0 %v2361_v18  ;;  %v2321_v18 = vld [vmem:[#allocation12 + $0x20] sm:$0xff] }
 0x446   : > { %v2045_v50 = vsel %vm2044_vm1, %v2877_v62, %v2041_v7  ;;  %vm2083_vm7 = vmor %vm2081_vm6, %vm2082_vm5  ;;  %v2372_v62 = vld [vmem:[#allocation12 + $0x1b8] sm:$0xff]  ;;  %2423 = vmatpush.msrb.mxu2 %v2371_v59  ;;  %v2359_v48 = vld [vmem:[#allocation12 + $0x150] sm:$0xff] }
 0x447   : > { %v2050_v9 = vsel %vm2047_vm3, %v2049_v38, %v2045_v50  ;;  %v2064_v10 = vsel %vm2063_vm2, %v2879_v4, %v2060_v12  ;;  %v2078_v16 = vsub.f32 1.0, %v2077_v0  ;;  %2443 = vmatpush.msrb.mxu3 %v2372_v62  ;;  %v2366_v4 = vld [vmem:[#allocation12 + $0x188] sm:$0xff]  ;;  %2386 = vmatpush.msrb.mxu0 %v2357_v13  ;;  %v2355_v38 = vld [vmem:[#allocation12 + $0x130] sm:$0xff]  ;;  %v2356_v12 = vld [vmem:[#allocation12 + $0x138] sm:$0xff] }
 0x448   : > { %v2069_v21 = vsel %vm2066_vm4, %v2068_v1, %v2064_v10  ;;  %v2092_v22 = vmul.f32 %v2883_v3, %v2050_v9  ;;  %2404 = vmatpush.msrb.mxu1 %v2366_v4  ;;  %2424 = vmatpush.msrb.mxu2 %v2367_v42  ;;  %v2354_v7 = vld [vmem:[#allocation12 + $0x128] sm:$0xff]  ;;  %v2349_v0 = vld [vmem:[#allocation12 + $0x100] sm:$0xff]  ;;  %v2351_v50 = vld [vmem:[#allocation12 + $0x110] sm:$0xff] }
 0x449   : > { %v2091_v23 = vmul.f32 %v2069_v21, %v4070_v11  ;;  %v2079_v39 = vmul.f32 %v2881_v17, %v2078_v16  ;;  %2444 = vmatpush.msrb.mxu3 %v2368_v58  ;;  %v2350_v1 = vld [vmem:[#allocation12 + $0x108] sm:$0xff]  ;;  %v2352_v3 = vld [vmem:[#allocation12 + $0x118] sm:$0xff]  ;;  %v2345_v9 = vld [vmem:[#allocation12 + $0xe0] sm:$0xff]  ;;  %v1553_v21 = vadd.f32 %v4037_v5, %v4052_v60 }
 0x44a   : > { %2405 = vmatpush.msrb.mxu1 %v2362_v41  ;;  %2425 = vmatpush.msrb.mxu2 %v2363_v27  ;;  %v2346_v10 = vld [vmem:[#allocation12 + $0xe8] sm:$0xff]  ;;  %v2347_v16 = vld [vmem:[#allocation12 + $0xf0] sm:$0xff]  ;;  %v2337_v5 = vld [vmem:[#allocation12 + $0xa0] sm:$0xff] }
 0x44b   : > { %v4088_v28 = vadd.f32 %v2092_v22, %v2091_v23  ;;  %v2080_v25 = vadd.f32 %v2881_v17, %v2079_v39  ;;  %2445 = vmatpush.msrb.mxu3 %v2364_v55  ;;  %v1582_v22 = vadd.f32 %v4039_v6, %v4054_v2  ;;  %v2348_v23 = vld [vmem:[#allocation12 + $0xf8] sm:$0xff]  ;;  %v2339_v6 = vld [vmem:[#allocation12 + $0xb0] sm:$0xff]  ;;  %v2325_v59 = vld [vmem:[#allocation12 + $0x40] sm:$0xff] }
 0x44c   : > { %2406 = vmatpush.msrb.mxu1 %v2358_v57  ;;  %2426 = vmatpush.msrb.mxu2 %v2359_v48  ;;  %v2327_v4 = vld [vmem:[#allocation12 + $0x50] sm:$0xff]  ;;  %v2328_v42 = vld [vmem:[#allocation12 + $0x58] sm:$0xff]  ;;  %v2322_v41 = vld [vmem:[#allocation12 + $0x28] sm:$0xff] }
 0x44d   : > { %2884 = vtanh.f32 %v4088_v28  ;;  %v2084_v36 = vsel %vm2083_vm7, %v2881_v17, %v2080_v25  ;;  %2446 = vmatpush.msrb.mxu3 %v2360_v35  ;;  %v2353_v17 = vld [vmem:[#allocation12 + $0x120] sm:$0xff]  ;;  %v2324_v27 = vld [vmem:[#allocation12 + $0x38] sm:$0xff]  ;;  %v2318_v57 = vld [vmem:[#allocation12 + $0x8] sm:$0xff]  ;;  %vm2547_vm7 = vcmp.eq.s32.totalorder %v4091_v33, 2 }
 0x44e   : > { %v2089_v47 = vsel %vm2086_vm9, %v2088_v40, %v2084_v36  ;;  %2387 = vmatpush.msrb.mxu0 %v2353_v17  ;;  %2407 = vmatpush.msrb.mxu1 %v2354_v7  ;;  %v2343_v36 = vld [vmem:[#allocation12 + $0xd0] sm:$0xff]  ;;  %v2317_v13 = vld [vmem:[#allocation12] sm:$0xff]  ;;  %v2320_v17 = vld [vmem:[#allocation12 + $0x18] sm:$0xff] }
 0x44f   : > { %2427 = vmatpush.msrb.mxu2 %v2355_v38  ;;  %2447 = vmatpush.msrb.mxu3 %v2356_v12  ;;  %v2319_v35 = vld [vmem:[#allocation12 + $0x10] sm:$0xff] }
 0x450   : > { %2388 = vmatpush.msrb.mxu0 %v2349_v0  ;;  %2408 = vmatpush.msrb.mxu1 %v2350_v1 }
 0x451   : > { %2428 = vmatpush.msrb.mxu2 %v2351_v50  ;;  %2448 = vmatpush.msrb.mxu3 %v2352_v3  ;;  %v1611_v50 = vadd.f32 %v4058_v14, %v4067_v46 }
 0x452   : > { %2389 = vmatpush.msrb.mxu0 %v2345_v9  ;;  %2409 = vmatpush.msrb.mxu1 %v2346_v10 }
 0x453   : > { %v2885_v11 = vpop.eup %2884  ;;  %2429 = vmatpush.msrb.mxu2 %v2347_v16  ;;  %2449 = vmatpush.msrb.mxu3 %v2348_v23 }
 0x454   : > { %v2095_v49 = vmul.f32 %v2885_v11, %v2089_v47  ;;  %2390 = vmatpush.msrb.mxu0 %v2341_v30  ;;  %2410 = vmatpush.msrb.mxu1 %v2342_v31  ;;  %v2344_v11 = vld [vmem:[#allocation12 + $0xd8] sm:$0xff]  ;;  %v2338_v47 = vld [vmem:[#allocation12 + $0xa8] sm:$0xff] }
 0x455   : > { %2430 = vmatpush.msrb.mxu2 %v2343_v36  ;;  %2450 = vmatpush.msrb.mxu3 %v2344_v11 }
 0x456   : > { %2181 = vmatmul.f32.vlgmr.msra.gmra.mxu0 %v2095_v49  ;;  %2201 = vmatmul.f32.vlgmr.msra.gmra.mxu1 %v2095_v49  ;;  %v4096_v52 = vsel %vm2544_vm10, %v2095_v49, %v2542_v51 }
 0x457   : > { %2221 = vmatmul.f32.vlgmr.msra.gmra.mxu2 %v2095_v49  ;;  %2241 = vmatmul.f32.vlgmr.msra.gmra.mxu3 %v2095_v49 }
 0x458   : > { %2391 = vmatpush.msrb.mxu0 %v2337_v5  ;;  %2411 = vmatpush.msrb.mxu1 %v2338_v47 }
 0x459   : > { %2431 = vmatpush.msrb.mxu2 %v2339_v6  ;;  %2451 = vmatpush.msrb.mxu3 %v2340_v53 }
 0x45a   : > { %2392 = vmatpush.msrb.mxu0 %v2333_v44  ;;  %2412 = vmatpush.msrb.mxu1 %v2334_v56 }
 0x45b   : > { %2432 = vmatpush.msrb.mxu2 %v2335_v54  ;;  %2452 = vmatpush.msrb.mxu3 %v2336_v37 }
 0x45c   : > { %2393 = vmatpush.msrb.mxu0 %v2329_v24  ;;  %2413 = vmatpush.msrb.mxu1 %v2330_v20 }
 0x45d   : > { %2433 = vmatpush.msrb.mxu2 %v2331_v61  ;;  %2453 = vmatpush.msrb.mxu3 %v2332_v63 }
 0x45e   : > { %2394 = vmatpush.msrb.mxu0 %v2325_v59  ;;  %2414 = vmatpush.msrb.mxu1 %v2326_v19 }
 0x45f   : > { %2434 = vmatpush.msrb.mxu2 %v2327_v4  ;;  %2454 = vmatpush.msrb.mxu3 %v2328_v42 }
 0x460   : > { %2395 = vmatpush.msrb.mxu0 %v2321_v18  ;;  %2415 = vmatpush.msrb.mxu1 %v2322_v41  ;;  %v1556_v41 = vadd.f32 %v4048_v26, %v4052_v60 }
 0x461   : > { %2435 = vmatpush.msrb.mxu2 %v2323_v8  ;;  %2455 = vmatpush.msrb.mxu3 %v2324_v27  ;;  %v1585_v8 = vadd.f32 %v4050_v43, %v4054_v2 }
 0x462   : > { %2396 = vmatpush.msrb.mxu0 %v2317_v13  ;;  %2416 = vmatpush.msrb.mxu1 %v2318_v57 }
 0x463   : > { %2436 = vmatpush.msrb.mxu2 %v2319_v35  ;;  %2456 = vmatpush.msrb.mxu3 %v2320_v17  ;;  %v1643_v17 = vadd.f32 %v4060_v15, %v4062_v34 }
 0x4d3   : > { %v2182_v39 = vpop.f32.mrf.mxu0  ;;  %v2202_v25 = vpop.f32.mrf.mxu1 }
 0x4d4   : > { %v2245_v40 = vadd.f32 %v2182_v39, %v1553_v21  ;;  %v2246_v45 = vadd.f32 %v2202_v25, %v1582_v22 }
 0x4d6   : > { %v2711_v49 = vmul.f32 -1.442695, %v2245_v40  ;;  %v2712_v51 = vmul.f32 -1.442695, %v2246_v45 }
 0x4d8   : > { %2886 = vpow2.f32 %v2711_v49 }
 0x4d9   : > { %2888 = vpow2.f32 %v2712_v51 }
 0x4da   : > { %v2242_v62 = vpop.f32.mrf.mxu3  ;;  %v2222_v0 = vpop.f32.mrf.mxu2 }
 0x4db   : > { %v2248_v58 = vadd.f32 %v2242_v62, %v1640_v32  ;;  %v2247_v10 = vadd.f32 %v2222_v0, %v1611_v50 }
 0x4dd   : > { %v2713_v55 = vmul.f32 -1.442695, %v2248_v58 }
 0x4de   : > { %v2887_v48 = vpop.eup %2886 }
 0x4df   : > { %v2889_v7 = vpop.eup %2888  ;;  %v2252_v38 = vadd.f32 1.0, %v2887_v48  ;;  %2890 = vpow2.f32 %v2713_v55 }
 0x4e0   : > { %v2271_v12 = vadd.f32 1.0, %v2889_v7 }
 0x4e1   : > { %2892 = vrcp.f32 %v2252_v38  ;;  %v2264_v25 = vand.u32 2147483648, %v2252_v38  ;;  %v2262_v36 = vand.u32 2147483647, %v2252_v38  ;;  %vm2258_vm13 = vweird.f32 %v2252_v38 }
 0x4e2   : > { %2894 = vrcp.f32 %v2271_v12  ;;  %v2283_v30 = vand.u32 2147483648, %v2271_v12  ;;  %v2281_v45 = vand.u32 2147483647, %v2271_v12  ;;  %vm2277_vm14 = vweird.f32 %v2271_v12 }
 0x4e3   : > { %v2265_v5 = vor.u32 1.1754944e-38, %v2264_v25  ;;  %vm2263_vm1 = vcmp.eq.f32.partialorder %v2262_v36, 8.507059e+37 }
 0x4e4   : > { %v2284_v49 = vor.u32 1.1754944e-38, %v2283_v30  ;;  %vm2282_vm2 = vcmp.eq.f32.partialorder %v2281_v45, 8.507059e+37 }
 0x4e5   : > { %v2891_v1 = vpop.eup %2890 }
 0x4e6   : > { %v2291_v3 = vadd.f32 1.0, %v2891_v1  ;;  %v1614_v1 = vadd.f32 %v4065_v29, %v4067_v46 }
 0x4e7   : > { %v2893_v9 = vpop.eup %2892 }
 0x4e8   : > { %v2895_v16 = vpop.eup %2894  ;;  %v2254_v21 = vmul.f32 %v2893_v9, %v2252_v38  ;;  %2896 = vrcp.f32 %v2291_v3  ;;  %vm2259_vm11 = vweird.f32 %v2893_v9  ;;  %v2303_v59 = vand.u32 2147483648, %v2291_v3 }
 0x4e9   : > { %v2273_v22 = vmul.f32 %v2895_v16, %v2271_v12  ;;  %2898 = vtanh.f32 %v2247_v10  ;;  %vm2278_vm12 = vweird.f32 %v2895_v16  ;;  %vm2260_vm15 = vmor %vm2258_vm13, %vm2259_vm11  ;;  %vm2297_vm4 = vweird.f32 %v2291_v3 }
 0x4ea   : > { %v2255_v23 = vsub.f32 1.0, %v2254_v21  ;;  %vm2279_vm0 = vmor %vm2277_vm14, %vm2278_vm12  ;;  %v2301_v62 = vand.u32 2147483647, %v2291_v3  ;;  %v2304_v4 = vor.u32 1.1754944e-38, %v2303_v59 }
 0x4eb   : > { %v2274_v39 = vsub.f32 1.0, %v2273_v22 }
 0x4ec   : > { %v2256_v31 = vmul.f32 %v2893_v9, %v2255_v23  ;;  %vm2302_vm6 = vcmp.eq.f32.partialorder %v2301_v62, 8.507059e+37 }
 0x4ed   : > { %v2275_v40 = vmul.f32 %v2895_v16, %v2274_v39 }
 0x4ee   : > { %v2897_v11 = vpop.eup %2896  ;;  %v2257_v14 = vadd.f32 %v2893_v9, %v2256_v31 }
 0x4ef   : > { %v2276_v47 = vadd.f32 %v2895_v16, %v2275_v40  ;;  %v2293_v6 = vmul.f32 %v2897_v11, %v2291_v3  ;;  %v2899_v53 = vpop.eup %2898  ;;  %vm2298_vm3 = vweird.f32 %v2897_v11 }
 0x4f0   : > { %v2261_v51 = vsel %vm2260_vm15, %v2893_v9, %v2257_v14  ;;  %vm2299_vm5 = vmor %vm2297_vm4, %vm2298_vm3  ;;  %vm2550_vm4 = vcmp.eq.s32.totalorder %v4091_v33, 3 }
 0x4f1   : > { %v2266_v44 = vsel %vm2263_vm1, %v2265_v5, %v2261_v51  ;;  %v2280_v56 = vsel %vm2279_vm0, %v2895_v16, %v2276_v47  ;;  %v2294_v54 = vsub.f32 1.0, %v2293_v6 }
 0x4f2   : > { %v2285_v37 = vsel %vm2282_vm2, %v2284_v49, %v2280_v56  ;;  %v2308_v24 = vmul.f32 %v2899_v53, %v2266_v44 }
 0x4f3   : > { %v2307_v20 = vmul.f32 %v2285_v37, %v4088_v28  ;;  %v2295_v32 = vmul.f32 %v2897_v11, %v2294_v54 }
 0x4f5   : > { %v4107_v61 = vadd.f32 %v2308_v24, %v2307_v20  ;;  %v2296_v63 = vadd.f32 %v2897_v11, %v2295_v32 }
 0x4f7   : > { %2900 = vtanh.f32 %v4107_v61  ;;  %v2300_v19 = vsel %vm2299_vm5, %v2897_v11, %v2296_v63 }
 0x4f8   : > { %v2305_v58 = vsel %vm2302_vm6, %v2304_v4, %v2300_v19 }
 0x4fd   : > { %v2901_v42 = vpop.eup %2900 }
 0x4fe   : > { %v2311_v18 = vmul.f32 %v2901_v42, %v2305_v58 }
 0x500   : > { %2397 = vmatmul.f32.vlgmr.msrb.gmra.mxu0 %v2311_v18  ;;  %2417 = vmatmul.f32.vlgmr.msrb.gmra.mxu1 %v2311_v18  ;;  %v4112_v28 = vsel %vm2547_vm7, %v2311_v18, %v4096_v52 }
 0x501   : > { %2437 = vmatmul.f32.vlgmr.msrb.gmra.mxu2 %v2311_v18  ;;  %2457 = vmatmul.f32.vlgmr.msrb.gmra.mxu3 %v2311_v18 }
 0x57d   : > { %v2398_v27 = vpop.f32.mrf.mxu0  ;;  %v2418_v55 = vpop.f32.mrf.mxu1 }
 0x57e   : > { %v2461_v13 = vadd.f32 %v2398_v27, %v1556_v41  ;;  %v2462_v57 = vadd.f32 %v2418_v55, %v1585_v8 }
 0x580   : > { %v2714_v48 = vmul.f32 -1.442695, %v2461_v13  ;;  %v2715_v35 = vmul.f32 -1.442695, %v2462_v57 }
 0x582   : > { %2902 = vpow2.f32 %v2714_v48 }
 0x583   : > { %2904 = vpow2.f32 %v2715_v35 }
 0x584   : > { %v2458_v52 = vpop.f32.mrf.mxu3  ;;  %v2438_v43 = vpop.f32.mrf.mxu2 }
 0x585   : > { %v2464_v7 = vadd.f32 %v2458_v52, %v1643_v17  ;;  %v2463_v9 = vadd.f32 %v2438_v43, %v1614_v1 }
 0x587   : > { %v2716_v38 = vmul.f32 -1.442695, %v2464_v7 }
 0x588   : > { %v2903_v12 = vpop.eup %2902 }
 0x589   : > { %v2905_v0 = vpop.eup %2904  ;;  %v2468_v26 = vadd.f32 1.0, %v2903_v12  ;;  %2906 = vpow2.f32 %v2716_v38 }
 0x58a   : > { %v2487_v60 = vadd.f32 1.0, %v2905_v0 }
 0x58b   : > { %2908 = vrcp.f32 %v2468_v26  ;;  %v2480_v22 = vand.u32 2147483648, %v2468_v26  ;;  %v2478_v25 = vand.u32 2147483647, %v2468_v26  ;;  %vm2474_vm10 = vweird.f32 %v2468_v26 }
 0x58c   : > { %2910 = vrcp.f32 %v2487_v60  ;;  %v2499_v23 = vand.u32 2147483648, %v2487_v60  ;;  %v2497_v31 = vand.u32 2147483647, %v2487_v60  ;;  %vm2493_vm11 = vweird.f32 %v2487_v60 }
 0x58d   : > { %v2481_v46 = vor.u32 1.1754944e-38, %v2480_v22  ;;  %vm2479_vm14 = vcmp.eq.f32.partialorder %v2478_v25, 8.507059e+37 }
 0x58e   : > { %v2500_v11 = vor.u32 1.1754944e-38, %v2499_v23  ;;  %vm2498_vm15 = vcmp.eq.f32.partialorder %v2497_v31, 8.507059e+37 }
 0x58f   : > { %v2907_v2 = vpop.eup %2906 }
 0x590   : > { %v2507_v50 = vadd.f32 1.0, %v2907_v2 }
 0x591   : > { %v2909_v3 = vpop.eup %2908 }
 0x592   : > { %v2911_v15 = vpop.eup %2910  ;;  %v2470_v34 = vmul.f32 %v2909_v3, %v2468_v26  ;;  %2912 = vrcp.f32 %v2507_v50  ;;  %vm2475_vm8 = vweird.f32 %v2909_v3  ;;  %v2519_v24 = vand.u32 2147483648, %v2507_v50 }
 0x593   : > { %v2489_v10 = vmul.f32 %v2911_v15, %v2487_v60  ;;  %2914 = vtanh.f32 %v2463_v9  ;;  %vm2494_vm9 = vweird.f32 %v2911_v15  ;;  %vm2476_vm12 = vmor %vm2474_vm10, %vm2475_vm8  ;;  %vm2513_vm1 = vweird.f32 %v2507_v50 }
 0x594   : > { %v2471_v16 = vsub.f32 1.0, %v2470_v34  ;;  %vm2495_vm13 = vmor %vm2493_vm11, %vm2494_vm9  ;;  %v2517_v20 = vand.u32 2147483647, %v2507_v50  ;;  %v2520_v63 = vor.u32 1.1754944e-38, %v2519_v24 }
 0x595   : > { %v2490_v21 = vsub.f32 1.0, %v2489_v10 }
 0x596   : > { %v2472_v39 = vmul.f32 %v2909_v3, %v2471_v16  ;;  %vm2518_vm3 = vcmp.eq.f32.partialorder %v2517_v20, 8.507059e+37 }
 0x597   : > { %v2491_v30 = vmul.f32 %v2911_v15, %v2490_v21 }
 0x598   : > { %v2913_v36 = vpop.eup %2912  ;;  %v2473_v29 = vadd.f32 %v2909_v3, %v2472_v39 }
 0x599   : > { %v2492_v40 = vadd.f32 %v2911_v15, %v2491_v30  ;;  %v2509_v45 = vmul.f32 %v2913_v36, %v2507_v50  ;;  %v2915_v5 = vpop.eup %2914  ;;  %vm2514_vm0 = vweird.f32 %v2913_v36 }
 0x59a   : > { %v2477_v14 = vsel %vm2476_vm12, %v2909_v3, %v2473_v29  ;;  %vm2515_vm2 = vmor %vm2513_vm1, %vm2514_vm0 }
 0x59b   : > { %v2482_v47 = vsel %vm2479_vm14, %v2481_v46, %v2477_v14  ;;  %v2496_v6 = vsel %vm2495_vm13, %v2911_v15, %v2492_v40  ;;  %v2510_v49 = vsub.f32 1.0, %v2509_v45 }
 0x59c   : > { %v2501_v51 = vsel %vm2498_vm15, %v2500_v11, %v2496_v6  ;;  %v2524_v53 = vmul.f32 %v2915_v5, %v2482_v47 }
 0x59d   : > { %v2523_v44 = vmul.f32 %v2501_v51, %v4107_v61  ;;  %v2511_v56 = vmul.f32 %v2913_v36, %v2510_v49 }
 0x59f   : > { %v2525_v54 = vadd.f32 %v2524_v53, %v2523_v44  ;;  %v2512_v37 = vadd.f32 %v2913_v36, %v2511_v56 }
 0x5a1   : > { %2916 = vtanh.f32 %v2525_v54  ;;  %2530 = vst [vmem:[#allocation3] sm:$0xff] %v2525_v54  ;;  %v2516_v32 = vsel %vm2515_vm2, %v2913_v36, %v2512_v37 }
 0x5a2   : > { %v2521_v59 = vsel %vm2518_vm3, %v2520_v63, %v2516_v32 }
 0x5a7   : > { %v2917_v61 = vpop.eup %2916 }
 0x5a8   : > { %v2527_v62 = vmul.f32 %v2917_v61, %v2521_v59 }
 0x5aa   : > { %2529 = vst [vmem:[#allocation2 + $0x8] sm:$0xff] %v2527_v62  ;;  %v2551_v19 = vsel %vm2550_vm4, %v2527_v62, %v4112_v28 }
 0x5ab   : > { %2552 = vst [vmem:[#allocation13] sm:$0xff] %v2551_v19 }
 0x5ac   : > { %2736 = dma.vmem_to_hbm [thread:$0]  (%p2755_p9), %s2562_s24, 128, %s2564_s26, [#allocation9]  }
 0x5ad   : > { %3057 = dma.done.wait (%p2755_p9), [#allocation9], 128  }
 0x5ae   : > { %3059 = vsyncadd (%p2755_p9), [#allocation9], 4294967168 }
 0x5af PF: > { %s21_s29 = sadd.s32 1, %s3070_s29   ;;  %s4233_s27 = smov %s3066_s28 }
 0x5b0   : > { %p18_p10 = scmp.ge.s32.totalorder %s21_s29, 4   ;;  %s4234_s28 = smov %s4236_s17 }
 0x5b2   :  { %20 = sbr.rel (!%p18_p10) target bundleno = 4 (0x4), region = 109 }
 0x5b7   :  { %2577 = vsyncpa [#allocation8], 1 }
 0x5b8   :  { %2579 = vsyncpa [#allocation8 + $0x1], 1 }
 0x5b9   :  { %2580 = vsyncpa [#allocation11], 1 }
 0x5ba   :  { %2581 = vsyncpa [#allocation9], 1 }
 0x5bb   :  { %2583 = vsyncpa [#allocation9 + $0x1], 1 }

// kernel: tpu_custom_call.1
= control target key start
LH: loop header
LB: loop body
LE: loop exit
PB: predicated region body
PF: predicated region fallthrough
CT: control target
= control target key end

     0   :  { %13 = vsyncpa [#allocation8], 0  ;;  %s4139_s0 = inlined_call_operand.vmem [shape: s32[8,1], index: 0, kind: input, shape index: {}]   ;;  %s4140_s1 = inlined_call_operand.vmem [shape: f32[64,16], index: 1, kind: input, shape index: {}]   ;;  %s4141_s2 = inlined_call_operand.vmem [shape: f32[16,512], index: 2, kind: input, shape index: {}]   ;;  %s4142_s3 = inlined_call_operand.hbm [shape: f32[128,512], index: 3, kind: input, shape index: {}]   ;;  %s4143_s4 = inlined_call_operand.vmem [shape: f32[1,512], index: 4, kind: input, shape index: {}]   ;;  %s4144_s5 = inlined_call_operand.hbm [shape: f32[128,512], index: 5, kind: input, shape index: {}]   ;;  %s4145_s6 = inlined_call_operand.hbm [shape: f32[128,512], index: 6, kind: input, shape index: {}]   ;;  %s4146_s7 = inlined_call_operand.vmem [shape: f32[1,512], index: 7, kind: input, shape index: {}]   ;;  %s4147_s8 = inlined_call_operand.hbm [shape: f32[8,128], index: 8, kind: output, shape index: {}]  }
   0x1   :  { %14 = vsyncpa [#allocation11], 0 }
   0x2   :  { %15 = vsyncpa [#allocation9], 0  ;;  %s3125_s27 = smov 0   ;;  %s3127_s28 = smov 0  }
   0x3   :  { %s3129_s29 = smov 0  }
   0x4 LB: > { %s2663_s30 = sadd.s32 4294967295, %s3070_s29   ;;  %p2664_p0 = scmp.ge.s32.totalorder %s3070_s29, 1  ;;  %s3070_s29 = sphi %s3129_s29, %s21_s29   ;;  %s3066_s28 = sphi %s3127_s28, %s4234_s28   ;;  %s3062_s27 = sphi %s3125_s27, %s4233_s27  }
   0x5   : > { %p246_p1 = scmp.lt.s32.totalorder %s3070_s29, 3  ;;  %p3145_p2 = scmp.eq.s32.totalorder %s2663_s30, 0 }
   0x6   : > { %s284_s12 = sshll.u32 %s4144_s5, 4  ;;  %s3072_s14 = smov [#allocation10]   ;;  %s285_s12 = int_to_ptr.hbm [resolvable:$true] %s284_s12 }
   0x7   : > { %p3152_p3 = pnand %p2664_p0, %p246_p1  ;;  %s286_s15 = sshll.u32 %s3072_s14, 4  ;;  %s287_s15 = int_to_ptr.vmem [resolvable:$true] %s286_s15 }
   0x8   : > { %s30_s17 = sadd.s32 1, %s3066_s28  ;;  %s3073_s18 = smov 512  }
   0x9   : > { %p2739_p4 = pneg %p3152_p3  ;;  %p31_p6 = scmp.ge.s32.totalorder %s30_s17, 2 }
   0xa   : > { %s3074_s19 = smov 32   ;;  %s267_s22 = sshll.u32 %s4142_s3, 4  ;;  %s268_s22 = int_to_ptr.hbm [resolvable:$true] %s267_s22 }
   0xb   : > { %p3160_p5 = pnand %p3145_p2, %p2739_p4  ;;  %s4236_s17 = smov (%p31_p6, %s30_s17), 0 }
   0xc   : > { %s3075_s23 = smov [#allocation7]   ;;  %s298_s10 = sshll.u32 %s4145_s6, 4  ;;  %s299_s10 = int_to_ptr.hbm [resolvable:$true] %s298_s10 }
   0xd   : > { %2745 = dma.hbm_to_vmem [thread:$0]  (!%p3160_p5), %s285_s12, 8192, %s287_s15, [#allocation11], %s3073_s18, %s3073_s18, %s3074_s19  }
   0xe   : > { %s269_s24 = sshll.u32 %s3075_s23, 4  ;;  %s3076_s11 = smov [#allocation12]   ;;  %s270_s24 = int_to_ptr.vmem [resolvable:$true] %s269_s24 }
   0xf   : > { %2742 = dma.hbm_to_vmem [thread:$0]  (!%p3160_p5), %s268_s22, 8192, %s270_s24, [#allocation8], %s3073_s18, %s3073_s18, %s3074_s19  }
  0x10   : > { %s300_s14 = sshll.u32 %s3076_s11, 4  ;;  %332 = sbr.rel (%p3152_p3) target bundleno = 1455 (0x5af), region = 52  ;;  %s301_s14 = int_to_ptr.vmem [resolvable:$true] %s300_s14 }
  0x11   : > { %2748 = dma.hbm_to_vmem [thread:$0]  (!%p3160_p5), %s299_s10, 8192, %s301_s14, [#allocation11], %s3073_s18, %s3073_s18, %s3074_s19  }
  0x15   : > { %3049 = dma.done.wait (%p3145_p2), [#allocation8], 8192  }
  0x16   : > { %3051 = vsyncadd (%p3145_p2), [#allocation8], 4294959104 }
  0x17   : > { %3053 = dma.done.wait (%p3145_p2), [#allocation11], 16384  }
  0x18   : > { %3055 = vsyncadd (%p3145_p2), [#allocation11], 4294950912  ;;  %s3190_s12 = sshll.u32 %s3062_s27, 2  ;;  %p2676_p8 = scmp.ne.s32.totalorder %s3062_s27, 0 }
  0x19   : > { %p385_p7 = scmp.lt.s32.totalorder %s3190_s12, 7 }
  0x1a   : > { %395 = sbr.rel (%p2676_p8) target bundleno = 37 (0x25), region = 68 }
  0x1b   : > { %s386_s13 = scalar_select %p385_p7, %s3190_s12, 7 }
  0x1d   : > { %s2675_s15 = sshll.u32 %s386_s13, 3 }
  0x1e   : > { %s3197_s19 = scalar_lea.vmem %s4140_s1, %s2675_s15 }
  0x1f   : > { %v3077_v0 = vmov 0.0  }
  0x20   : > { %396 = vst [vmem:[#allocation2] sm:$0xff] %v3077_v0 }
  0x21   : > { %397 = vst [vmem:[#allocation2 + $0x8] sm:$0xff] %v3077_v0 }
  0x22   : > { %398 = vst [vmem:[#allocation3 + $0x8] sm:$0xff] %v3077_v0 }
  0x23   : > { %399 = vst [vmem:[#allocation3] sm:$0xff] %v3077_v0 }
  0x24   : > { %400 = vst [vmem:[#allocation13] sm:$0xff] %v3077_v0 }
  0x25 PF: > { %v409_v1 = vld [vmem:[%s4141_s2 + $0x20] sm:$0xff]  ;;  %v410_v2 = vld [vmem:[%s4141_s2 + $0x28] sm:$0xff]  ;;  %v411_v3 = vld [vmem:[%s4141_s2 + $0x30] sm:$0xff]  ;;  %vm423_vm0 = vcmask 130048   ;;  %s3079_s23 = smov [#allocation13]   ;;  %s2563_s26 = sshll.u32 %s4147_s8, 4  ;;  %s2564_s26 = int_to_ptr.hbm [resolvable:$true] %s2563_s26 }
  0x26   : > { %450 = vmatpush.msra.mxu0 %v409_v1  ;;  %479 = vmatpush.msra.mxu1 %v410_v2  ;;  %v412_v4 = vld [vmem:[%s4141_s2 + $0x38] sm:$0xff]  ;;  %v405_v5 = vld [vmem:[%s4141_s2] sm:$0xff]  ;;  %v406_v6 = vld [vmem:[%s4141_s2 + $0x8] sm:$0xff]  ;;  %s2561_s24 = sshll.u32 %s3079_s23, 4  ;;  %p2755_p9 = scmp.eq.s32.totalorder %s2663_s30, 1  ;;  %s2562_s24 = int_to_ptr.vmem [resolvable:$true] %s2561_s24 }
  0x27   : > { %508 = vmatpush.msra.mxu2 %v411_v3  ;;  %537 = vmatpush.msra.mxu3 %v412_v4  ;;  %v407_v7 = vld [vmem:[%s4141_s2 + $0x10] sm:$0xff]  ;;  %v408_v8 = vld [vmem:[%s4141_s2 + $0x18] sm:$0xff]  ;;  %v401_v9 = vld [vmem:[%s3197_s19] sm:$0xff] }
  0x28   : > { %451 = vmatpush.msra.mxu0 %v405_v5  ;;  %480 = vmatpush.msra.mxu1 %v406_v6  ;;  %v3225_v10 = vld [vmem:[#allocation7 + $0x1e0] sm:$0xff]  ;;  %v3227_v11 = vld [vmem:[#allocation7 + $0x1e8] sm:$0xff]  ;;  %v3231_v12 = vld [vmem:[#allocation7 + $0x1f0] sm:$0xff] }
  0x29   : > { %509 = vmatpush.msra.mxu2 %v407_v7  ;;  %538 = vmatpush.msra.mxu3 %v408_v8  ;;  %v3233_v13 = vld [vmem:[#allocation7 + $0x1f8] sm:$0xff]  ;;  %v3237_v14 = vld [vmem:[#allocation7 + $0x1c0] sm:$0xff]  ;;  %v3239_v15 = vld [vmem:[#allocation7 + $0x1c8] sm:$0xff] }
  0x2a   : > { %2677 = vmatmul.msk.f32.vlgmr.msra.gmra.mxu0 %vm423_vm0, %v401_v9  ;;  %2681 = vmatmul.msk.f32.vlgmr.msra.gmra.mxu1 %vm423_vm0, %v401_v9  ;;  %v3243_v16 = vld [vmem:[#allocation7 + $0x1d0] sm:$0xff]  ;;  %v3245_v17 = vld [vmem:[#allocation7 + $0x1d8] sm:$0xff]  ;;  %v3249_v18 = vld [vmem:[#allocation7 + $0x1a0] sm:$0xff] }
  0x2b   : > { %2685 = vmatmul.msk.f32.vlgmr.msra.gmra.mxu2 %vm423_vm0, %v401_v9  ;;  %2689 = vmatmul.msk.f32.vlgmr.msra.gmra.mxu3 %vm423_vm0, %v401_v9  ;;  %v3251_v19 = vld [vmem:[#allocation7 + $0x1a8] sm:$0xff]  ;;  %v3255_v20 = vld [vmem:[#allocation7 + $0x1b0] sm:$0xff]  ;;  %v3257_v21 = vld [vmem:[#allocation7 + $0x1b8] sm:$0xff] }
  0x2c   : > { %641 = vmatpush.msrb.mxu0 %v3225_v10  ;;  %661 = vmatpush.msrb.mxu1 %v3227_v11  ;;  %v3261_v22 = vld [vmem:[#allocation7 + $0x180] sm:$0xff]  ;;  %v3263_v23 = vld [vmem:[#allocation7 + $0x188] sm:$0xff]  ;;  %v3267_v24 = vld [vmem:[#allocation7 + $0x190] sm:$0xff] }
  0x2d   : > { %681 = vmatpush.msrb.mxu2 %v3231_v12  ;;  %701 = vmatpush.msrb.mxu3 %v3233_v13  ;;  %v3269_v25 = vld [vmem:[#allocation7 + $0x198] sm:$0xff]  ;;  %v402_v26 = vld [vmem:[%s3197_s19 + $0x8] sm:$0xff]  ;;  %v3278_v27 = vld [vmem:[#allocation7 + $0x160] sm:$0xff] }
  0x2e   : > { %642 = vmatpush.msrb.mxu0 %v3237_v14  ;;  %662 = vmatpush.msrb.mxu1 %v3239_v15  ;;  %v3280_v28 = vld [vmem:[#allocation7 + $0x168] sm:$0xff]  ;;  %v3284_v29 = vld [vmem:[#allocation7 + $0x170] sm:$0xff]  ;;  %v3286_v30 = vld [vmem:[#allocation7 + $0x178] sm:$0xff] }
  0x2f   : > { %682 = vmatpush.msrb.mxu2 %v3243_v16  ;;  %702 = vmatpush.msrb.mxu3 %v3245_v17  ;;  %v3290_v31 = vld [vmem:[#allocation7 + $0x140] sm:$0xff]  ;;  %v3292_v32 = vld [vmem:[#allocation7 + $0x148] sm:$0xff]  ;;  %v3296_v33 = vld [vmem:[#allocation7 + $0x150] sm:$0xff] }
  0x30   : > { %643 = vmatpush.msrb.mxu0 %v3249_v18  ;;  %663 = vmatpush.msrb.mxu1 %v3251_v19  ;;  %v3298_v34 = vld [vmem:[#allocation7 + $0x158] sm:$0xff]  ;;  %v3302_v35 = vld [vmem:[#allocation7 + $0x120] sm:$0xff]  ;;  %v3304_v36 = vld [vmem:[#allocation7 + $0x128] sm:$0xff] }
  0x31   : > { %683 = vmatpush.msrb.mxu2 %v3255_v20  ;;  %703 = vmatpush.msrb.mxu3 %v3257_v21  ;;  %v3308_v37 = vld [vmem:[#allocation7 + $0x130] sm:$0xff]  ;;  %v3310_v38 = vld [vmem:[#allocation7 + $0x138] sm:$0xff]  ;;  %v3314_v39 = vld [vmem:[#allocation7 + $0x100] sm:$0xff] }
  0x32   : > { %644 = vmatpush.msrb.mxu0 %v3261_v22  ;;  %664 = vmatpush.msrb.mxu1 %v3263_v23  ;;  %v3316_v40 = vld [vmem:[#allocation7 + $0x108] sm:$0xff]  ;;  %v3320_v41 = vld [vmem:[#allocation7 + $0x110] sm:$0xff]  ;;  %v3322_v42 = vld [vmem:[#allocation7 + $0x118] sm:$0xff] }
  0x33   : > { %684 = vmatpush.msrb.mxu2 %v3267_v24  ;;  %704 = vmatpush.msrb.mxu3 %v3269_v25  ;;  %v403_v43 = vld [vmem:[%s3197_s19 + $0x10] sm:$0xff]  ;;  %v3331_v44 = vld [vmem:[#allocation7 + $0xe0] sm:$0xff]  ;;  %v3333_v45 = vld [vmem:[#allocation7 + $0xe8] sm:$0xff] }
  0x34   : > { %2678 = vmatmul.msk.f32.gmra.mxu0 %vm423_vm0, %v402_v26  ;;  %2682 = vmatmul.msk.f32.gmra.mxu1 %vm423_vm0, %v402_v26  ;;  %v3337_v46 = vld [vmem:[#allocation7 + $0xf0] sm:$0xff]  ;;  %v3339_v47 = vld [vmem:[#allocation7 + $0xf8] sm:$0xff]  ;;  %v3343_v48 = vld [vmem:[#allocation7 + $0xc0] sm:$0xff] }
  0x35   : > { %2686 = vmatmul.msk.f32.gmra.mxu2 %vm423_vm0, %v402_v26  ;;  %2690 = vmatmul.msk.f32.gmra.mxu3 %vm423_vm0, %v402_v26  ;;  %v3345_v49 = vld [vmem:[#allocation7 + $0xc8] sm:$0xff]  ;;  %v3349_v50 = vld [vmem:[#allocation7 + $0xd0] sm:$0xff]  ;;  %v3351_v51 = vld [vmem:[#allocation7 + $0xd8] sm:$0xff] }
  0x36   : > { %645 = vmatpush.msrb.mxu0 %v3278_v27  ;;  %665 = vmatpush.msrb.mxu1 %v3280_v28  ;;  %v3355_v52 = vld [vmem:[#allocation7 + $0xa0] sm:$0xff]  ;;  %v3357_v53 = vld [vmem:[#allocation7 + $0xa8] sm:$0xff]  ;;  %v3361_v54 = vld [vmem:[#allocation7 + $0xb0] sm:$0xff] }
  0x37   : > { %685 = vmatpush.msrb.mxu2 %v3284_v29  ;;  %705 = vmatpush.msrb.mxu3 %v3286_v30  ;;  %v3363_v55 = vld [vmem:[#allocation7 + $0xb8] sm:$0xff]  ;;  %v3367_v56 = vld [vmem:[#allocation7 + $0x80] sm:$0xff]  ;;  %v3369_v57 = vld [vmem:[#allocation7 + $0x88] sm:$0xff] }
  0x38   : > { %646 = vmatpush.msrb.mxu0 %v3290_v31  ;;  %666 = vmatpush.msrb.mxu1 %v3292_v32  ;;  %v3373_v58 = vld [vmem:[#allocation7 + $0x90] sm:$0xff]  ;;  %v3375_v59 = vld [vmem:[#allocation7 + $0x98] sm:$0xff]  ;;  %v3384_v61 = vld [vmem:[#allocation7 + $0x60] sm:$0xff] }
  0x39   : > { %686 = vmatpush.msrb.mxu2 %v3296_v33  ;;  %706 = vmatpush.msrb.mxu3 %v3298_v34  ;;  %v404_v60 = vld [vmem:[%s3197_s19 + $0x18] sm:$0xff]  ;;  %v3386_v62 = vld [vmem:[#allocation7 + $0x68] sm:$0xff]  ;;  %v3390_v63 = vld [vmem:[#allocation7 + $0x70] sm:$0xff] }
  0x3a   : > { %647 = vmatpush.msrb.mxu0 %v3302_v35  ;;  %667 = vmatpush.msrb.mxu1 %v3304_v36  ;;  %v3392_v0 = vld [vmem:[#allocation7 + $0x78] sm:$0xff]  ;;  %v3396_v1 = vld [vmem:[#allocation7 + $0x40] sm:$0xff]  ;;  %v3398_v2 = vld [vmem:[#allocation7 + $0x48] sm:$0xff] }
  0x3b   : > { %687 = vmatpush.msrb.mxu2 %v3308_v37  ;;  %707 = vmatpush.msrb.mxu3 %v3310_v38  ;;  %4191 = vst [vmem:[#allocation17_spill] sm:$0xff] %v3398_v2  ;;  %v3402_v3 = vld [vmem:[#allocation7 + $0x50] sm:$0xff]  ;;  %v3404_v4 = vld [vmem:[#allocation7 + $0x58] sm:$0xff]  ;;  %v3408_v5 = vld [vmem:[#allocation7 + $0x20] sm:$0xff] }
  0x3c   : > { %648 = vmatpush.msrb.mxu0 %v3314_v39  ;;  %668 = vmatpush.msrb.mxu1 %v3316_v40  ;;  %v3410_v6 = vld [vmem:[#allocation7 + $0x28] sm:$0xff]  ;;  %v3414_v7 = vld [vmem:[#allocation7 + $0x30] sm:$0xff]  ;;  %v3416_v8 = vld [vmem:[#allocation7 + $0x38] sm:$0xff] }
  0x3d   : > { %688 = vmatpush.msrb.mxu2 %v3320_v41  ;;  %708 = vmatpush.msrb.mxu3 %v3322_v42  ;;  %v3420_v9 = vld [vmem:[#allocation7] sm:$0xff]  ;;  %v3422_v26 = vld [vmem:[#allocation7 + $0x8] sm:$0xff] }
  0x3e   : > { %2679 = vmatmul.msk.f32.gmra.mxu0 %vm423_vm0, %v403_v43  ;;  %2683 = vmatmul.msk.f32.gmra.mxu1 %vm423_vm0, %v403_v43 }
  0x3f   : > { %2687 = vmatmul.msk.f32.gmra.mxu2 %vm423_vm0, %v403_v43  ;;  %2691 = vmatmul.msk.f32.gmra.mxu3 %vm423_vm0, %v403_v43  ;;  %v3426_v43 = vld [vmem:[#allocation7 + $0x10] sm:$0xff] }
  0x40   : > { %649 = vmatpush.msrb.mxu0 %v3331_v44  ;;  %669 = vmatpush.msrb.mxu1 %v3333_v45 }
  0x41   : > { %689 = vmatpush.msrb.mxu2 %v3337_v46  ;;  %709 = vmatpush.msrb.mxu3 %v3339_v47 }
  0x42   : > { %650 = vmatpush.msrb.mxu0 %v3343_v48  ;;  %670 = vmatpush.msrb.mxu1 %v3345_v49 }
  0x43   : > { %690 = vmatpush.msrb.mxu2 %v3349_v50  ;;  %710 = vmatpush.msrb.mxu3 %v3351_v51 }
  0x44   : > { %651 = vmatpush.msrb.mxu0 %v3355_v52  ;;  %671 = vmatpush.msrb.mxu1 %v3357_v53 }
  0x45   : > { %691 = vmatpush.msrb.mxu2 %v3361_v54  ;;  %711 = vmatpush.msrb.mxu3 %v3363_v55 }
  0x46   : > { %652 = vmatpush.msrb.mxu0 %v3367_v56  ;;  %672 = vmatpush.msrb.mxu1 %v3369_v57 }
  0x47   : > { %692 = vmatpush.msrb.mxu2 %v3373_v58  ;;  %712 = vmatpush.msrb.mxu3 %v3375_v59 }
  0x48   : > { %2680 = vmatmul.msk.f32.gmra.mxu0 %vm423_vm0, %v404_v60  ;;  %2684 = vmatmul.msk.f32.gmra.mxu1 %vm423_vm0, %v404_v60 }
  0x49   : > { %2688 = vmatmul.msk.f32.gmra.mxu2 %vm423_vm0, %v404_v60  ;;  %2692 = vmatmul.msk.f32.gmra.mxu3 %vm423_vm0, %v404_v60  ;;  %v3428_v60 = vld [vmem:[#allocation7 + $0x18] sm:$0xff] }
  0x4a   : > { %653 = vmatpush.msrb.mxu0 %v3384_v61  ;;  %673 = vmatpush.msrb.mxu1 %v3386_v62 }
  0x4b   : > { %693 = vmatpush.msrb.mxu2 %v3390_v63  ;;  %713 = vmatpush.msrb.mxu3 %v3392_v0 }
  0x4c   : > { %654 = vmatpush.msrb.mxu0 %v3396_v1  ;;  %674 = vmatpush.msrb.mxu1 %v3398_v2  ;;  %v568_v2 = vld [vmem:[#allocation2] sm:$0xff] }
  0x4d   : > { %694 = vmatpush.msrb.mxu2 %v3402_v3  ;;  %714 = vmatpush.msrb.mxu3 %v3404_v4 }
  0x4e   : > { %655 = vmatpush.msrb.mxu0 %v3408_v5  ;;  %675 = vmatpush.msrb.mxu1 %v3410_v6 }
  0x4f   : > { %695 = vmatpush.msrb.mxu2 %v3414_v7  ;;  %715 = vmatpush.msrb.mxu3 %v3416_v8 }
  0x50   : > { %656 = vmatpush.msrb.mxu0 %v3420_v9  ;;  %676 = vmatpush.msrb.mxu1 %v3422_v26 }
  0x51   : > { %696 = vmatpush.msrb.mxu2 %v3426_v43  ;;  %716 = vmatpush.msrb.mxu3 %v3428_v60 }
  0x52   : > { %657 = vmatmul.f32.vlgmr.msrb.gmra.mxu0 %v568_v2  ;;  %677 = vmatmul.f32.vlgmr.msrb.gmra.mxu1 %v568_v2 }
  0x53   : > { %697 = vmatmul.f32.vlgmr.msrb.gmra.mxu2 %v568_v2  ;;  %717 = vmatmul.f32.vlgmr.msrb.gmra.mxu3 %v568_v2  ;;  %v4192_v2 = vld [vmem:[#allocation17_spill] sm:$0xff] }
  0x54   : > { %860 = vmatpush.msra.mxu0 %v3225_v10  ;;  %880 = vmatpush.msra.mxu1 %v3227_v11 }
  0x55   : > { %900 = vmatpush.msra.mxu2 %v3231_v12  ;;  %920 = vmatpush.msra.mxu3 %v3233_v13 }
  0x56   : > { %861 = vmatpush.msra.mxu0 %v3237_v14  ;;  %881 = vmatpush.msra.mxu1 %v3239_v15 }
  0x57   : > { %901 = vmatpush.msra.mxu2 %v3243_v16  ;;  %921 = vmatpush.msra.mxu3 %v3245_v17 }
  0x58   : > { %862 = vmatpush.msra.mxu0 %v3249_v18  ;;  %882 = vmatpush.msra.mxu1 %v3251_v19 }
  0x59   : > { %902 = vmatpush.msra.mxu2 %v3255_v20  ;;  %922 = vmatpush.msra.mxu3 %v3257_v21 }
  0x5a   : > { %863 = vmatpush.msra.mxu0 %v3261_v22  ;;  %883 = vmatpush.msra.mxu1 %v3263_v23 }
  0x5b   : > { %903 = vmatpush.msra.mxu2 %v3267_v24  ;;  %923 = vmatpush.msra.mxu3 %v3269_v25 }
  0x5c   : > { %864 = vmatpush.msra.mxu0 %v3278_v27  ;;  %884 = vmatpush.msra.mxu1 %v3280_v28 }
  0x5d   : > { %904 = vmatpush.msra.mxu2 %v3284_v29  ;;  %924 = vmatpush.msra.mxu3 %v3286_v30 }
  0x5e   : > { %865 = vmatpush.msra.mxu0 %v3290_v31  ;;  %885 = vmatpush.msra.mxu1 %v3292_v32 }
  0x5f   : > { %905 = vmatpush.msra.mxu2 %v3296_v33  ;;  %925 = vmatpush.msra.mxu3 %v3298_v34 }
  0x60   : > { %866 = vmatpush.msra.mxu0 %v3302_v35  ;;  %886 = vmatpush.msra.mxu1 %v3304_v36 }
  0x61   : > { %906 = vmatpush.msra.mxu2 %v3308_v37  ;;  %926 = vmatpush.msra.mxu3 %v3310_v38 }
  0x62   : > { %867 = vmatpush.msra.mxu0 %v3314_v39  ;;  %887 = vmatpush.msra.mxu1 %v3316_v40 }
  0x63   : > { %907 = vmatpush.msra.mxu2 %v3320_v41  ;;  %927 = vmatpush.msra.mxu3 %v3322_v42 }
  0x64   : > { %868 = vmatpush.msra.mxu0 %v3331_v44  ;;  %888 = vmatpush.msra.mxu1 %v3333_v45 }
  0x65   : > { %908 = vmatpush.msra.mxu2 %v3337_v46  ;;  %928 = vmatpush.msra.mxu3 %v3339_v47 }
  0x66   : > { %869 = vmatpush.msra.mxu0 %v3343_v48  ;;  %889 = vmatpush.msra.mxu1 %v3345_v49 }
  0x67   : > { %909 = vmatpush.msra.mxu2 %v3349_v50  ;;  %929 = vmatpush.msra.mxu3 %v3351_v51 }
  0x68   : > { %870 = vmatpush.msra.mxu0 %v3355_v52  ;;  %890 = vmatpush.msra.mxu1 %v3357_v53 }
  0x69   : > { %910 = vmatpush.msra.mxu2 %v3361_v54  ;;  %930 = vmatpush.msra.mxu3 %v3363_v55 }
  0x6a   : > { %871 = vmatpush.msra.mxu0 %v3367_v56  ;;  %891 = vmatpush.msra.mxu1 %v3369_v57 }
  0x6b   : > { %911 = vmatpush.msra.mxu2 %v3373_v58  ;;  %931 = vmatpush.msra.mxu3 %v3375_v59 }
  0x6c   : > { %872 = vmatpush.msra.mxu0 %v3384_v61  ;;  %892 = vmatpush.msra.mxu1 %v3386_v62 }
  0x6d   : > { %912 = vmatpush.msra.mxu2 %v3390_v63  ;;  %932 = vmatpush.msra.mxu3 %v3392_v0 }
  0x6e   : > { %873 = vmatpush.msra.mxu0 %v3396_v1  ;;  %893 = vmatpush.msra.mxu1 %v4192_v2 }
  0x6f   : > { %913 = vmatpush.msra.mxu2 %v3402_v3  ;;  %933 = vmatpush.msra.mxu3 %v3404_v4 }
  0x70   : > { %874 = vmatpush.msra.mxu0 %v3408_v5  ;;  %894 = vmatpush.msra.mxu1 %v3410_v6 }
  0x71   : > { %914 = vmatpush.msra.mxu2 %v3414_v7  ;;  %934 = vmatpush.msra.mxu3 %v3416_v8 }
  0x72   : > { %875 = vmatpush.msra.mxu0 %v3420_v9  ;;  %895 = vmatpush.msra.mxu1 %v3422_v26 }
  0x73   : > { %915 = vmatpush.msra.mxu2 %v3426_v43  ;;  %935 = vmatpush.msra.mxu3 %v3428_v60 }
  0x74   : > { %1080 = vmatpush.msrb.mxu0 %v3225_v10  ;;  %1100 = vmatpush.msrb.mxu1 %v3227_v11 }
  0x75   : > { %1120 = vmatpush.msrb.mxu2 %v3231_v12  ;;  %1140 = vmatpush.msrb.mxu3 %v3233_v13  ;;  %v413_v12 = vld [vmem:[%s4143_s4] sm:$0xf] }
  0x76   : > { %1081 = vmatpush.msrb.mxu0 %v3237_v14  ;;  %1101 = vmatpush.msrb.mxu1 %v3239_v15  ;;  %v415_v15 = vperm.slane %v413_v12, 0 }
  0x77   : > { %1121 = vmatpush.msrb.mxu2 %v3243_v16  ;;  %1141 = vmatpush.msrb.mxu3 %v3245_v17  ;;  %v416_v16 = vperm.slane %v413_v12, 1 }
  0x78   : > { %1082 = vmatpush.msrb.mxu0 %v3249_v18  ;;  %1102 = vmatpush.msrb.mxu1 %v3251_v19 }
  0x79   : > { %1122 = vmatpush.msrb.mxu2 %v3255_v20  ;;  %1142 = vmatpush.msrb.mxu3 %v3257_v21  ;;  %v417_v21 = vperm.slane %v413_v12, 2 }
  0x7a   : > { %1083 = vmatpush.msrb.mxu0 %v3261_v22  ;;  %1103 = vmatpush.msrb.mxu1 %v3263_v23  ;;  %v418_v22 = vperm.slane %v413_v12, 3 }
  0x7b   : > { %1123 = vmatpush.msrb.mxu2 %v3267_v24  ;;  %1143 = vmatpush.msrb.mxu3 %v3269_v25 }
  0x7c   : > { %1084 = vmatpush.msrb.mxu0 %v3278_v27  ;;  %1104 = vmatpush.msrb.mxu1 %v3280_v28 }
  0x7d   : > { %1124 = vmatpush.msrb.mxu2 %v3284_v29  ;;  %1144 = vmatpush.msrb.mxu3 %v3286_v30 }
  0x7e   : > { %1085 = vmatpush.msrb.mxu0 %v3290_v31  ;;  %1105 = vmatpush.msrb.mxu1 %v3292_v32 }
  0x7f   : > { %1125 = vmatpush.msrb.mxu2 %v3296_v33  ;;  %1145 = vmatpush.msrb.mxu3 %v3298_v34 }
  0x80   : > { %1086 = vmatpush.msrb.mxu0 %v3302_v35  ;;  %1106 = vmatpush.msrb.mxu1 %v3304_v36 }
  0x81   : > { %1126 = vmatpush.msrb.mxu2 %v3308_v37  ;;  %1146 = vmatpush.msrb.mxu3 %v3310_v38 }
  0x82   : > { %1087 = vmatpush.msrb.mxu0 %v3314_v39  ;;  %1107 = vmatpush.msrb.mxu1 %v3316_v40 }
  0x83   : > { %1127 = vmatpush.msrb.mxu2 %v3320_v41  ;;  %1147 = vmatpush.msrb.mxu3 %v3322_v42 }
  0x84   : > { %1088 = vmatpush.msrb.mxu0 %v3331_v44  ;;  %1108 = vmatpush.msrb.mxu1 %v3333_v45 }
  0x85   : > { %1128 = vmatpush.msrb.mxu2 %v3337_v46  ;;  %1148 = vmatpush.msrb.mxu3 %v3339_v47 }
  0x86   : > { %1089 = vmatpush.msrb.mxu0 %v3343_v48  ;;  %1109 = vmatpush.msrb.mxu1 %v3345_v49 }
  0x87   : > { %1129 = vmatpush.msrb.mxu2 %v3349_v50  ;;  %1149 = vmatpush.msrb.mxu3 %v3351_v51 }
  0x88   : > { %1090 = vmatpush.msrb.mxu0 %v3355_v52  ;;  %1110 = vmatpush.msrb.mxu1 %v3357_v53 }
  0x89   : > { %1130 = vmatpush.msrb.mxu2 %v3361_v54  ;;  %1150 = vmatpush.msrb.mxu3 %v3363_v55 }
  0x8a   : > { %1091 = vmatpush.msrb.mxu0 %v3367_v56  ;;  %1111 = vmatpush.msrb.mxu1 %v3369_v57 }
  0x8b   : > { %1131 = vmatpush.msrb.mxu2 %v3373_v58  ;;  %1151 = vmatpush.msrb.mxu3 %v3375_v59 }
  0x8c   : > { %1092 = vmatpush.msrb.mxu0 %v3384_v61  ;;  %1112 = vmatpush.msrb.mxu1 %v3386_v62 }
  0x8d   : > { %1132 = vmatpush.msrb.mxu2 %v3390_v63  ;;  %1152 = vmatpush.msrb.mxu3 %v3392_v0 }
  0x8e   : > { %1093 = vmatpush.msrb.mxu0 %v3396_v1  ;;  %1113 = vmatpush.msrb.mxu1 %v4192_v2 }
  0x8f   : > { %1133 = vmatpush.msrb.mxu2 %v3402_v3  ;;  %1153 = vmatpush.msrb.mxu3 %v3404_v4 }
  0x90   : > { %1094 = vmatpush.msrb.mxu0 %v3408_v5  ;;  %1114 = vmatpush.msrb.mxu1 %v3410_v6 }
  0x91   : > { %1134 = vmatpush.msrb.mxu2 %v3414_v7  ;;  %1154 = vmatpush.msrb.mxu3 %v3416_v8 }
  0x92   : > { %1095 = vmatpush.msrb.mxu0 %v3420_v9  ;;  %1115 = vmatpush.msrb.mxu1 %v3422_v26 }
  0x93   : > { %1135 = vmatpush.msrb.mxu2 %v3426_v43  ;;  %1155 = vmatpush.msrb.mxu3 %v3428_v60 }
  0xa7   : > { %v453_v10 = vpop.f32.mrf.mxu0  ;;  %v482_v11 = vpop.f32.mrf.mxu1 }
  0xa8   : > { %v454_v45 = vadd.f32 %v453_v10, %v415_v15  ;;  %v483_v46 = vadd.f32 %v482_v11, %v416_v16 }
  0xae   : > { %v511_v13 = vpop.f32.mrf.mxu2  ;;  %v540_v14 = vpop.f32.mrf.mxu3 }
  0xaf   : > { %v541_v53 = vadd.f32 %v540_v14, %v418_v22  ;;  %v512_v0 = vadd.f32 %v511_v13, %v417_v21 }
  0xb1   : > { %v456_v17 = vpop.f32.mrf.mxu0  ;;  %v485_v18 = vpop.f32.mrf.mxu1 }
  0xb2   : > { %v3567_v19 = vadd.f32 %v456_v17, %v415_v15  ;;  %v3569_v20 = vadd.f32 %v485_v18, %v416_v16  ;;  %v569_v18 = vld [vmem:[#allocation3 + $0x8] sm:$0xff] }
  0xb8   : > { %v514_v23 = vpop.f32.mrf.mxu2  ;;  %v543_v24 = vpop.f32.mrf.mxu3 }
  0xb9   : > { %v3571_v25 = vadd.f32 %v514_v23, %v417_v21  ;;  %v3573_v27 = vadd.f32 %v543_v24, %v418_v22 }
  0xbb   : > { %v459_v28 = vpop.f32.mrf.mxu0  ;;  %v488_v29 = vpop.f32.mrf.mxu1 }
  0xbc   : > { %v3575_v30 = vadd.f32 %v459_v28, %v415_v15  ;;  %v3577_v31 = vadd.f32 %v488_v29, %v416_v16 }
  0xc2   : > { %v517_v32 = vpop.f32.mrf.mxu2  ;;  %v546_v33 = vpop.f32.mrf.mxu3 }
  0xc3   : > { %v3579_v34 = vadd.f32 %v517_v32, %v417_v21  ;;  %v3581_v35 = vadd.f32 %v546_v33, %v418_v22 }
  0xc5   : > { %v462_v36 = vpop.f32.mrf.mxu0  ;;  %v491_v37 = vpop.f32.mrf.mxu1 }
  0xc6   : > { %v3583_v38 = vadd.f32 %v462_v36, %v415_v15  ;;  %v3585_v39 = vadd.f32 %v491_v37, %v416_v16 }
  0xcc   : > { %v520_v40 = vpop.f32.mrf.mxu2  ;;  %v549_v41 = vpop.f32.mrf.mxu3 }
  0xcd   : > { %v3587_v42 = vadd.f32 %v520_v40, %v417_v21  ;;  %v3589_v44 = vadd.f32 %v549_v41, %v418_v22 }
  0xcf   : > { %v658_v47 = vpop.f32.mrf.mxu0  ;;  %v678_v48 = vpop.f32.mrf.mxu1 }
  0xd0   : > { %v721_v49 = vadd.f32 %v658_v47, %v454_v45  ;;  %v722_v50 = vadd.f32 %v678_v48, %v483_v46 }
  0xd2   : > { %v2693_v51 = vmul.f32 -1.442695, %v721_v49  ;;  %v2694_v52 = vmul.f32 -1.442695, %v722_v50 }
  0xd4   : > { %2790 = vpow2.f32 %v2693_v51 }
  0xd5   : > { %2792 = vpow2.f32 %v2694_v52 }
  0xd6   : > { %v718_v54 = vpop.f32.mrf.mxu3  ;;  %v698_v62 = vpop.f32.mrf.mxu2 }
  0xd7   : > { %v724_v55 = vadd.f32 %v718_v54, %v541_v53  ;;  %v723_v4 = vadd.f32 %v698_v62, %v512_v0 }
  0xd9   : > { %v2695_v56 = vmul.f32 -1.442695, %v724_v55 }
  0xda   : > { %v2791_v57 = vpop.eup %2790 }
  0xdb   : > { %v2793_v58 = vpop.eup %2792  ;;  %v728_v59 = vadd.f32 1.0, %v2791_v57  ;;  %2794 = vpow2.f32 %v2695_v56 }
  0xdc   : > { %v747_v61 = vadd.f32 1.0, %v2793_v58 }
  0xdd   : > { %2796 = vrcp.f32 %v728_v59  ;;  %v740_v26 = vand.u32 2147483648, %v728_v59  ;;  %v738_v2 = vand.u32 2147483647, %v728_v59  ;;  %vm734_vm3 = vweird.f32 %v728_v59 }
  0xde   : > { %2798 = vrcp.f32 %v747_v61  ;;  %v759_v43 = vand.u32 2147483648, %v747_v61  ;;  %v757_v11 = vand.u32 2147483647, %v747_v61  ;;  %vm753_vm4 = vweird.f32 %v747_v61 }
  0xdf   : > { %v741_v14 = vor.u32 1.1754944e-38, %v740_v26  ;;  %vm739_vm7 = vcmp.eq.f32.partialorder %v738_v2, 8.507059e+37  ;;  %v1290_v26 = vld [vmem:[#allocation7 + $0x1b0] sm:$0xff]  ;;  %v1284_v2 = vld [vmem:[#allocation7 + $0x180] sm:$0xff] }
  0xe0   : > { %v760_v17 = vor.u32 1.1754944e-38, %v759_v43  ;;  %vm758_vm8 = vcmp.eq.f32.partialorder %v757_v11, 8.507059e+37  ;;  %v1291_v43 = vld [vmem:[#allocation7 + $0x1b8] sm:$0xff] }
  0xe1   : > { %v2795_v63 = vpop.eup %2794 }
  0xe2   : > { %v767_v1 = vadd.f32 1.0, %v2795_v63 }
  0xe3   : > { %v2797_v3 = vpop.eup %2796 }
  0xe4   : > { %v2799_v5 = vpop.eup %2798  ;;  %v730_v6 = vmul.f32 %v2797_v3, %v728_v59  ;;  %2800 = vrcp.f32 %v767_v1  ;;  %vm735_vm1 = vweird.f32 %v2797_v3  ;;  %v779_v41 = vand.u32 2147483648, %v767_v1 }
  0xe5   : > { %v749_v7 = vmul.f32 %v2799_v5, %v747_v61  ;;  %2802 = vtanh.f32 %v723_v4  ;;  %vm754_vm2 = vweird.f32 %v2799_v5  ;;  %vm736_vm5 = vmor %vm734_vm3, %vm735_vm1  ;;  %vm773_vm10 = vweird.f32 %v767_v1  ;;  %v1292_v4 = vld [vmem:[#allocation7 + $0x1c0] sm:$0xff] }
  0xe6   : > { %v731_v8 = vsub.f32 1.0, %v730_v6  ;;  %vm755_vm6 = vmor %vm753_vm4, %vm754_vm2  ;;  %v777_v45 = vand.u32 2147483647, %v767_v1  ;;  %v780_v47 = vor.u32 1.1754944e-38, %v779_v41  ;;  %v1295_v6 = vld [vmem:[#allocation7 + $0x1d8] sm:$0xff] }
  0xe7   : > { %v750_v9 = vsub.f32 1.0, %v749_v7  ;;  %v1288_v7 = vld [vmem:[#allocation7 + $0x1a0] sm:$0xff] }
  0xe8   : > { %v732_v60 = vmul.f32 %v2797_v3, %v731_v8  ;;  %vm778_vm12 = vcmp.eq.f32.partialorder %v777_v45, 8.507059e+37 }
  0xe9   : > { %v751_v10 = vmul.f32 %v2799_v5, %v750_v9  ;;  %v1289_v9 = vld [vmem:[#allocation7 + $0x1a8] sm:$0xff] }
  0xea   : > { %v2801_v12 = vpop.eup %2800  ;;  %v733_v13 = vadd.f32 %v2797_v3, %v732_v60 }
  0xeb   : > { %v752_v15 = vadd.f32 %v2799_v5, %v751_v10  ;;  %v769_v16 = vmul.f32 %v2801_v12, %v767_v1  ;;  %v2803_v22 = vpop.eup %2802  ;;  %vm774_vm9 = vweird.f32 %v2801_v12  ;;  %v1297_v1 = vld [vmem:[#allocation7 + $0x1e8] sm:$0xff] }
  0xec   : > { %v737_v21 = vsel %vm736_vm5, %v2797_v3, %v733_v13  ;;  %vm775_vm11 = vmor %vm773_vm10, %vm774_vm9  ;;  %v1299_v3 = vld [vmem:[#allocation7 + $0x1f8] sm:$0xff]  ;;  %v1285_v10 = vld [vmem:[#allocation7 + $0x188] sm:$0xff] }
  0xed   : > { %v742_v23 = vsel %vm739_vm7, %v741_v14, %v737_v21  ;;  %v756_v24 = vsel %vm755_vm6, %v2799_v5, %v752_v15  ;;  %v770_v28 = vsub.f32 1.0, %v769_v16  ;;  %v1294_v5 = vld [vmem:[#allocation7 + $0x1d0] sm:$0xff]  ;;  %v1287_v13 = vld [vmem:[#allocation7 + $0x198] sm:$0xff]  ;;  %v1280_v16 = vld [vmem:[#allocation7 + $0x160] sm:$0xff] }
  0xee   : > { %v761_v29 = vsel %vm758_vm8, %v760_v17, %v756_v24  ;;  %v784_v32 = vmul.f32 %v2803_v22, %v742_v23  ;;  %v1281_v17 = vld [vmem:[#allocation7 + $0x168] sm:$0xff]  ;;  %v1282_v22 = vld [vmem:[#allocation7 + $0x170] sm:$0xff]  ;;  %v1283_v23 = vld [vmem:[#allocation7 + $0x178] sm:$0xff] }
  0xef   : > { %v783_v33 = vmul.f32 %v761_v29, %v569_v18  ;;  %v771_v36 = vmul.f32 %v2801_v12, %v770_v28 }
  0xf1   : > { %v3591_v37 = vadd.f32 %v784_v32, %v783_v33  ;;  %v772_v40 = vadd.f32 %v2801_v12, %v771_v36 }
  0xf3   : > { %2804 = vtanh.f32 %v3591_v37  ;;  %v776_v46 = vsel %vm775_vm11, %v2801_v12, %v772_v40  ;;  %v1286_v12 = vld [vmem:[#allocation7 + $0x190] sm:$0xff] }
  0xf4   : > { %v781_v49 = vsel %vm778_vm12, %v780_v47, %v776_v46 }
  0xf9   : > { %v2805_v48 = vpop.eup %2804 }
  0xfa   : > { %v3594_v50 = vmul.f32 %v2805_v48, %v781_v49 }
  0xfc   : > { %876 = vmatmul.f32.vlgmr.msra.gmra.mxu0 %v3594_v50  ;;  %896 = vmatmul.f32.vlgmr.msra.gmra.mxu1 %v3594_v50 }
  0xfd   : > { %916 = vmatmul.f32.vlgmr.msra.gmra.mxu2 %v3594_v50  ;;  %936 = vmatmul.f32.vlgmr.msra.gmra.mxu3 %v3594_v50 }
  0xfe   : > { %1320 = vmatpush.msra.mxu1 %v1297_v1  ;;  %1360 = vmatpush.msra.mxu3 %v1299_v3 }
 0x100   : > { %1361 = vmatpush.msra.mxu3 %v1295_v6  ;;  %v1278_v6 = vld [vmem:[#allocation7 + $0x150] sm:$0xff] }
 0x102   : > { %1362 = vmatpush.msra.mxu3 %v1291_v43  ;;  %v1275_v43 = vld [vmem:[#allocation7 + $0x138] sm:$0xff] }
 0x104   : > { %1363 = vmatpush.msra.mxu3 %v1287_v13  ;;  %v1265_v13 = vld [vmem:[#allocation7 + $0xe8] sm:$0xff] }
 0x106   : > { %1364 = vmatpush.msra.mxu3 %v1283_v23  ;;  %v1257_v23 = vld [vmem:[#allocation7 + $0xa8] sm:$0xff] }
 0x179   : > { %v877_v51 = vpop.f32.mrf.mxu0  ;;  %v897_v52 = vpop.f32.mrf.mxu1 }
 0x17a   : > { %v940_v53 = vadd.f32 %v877_v51, %v3567_v19  ;;  %v941_v54 = vadd.f32 %v897_v52, %v3569_v20  ;;  %v1296_v19 = vld [vmem:[#allocation7 + $0x1e0] sm:$0xff]  ;;  %v1298_v20 = vld [vmem:[#allocation7 + $0x1f0] sm:$0xff] }
 0x17b   : > { %1300 = vmatpush.msra.mxu0 %v1296_v19  ;;  %1340 = vmatpush.msra.mxu2 %v1298_v20 }
 0x17c   : > { %v2696_v55 = vmul.f32 -1.442695, %v940_v53  ;;  %v2697_v56 = vmul.f32 -1.442695, %v941_v54 }
 0x17d   : > { %1301 = vmatpush.msra.mxu0 %v1292_v4  ;;  %1341 = vmatpush.msra.mxu2 %v1294_v5  ;;  %v1277_v5 = vld [vmem:[#allocation7 + $0x148] sm:$0xff] }
 0x17e   : > { %2806 = vpow2.f32 %v2696_v55 }
 0x17f   : > { %2808 = vpow2.f32 %v2697_v56  ;;  %1302 = vmatpush.msra.mxu0 %v1288_v7  ;;  %1342 = vmatpush.msra.mxu2 %v1290_v26  ;;  %v1279_v7 = vld [vmem:[#allocation7 + $0x158] sm:$0xff]  ;;  %v1274_v26 = vld [vmem:[#allocation7 + $0x130] sm:$0xff] }
 0x180   : > { %v937_v57 = vpop.f32.mrf.mxu3  ;;  %v917_v8 = vpop.f32.mrf.mxu2  ;;  %1365 = vmatpush.msra.mxu3 %v1279_v7  ;;  %v1503_v7 = vld [vmem:[#allocation10 + $0x180] sm:$0xff] }
 0x181   : > { %v943_v58 = vadd.f32 %v937_v57, %v3573_v27  ;;  %v1293_v27 = vld [vmem:[#allocation7 + $0x1c8] sm:$0xff]  ;;  %v942_v15 = vadd.f32 %v917_v8, %v3571_v25  ;;  %1303 = vmatpush.msra.mxu0 %v1284_v2  ;;  %1343 = vmatpush.msra.mxu2 %v1286_v12  ;;  %v1272_v8 = vld [vmem:[#allocation7 + $0x120] sm:$0xff] }
 0x182   : > { %1321 = vmatpush.msra.mxu1 %v1293_v27  ;;  %v1276_v27 = vld [vmem:[#allocation7 + $0x140] sm:$0xff]  ;;  %1366 = vmatpush.msra.mxu3 %v1275_v43  ;;  %v1269_v2 = vld [vmem:[#allocation7 + $0x108] sm:$0xff] }
 0x183   : > { %v2698_v59 = vmul.f32 -1.442695, %v943_v58  ;;  %1304 = vmatpush.msra.mxu0 %v1280_v16  ;;  %1344 = vmatpush.msra.mxu2 %v1282_v22  ;;  %v1264_v12 = vld [vmem:[#allocation7 + $0xe0] sm:$0xff] }
 0x184   : > { %v2807_v61 = vpop.eup %2806  ;;  %1322 = vmatpush.msra.mxu1 %v1289_v9  ;;  %v1273_v9 = vld [vmem:[#allocation7 + $0x128] sm:$0xff]  ;;  %v1260_v16 = vld [vmem:[#allocation7 + $0xc0] sm:$0xff] }
 0x185   : > { %v2809_v62 = vpop.eup %2808  ;;  %v3603_v63 = vadd.f32 1.0, %v2807_v61  ;;  %2810 = vpow2.f32 %v2698_v59  ;;  %1305 = vmatpush.msra.mxu0 %v1276_v27  ;;  %1345 = vmatpush.msra.mxu2 %v1278_v6  ;;  %v1256_v22 = vld [vmem:[#allocation7 + $0xa0] sm:$0xff]  ;;  %v1508_v27 = vld [vmem:[#allocation10 + $0x1a8] sm:$0xff]  ;;  %v1510_v6 = vld [vmem:[#allocation10 + $0x1b8] sm:$0xff] }
 0x186   : > { %v3605_v0 = vadd.f32 1.0, %v2809_v62  ;;  %1323 = vmatpush.msra.mxu1 %v1285_v10  ;;  %v1270_v10 = vld [vmem:[#allocation7 + $0x110] sm:$0xff]  ;;  %v1499_v43 = vld [vmem:[#allocation10 + $0x160] sm:$0xff] }
 0x187   : > { %2812 = vrcp.f32 %v3603_v63  ;;  %v959_v29 = vand.u32 2147483648, %v3603_v63  ;;  %v957_v36 = vand.u32 2147483647, %v3603_v63  ;;  %vm953_vm15 = vweird.f32 %v3603_v63  ;;  %1306 = vmatpush.msra.mxu0 %v1272_v8  ;;  %1346 = vmatpush.msra.mxu2 %v1274_v26  ;;  %v1504_v8 = vld [vmem:[#allocation10 + $0x188] sm:$0xff]  ;;  %v1506_v26 = vld [vmem:[#allocation10 + $0x198] sm:$0xff] }
 0x188   : > { %2814 = vrcp.f32 %v3605_v0  ;;  %1324 = vmatpush.msra.mxu1 %v1281_v17  ;;  %v978_v32 = vand.u32 2147483648, %v3605_v0  ;;  %v976_v41 = vand.u32 2147483647, %v3605_v0  ;;  %vm972_vm0 = vweird.f32 %v3605_v0  ;;  %v1261_v17 = vld [vmem:[#allocation7 + $0xc8] sm:$0xff] }
 0x189   : > { %v960_v47 = vor.u32 1.1754944e-38, %v959_v29  ;;  %vm958_vm3 = vcmp.eq.f32.partialorder %v957_v36, 8.507059e+37  ;;  %1347 = vmatpush.msra.mxu2 %v1270_v10  ;;  %v1253_v29 = vld [vmem:[#allocation7 + $0x88] sm:$0xff]  ;;  %v1248_v36 = vld [vmem:[#allocation7 + $0x60] sm:$0xff]  ;;  %v1502_v10 = vld [vmem:[#allocation10 + $0x178] sm:$0xff] }
 0x18a   : > { %v979_v51 = vor.u32 1.1754944e-38, %v978_v32  ;;  %vm977_vm4 = vcmp.eq.f32.partialorder %v976_v41, 8.507059e+37  ;;  %1325 = vmatpush.msra.mxu1 %v1277_v5  ;;  %v1254_v32 = vld [vmem:[#allocation7 + $0x90] sm:$0xff] }
 0x18b   : > { %v2811_v60 = vpop.eup %2810  ;;  %v1250_v41 = vld [vmem:[#allocation7 + $0x70] sm:$0xff] }
 0x18c   : > { %v3609_v11 = vadd.f32 1.0, %v2811_v60  ;;  %1326 = vmatpush.msra.mxu1 %v1273_v9  ;;  %v1268_v60 = vld [vmem:[#allocation7 + $0x100] sm:$0xff]  ;;  %v1509_v5 = vld [vmem:[#allocation10 + $0x1b0] sm:$0xff] }
 0x18d   : > { %v2813_v14 = vpop.eup %2812  ;;  %1307 = vmatpush.msra.mxu0 %v1268_v60  ;;  %v1505_v9 = vld [vmem:[#allocation10 + $0x190] sm:$0xff]  ;;  %v1500_v60 = vld [vmem:[#allocation10 + $0x168] sm:$0xff] }
 0x18e   : > { %v2815_v18 = vpop.eup %2814  ;;  %v949_v21 = vmul.f32 %v2813_v14, %v3603_v63  ;;  %2816 = vrcp.f32 %v3609_v11  ;;  %vm954_vm13 = vweird.f32 %v2813_v14  ;;  %vm992_vm6 = vweird.f32 %v3609_v11  ;;  %1327 = vmatpush.msra.mxu1 %v1269_v2  ;;  %v1501_v2 = vld [vmem:[#allocation10 + $0x170] sm:$0xff] }
 0x18f   : > { %v968_v24 = vmul.f32 %v2815_v18, %v3605_v0  ;;  %2818 = vtanh.f32 %v942_v15  ;;  %vm973_vm14 = vweird.f32 %v2815_v18  ;;  %vm955_vm1 = vmor %vm953_vm15, %vm954_vm13  ;;  %v998_v0 = vand.u32 2147483648, %v3609_v11  ;;  %1308 = vmatpush.msra.mxu0 %v1264_v12  ;;  %v1267_v15 = vld [vmem:[#allocation7 + $0xf8] sm:$0xff] }
 0x190   : > { %v950_v28 = vsub.f32 1.0, %v949_v21  ;;  %vm974_vm2 = vmor %vm972_vm0, %vm973_vm14  ;;  %v996_v19 = vand.u32 2147483647, %v3609_v11  ;;  %1328 = vmatpush.msra.mxu1 %v1265_v13  ;;  %v1263_v21 = vld [vmem:[#allocation7 + $0xd8] sm:$0xff]  ;;  %v1495_v13 = vld [vmem:[#allocation10 + $0x140] sm:$0xff] }
 0x191   : > { %v969_v25 = vsub.f32 1.0, %v968_v24  ;;  %v999_v20 = vor.u32 1.1754944e-38, %v998_v0  ;;  %1309 = vmatpush.msra.mxu0 %v1260_v16  ;;  %v1258_v24 = vld [vmem:[#allocation7 + $0xb0] sm:$0xff]  ;;  %v1518_v0 = vld [vmem:[#allocation10 + $0x1f8] sm:$0xff] }
 0x192   : > { %v951_v33 = vmul.f32 %v2813_v14, %v950_v28  ;;  %vm997_vm8 = vcmp.eq.f32.partialorder %v996_v19, 8.507059e+37  ;;  %1329 = vmatpush.msra.mxu1 %v1261_v17  ;;  %v1259_v28 = vld [vmem:[#allocation7 + $0xb8] sm:$0xff]  ;;  %v1511_v19 = vld [vmem:[#allocation10 + $0x1c0] sm:$0xff] }
 0x193   : > { %v970_v40 = vmul.f32 %v2815_v18, %v969_v25  ;;  %1310 = vmatpush.msra.mxu0 %v1256_v22  ;;  %v1252_v25 = vld [vmem:[#allocation7 + $0x80] sm:$0xff]  ;;  %v1492_v22 = vld [vmem:[#allocation10 + $0x128] sm:$0xff] }
 0x194   : > { %v2817_v45 = vpop.eup %2816  ;;  %v952_v46 = vadd.f32 %v2813_v14, %v951_v33  ;;  %1330 = vmatpush.msra.mxu1 %v1257_v23  ;;  %v1255_v33 = vld [vmem:[#allocation7 + $0x98] sm:$0xff]  ;;  %v1493_v23 = vld [vmem:[#allocation10 + $0x130] sm:$0xff] }
 0x195   : > { %v971_v48 = vadd.f32 %v2815_v18, %v970_v40  ;;  %v988_v49 = vmul.f32 %v2817_v45, %v3609_v11  ;;  %v2819_v53 = vpop.eup %2818  ;;  %vm993_vm5 = vweird.f32 %v2817_v45  ;;  %v1271_v11 = vld [vmem:[#allocation7 + $0x118] sm:$0xff]  ;;  %1311 = vmatpush.msra.mxu0 %v1252_v25  ;;  %v1249_v40 = vld [vmem:[#allocation7 + $0x68] sm:$0xff] }
 0x196   : > { %v956_v52 = vsel %vm955_vm1, %v2813_v14, %v952_v46  ;;  %vm994_vm7 = vmor %vm992_vm6, %vm993_vm5  ;;  %1367 = vmatpush.msra.mxu3 %v1271_v11  ;;  %v1266_v14 = vld [vmem:[#allocation7 + $0xf0] sm:$0xff]  ;;  %1331 = vmatpush.msra.mxu1 %v1253_v29  ;;  %v1244_v46 = vld [vmem:[#allocation7 + $0x40] sm:$0xff] }
 0x197   : > { %v961_v54 = vsel %vm958_vm3, %v960_v47, %v956_v52  ;;  %v975_v55 = vsel %vm974_vm2, %v2815_v18, %v971_v48  ;;  %v989_v56 = vsub.f32 1.0, %v988_v49  ;;  %1348 = vmatpush.msra.mxu2 %v1266_v14  ;;  %v1262_v18 = vld [vmem:[#allocation7 + $0xd0] sm:$0xff]  ;;  %1312 = vmatpush.msra.mxu0 %v1248_v36  ;;  %v1245_v47 = vld [vmem:[#allocation7 + $0x48] sm:$0xff]  ;;  %v1247_v49 = vld [vmem:[#allocation7 + $0x58] sm:$0xff] }
 0x198   : > { %v980_v57 = vsel %vm977_vm4, %v979_v51, %v975_v55  ;;  %v1003_v58 = vmul.f32 %v2819_v53, %v961_v54  ;;  %1368 = vmatpush.msra.mxu3 %v1267_v15  ;;  %1332 = vmatpush.msra.mxu1 %v1249_v40  ;;  %v1246_v48 = vld [vmem:[#allocation7 + $0x50] sm:$0xff]  ;;  %v1240_v51 = vld [vmem:[#allocation7 + $0x20] sm:$0xff]  ;;  %v1241_v52 = vld [vmem:[#allocation7 + $0x28] sm:$0xff] }
 0x199   : > { %v1002_v59 = vmul.f32 %v980_v57, %v3591_v37  ;;  %v990_v61 = vmul.f32 %v2817_v45, %v989_v56  ;;  %1349 = vmatpush.msra.mxu2 %v1262_v18  ;;  %1313 = vmatpush.msra.mxu0 %v1244_v46  ;;  %v1242_v53 = vld [vmem:[#allocation7 + $0x30] sm:$0xff]  ;;  %v1243_v54 = vld [vmem:[#allocation7 + $0x38] sm:$0xff]  ;;  %v1236_v55 = vld [vmem:[#allocation7] sm:$0xff] }
 0x19a   : > { %1369 = vmatpush.msra.mxu3 %v1263_v21  ;;  %1333 = vmatpush.msra.mxu1 %v1245_v47  ;;  %v1237_v56 = vld [vmem:[#allocation7 + $0x8] sm:$0xff]  ;;  %v1238_v57 = vld [vmem:[#allocation7 + $0x10] sm:$0xff]  ;;  %v1498_v18 = vld [vmem:[#allocation10 + $0x158] sm:$0xff] }
 0x19b   : > { %v3623_v62 = vadd.f32 %v1003_v58, %v1002_v59  ;;  %v991_v63 = vadd.f32 %v2817_v45, %v990_v61  ;;  %1350 = vmatpush.msra.mxu2 %v1258_v24  ;;  %1314 = vmatpush.msra.mxu0 %v1240_v51  ;;  %v1239_v58 = vld [vmem:[#allocation7 + $0x18] sm:$0xff]  ;;  %v1515_v59 = vld [vmem:[#allocation10 + $0x1e0] sm:$0xff]  ;;  %v1516_v61 = vld [vmem:[#allocation10 + $0x1e8] sm:$0xff] }
 0x19c   : > { %1370 = vmatpush.msra.mxu3 %v1259_v28  ;;  %1334 = vmatpush.msra.mxu1 %v1241_v52  ;;  %v1496_v14 = vld [vmem:[#allocation10 + $0x148] sm:$0xff]  ;;  %v1497_v15 = vld [vmem:[#allocation10 + $0x150] sm:$0xff]  ;;  %v1491_v21 = vld [vmem:[#allocation10 + $0x120] sm:$0xff] }
 0x19d   : > { %2820 = vtanh.f32 %v3623_v62  ;;  %v995_v1 = vsel %vm994_vm7, %v2817_v45, %v991_v63  ;;  %1351 = vmatpush.msra.mxu2 %v1254_v32  ;;  %v1251_v45 = vld [vmem:[#allocation7 + $0x78] sm:$0xff]  ;;  %1315 = vmatpush.msra.mxu0 %v1236_v55  ;;  %v1517_v63 = vld [vmem:[#allocation10 + $0x1f0] sm:$0xff]  ;;  %v1487_v29 = vld [vmem:[#allocation10 + $0x100] sm:$0xff] }
 0x19e   : > { %v1000_v4 = vsel %vm997_vm8, %v999_v20, %v995_v1  ;;  %1371 = vmatpush.msra.mxu3 %v1255_v33  ;;  %1335 = vmatpush.msra.mxu1 %v1237_v56  ;;  %v1512_v1 = vld [vmem:[#allocation10 + $0x1c8] sm:$0xff]  ;;  %v1513_v20 = vld [vmem:[#allocation10 + $0x1d0] sm:$0xff]  ;;  %v1494_v25 = vld [vmem:[#allocation10 + $0x138] sm:$0xff] }
 0x19f   : > { %1352 = vmatpush.msra.mxu2 %v1250_v41  ;;  %v1488_v32 = vld [vmem:[#allocation10 + $0x108] sm:$0xff]  ;;  %v1483_v33 = vld [vmem:[#allocation10 + $0xe0] sm:$0xff]  ;;  %v1485_v40 = vld [vmem:[#allocation10 + $0xf0] sm:$0xff] }
 0x1a0   : > { %1372 = vmatpush.msra.mxu3 %v1251_v45  ;;  %v1484_v36 = vld [vmem:[#allocation10 + $0xe8] sm:$0xff]  ;;  %v1486_v45 = vld [vmem:[#allocation10 + $0xf8] sm:$0xff]  ;;  %v1479_v47 = vld [vmem:[#allocation10 + $0xc0] sm:$0xff] }
 0x1a1   : > { %1353 = vmatpush.msra.mxu2 %v1246_v48  ;;  %v1480_v48 = vld [vmem:[#allocation10 + $0xc8] sm:$0xff]  ;;  %v1482_v51 = vld [vmem:[#allocation10 + $0xd8] sm:$0xff]  ;;  %v1477_v55 = vld [vmem:[#allocation10 + $0xb0] sm:$0xff] }
 0x1a2   : > { %1373 = vmatpush.msra.mxu3 %v1247_v49  ;;  %v1481_v49 = vld [vmem:[#allocation10 + $0xd0] sm:$0xff] }
 0x1a3   : > { %v2821_v3 = vpop.eup %2820  ;;  %1354 = vmatpush.msra.mxu2 %v1242_v53  ;;  %v1475_v53 = vld [vmem:[#allocation10 + $0xa0] sm:$0xff] }
 0x1a4   : > { %v3629_v37 = vmul.f32 %v2821_v3, %v1000_v4  ;;  %1374 = vmatpush.msra.mxu3 %v1243_v54  ;;  %v1514_v3 = vld [vmem:[#allocation10 + $0x1d8] sm:$0xff]  ;;  %v1507_v4 = vld [vmem:[#allocation10 + $0x1a0] sm:$0xff]  ;;  %v1476_v54 = vld [vmem:[#allocation10 + $0xa8] sm:$0xff] }
 0x1a5   : > { %1355 = vmatpush.msra.mxu2 %v1238_v57  ;;  %v1478_v57 = vld [vmem:[#allocation10 + $0xb8] sm:$0xff] }
 0x1a6   : > { %1096 = vmatmul.f32.vlgmr.msrb.gmra.mxu0 %v3629_v37  ;;  %1116 = vmatmul.f32.vlgmr.msrb.gmra.mxu1 %v3629_v37 }
 0x1a7   : > { %1136 = vmatmul.f32.vlgmr.msrb.gmra.mxu2 %v3629_v37  ;;  %1156 = vmatmul.f32.vlgmr.msrb.gmra.mxu3 %v3629_v37 }
 0x1a8   : > { %1375 = vmatpush.msra.mxu3 %v1239_v58  ;;  %1529 = vmatpush.msrb.mxu0 %v1515_v59  ;;  %v1471_v58 = vld [vmem:[#allocation10 + $0x80] sm:$0xff] }
 0x1a9   : > { %1558 = vmatpush.msrb.mxu1 %v1516_v61  ;;  %1587 = vmatpush.msrb.mxu2 %v1517_v63  ;;  %v1473_v63 = vld [vmem:[#allocation10 + $0x90] sm:$0xff] }
 0x1aa   : > { %1616 = vmatpush.msrb.mxu3 %v1518_v0  ;;  %1530 = vmatpush.msrb.mxu0 %v1511_v19  ;;  %v1474_v0 = vld [vmem:[#allocation10 + $0x98] sm:$0xff] }
 0x1ab   : > { %1559 = vmatpush.msrb.mxu1 %v1512_v1  ;;  %1588 = vmatpush.msrb.mxu2 %v1513_v20  ;;  %v1467_v1 = vld [vmem:[#allocation10 + $0x60] sm:$0xff]  ;;  %v1468_v20 = vld [vmem:[#allocation10 + $0x68] sm:$0xff] }
 0x1ac   : > { %1617 = vmatpush.msrb.mxu3 %v1514_v3  ;;  %1531 = vmatpush.msrb.mxu0 %v1507_v4  ;;  %v1469_v3 = vld [vmem:[#allocation10 + $0x70] sm:$0xff]  ;;  %v1470_v4 = vld [vmem:[#allocation10 + $0x78] sm:$0xff] }
 0x1ad   : > { %1560 = vmatpush.msrb.mxu1 %v1508_v27  ;;  %1589 = vmatpush.msrb.mxu2 %v1509_v5  ;;  %v1463_v27 = vld [vmem:[#allocation10 + $0x40] sm:$0xff]  ;;  %v1464_v5 = vld [vmem:[#allocation10 + $0x48] sm:$0xff] }
 0x1ae   : > { %1618 = vmatpush.msrb.mxu3 %v1510_v6  ;;  %1532 = vmatpush.msrb.mxu0 %v1503_v7  ;;  %v1465_v6 = vld [vmem:[#allocation10 + $0x50] sm:$0xff]  ;;  %v1466_v7 = vld [vmem:[#allocation10 + $0x58] sm:$0xff] }
 0x1af   : > { %1561 = vmatpush.msrb.mxu1 %v1504_v8  ;;  %1590 = vmatpush.msrb.mxu2 %v1505_v9  ;;  %v1459_v9 = vld [vmem:[#allocation10 + $0x20] sm:$0xff] }
 0x1b0   : > { %1619 = vmatpush.msrb.mxu3 %v1506_v26  ;;  %1533 = vmatpush.msrb.mxu0 %v1499_v43  ;;  %v1460_v26 = vld [vmem:[#allocation10 + $0x28] sm:$0xff] }
 0x1b1   : > { %1562 = vmatpush.msrb.mxu1 %v1500_v60  ;;  %1591 = vmatpush.msrb.mxu2 %v1501_v2  ;;  %v1461_v60 = vld [vmem:[#allocation10 + $0x30] sm:$0xff]  ;;  %v1462_v2 = vld [vmem:[#allocation10 + $0x38] sm:$0xff] }
 0x1b2   : > { %1620 = vmatpush.msrb.mxu3 %v1502_v10  ;;  %1534 = vmatpush.msrb.mxu0 %v1495_v13 }
 0x1b3   : > { %1563 = vmatpush.msrb.mxu1 %v1496_v14  ;;  %1592 = vmatpush.msrb.mxu2 %v1497_v15  ;;  %v1457_v15 = vld [vmem:[#allocation10 + $0x10] sm:$0xff] }
 0x1b4   : > { %1621 = vmatpush.msrb.mxu3 %v1498_v18  ;;  %1535 = vmatpush.msrb.mxu0 %v1491_v21 }
 0x1b5   : > { %1564 = vmatpush.msrb.mxu1 %v1492_v22  ;;  %1593 = vmatpush.msrb.mxu2 %v1493_v23 }
 0x1b6   : > { %1622 = vmatpush.msrb.mxu3 %v1494_v25  ;;  %1536 = vmatpush.msrb.mxu0 %v1487_v29 }
 0x1b7   : > { %1565 = vmatpush.msrb.mxu1 %v1488_v32 }
 0x1b8   : > { %1537 = vmatpush.msrb.mxu0 %v1483_v33 }
 0x1b9   : > { %1566 = vmatpush.msrb.mxu1 %v1484_v36 }
 0x1ba   : > { %1538 = vmatpush.msrb.mxu0 %v1479_v47 }
 0x1bb   : > { %1567 = vmatpush.msrb.mxu1 %v1480_v48 }
 0x1bc   : > { %1539 = vmatpush.msrb.mxu0 %v1475_v53 }
 0x1bd   : > { %1568 = vmatpush.msrb.mxu1 %v1476_v54 }
 0x1be   : > { %1540 = vmatpush.msrb.mxu0 %v1471_v58 }
 0x1c0   : > { %1541 = vmatpush.msrb.mxu0 %v1467_v1  ;;  %v3676_v1 = vld [vmem:[#allocation12 + $0x1f0] sm:$0xff] }
 0x1c2   : > { %1542 = vmatpush.msrb.mxu0 %v1463_v27  ;;  %v3696_v27 = vld [vmem:[#allocation12 + $0x1a0] sm:$0xff] }
 0x1c3   : > { %4194 = vst [vmem:[#allocation18_spill] sm:$0xff] %v3696_v27 }
 0x1c4   : > { %1543 = vmatpush.msrb.mxu0 %v1459_v9  ;;  %v3710_v9 = vld [vmem:[#allocation12 + $0x188] sm:$0xff] }
 0x223   : > { %v1097_v11 = vpop.f32.mrf.mxu0  ;;  %v1117_v12 = vpop.f32.mrf.mxu1 }
 0x224   : > { %v1160_v16 = vadd.f32 %v1097_v11, %v3575_v30  ;;  %v1161_v17 = vadd.f32 %v1117_v12, %v3577_v31  ;;  %v1489_v30 = vld [vmem:[#allocation10 + $0x110] sm:$0xff]  ;;  %v1490_v31 = vld [vmem:[#allocation10 + $0x118] sm:$0xff]  ;;  %v1455_v11 = vld [vmem:[#allocation10] sm:$0xff] }
 0x225   : > { %1594 = vmatpush.msrb.mxu2 %v1489_v30  ;;  %1623 = vmatpush.msrb.mxu3 %v1490_v31  ;;  %v1456_v12 = vld [vmem:[#allocation10 + $0x8] sm:$0xff] }
 0x226   : > { %v2699_v24 = vmul.f32 -1.442695, %v1160_v16  ;;  %v2700_v28 = vmul.f32 -1.442695, %v1161_v17  ;;  %v1458_v16 = vld [vmem:[#allocation10 + $0x18] sm:$0xff]  ;;  %1544 = vmatpush.msrb.mxu0 %v1455_v11 }
 0x227   : > { %1595 = vmatpush.msrb.mxu2 %v1485_v40  ;;  %1624 = vmatpush.msrb.mxu3 %v1486_v45  ;;  %v3728_v11 = vld [vmem:[#allocation12 + $0x178] sm:$0xff] }
 0x228   : > { %2822 = vpow2.f32 %v2699_v24 }
 0x229   : > { %2824 = vpow2.f32 %v2700_v28  ;;  %1596 = vmatpush.msrb.mxu2 %v1481_v49  ;;  %1625 = vmatpush.msrb.mxu3 %v1482_v51 }
 0x22a   : > { %v1157_v41 = vpop.f32.mrf.mxu3  ;;  %v1137_v8 = vpop.f32.mrf.mxu2 }
 0x22b   : > { %v1163_v46 = vadd.f32 %v1157_v41, %v3581_v35  ;;  %v1472_v35 = vld [vmem:[#allocation10 + $0x88] sm:$0xff]  ;;  %1597 = vmatpush.msrb.mxu2 %v1477_v55  ;;  %1626 = vmatpush.msrb.mxu3 %v1478_v57  ;;  %v1162_v14 = vadd.f32 %v1137_v8, %v3579_v34  ;;  %v3708_v8 = vld [vmem:[#allocation12 + $0x180] sm:$0xff] }
 0x22c   : > { %1569 = vmatpush.msrb.mxu1 %v1472_v35 }
 0x22d   : > { %v2701_v52 = vmul.f32 -1.442695, %v1163_v46  ;;  %1598 = vmatpush.msrb.mxu2 %v1473_v63  ;;  %1627 = vmatpush.msrb.mxu3 %v1474_v0  ;;  %v3672_v0 = vld [vmem:[#allocation12 + $0x1e0] sm:$0xff] }
 0x22e   : > { %v2823_v56 = vpop.eup %2822  ;;  %1570 = vmatpush.msrb.mxu1 %v1468_v20  ;;  %v3686_v20 = vld [vmem:[#allocation12 + $0x1c8] sm:$0xff] }
 0x22f   : > { %v2825_v59 = vpop.eup %2824  ;;  %v3638_v61 = vadd.f32 1.0, %v2823_v56  ;;  %2826 = vpow2.f32 %v2701_v52  ;;  %1599 = vmatpush.msrb.mxu2 %v1469_v3  ;;  %1628 = vmatpush.msrb.mxu3 %v1470_v4  ;;  %v3688_v3 = vld [vmem:[#allocation12 + $0x1d0] sm:$0xff]  ;;  %v3692_v4 = vld [vmem:[#allocation12 + $0x1d8] sm:$0xff] }
 0x230   : > { %v3640_v19 = vadd.f32 1.0, %v2825_v59  ;;  %1571 = vmatpush.msrb.mxu1 %v1464_v5  ;;  %v3698_v5 = vld [vmem:[#allocation12 + $0x1a8] sm:$0xff] }
 0x231   : > { %2828 = vrcp.f32 %v3638_v61  ;;  %1600 = vmatpush.msrb.mxu2 %v1465_v6  ;;  %1629 = vmatpush.msrb.mxu3 %v1466_v7  ;;  %v1179_v34 = vand.u32 2147483648, %v3638_v61  ;;  %v1177_v25 = vand.u32 2147483647, %v3638_v61  ;;  %vm1173_vm11 = vweird.f32 %v3638_v61  ;;  %v3700_v6 = vld [vmem:[#allocation12 + $0x1b0] sm:$0xff]  ;;  %v3704_v7 = vld [vmem:[#allocation12 + $0x1b8] sm:$0xff] }
 0x232   : > { %2830 = vrcp.f32 %v3640_v19  ;;  %1572 = vmatpush.msrb.mxu1 %v1460_v26  ;;  %v1198_v24 = vand.u32 2147483648, %v3640_v19  ;;  %v1196_v32 = vand.u32 2147483647, %v3640_v19  ;;  %vm1192_vm12 = vweird.f32 %v3640_v19  ;;  %v3712_v26 = vld [vmem:[#allocation12 + $0x190] sm:$0xff] }
 0x233   : > { %1601 = vmatpush.msrb.mxu2 %v1461_v60  ;;  %1630 = vmatpush.msrb.mxu3 %v1462_v2  ;;  %v1180_v33 = vor.u32 1.1754944e-38, %v1179_v34  ;;  %vm1178_vm15 = vcmp.eq.f32.partialorder %v1177_v25, 8.507059e+37  ;;  %v3720_v60 = vld [vmem:[#allocation12 + $0x160] sm:$0xff]  ;;  %v3722_v2 = vld [vmem:[#allocation12 + $0x168] sm:$0xff]  ;;  %v3750_v34 = vld [vmem:[#allocation12 + $0x130] sm:$0xff] }
 0x234   : > { %1573 = vmatpush.msrb.mxu1 %v1456_v12  ;;  %v1199_v41 = vor.u32 1.1754944e-38, %v1198_v24  ;;  %vm1197_vm0 = vcmp.eq.f32.partialorder %v1196_v32, 8.507059e+37  ;;  %v3760_v25 = vld [vmem:[#allocation12 + $0x108] sm:$0xff]  ;;  %v3766_v32 = vld [vmem:[#allocation12 + $0x118] sm:$0xff] }
 0x235   : > { %v2827_v43 = vpop.eup %2826  ;;  %1602 = vmatpush.msrb.mxu2 %v1457_v15  ;;  %1631 = vmatpush.msrb.mxu3 %v1458_v16  ;;  %v3734_v15 = vld [vmem:[#allocation12 + $0x148] sm:$0xff]  ;;  %v3736_v16 = vld [vmem:[#allocation12 + $0x150] sm:$0xff] }
 0x236   : > { %v3644_v10 = vadd.f32 1.0, %v2827_v43  ;;  %v3716_v43 = vld [vmem:[#allocation12 + $0x198] sm:$0xff] }
 0x237   : > { %v2829_v13 = vpop.eup %2828 }
 0x238   : > { %v2831_v17 = vpop.eup %2830  ;;  %v1169_v18 = vmul.f32 %v2829_v13, %v3638_v61  ;;  %2832 = vrcp.f32 %v3644_v10  ;;  %vm1174_vm9 = vweird.f32 %v2829_v13  ;;  %v1218_v57 = vand.u32 2147483648, %v3644_v10 }
 0x239   : > { %v1188_v21 = vmul.f32 %v2831_v17, %v3640_v19  ;;  %2834 = vtanh.f32 %v1162_v14  ;;  %vm1193_vm10 = vweird.f32 %v2831_v17  ;;  %vm1175_vm13 = vmor %vm1173_vm11, %vm1174_vm9  ;;  %vm1212_vm2 = vweird.f32 %v3644_v10  ;;  %v3674_v19 = vld [vmem:[#allocation12 + $0x1e8] sm:$0xff]  ;;  %v3732_v14 = vld [vmem:[#allocation12 + $0x140] sm:$0xff] }
 0x23a   : > { %v1170_v22 = vsub.f32 1.0, %v1169_v18  ;;  %vm1194_vm14 = vmor %vm1192_vm12, %vm1193_vm10  ;;  %v1216_v58 = vand.u32 2147483647, %v3644_v10  ;;  %v1219_v59 = vor.u32 1.1754944e-38, %v1218_v57  ;;  %4193 = vst [vmem:[#allocation17_spill] sm:$0xff] %v3674_v19 }
 0x23b   : > { %v1189_v23 = vsub.f32 1.0, %v1188_v21  ;;  %v3742_v21 = vld [vmem:[#allocation12 + $0x158] sm:$0xff] }
 0x23c   : > { %v1171_v28 = vmul.f32 %v2829_v13, %v1170_v22  ;;  %vm1217_vm4 = vcmp.eq.f32.partialorder %v1216_v58, 8.507059e+37  ;;  %v3746_v22 = vld [vmem:[#allocation12 + $0x120] sm:$0xff]  ;;  %v3809_v58 = vld [vmem:[#allocation12 + $0x90] sm:$0xff] }
 0x23d   : > { %v1190_v29 = vmul.f32 %v2831_v17, %v1189_v23  ;;  %v3748_v23 = vld [vmem:[#allocation12 + $0x128] sm:$0xff]  ;;  %4195 = vst [vmem:[#allocation19_spill] sm:$0xff] %v3809_v58 }
 0x23e   : > { %v2833_v30 = vpop.eup %2832  ;;  %v1172_v31 = vadd.f32 %v2829_v13, %v1171_v28  ;;  %v3758_v28 = vld [vmem:[#allocation12 + $0x100] sm:$0xff] }
 0x23f   : > { %v1191_v36 = vadd.f32 %v2831_v17, %v1190_v29  ;;  %v1208_v40 = vmul.f32 %v2833_v30, %v3644_v10  ;;  %v2835_v46 = vpop.eup %2834  ;;  %vm1213_vm1 = vweird.f32 %v2833_v30  ;;  %v3724_v10 = vld [vmem:[#allocation12 + $0x170] sm:$0xff] }
 0x240   : > { %v1176_v45 = vsel %vm1175_vm13, %v2829_v13, %v1172_v31  ;;  %vm1214_vm3 = vmor %vm1212_vm2, %vm1213_vm1  ;;  %v3762_v29 = vld [vmem:[#allocation12 + $0x110] sm:$0xff]  ;;  %v3770_v31 = vld [vmem:[#allocation12 + $0xe8] sm:$0xff] }
 0x241   : > { %v1181_v47 = vsel %vm1178_vm15, %v1180_v33, %v1176_v45  ;;  %v1195_v48 = vsel %vm1194_vm14, %v2831_v17, %v1191_v36  ;;  %v1209_v49 = vsub.f32 1.0, %v1208_v40  ;;  %v3774_v33 = vld [vmem:[#allocation12 + $0xf0] sm:$0xff]  ;;  %v3776_v36 = vld [vmem:[#allocation12 + $0xf8] sm:$0xff]  ;;  %v3778_v40 = vld [vmem:[#allocation12 + $0xc0] sm:$0xff] }
 0x242   : > { %v1200_v51 = vsel %vm1197_vm0, %v1199_v41, %v1195_v48  ;;  %v1223_v52 = vmul.f32 %v2835_v46, %v1181_v47  ;;  %v3782_v45 = vld [vmem:[#allocation12 + $0xc8] sm:$0xff]  ;;  %v3784_v46 = vld [vmem:[#allocation12 + $0xd0] sm:$0xff]  ;;  %v3786_v47 = vld [vmem:[#allocation12 + $0xd8] sm:$0xff] }
 0x243   : > { %v1222_v53 = vmul.f32 %v1200_v51, %v3623_v62  ;;  %v1210_v54 = vmul.f32 %v2833_v30, %v1209_v49  ;;  %v3791_v49 = vld [vmem:[#allocation12 + $0xa0] sm:$0xff]  ;;  %v3793_v51 = vld [vmem:[#allocation12 + $0xa8] sm:$0xff] }
 0x245   : > { %v3658_v55 = vadd.f32 %v1223_v52, %v1222_v53  ;;  %v1211_v56 = vadd.f32 %v2833_v30, %v1210_v54  ;;  %v3797_v52 = vld [vmem:[#allocation12 + $0xb0] sm:$0xff]  ;;  %v3799_v53 = vld [vmem:[#allocation12 + $0xb8] sm:$0xff] }
 0x247   : > { %2836 = vtanh.f32 %v3658_v55  ;;  %v1215_v35 = vsel %vm1214_vm3, %v2833_v30, %v1211_v56  ;;  %v3768_v30 = vld [vmem:[#allocation12 + $0xe0] sm:$0xff]  ;;  %v3805_v56 = vld [vmem:[#allocation12 + $0x88] sm:$0xff] }
 0x248   : > { %v1220_v63 = vsel %vm1217_vm4, %v1219_v59, %v1215_v35  ;;  %v3811_v35 = vld [vmem:[#allocation12 + $0x98] sm:$0xff] }
 0x249   : > { %4196 = vst [vmem:[#allocation20_spill] sm:$0xff] %v3811_v35 }
 0x24d   : > { %v2837_v61 = vpop.eup %2836 }
 0x24e   : > { %v1226_v62 = vmul.f32 %v2837_v61, %v1220_v63 }
 0x250   : > { %1316 = vmatmul.f32.vlgmr.msra.gmra.mxu0 %v1226_v62  ;;  %1336 = vmatmul.f32.vlgmr.msra.gmra.mxu1 %v1226_v62 }
 0x251   : > { %1356 = vmatmul.f32.vlgmr.msra.gmra.mxu2 %v1226_v62  ;;  %1376 = vmatmul.f32.vlgmr.msra.gmra.mxu3 %v1226_v62 }
 0x252   : > { %1733 = vmatpush.msra.mxu0 %v3672_v0  ;;  %1753 = vmatpush.msra.mxu1 %v3674_v19 }
 0x253   : > { %1773 = vmatpush.msra.mxu2 %v3676_v1 }
 0x254   : > { %1754 = vmatpush.msra.mxu1 %v3686_v20 }
 0x255   : > { %1774 = vmatpush.msra.mxu2 %v3688_v3 }
 0x256   : > { %1755 = vmatpush.msra.mxu1 %v3698_v5 }
 0x257   : > { %1775 = vmatpush.msra.mxu2 %v3700_v6 }
 0x258   : > { %1545 = vmatmul.f32.vlgmr.msrb.gmra.mxu0 %v3594_v50  ;;  %1574 = vmatmul.f32.vlgmr.msrb.gmra.mxu1 %v3594_v50 }
 0x259   : > { %1603 = vmatmul.f32.vlgmr.msrb.gmra.mxu2 %v3594_v50  ;;  %1632 = vmatmul.f32.vlgmr.msrb.gmra.mxu3 %v3594_v50  ;;  %v3680_v50 = vld [vmem:[#allocation12 + $0x1f8] sm:$0xff] }
 0x25a   : > { %1793 = vmatpush.msra.mxu3 %v3680_v50  ;;  %1756 = vmatpush.msra.mxu1 %v3710_v9 }
 0x25b   : > { %1776 = vmatpush.msra.mxu2 %v3712_v26 }
 0x25c   : > { %1794 = vmatpush.msra.mxu3 %v3692_v4  ;;  %1757 = vmatpush.msra.mxu1 %v3722_v2 }
 0x25d   : > { %1777 = vmatpush.msra.mxu2 %v3724_v10 }
 0x25e   : > { %1795 = vmatpush.msra.mxu3 %v3704_v7  ;;  %1758 = vmatpush.msra.mxu1 %v3734_v15 }
 0x25f   : > { %1778 = vmatpush.msra.mxu2 %v3736_v16 }
 0x260   : > { %1548 = vmatmul.f32.gmra.mxu0 %v3629_v37  ;;  %1577 = vmatmul.f32.gmra.mxu1 %v3629_v37 }
 0x261   : > { %1606 = vmatmul.f32.gmra.mxu2 %v3629_v37  ;;  %1635 = vmatmul.f32.gmra.mxu3 %v3629_v37  ;;  %v3684_v37 = vld [vmem:[#allocation12 + $0x1c0] sm:$0xff] }
 0x262   : > { %1734 = vmatpush.msra.mxu0 %v3684_v37  ;;  %1796 = vmatpush.msra.mxu3 %v3716_v43 }
 0x263   : > { %1759 = vmatpush.msra.mxu1 %v3748_v23  ;;  %1779 = vmatpush.msra.mxu2 %v3750_v34 }
 0x264   : > { %1735 = vmatpush.msra.mxu0 %v3696_v27  ;;  %1797 = vmatpush.msra.mxu3 %v3728_v11 }
 0x265   : > { %1760 = vmatpush.msra.mxu1 %v3760_v25  ;;  %1780 = vmatpush.msra.mxu2 %v3762_v29 }
 0x266   : > { %1736 = vmatpush.msra.mxu0 %v3708_v8  ;;  %1798 = vmatpush.msra.mxu3 %v3742_v21 }
 0x267   : > { %1761 = vmatpush.msra.mxu1 %v3770_v31  ;;  %1781 = vmatpush.msra.mxu2 %v3774_v33 }
 0x268   : > { %1551 = vmatmul.f32.gmra.mxu0 %v1226_v62  ;;  %1580 = vmatmul.f32.gmra.mxu1 %v1226_v62 }
 0x269   : > { %1609 = vmatmul.f32.gmra.mxu2 %v1226_v62  ;;  %1638 = vmatmul.f32.gmra.mxu3 %v1226_v62  ;;  %v3824_v62 = vld [vmem:[#allocation12 + $0x60] sm:$0xff] }
 0x26a   : > { %1737 = vmatpush.msra.mxu0 %v3720_v60  ;;  %1762 = vmatpush.msra.mxu1 %v3782_v45  ;;  %4197 = vst [vmem:[#allocation21_spill] sm:$0xff] %v3824_v62 }
 0x26b   : > { %1782 = vmatpush.msra.mxu2 %v3784_v46 }
 0x26c   : > { %1738 = vmatpush.msra.mxu0 %v3732_v14  ;;  %1763 = vmatpush.msra.mxu1 %v3793_v51 }
 0x26d   : > { %1783 = vmatpush.msra.mxu2 %v3797_v52 }
 0x26e   : > { %1739 = vmatpush.msra.mxu0 %v3746_v22  ;;  %1764 = vmatpush.msra.mxu1 %v3805_v56 }
 0x26f   : > { %1784 = vmatpush.msra.mxu2 %v3809_v58 }
 0x270   : > { %1740 = vmatpush.msra.mxu0 %v3758_v28 }
 0x272   : > { %1741 = vmatpush.msra.mxu0 %v3768_v30 }
 0x274   : > { %1742 = vmatpush.msra.mxu0 %v3778_v40 }
 0x276   : > { %1743 = vmatpush.msra.mxu0 %v3791_v49 }
 0x2cd   : > { %v1317_v12 = vpop.f32.mrf.mxu0  ;;  %v1337_v13 = vpop.f32.mrf.mxu1 }
 0x2ce   : > { %v1380_v17 = vadd.f32 %v1317_v12, %v3583_v38  ;;  %v1381_v18 = vadd.f32 %v1337_v13, %v3585_v39  ;;  %v3754_v39 = vld [vmem:[#allocation12 + $0x138] sm:$0xff]  ;;  %v3826_v12 = vld [vmem:[#allocation12 + $0x68] sm:$0xff]  ;;  %v3828_v13 = vld [vmem:[#allocation12 + $0x70] sm:$0xff] }
 0x2cf   : > { %1799 = vmatpush.msra.mxu3 %v3754_v39  ;;  %4198 = vst [vmem:[#allocation22_spill] sm:$0xff] %v3826_v12  ;;  %1765 = vmatpush.msra.mxu1 %v3826_v12  ;;  %v3853_v12 = vld [vmem:[#allocation12 + $0x38] sm:$0xff] }
 0x2d0   : > { %v2702_v24 = vmul.f32 -1.442695, %v1380_v17  ;;  %v2703_v38 = vmul.f32 -1.442695, %v1381_v18  ;;  %4199 = vst [vmem:[#allocation23_spill] sm:$0xff] %v3828_v13  ;;  %v3833_v17 = vld [vmem:[#allocation12 + $0x78] sm:$0xff]  ;;  %1785 = vmatpush.msra.mxu2 %v3828_v13 }
 0x2d1   : > { %1800 = vmatpush.msra.mxu3 %v3766_v32  ;;  %4200 = vst [vmem:[#allocation24_spill] sm:$0xff] %v3833_v17  ;;  %v3835_v18 = vld [vmem:[#allocation12 + $0x40] sm:$0xff] }
 0x2d2   : > { %2838 = vpow2.f32 %v2702_v24  ;;  %4201 = vst [vmem:[#allocation25_spill] sm:$0xff] %v3835_v18  ;;  %v3837_v24 = vld [vmem:[#allocation12 + $0x48] sm:$0xff] }
 0x2d3   : > { %2840 = vpow2.f32 %v2703_v38  ;;  %1801 = vmatpush.msra.mxu3 %v3776_v36  ;;  %4202 = vst [vmem:[#allocation26_spill] sm:$0xff] %v3837_v24  ;;  %v3841_v38 = vld [vmem:[#allocation12 + $0x50] sm:$0xff]  ;;  %1766 = vmatpush.msra.mxu1 %v3837_v24 }
 0x2d4   : > { %v1377_v41 = vpop.f32.mrf.mxu3  ;;  %4203 = vst [vmem:[#allocation27_spill] sm:$0xff] %v3841_v38  ;;  %1786 = vmatpush.msra.mxu2 %v3841_v38  ;;  %v3865_v24 = vld [vmem:[#allocation12 + $0x10] sm:$0xff] }
 0x2d5   : > { %v1383_v48 = vadd.f32 %v1377_v41, %v3589_v44  ;;  %1802 = vmatpush.msra.mxu3 %v3786_v47  ;;  %v3803_v44 = vld [vmem:[#allocation12 + $0x80] sm:$0xff]  ;;  %v3843_v41 = vld [vmem:[#allocation12 + $0x58] sm:$0xff]  ;;  %4208 = vst [vmem:[#allocation32_spill] sm:$0xff] %v3853_v12 }
 0x2d6   : > { %1744 = vmatpush.msra.mxu0 %v3803_v44  ;;  %4204 = vst [vmem:[#allocation28_spill] sm:$0xff] %v3843_v41 }
 0x2d7   : > { %v2704_v54 = vmul.f32 -1.442695, %v1383_v48  ;;  %1803 = vmatpush.msra.mxu3 %v3799_v53  ;;  %v3845_v48 = vld [vmem:[#allocation12 + $0x20] sm:$0xff]  ;;  %4211 = vst [vmem:[#allocation35_spill] sm:$0xff] %v3865_v24 }
 0x2d8   : > { %v2839_v57 = vpop.eup %2838  ;;  %1745 = vmatpush.msra.mxu0 %v3824_v62  ;;  %4205 = vst [vmem:[#allocation29_spill] sm:$0xff] %v3845_v48  ;;  %v3859_v62 = vld [vmem:[#allocation12 + $0x8] sm:$0xff] }
 0x2d9   : > { %v2841_v59 = vpop.eup %2840  ;;  %v3813_v61 = vadd.f32 1.0, %v2839_v57  ;;  %2842 = vpow2.f32 %v2704_v54  ;;  %1804 = vmatpush.msra.mxu3 %v3811_v35  ;;  %v1357_v54 = vpop.f32.mrf.mxu2  ;;  %v3849_v57 = vld [vmem:[#allocation12 + $0x28] sm:$0xff]  ;;  %4210 = vst [vmem:[#allocation34_spill] sm:$0xff] %v3859_v62 }
 0x2da   : > { %v3817_v63 = vadd.f32 1.0, %v2841_v59  ;;  %1746 = vmatpush.msra.mxu0 %v3835_v18  ;;  %4206 = vst [vmem:[#allocation30_spill] sm:$0xff] %v3849_v57  ;;  %v3851_v59 = vld [vmem:[#allocation12 + $0x30] sm:$0xff]  ;;  %1767 = vmatpush.msra.mxu1 %v3849_v57  ;;  %v3867_v18 = vld [vmem:[#allocation12 + $0x18] sm:$0xff]  ;;  %v1382_v38 = vadd.f32 %v1357_v54, %v3587_v42  ;;  %v2531_v42 = vld [vmem:[%s4139_s0] sm:$0xff] }
 0x2db   : > { %2844 = vrcp.f32 %v3813_v61  ;;  %1805 = vmatpush.msra.mxu3 %v3833_v17  ;;  %4207 = vst [vmem:[#allocation31_spill] sm:$0xff] %v3851_v59  ;;  %v3857_v17 = vld [vmem:[#allocation12] sm:$0xff]  ;;  %1787 = vmatpush.msra.mxu2 %v3851_v59  ;;  %v2534_v59 = vstv %s3190_s12  ;;  %vm1393_vm7 = vweird.f32 %v3813_v61 }
 0x2dc   : > { %2846 = vrcp.f32 %v3817_v63  ;;  %4209 = vst [vmem:[#allocation33_spill] sm:$0xff] %v3857_v17  ;;  %1747 = vmatpush.msra.mxu0 %v3845_v48  ;;  %1768 = vmatpush.msra.mxu1 %v3859_v62  ;;  %v1399_v62 = vand.u32 2147483648, %v3813_v61  ;;  %v3078_v48 = vmov 0   ;;  %vm1412_vm8 = vweird.f32 %v3817_v63 }
 0x2dd   : > { %1806 = vmatpush.msra.mxu3 %v3843_v41  ;;  %4212 = vst [vmem:[#allocation36_spill] sm:$0xff] %v3867_v18  ;;  %1788 = vmatpush.msra.mxu2 %v3865_v24 }
 0x2de   : > { %1748 = vmatpush.msra.mxu0 %v3857_v17  ;;  %1969 = vmatpush.msrb.mxu1 %v3674_v19 }
 0x2df   : > { %v2843_v13 = vpop.eup %2842  ;;  %1807 = vmatpush.msra.mxu3 %v3853_v12  ;;  %v2717_v12 = vadd.s32 4294967295, %v2531_v42  ;;  %2789 = vset.pattern.permute.xlu0 %v3078_v48 }
 0x2e0   : > { %v3861_v35 = vadd.f32 1.0, %v2843_v13  ;;  %1949 = vmatpush.msrb.mxu0 %v3672_v0  ;;  %1989 = vmatpush.msrb.mxu2 %v3676_v1 }
 0x2e1   : > { %v2845_v58 = vpop.eup %2844  ;;  %1808 = vmatpush.msra.mxu3 %v3867_v18  ;;  %v1418_v18 = vand.u32 2147483648, %v3817_v63  ;;  %v2535_v19 = vsub.s32 %v2717_v12, %v2534_v59  ;;  %1970 = vmatpush.msrb.mxu1 %v3686_v20 }
 0x2e2   : > { %v2847_v41 = vpop.eup %2846  ;;  %v1389_v13 = vmul.f32 %v2845_v58, %v3813_v61  ;;  %2848 = vrcp.f32 %v3861_v35  ;;  %vm1394_vm5 = vweird.f32 %v2845_v58  ;;  %1950 = vmatpush.msrb.mxu0 %v3684_v37  ;;  %1990 = vmatpush.msrb.mxu2 %v3688_v3  ;;  %vm1432_vm14 = vweird.f32 %v3861_v35 }
 0x2e3   : > { %v1408_v57 = vmul.f32 %v2847_v41, %v3817_v63  ;;  %2850 = vtanh.f32 %v1382_v38  ;;  %2009 = vmatpush.msrb.mxu3 %v3680_v50  ;;  %vm1413_vm6 = vweird.f32 %v2847_v41  ;;  %vm1395_vm9 = vmor %vm1393_vm7, %vm1394_vm5  ;;  %2537 = vperm.xlu0 %2789, %v2535_v19  }
 0x2e4   : > { %v1390_v54 = vsub.f32 1.0, %v1389_v13  ;;  %v1397_v13 = vand.u32 2147483647, %v3813_v61  ;;  %1951 = vmatpush.msrb.mxu0 %v3696_v27  ;;  %1971 = vmatpush.msrb.mxu1 %v3698_v5  ;;  %vm1414_vm10 = vmor %vm1412_vm8, %vm1413_vm6 }
 0x2e5   : > { %v1409_v17 = vsub.f32 1.0, %v1408_v57  ;;  %v1416_v57 = vand.u32 2147483647, %v3817_v63  ;;  %2010 = vmatpush.msrb.mxu3 %v3692_v4  ;;  %1991 = vmatpush.msrb.mxu2 %v3700_v6 }
 0x2e6   : > { %v1391_v24 = vmul.f32 %v2845_v58, %v1390_v54  ;;  %vm1398_vm11 = vcmp.eq.f32.partialorder %v1397_v13, 8.507059e+37  ;;  %1952 = vmatpush.msrb.mxu0 %v3708_v8  ;;  %1972 = vmatpush.msrb.mxu1 %v3710_v9  ;;  %v1436_v13 = vand.u32 2147483647, %v3861_v35 }
 0x2e7   : > { %v1410_v42 = vmul.f32 %v2847_v41, %v1409_v17  ;;  %v1400_v17 = vor.u32 1.1754944e-38, %v1399_v62  ;;  %2011 = vmatpush.msrb.mxu3 %v3704_v7  ;;  %vm1417_vm12 = vcmp.eq.f32.partialorder %v1416_v57, 8.507059e+37  ;;  %1992 = vmatpush.msrb.mxu2 %v3712_v26 }
 0x2e8   : > { %v3894_v38 = vpop.eup %2848  ;;  %v1392_v48 = vadd.f32 %v2845_v58, %v1391_v24  ;;  %v1419_v24 = vor.u32 1.1754944e-38, %v1418_v18  ;;  %1953 = vmatpush.msrb.mxu0 %v3720_v60  ;;  %1973 = vmatpush.msrb.mxu1 %v3722_v2  ;;  %vm1437_vm0 = vcmp.eq.f32.partialorder %v1436_v13, 8.507059e+37  ;;  %v4226_v13 = vld [vmem:[#allocation32_spill] sm:$0xff] }
 0x2e9   : > { %v1411_v54 = vadd.f32 %v2847_v41, %v1410_v42  ;;  %v1428_v12 = vmul.f32 %v3894_v38, %v3861_v35  ;;  %v2851_v63 = vpop.eup %2850  ;;  %2012 = vmatpush.msrb.mxu3 %v3716_v43  ;;  %1993 = vmatpush.msrb.mxu2 %v3724_v10  ;;  %vm1433_vm13 = vweird.f32 %v3894_v38 }
 0x2ea   : > { %v1396_v61 = vsel %vm1395_vm9, %v2845_v58, %v1392_v48  ;;  %1954 = vmatpush.msrb.mxu0 %v3732_v14  ;;  %1974 = vmatpush.msrb.mxu1 %v3734_v15  ;;  %vm1434_vm15 = vmor %vm1432_vm14, %vm1433_vm13 }
 0x2eb   : > { %v1401_v59 = vsel %vm1398_vm11, %v1400_v17, %v1396_v61  ;;  %v1415_v27 = vsel %vm1414_vm10, %v2847_v41, %v1411_v54  ;;  %v1429_v62 = vsub.f32 1.0, %v1428_v12  ;;  %2013 = vmatpush.msrb.mxu3 %v3728_v11  ;;  %1994 = vmatpush.msrb.mxu2 %v3736_v16  ;;  %v4213_v54 = vld [vmem:[#allocation19_spill] sm:$0xff]  ;;  %v1662_v12 = vld [vmem:[#allocation2 + $0x8] sm:$0xff] }
 0x2ec   : > { %v1420_v19 = vsel %vm1417_vm12, %v1419_v24, %v1415_v27  ;;  %v1443_v42 = vmul.f32 %v2851_v63, %v1401_v59  ;;  %1955 = vmatpush.msrb.mxu0 %v3746_v22  ;;  %1975 = vmatpush.msrb.mxu1 %v3748_v23  ;;  %v4214_v24 = vld [vmem:[#allocation20_spill] sm:$0xff]  ;;  %v4215_v61 = vld [vmem:[#allocation21_spill] sm:$0xff]  ;;  %v4216_v63 = vld [vmem:[#allocation22_spill] sm:$0xff] }
 0x2ed   : > { %v1442_v58 = vmul.f32 %v1420_v19, %v3658_v55  ;;  %v1430_v18 = vmul.f32 %v3894_v38, %v1429_v62  ;;  %v1438_v55 = vand.u32 2147483648, %v3861_v35  ;;  %2014 = vmatpush.msrb.mxu3 %v3742_v21  ;;  %1995 = vmatpush.msrb.mxu2 %v3750_v34  ;;  %v4217_v59 = vld [vmem:[#allocation23_spill] sm:$0xff]  ;;  %v4218_v62 = vld [vmem:[#allocation24_spill] sm:$0xff]  ;;  %v4219_v19 = vld [vmem:[#allocation25_spill] sm:$0xff] }
 0x2ee   : > { %1956 = vmatpush.msrb.mxu0 %v3758_v28  ;;  %1976 = vmatpush.msrb.mxu1 %v3760_v25 }
 0x2ef   : > { %v1444_v41 = vadd.f32 %v1443_v42, %v1442_v58  ;;  %v1431_v27 = vadd.f32 %v3894_v38, %v1430_v18  ;;  %2015 = vmatpush.msrb.mxu3 %v3754_v39  ;;  %1996 = vmatpush.msrb.mxu2 %v3762_v29  ;;  %v1439_v48 = vor.u32 1.1754944e-38, %v1438_v55  ;;  %v4220_v42 = vld [vmem:[#allocation26_spill] sm:$0xff]  ;;  %v4221_v58 = vld [vmem:[#allocation27_spill] sm:$0xff]  ;;  %v4222_v18 = vld [vmem:[#allocation28_spill] sm:$0xff] }
 0x2f0   : > { %1957 = vmatpush.msrb.mxu0 %v3768_v30  ;;  %1977 = vmatpush.msrb.mxu1 %v3770_v31  ;;  %v4225_v55 = vld [vmem:[#allocation31_spill] sm:$0xff] }
 0x2f1   : > { %2852 = vtanh.f32 %v1444_v41  ;;  %1450 = vst [vmem:[#allocation3 + $0x8] sm:$0xff] %v1444_v41  ;;  %v1435_v57 = vsel %vm1434_vm15, %v3894_v38, %v1431_v27  ;;  %2016 = vmatpush.msrb.mxu3 %v3766_v32  ;;  %1997 = vmatpush.msrb.mxu2 %v3774_v33  ;;  %v4223_v41 = vld [vmem:[#allocation29_spill] sm:$0xff]  ;;  %v4224_v27 = vld [vmem:[#allocation30_spill] sm:$0xff] }
 0x2f2   : > { %v1440_v17 = vsel %vm1437_vm0, %v1439_v48, %v1435_v57  ;;  %1958 = vmatpush.msrb.mxu0 %v3778_v40  ;;  %1978 = vmatpush.msrb.mxu1 %v3782_v45  ;;  %v4227_v57 = vld [vmem:[#allocation33_spill] sm:$0xff]  ;;  %v4228_v48 = vld [vmem:[#allocation34_spill] sm:$0xff] }
 0x2f3   : > { %2017 = vmatpush.msrb.mxu3 %v3776_v36  ;;  %1998 = vmatpush.msrb.mxu2 %v3784_v46 }
 0x2f4   : > { %1959 = vmatpush.msrb.mxu0 %v3791_v49  ;;  %1979 = vmatpush.msrb.mxu1 %v3793_v51 }
 0x2f5   : > { %2018 = vmatpush.msrb.mxu3 %v3786_v47  ;;  %1999 = vmatpush.msrb.mxu2 %v3797_v52 }
 0x2f6   : > { %1960 = vmatpush.msrb.mxu0 %v3803_v44  ;;  %1980 = vmatpush.msrb.mxu1 %v3805_v56 }
 0x2f7   : > { %v2853_v35 = vpop.eup %2852  ;;  %2019 = vmatpush.msrb.mxu3 %v3799_v53  ;;  %2000 = vmatpush.msrb.mxu2 %v4213_v54 }
 0x2f8   : > { %v1446_v38 = vmul.f32 %v2853_v35, %v1440_v17  ;;  %1961 = vmatpush.msrb.mxu0 %v4215_v61  ;;  %1981 = vmatpush.msrb.mxu1 %v4216_v63  ;;  %v4229_v35 = vld [vmem:[#allocation35_spill] sm:$0xff]  ;;  %v4230_v17 = vld [vmem:[#allocation36_spill] sm:$0xff] }
 0x2f9   : > { %2020 = vmatpush.msrb.mxu3 %v4214_v24  ;;  %2001 = vmatpush.msrb.mxu2 %v4217_v59 }
 0x2fa   : > { %1449 = vst [vmem:[#allocation2] sm:$0xff] %v1446_v38  ;;  %1554 = vmatmul.f32.gmra.mxu0 %v1446_v38  ;;  %1583 = vmatmul.f32.gmra.mxu1 %v1446_v38 }
 0x2fb   : > { %1612 = vmatmul.f32.gmra.mxu2 %v1446_v38  ;;  %1641 = vmatmul.f32.gmra.mxu3 %v1446_v38  ;;  %v4231_v38 = vld [vmem:[#allocation17_spill] sm:$0xff] }
 0x2fc   : > { %2021 = vmatpush.msrb.mxu3 %v4218_v62  ;;  %1962 = vmatpush.msrb.mxu0 %v4219_v19 }
 0x2fd   : > { %1982 = vmatpush.msrb.mxu1 %v4220_v42  ;;  %2002 = vmatpush.msrb.mxu2 %v4221_v58 }
 0x2fe   : > { %2022 = vmatpush.msrb.mxu3 %v4222_v18  ;;  %1963 = vmatpush.msrb.mxu0 %v4223_v41 }
 0x2ff   : > { %1983 = vmatpush.msrb.mxu1 %v4224_v27  ;;  %2003 = vmatpush.msrb.mxu2 %v4225_v55 }
 0x300   : > { %2023 = vmatpush.msrb.mxu3 %v4226_v13  ;;  %1964 = vmatpush.msrb.mxu0 %v4227_v57 }
 0x301   : > { %1984 = vmatpush.msrb.mxu1 %v4228_v48  ;;  %2004 = vmatpush.msrb.mxu2 %v4229_v35 }
 0x302   : > { %1749 = vmatmul.f32.vlgmr.msra.gmra.mxu0 %v1662_v12  ;;  %1769 = vmatmul.f32.vlgmr.msra.gmra.mxu1 %v1662_v12 }
 0x303   : > { %1789 = vmatmul.f32.vlgmr.msra.gmra.mxu2 %v1662_v12  ;;  %1809 = vmatmul.f32.vlgmr.msra.gmra.mxu3 %v1662_v12  ;;  %v4232_v12 = vld [vmem:[#allocation18_spill] sm:$0xff] }
 0x304   : > { %2024 = vmatpush.msrb.mxu3 %v4230_v17  ;;  %2165 = vmatpush.msra.mxu0 %v3672_v0  ;;  %v1546_v0 = vpop.f32.mrf.mxu0 }
 0x305   : > { %2185 = vmatpush.msra.mxu1 %v4231_v38  ;;  %2205 = vmatpush.msra.mxu2 %v3676_v1  ;;  %v1575_v1 = vpop.f32.mrf.mxu1 }
 0x306   : > { %2225 = vmatpush.msra.mxu3 %v3680_v50  ;;  %2166 = vmatpush.msra.mxu0 %v3684_v37  ;;  %v1633_v50 = vpop.f32.mrf.mxu3 }
 0x307   : > { %2186 = vmatpush.msra.mxu1 %v3686_v20  ;;  %2206 = vmatpush.msra.mxu2 %v3688_v3  ;;  %v1604_v3 = vpop.f32.mrf.mxu2 }
 0x308   : > { %2226 = vmatpush.msra.mxu3 %v3692_v4  ;;  %2167 = vmatpush.msra.mxu0 %v4232_v12 }
 0x309   : > { %2187 = vmatpush.msra.mxu1 %v3698_v5  ;;  %2207 = vmatpush.msra.mxu2 %v3700_v6 }
 0x30a   : > { %2227 = vmatpush.msra.mxu3 %v3704_v7  ;;  %2168 = vmatpush.msra.mxu0 %v3708_v8 }
 0x30b   : > { %2188 = vmatpush.msra.mxu1 %v3710_v9  ;;  %2208 = vmatpush.msra.mxu2 %v3712_v26  ;;  %v1519_v9 = vld [vmem:[%s4146_s7] sm:$0xf] }
 0x30c   : > { %2228 = vmatpush.msra.mxu3 %v3716_v43  ;;  %2169 = vmatpush.msra.mxu0 %v3720_v60  ;;  %v4031_v37 = vpop.f32.mrf.mxu0  ;;  %v4052_v60 = vperm.slane %v1519_v9, 0 }
 0x30d   : > { %2189 = vmatpush.msra.mxu1 %v3722_v2  ;;  %2209 = vmatpush.msra.mxu2 %v3724_v10  ;;  %v4033_v20 = vpop.f32.mrf.mxu1  ;;  %v4054_v2 = vperm.slane %v1519_v9, 1 }
 0x30e   : > { %2229 = vmatpush.msra.mxu3 %v3728_v11  ;;  %2170 = vmatpush.msra.mxu0 %v3732_v14  ;;  %v4035_v4 = vpop.f32.mrf.mxu3  ;;  %v1547_v10 = vadd.f32 %v1546_v0, %v4052_v60 }
 0x30f   : > { %2190 = vmatpush.msra.mxu1 %v3734_v15  ;;  %2210 = vmatpush.msra.mxu2 %v3736_v16  ;;  %v4041_v7 = vpop.f32.mrf.mxu2  ;;  %v1576_v11 = vadd.f32 %v1575_v1, %v4054_v2 }
 0x310   : > { %2230 = vmatpush.msra.mxu3 %v3742_v21  ;;  %2171 = vmatpush.msra.mxu0 %v3746_v22 }
 0x311   : > { %2191 = vmatpush.msra.mxu1 %v3748_v23  ;;  %2211 = vmatpush.msra.mxu2 %v3750_v34  ;;  %v4062_v34 = vperm.slane %v1519_v9, 3 }
 0x312   : > { %2231 = vmatpush.msra.mxu3 %v3754_v39  ;;  %2172 = vmatpush.msra.mxu0 %v3758_v28 }
 0x313   : > { %2192 = vmatpush.msra.mxu1 %v3760_v25  ;;  %2212 = vmatpush.msra.mxu2 %v3762_v29  ;;  %v1634_v25 = vadd.f32 %v1633_v50, %v4062_v34 }
 0x314   : > { %2232 = vmatpush.msra.mxu3 %v3766_v32  ;;  %2173 = vmatpush.msra.mxu0 %v3768_v30  ;;  %v4037_v5 = vpop.f32.mrf.mxu0 }
 0x315   : > { %2193 = vmatpush.msra.mxu1 %v3770_v31  ;;  %2213 = vmatpush.msra.mxu2 %v3774_v33  ;;  %v4039_v6 = vpop.f32.mrf.mxu1 }
 0x316   : > { %2233 = vmatpush.msra.mxu3 %v3776_v36  ;;  %2174 = vmatpush.msra.mxu0 %v3778_v40  ;;  %v4043_v8 = vpop.f32.mrf.mxu3 }
 0x317   : > { %2194 = vmatpush.msra.mxu1 %v3782_v45  ;;  %2214 = vmatpush.msra.mxu2 %v3784_v46  ;;  %v4058_v14 = vpop.f32.mrf.mxu2  ;;  %v4067_v46 = vperm.slane %v1519_v9, 2 }
 0x318   : > { %2234 = vmatpush.msra.mxu3 %v3786_v47  ;;  %2175 = vmatpush.msra.mxu0 %v3791_v49 }
 0x319   : > { %2195 = vmatpush.msra.mxu1 %v3793_v51  ;;  %2215 = vmatpush.msra.mxu2 %v3797_v52  ;;  %v1605_v51 = vadd.f32 %v1604_v3, %v4067_v46 }
 0x31a   : > { %2235 = vmatpush.msra.mxu3 %v3799_v53  ;;  %2176 = vmatpush.msra.mxu0 %v3803_v44 }
 0x31b   : > { %2196 = vmatpush.msra.mxu1 %v3805_v56  ;;  %2216 = vmatpush.msra.mxu2 %v4213_v54 }
 0x31c   : > { %2236 = vmatpush.msra.mxu3 %v4214_v24  ;;  %2177 = vmatpush.msra.mxu0 %v4215_v61 }
 0x31d   : > { %2197 = vmatpush.msra.mxu1 %v4216_v63  ;;  %2217 = vmatpush.msra.mxu2 %v4217_v59 }
 0x31e   : > { %2237 = vmatpush.msra.mxu3 %v4218_v62  ;;  %2178 = vmatpush.msra.mxu0 %v4219_v19 }
 0x31f   : > { %2198 = vmatpush.msra.mxu1 %v4220_v42  ;;  %2218 = vmatpush.msra.mxu2 %v4221_v58 }
 0x320   : > { %2238 = vmatpush.msra.mxu3 %v4222_v18  ;;  %2179 = vmatpush.msra.mxu0 %v4223_v41 }
 0x321   : > { %2199 = vmatpush.msra.mxu1 %v4224_v27  ;;  %2219 = vmatpush.msra.mxu2 %v4225_v55 }
 0x322   : > { %2239 = vmatpush.msra.mxu3 %v4226_v13  ;;  %2180 = vmatpush.msra.mxu0 %v4227_v57 }
 0x323   : > { %2200 = vmatpush.msra.mxu1 %v4228_v48  ;;  %2220 = vmatpush.msra.mxu2 %v4229_v35  ;;  %v1664_v35 = vld [vmem:[#allocation3] sm:$0xff] }
 0x324   : > { %2240 = vmatpush.msra.mxu3 %v4230_v17 }
 0x377   : > { %v4048_v26 = vpop.f32.mrf.mxu0  ;;  %v4050_v43 = vpop.f32.mrf.mxu1 }
 0x37e   : > { %v4060_v15 = vpop.f32.mrf.mxu3  ;;  %v4065_v29 = vpop.f32.mrf.mxu2 }
 0x37f   : > { %v1750_v16 = vpop.f32.mrf.mxu0  ;;  %v1770_v21 = vpop.f32.mrf.mxu1 }
 0x380   : > { %v1813_v22 = vadd.f32 %v1750_v16, %v1547_v10  ;;  %v1814_v23 = vadd.f32 %v1770_v21, %v1576_v11 }
 0x382   : > { %v2705_v39 = vmul.f32 -1.442695, %v1813_v22  ;;  %v2706_v28 = vmul.f32 -1.442695, %v1814_v23 }
 0x384   : > { %2854 = vpow2.f32 %v2705_v39 }
 0x385   : > { %2856 = vpow2.f32 %v2706_v28 }
 0x386   : > { %v1810_v32 = vpop.f32.mrf.mxu3  ;;  %v1790_v47 = vpop.f32.mrf.mxu2 }
 0x387   : > { %v1816_v30 = vadd.f32 %v1810_v32, %v1634_v25  ;;  %v1815_v44 = vadd.f32 %v1790_v47, %v1605_v51  ;;  %v1637_v51 = vadd.f32 %v4035_v4, %v4062_v34 }
 0x389   : > { %v2707_v31 = vmul.f32 -1.442695, %v1816_v30  ;;  %v1550_v30 = vadd.f32 %v4031_v37, %v4052_v60 }
 0x38a   : > { %v2855_v33 = vpop.eup %2854 }
 0x38b   : > { %v2857_v36 = vpop.eup %2856  ;;  %v1820_v40 = vadd.f32 1.0, %v2855_v33  ;;  %2858 = vpow2.f32 %v2707_v31  ;;  %v1579_v31 = vadd.f32 %v4033_v20, %v4054_v2 }
 0x38c   : > { %v1839_v45 = vadd.f32 1.0, %v2857_v36 }
 0x38d   : > { %2860 = vrcp.f32 %v1820_v40  ;;  %v1832_v59 = vand.u32 2147483648, %v1820_v40  ;;  %v1830_v42 = vand.u32 2147483647, %v1820_v40  ;;  %vm1826_vm3 = vweird.f32 %v1820_v40 }
 0x38e   : > { %2862 = vrcp.f32 %v1839_v45  ;;  %v1851_v62 = vand.u32 2147483648, %v1839_v45  ;;  %v1849_v18 = vand.u32 2147483647, %v1839_v45  ;;  %vm1845_vm4 = vweird.f32 %v1839_v45 }
 0x38f   : > { %v1833_v55 = vor.u32 1.1754944e-38, %v1832_v59  ;;  %vm1831_vm7 = vcmp.eq.f32.partialorder %v1830_v42, 8.507059e+37 }
 0x390   : > { %v1852_v48 = vor.u32 1.1754944e-38, %v1851_v62  ;;  %vm1850_vm8 = vcmp.eq.f32.partialorder %v1849_v18, 8.507059e+37 }
 0x391   : > { %v2859_v49 = vpop.eup %2858 }
 0x392   : > { %v1859_v52 = vadd.f32 1.0, %v2859_v49 }
 0x393   : > { %v2861_v53 = vpop.eup %2860 }
 0x394   : > { %v2863_v56 = vpop.eup %2862  ;;  %v1822_v54 = vmul.f32 %v2861_v53, %v1820_v40  ;;  %2864 = vrcp.f32 %v1859_v52  ;;  %vm1827_vm1 = vweird.f32 %v2861_v53  ;;  %v1871_v21 = vand.u32 2147483648, %v1859_v52 }
 0x395   : > { %v1841_v24 = vmul.f32 %v2863_v56, %v1839_v45  ;;  %2866 = vtanh.f32 %v1815_v44  ;;  %vm1846_vm2 = vweird.f32 %v2863_v56  ;;  %vm1828_vm5 = vmor %vm1826_vm3, %vm1827_vm1  ;;  %vm1865_vm10 = vweird.f32 %v1859_v52 }
 0x396   : > { %v1823_v61 = vsub.f32 1.0, %v1822_v54  ;;  %vm1847_vm6 = vmor %vm1845_vm4, %vm1846_vm2  ;;  %v1869_v22 = vand.u32 2147483647, %v1859_v52  ;;  %v1872_v39 = vor.u32 1.1754944e-38, %v1871_v21 }
 0x397   : > { %v1842_v63 = vsub.f32 1.0, %v1841_v24 }
 0x398   : > { %v1824_v19 = vmul.f32 %v2861_v53, %v1823_v61  ;;  %vm1870_vm12 = vcmp.eq.f32.partialorder %v1869_v22, 8.507059e+37 }
 0x399   : > { %v1843_v58 = vmul.f32 %v2863_v56, %v1842_v63  ;;  %v1608_v63 = vadd.f32 %v4041_v7, %v4067_v46 }
 0x39a   : > { %v2865_v41 = vpop.eup %2864  ;;  %v1825_v27 = vadd.f32 %v2861_v53, %v1824_v19 }
 0x39b   : > { %v1844_v13 = vadd.f32 %v2863_v56, %v1843_v58  ;;  %v1861_v57 = vmul.f32 %v2865_v41, %v1859_v52  ;;  %v2867_v38 = vpop.eup %2866  ;;  %vm1866_vm9 = vweird.f32 %v2865_v41 }
 0x39c   : > { %v1829_v17 = vsel %vm1828_vm5, %v2861_v53, %v1825_v27  ;;  %vm1867_vm11 = vmor %vm1865_vm10, %vm1866_vm9 }
 0x39d   : > { %v1834_v12 = vsel %vm1831_vm7, %v1833_v55, %v1829_v17  ;;  %v1848_v0 = vsel %vm1847_vm6, %v2863_v56, %v1844_v13  ;;  %v1862_v1 = vsub.f32 1.0, %v1861_v57 }
 0x39e   : > { %v1853_v50 = vsel %vm1850_vm8, %v1852_v48, %v1848_v0  ;;  %v1876_v3 = vmul.f32 %v2867_v38, %v1834_v12 }
 0x39f   : > { %v1875_v9 = vmul.f32 %v1853_v50, %v1664_v35  ;;  %v1863_v10 = vmul.f32 %v2865_v41, %v1862_v1 }
 0x3a1   : > { %v4070_v11 = vadd.f32 %v1876_v3, %v1875_v9  ;;  %v1864_v16 = vadd.f32 %v2865_v41, %v1863_v10 }
 0x3a3   : > { %2868 = vtanh.f32 %v4070_v11  ;;  %v1868_v23 = vsel %vm1867_vm11, %v2865_v41, %v1864_v16 }
 0x3a4   : > { %v1873_v25 = vsel %vm1870_vm12, %v1872_v39, %v1868_v23 }
 0x3a9   : > { %v2869_v28 = vpop.eup %2868 }
 0x3aa   : > { %v4073_v32 = vmul.f32 %v2869_v28, %v1873_v25 }
 0x3ac   : > { %1965 = vmatmul.f32.vlgmr.msrb.gmra.mxu0 %v4073_v32  ;;  %1985 = vmatmul.f32.vlgmr.msrb.gmra.mxu1 %v4073_v32 }
 0x3ad   : > { %2005 = vmatmul.f32.vlgmr.msrb.gmra.mxu2 %v4073_v32  ;;  %2025 = vmatmul.f32.vlgmr.msrb.gmra.mxu3 %v4073_v32 }
 0x429   : > { %v1966_v33 = vpop.f32.mrf.mxu0  ;;  %v1986_v36 = vpop.f32.mrf.mxu1 }
 0x42a   : > { %v2029_v40 = vadd.f32 %v1966_v33, %v1550_v30  ;;  %v2030_v45 = vadd.f32 %v1986_v36, %v1579_v31  ;;  %v4091_v33 = vpop.permute.xlu0 %2537 }
 0x42b   : > { %vm2541_vm8 = vcmp.eq.s32.totalorder %v4091_v33, 0  ;;  %vm2544_vm10 = vcmp.eq.s32.totalorder %v4091_v33, 1 }
 0x42c   : > { %v2708_v47 = vmul.f32 -1.442695, %v2029_v40  ;;  %v2709_v49 = vmul.f32 -1.442695, %v2030_v45  ;;  %v2539_v45 = vld [vmem:[#allocation13] sm:$0xff] }
 0x42e   : > { %2870 = vpow2.f32 %v2708_v47 }
 0x42f   : > { %2872 = vpow2.f32 %v2709_v49 }
 0x430   : > { %v2026_v52 = vpop.f32.mrf.mxu3  ;;  %v2006_v20 = vpop.f32.mrf.mxu2 }
 0x431   : > { %v2032_v53 = vadd.f32 %v2026_v52, %v1637_v51  ;;  %v2031_v19 = vadd.f32 %v2006_v20, %v1608_v63  ;;  %v2542_v51 = vsel %vm2541_vm8, %v4073_v32, %v2539_v45  ;;  %v2375_v20 = vld [vmem:[#allocation12 + $0x1d0] sm:$0xff]  ;;  %v2376_v32 = vld [vmem:[#allocation12 + $0x1d8] sm:$0xff]  ;;  %v2370_v63 = vld [vmem:[#allocation12 + $0x1a8] sm:$0xff] }
 0x433   : > { %v2710_v44 = vmul.f32 -1.442695, %v2032_v53  ;;  %v2377_v53 = vld [vmem:[#allocation12 + $0x1e0] sm:$0xff] }
 0x434   : > { %v2871_v56 = vpop.eup %2870  ;;  %2381 = vmatpush.msrb.mxu0 %v2377_v53  ;;  %v2340_v53 = vld [vmem:[#allocation12 + $0xb8] sm:$0xff] }
 0x435   : > { %v2873_v54 = vpop.eup %2872  ;;  %v2036_v37 = vadd.f32 1.0, %v2871_v56  ;;  %2874 = vpow2.f32 %v2710_v44  ;;  %v2378_v44 = vld [vmem:[#allocation12 + $0x1e8] sm:$0xff]  ;;  %v2379_v56 = vld [vmem:[#allocation12 + $0x1f0] sm:$0xff] }
 0x436   : > { %v2055_v24 = vadd.f32 1.0, %v2873_v54  ;;  %2401 = vmatpush.msrb.mxu1 %v2378_v44  ;;  %v2380_v54 = vld [vmem:[#allocation12 + $0x1f8] sm:$0xff]  ;;  %2421 = vmatpush.msrb.mxu2 %v2379_v56  ;;  %v2333_v44 = vld [vmem:[#allocation12 + $0x80] sm:$0xff]  ;;  %v2334_v56 = vld [vmem:[#allocation12 + $0x88] sm:$0xff] }
 0x437   : > { %2876 = vrcp.f32 %v2036_v37  ;;  %v2048_v27 = vand.u32 2147483648, %v2036_v37  ;;  %v2046_v57 = vand.u32 2147483647, %v2036_v37  ;;  %vm2042_vm15 = vweird.f32 %v2036_v37  ;;  %2441 = vmatpush.msrb.mxu3 %v2380_v54  ;;  %v2335_v54 = vld [vmem:[#allocation12 + $0x90] sm:$0xff] }
 0x438   : > { %2878 = vrcp.f32 %v2055_v24  ;;  %v2067_v55 = vand.u32 2147483648, %v2055_v24  ;;  %v2065_v35 = vand.u32 2147483647, %v2055_v24  ;;  %vm2061_vm0 = vweird.f32 %v2055_v24  ;;  %2422 = vmatpush.msrb.mxu2 %v2375_v20  ;;  %v2330_v20 = vld [vmem:[#allocation12 + $0x68] sm:$0xff] }
 0x439   : > { %v2049_v38 = vor.u32 1.1754944e-38, %v2048_v27  ;;  %vm2047_vm3 = vcmp.eq.f32.partialorder %v2046_v57, 8.507059e+37  ;;  %2442 = vmatpush.msrb.mxu3 %v2376_v32  ;;  %v2363_v27 = vld [vmem:[#allocation12 + $0x170] sm:$0xff]  ;;  %v2358_v57 = vld [vmem:[#allocation12 + $0x148] sm:$0xff]  ;;  %v1640_v32 = vadd.f32 %v4043_v8, %v4062_v34 }
 0x43a   : > { %v2068_v1 = vor.u32 1.1754944e-38, %v2067_v55  ;;  %vm2066_vm4 = vcmp.eq.f32.partialorder %v2065_v35, 8.507059e+37  ;;  %v2364_v55 = vld [vmem:[#allocation12 + $0x178] sm:$0xff]  ;;  %v2323_v8 = vld [vmem:[#allocation12 + $0x30] sm:$0xff] }
 0x43b   : > { %v2875_v61 = vpop.eup %2874  ;;  %v2360_v35 = vld [vmem:[#allocation12 + $0x158] sm:$0xff] }
 0x43c   : > { %v2075_v59 = vadd.f32 1.0, %v2875_v61  ;;  %v2369_v61 = vld [vmem:[#allocation12 + $0x1a0] sm:$0xff] }
 0x43d   : > { %v2877_v62 = vpop.eup %2876 }
 0x43e   : > { %v2879_v4 = vpop.eup %2878  ;;  %v2038_v42 = vmul.f32 %v2877_v62, %v2036_v37  ;;  %2880 = vrcp.f32 %v2075_v59  ;;  %vm2043_vm13 = vweird.f32 %v2877_v62  ;;  %v2087_v30 = vand.u32 2147483648, %v2075_v59  ;;  %v2373_v37 = vld [vmem:[#allocation12 + $0x1c0] sm:$0xff] }
 0x43f   : > { %v2057_v58 = vmul.f32 %v2879_v4, %v2055_v24  ;;  %2882 = vtanh.f32 %v2031_v19  ;;  %vm2062_vm14 = vweird.f32 %v2879_v4  ;;  %vm2044_vm1 = vmor %vm2042_vm15, %vm2043_vm13  ;;  %vm2081_vm6 = vweird.f32 %v2075_v59  ;;  %v2374_v24 = vld [vmem:[#allocation12 + $0x1c8] sm:$0xff]  ;;  %2382 = vmatpush.msrb.mxu0 %v2373_v37  ;;  %v2365_v19 = vld [vmem:[#allocation12 + $0x180] sm:$0xff] }
 0x440   : > { %v2039_v18 = vsub.f32 1.0, %v2038_v42  ;;  %vm2063_vm2 = vmor %vm2061_vm0, %vm2062_vm14  ;;  %v2085_v31 = vand.u32 2147483647, %v2075_v59  ;;  %v2088_v40 = vor.u32 1.1754944e-38, %v2087_v30  ;;  %2402 = vmatpush.msrb.mxu1 %v2374_v24  ;;  %v2367_v42 = vld [vmem:[#allocation12 + $0x190] sm:$0xff]  ;;  %v2341_v30 = vld [vmem:[#allocation12 + $0xc0] sm:$0xff] }
 0x441   : > { %v2058_v41 = vsub.f32 1.0, %v2057_v58  ;;  %2383 = vmatpush.msrb.mxu0 %v2369_v61  ;;  %v2368_v58 = vld [vmem:[#allocation12 + $0x198] sm:$0xff]  ;;  %v2329_v24 = vld [vmem:[#allocation12 + $0x60] sm:$0xff]  ;;  %v2331_v61 = vld [vmem:[#allocation12 + $0x70] sm:$0xff] }
 0x442   : > { %v2040_v13 = vmul.f32 %v2877_v62, %v2039_v18  ;;  %vm2086_vm9 = vcmp.eq.f32.partialorder %v2085_v31, 8.507059e+37  ;;  %2403 = vmatpush.msrb.mxu1 %v2370_v63  ;;  %v2361_v18 = vld [vmem:[#allocation12 + $0x160] sm:$0xff]  ;;  %v2342_v31 = vld [vmem:[#allocation12 + $0xc8] sm:$0xff]  ;;  %v2336_v37 = vld [vmem:[#allocation12 + $0x98] sm:$0xff] }
 0x443   : > { %v2059_v48 = vmul.f32 %v2879_v4, %v2058_v41  ;;  %2384 = vmatpush.msrb.mxu0 %v2365_v19  ;;  %v2362_v41 = vld [vmem:[#allocation12 + $0x168] sm:$0xff]  ;;  %v2332_v63 = vld [vmem:[#allocation12 + $0x78] sm:$0xff] }
 0x444   : > { %v2881_v17 = vpop.eup %2880  ;;  %v2041_v7 = vadd.f32 %v2877_v62, %v2040_v13  ;;  %v2357_v13 = vld [vmem:[#allocation12 + $0x140] sm:$0xff]  ;;  %v2326_v19 = vld [vmem:[#allocation12 + $0x48] sm:$0xff] }
 0x445   : > { %v2060_v12 = vadd.f32 %v2879_v4, %v2059_v48  ;;  %v2077_v0 = vmul.f32 %v2881_v17, %v2075_v59  ;;  %v2883_v3 = vpop.eup %2882  ;;  %vm2082_vm5 = vweird.f32 %v2881_v17  ;;  %v2371_v59 = vld [vmem:[#allocation12 + $0x1b0] sm:$0xff]  ;;  %2385 = vmatpush.msrb.mxu0 %v2361_v18  ;;  %v2321_v18 = vld [vmem:[#allocation12 + $0x20] sm:$0xff] }
 0x446   : > { %v2045_v50 = vsel %vm2044_vm1, %v2877_v62, %v2041_v7  ;;  %vm2083_vm7 = vmor %vm2081_vm6, %vm2082_vm5  ;;  %v2372_v62 = vld [vmem:[#allocation12 + $0x1b8] sm:$0xff]  ;;  %2423 = vmatpush.msrb.mxu2 %v2371_v59  ;;  %v2359_v48 = vld [vmem:[#allocation12 + $0x150] sm:$0xff] }
 0x447   : > { %v2050_v9 = vsel %vm2047_vm3, %v2049_v38, %v2045_v50  ;;  %v2064_v10 = vsel %vm2063_vm2, %v2879_v4, %v2060_v12  ;;  %v2078_v16 = vsub.f32 1.0, %v2077_v0  ;;  %2443 = vmatpush.msrb.mxu3 %v2372_v62  ;;  %v2366_v4 = vld [vmem:[#allocation12 + $0x188] sm:$0xff]  ;;  %2386 = vmatpush.msrb.mxu0 %v2357_v13  ;;  %v2355_v38 = vld [vmem:[#allocation12 + $0x130] sm:$0xff]  ;;  %v2356_v12 = vld [vmem:[#allocation12 + $0x138] sm:$0xff] }
 0x448   : > { %v2069_v21 = vsel %vm2066_vm4, %v2068_v1, %v2064_v10  ;;  %v2092_v22 = vmul.f32 %v2883_v3, %v2050_v9  ;;  %2404 = vmatpush.msrb.mxu1 %v2366_v4  ;;  %2424 = vmatpush.msrb.mxu2 %v2367_v42  ;;  %v2354_v7 = vld [vmem:[#allocation12 + $0x128] sm:$0xff]  ;;  %v2349_v0 = vld [vmem:[#allocation12 + $0x100] sm:$0xff]  ;;  %v2351_v50 = vld [vmem:[#allocation12 + $0x110] sm:$0xff] }
 0x449   : > { %v2091_v23 = vmul.f32 %v2069_v21, %v4070_v11  ;;  %v2079_v39 = vmul.f32 %v2881_v17, %v2078_v16  ;;  %2444 = vmatpush.msrb.mxu3 %v2368_v58  ;;  %v2350_v1 = vld [vmem:[#allocation12 + $0x108] sm:$0xff]  ;;  %v2352_v3 = vld [vmem:[#allocation12 + $0x118] sm:$0xff]  ;;  %v2345_v9 = vld [vmem:[#allocation12 + $0xe0] sm:$0xff]  ;;  %v1553_v21 = vadd.f32 %v4037_v5, %v4052_v60 }
 0x44a   : > { %2405 = vmatpush.msrb.mxu1 %v2362_v41  ;;  %2425 = vmatpush.msrb.mxu2 %v2363_v27  ;;  %v2346_v10 = vld [vmem:[#allocation12 + $0xe8] sm:$0xff]  ;;  %v2347_v16 = vld [vmem:[#allocation12 + $0xf0] sm:$0xff]  ;;  %v2337_v5 = vld [vmem:[#allocation12 + $0xa0] sm:$0xff] }
 0x44b   : > { %v4088_v28 = vadd.f32 %v2092_v22, %v2091_v23  ;;  %v2080_v25 = vadd.f32 %v2881_v17, %v2079_v39  ;;  %2445 = vmatpush.msrb.mxu3 %v2364_v55  ;;  %v1582_v22 = vadd.f32 %v4039_v6, %v4054_v2  ;;  %v2348_v23 = vld [vmem:[#allocation12 + $0xf8] sm:$0xff]  ;;  %v2339_v6 = vld [vmem:[#allocation12 + $0xb0] sm:$0xff]  ;;  %v2325_v59 = vld [vmem:[#allocation12 + $0x40] sm:$0xff] }
 0x44c   : > { %2406 = vmatpush.msrb.mxu1 %v2358_v57  ;;  %2426 = vmatpush.msrb.mxu2 %v2359_v48  ;;  %v2327_v4 = vld [vmem:[#allocation12 + $0x50] sm:$0xff]  ;;  %v2328_v42 = vld [vmem:[#allocation12 + $0x58] sm:$0xff]  ;;  %v2322_v41 = vld [vmem:[#allocation12 + $0x28] sm:$0xff] }
 0x44d   : > { %2884 = vtanh.f32 %v4088_v28  ;;  %v2084_v36 = vsel %vm2083_vm7, %v2881_v17, %v2080_v25  ;;  %2446 = vmatpush.msrb.mxu3 %v2360_v35  ;;  %v2353_v17 = vld [vmem:[#allocation12 + $0x120] sm:$0xff]  ;;  %v2324_v27 = vld [vmem:[#allocation12 + $0x38] sm:$0xff]  ;;  %v2318_v57 = vld [vmem:[#allocation12 + $0x8] sm:$0xff]  ;;  %vm2547_vm7 = vcmp.eq.s32.totalorder %v4091_v33, 2 }
 0x44e   : > { %v2089_v47 = vsel %vm2086_vm9, %v2088_v40, %v2084_v36  ;;  %2387 = vmatpush.msrb.mxu0 %v2353_v17  ;;  %2407 = vmatpush.msrb.mxu1 %v2354_v7  ;;  %v2343_v36 = vld [vmem:[#allocation12 + $0xd0] sm:$0xff]  ;;  %v2317_v13 = vld [vmem:[#allocation12] sm:$0xff]  ;;  %v2320_v17 = vld [vmem:[#allocation12 + $0x18] sm:$0xff] }
 0x44f   : > { %2427 = vmatpush.msrb.mxu2 %v2355_v38  ;;  %2447 = vmatpush.msrb.mxu3 %v2356_v12  ;;  %v2319_v35 = vld [vmem:[#allocation12 + $0x10] sm:$0xff] }
 0x450   : > { %2388 = vmatpush.msrb.mxu0 %v2349_v0  ;;  %2408 = vmatpush.msrb.mxu1 %v2350_v1 }
 0x451   : > { %2428 = vmatpush.msrb.mxu2 %v2351_v50  ;;  %2448 = vmatpush.msrb.mxu3 %v2352_v3  ;;  %v1611_v50 = vadd.f32 %v4058_v14, %v4067_v46 }
 0x452   : > { %2389 = vmatpush.msrb.mxu0 %v2345_v9  ;;  %2409 = vmatpush.msrb.mxu1 %v2346_v10 }
 0x453   : > { %v2885_v11 = vpop.eup %2884  ;;  %2429 = vmatpush.msrb.mxu2 %v2347_v16  ;;  %2449 = vmatpush.msrb.mxu3 %v2348_v23 }
 0x454   : > { %v2095_v49 = vmul.f32 %v2885_v11, %v2089_v47  ;;  %2390 = vmatpush.msrb.mxu0 %v2341_v30  ;;  %2410 = vmatpush.msrb.mxu1 %v2342_v31  ;;  %v2344_v11 = vld [vmem:[#allocation12 + $0xd8] sm:$0xff]  ;;  %v2338_v47 = vld [vmem:[#allocation12 + $0xa8] sm:$0xff] }
 0x455   : > { %2430 = vmatpush.msrb.mxu2 %v2343_v36  ;;  %2450 = vmatpush.msrb.mxu3 %v2344_v11 }
 0x456   : > { %2181 = vmatmul.f32.vlgmr.msra.gmra.mxu0 %v2095_v49  ;;  %2201 = vmatmul.f32.vlgmr.msra.gmra.mxu1 %v2095_v49  ;;  %v4096_v52 = vsel %vm2544_vm10, %v2095_v49, %v2542_v51 }
 0x457   : > { %2221 = vmatmul.f32.vlgmr.msra.gmra.mxu2 %v2095_v49  ;;  %2241 = vmatmul.f32.vlgmr.msra.gmra.mxu3 %v2095_v49 }
 0x458   : > { %2391 = vmatpush.msrb.mxu0 %v2337_v5  ;;  %2411 = vmatpush.msrb.mxu1 %v2338_v47 }
 0x459   : > { %2431 = vmatpush.msrb.mxu2 %v2339_v6  ;;  %2451 = vmatpush.msrb.mxu3 %v2340_v53 }
 0x45a   : > { %2392 = vmatpush.msrb.mxu0 %v2333_v44  ;;  %2412 = vmatpush.msrb.mxu1 %v2334_v56 }
 0x45b   : > { %2432 = vmatpush.msrb.mxu2 %v2335_v54  ;;  %2452 = vmatpush.msrb.mxu3 %v2336_v37 }
 0x45c   : > { %2393 = vmatpush.msrb.mxu0 %v2329_v24  ;;  %2413 = vmatpush.msrb.mxu1 %v2330_v20 }
 0x45d   : > { %2433 = vmatpush.msrb.mxu2 %v2331_v61  ;;  %2453 = vmatpush.msrb.mxu3 %v2332_v63 }
 0x45e   : > { %2394 = vmatpush.msrb.mxu0 %v2325_v59  ;;  %2414 = vmatpush.msrb.mxu1 %v2326_v19 }
 0x45f   : > { %2434 = vmatpush.msrb.mxu2 %v2327_v4  ;;  %2454 = vmatpush.msrb.mxu3 %v2328_v42 }
 0x460   : > { %2395 = vmatpush.msrb.mxu0 %v2321_v18  ;;  %2415 = vmatpush.msrb.mxu1 %v2322_v41  ;;  %v1556_v41 = vadd.f32 %v4048_v26, %v4052_v60 }
 0x461   : > { %2435 = vmatpush.msrb.mxu2 %v2323_v8  ;;  %2455 = vmatpush.msrb.mxu3 %v2324_v27  ;;  %v1585_v8 = vadd.f32 %v4050_v43, %v4054_v2 }
 0x462   : > { %2396 = vmatpush.msrb.mxu0 %v2317_v13  ;;  %2416 = vmatpush.msrb.mxu1 %v2318_v57 }
 0x463   : > { %2436 = vmatpush.msrb.mxu2 %v2319_v35  ;;  %2456 = vmatpush.msrb.mxu3 %v2320_v17  ;;  %v1643_v17 = vadd.f32 %v4060_v15, %v4062_v34 }
 0x4d3   : > { %v2182_v39 = vpop.f32.mrf.mxu0  ;;  %v2202_v25 = vpop.f32.mrf.mxu1 }
 0x4d4   : > { %v2245_v40 = vadd.f32 %v2182_v39, %v1553_v21  ;;  %v2246_v45 = vadd.f32 %v2202_v25, %v1582_v22 }
 0x4d6   : > { %v2711_v49 = vmul.f32 -1.442695, %v2245_v40  ;;  %v2712_v51 = vmul.f32 -1.442695, %v2246_v45 }
 0x4d8   : > { %2886 = vpow2.f32 %v2711_v49 }
 0x4d9   : > { %2888 = vpow2.f32 %v2712_v51 }
 0x4da   : > { %v2242_v62 = vpop.f32.mrf.mxu3  ;;  %v2222_v0 = vpop.f32.mrf.mxu2 }
 0x4db   : > { %v2248_v58 = vadd.f32 %v2242_v62, %v1640_v32  ;;  %v2247_v10 = vadd.f32 %v2222_v0, %v1611_v50 }
 0x4dd   : > { %v2713_v55 = vmul.f32 -1.442695, %v2248_v58 }
 0x4de   : > { %v2887_v48 = vpop.eup %2886 }
 0x4df   : > { %v2889_v7 = vpop.eup %2888  ;;  %v2252_v38 = vadd.f32 1.0, %v2887_v48  ;;  %2890 = vpow2.f32 %v2713_v55 }
 0x4e0   : > { %v2271_v12 = vadd.f32 1.0, %v2889_v7 }
 0x4e1   : > { %2892 = vrcp.f32 %v2252_v38  ;;  %v2264_v25 = vand.u32 2147483648, %v2252_v38  ;;  %v2262_v36 = vand.u32 2147483647, %v2252_v38  ;;  %vm2258_vm13 = vweird.f32 %v2252_v38 }
 0x4e2   : > { %2894 = vrcp.f32 %v2271_v12  ;;  %v2283_v30 = vand.u32 2147483648, %v2271_v12  ;;  %v2281_v45 = vand.u32 2147483647, %v2271_v12  ;;  %vm2277_vm14 = vweird.f32 %v2271_v12 }
 0x4e3   : > { %v2265_v5 = vor.u32 1.1754944e-38, %v2264_v25  ;;  %vm2263_vm1 = vcmp.eq.f32.partialorder %v2262_v36, 8.507059e+37 }
 0x4e4   : > { %v2284_v49 = vor.u32 1.1754944e-38, %v2283_v30  ;;  %vm2282_vm2 = vcmp.eq.f32.partialorder %v2281_v45, 8.507059e+37 }
 0x4e5   : > { %v2891_v1 = vpop.eup %2890 }
 0x4e6   : > { %v2291_v3 = vadd.f32 1.0, %v2891_v1  ;;  %v1614_v1 = vadd.f32 %v4065_v29, %v4067_v46 }
 0x4e7   : > { %v2893_v9 = vpop.eup %2892 }
 0x4e8   : > { %v2895_v16 = vpop.eup %2894  ;;  %v2254_v21 = vmul.f32 %v2893_v9, %v2252_v38  ;;  %2896 = vrcp.f32 %v2291_v3  ;;  %vm2259_vm11 = vweird.f32 %v2893_v9  ;;  %v2303_v59 = vand.u32 2147483648, %v2291_v3 }
 0x4e9   : > { %v2273_v22 = vmul.f32 %v2895_v16, %v2271_v12  ;;  %2898 = vtanh.f32 %v2247_v10  ;;  %vm2278_vm12 = vweird.f32 %v2895_v16  ;;  %vm2260_vm15 = vmor %vm2258_vm13, %vm2259_vm11  ;;  %vm2297_vm4 = vweird.f32 %v2291_v3 }
 0x4ea   : > { %v2255_v23 = vsub.f32 1.0, %v2254_v21  ;;  %vm2279_vm0 = vmor %vm2277_vm14, %vm2278_vm12  ;;  %v2301_v62 = vand.u32 2147483647, %v2291_v3  ;;  %v2304_v4 = vor.u32 1.1754944e-38, %v2303_v59 }
 0x4eb   : > { %v2274_v39 = vsub.f32 1.0, %v2273_v22 }
 0x4ec   : > { %v2256_v31 = vmul.f32 %v2893_v9, %v2255_v23  ;;  %vm2302_vm6 = vcmp.eq.f32.partialorder %v2301_v62, 8.507059e+37 }
 0x4ed   : > { %v2275_v40 = vmul.f32 %v2895_v16, %v2274_v39 }
 0x4ee   : > { %v2897_v11 = vpop.eup %2896  ;;  %v2257_v14 = vadd.f32 %v2893_v9, %v2256_v31 }
 0x4ef   : > { %v2276_v47 = vadd.f32 %v2895_v16, %v2275_v40  ;;  %v2293_v6 = vmul.f32 %v2897_v11, %v2291_v3  ;;  %v2899_v53 = vpop.eup %2898  ;;  %vm2298_vm3 = vweird.f32 %v2897_v11 }
 0x4f0   : > { %v2261_v51 = vsel %vm2260_vm15, %v2893_v9, %v2257_v14  ;;  %vm2299_vm5 = vmor %vm2297_vm4, %vm2298_vm3  ;;  %vm2550_vm4 = vcmp.eq.s32.totalorder %v4091_v33, 3 }
 0x4f1   : > { %v2266_v44 = vsel %vm2263_vm1, %v2265_v5, %v2261_v51  ;;  %v2280_v56 = vsel %vm2279_vm0, %v2895_v16, %v2276_v47  ;;  %v2294_v54 = vsub.f32 1.0, %v2293_v6 }
 0x4f2   : > { %v2285_v37 = vsel %vm2282_vm2, %v2284_v49, %v2280_v56  ;;  %v2308_v24 = vmul.f32 %v2899_v53, %v2266_v44 }
 0x4f3   : > { %v2307_v20 = vmul.f32 %v2285_v37, %v4088_v28  ;;  %v2295_v32 = vmul.f32 %v2897_v11, %v2294_v54 }
 0x4f5   : > { %v4107_v61 = vadd.f32 %v2308_v24, %v2307_v20  ;;  %v2296_v63 = vadd.f32 %v2897_v11, %v2295_v32 }
 0x4f7   : > { %2900 = vtanh.f32 %v4107_v61  ;;  %v2300_v19 = vsel %vm2299_vm5, %v2897_v11, %v2296_v63 }
 0x4f8   : > { %v2305_v58 = vsel %vm2302_vm6, %v2304_v4, %v2300_v19 }
 0x4fd   : > { %v2901_v42 = vpop.eup %2900 }
 0x4fe   : > { %v2311_v18 = vmul.f32 %v2901_v42, %v2305_v58 }
 0x500   : > { %2397 = vmatmul.f32.vlgmr.msrb.gmra.mxu0 %v2311_v18  ;;  %2417 = vmatmul.f32.vlgmr.msrb.gmra.mxu1 %v2311_v18  ;;  %v4112_v28 = vsel %vm2547_vm7, %v2311_v18, %v4096_v52 }
 0x501   : > { %2437 = vmatmul.f32.vlgmr.msrb.gmra.mxu2 %v2311_v18  ;;  %2457 = vmatmul.f32.vlgmr.msrb.gmra.mxu3 %v2311_v18 }
 0x57d   : > { %v2398_v27 = vpop.f32.mrf.mxu0  ;;  %v2418_v55 = vpop.f32.mrf.mxu1 }
 0x57e   : > { %v2461_v13 = vadd.f32 %v2398_v27, %v1556_v41  ;;  %v2462_v57 = vadd.f32 %v2418_v55, %v1585_v8 }
 0x580   : > { %v2714_v48 = vmul.f32 -1.442695, %v2461_v13  ;;  %v2715_v35 = vmul.f32 -1.442695, %v2462_v57 }
 0x582   : > { %2902 = vpow2.f32 %v2714_v48 }
 0x583   : > { %2904 = vpow2.f32 %v2715_v35 }
 0x584   : > { %v2458_v52 = vpop.f32.mrf.mxu3  ;;  %v2438_v43 = vpop.f32.mrf.mxu2 }
 0x585   : > { %v2464_v7 = vadd.f32 %v2458_v52, %v1643_v17  ;;  %v2463_v9 = vadd.f32 %v2438_v43, %v1614_v1 }
 0x587   : > { %v2716_v38 = vmul.f32 -1.442695, %v2464_v7 }
 0x588   : > { %v2903_v12 = vpop.eup %2902 }
 0x589   : > { %v2905_v0 = vpop.eup %2904  ;;  %v2468_v26 = vadd.f32 1.0, %v2903_v12  ;;  %2906 = vpow2.f32 %v2716_v38 }
 0x58a   : > { %v2487_v60 = vadd.f32 1.0, %v2905_v0 }
 0x58b   : > { %2908 = vrcp.f32 %v2468_v26  ;;  %v2480_v22 = vand.u32 2147483648, %v2468_v26  ;;  %v2478_v25 = vand.u32 2147483647, %v2468_v26  ;;  %vm2474_vm10 = vweird.f32 %v2468_v26 }
 0x58c   : > { %2910 = vrcp.f32 %v2487_v60  ;;  %v2499_v23 = vand.u32 2147483648, %v2487_v60  ;;  %v2497_v31 = vand.u32 2147483647, %v2487_v60  ;;  %vm2493_vm11 = vweird.f32 %v2487_v60 }
 0x58d   : > { %v2481_v46 = vor.u32 1.1754944e-38, %v2480_v22  ;;  %vm2479_vm14 = vcmp.eq.f32.partialorder %v2478_v25, 8.507059e+37 }
 0x58e   : > { %v2500_v11 = vor.u32 1.1754944e-38, %v2499_v23  ;;  %vm2498_vm15 = vcmp.eq.f32.partialorder %v2497_v31, 8.507059e+37 }
 0x58f   : > { %v2907_v2 = vpop.eup %2906 }
 0x590   : > { %v2507_v50 = vadd.f32 1.0, %v2907_v2 }
 0x591   : > { %v2909_v3 = vpop.eup %2908 }
 0x592   : > { %v2911_v15 = vpop.eup %2910  ;;  %v2470_v34 = vmul.f32 %v2909_v3, %v2468_v26  ;;  %2912 = vrcp.f32 %v2507_v50  ;;  %vm2475_vm8 = vweird.f32 %v2909_v3  ;;  %v2519_v24 = vand.u32 2147483648, %v2507_v50 }
 0x593   : > { %v2489_v10 = vmul.f32 %v2911_v15, %v2487_v60  ;;  %2914 = vtanh.f32 %v2463_v9  ;;  %vm2494_vm9 = vweird.f32 %v2911_v15  ;;  %vm2476_vm12 = vmor %vm2474_vm10, %vm2475_vm8  ;;  %vm2513_vm1 = vweird.f32 %v2507_v50 }
 0x594   : > { %v2471_v16 = vsub.f32 1.0, %v2470_v34  ;;  %vm2495_vm13 = vmor %vm2493_vm11, %vm2494_vm9  ;;  %v2517_v20 = vand.u32 2147483647, %v2507_v50  ;;  %v2520_v63 = vor.u32 1.1754944e-38, %v2519_v24 }
 0x595   : > { %v2490_v21 = vsub.f32 1.0, %v2489_v10 }
 0x596   : > { %v2472_v39 = vmul.f32 %v2909_v3, %v2471_v16  ;;  %vm2518_vm3 = vcmp.eq.f32.partialorder %v2517_v20, 8.507059e+37 }
 0x597   : > { %v2491_v30 = vmul.f32 %v2911_v15, %v2490_v21 }
 0x598   : > { %v2913_v36 = vpop.eup %2912  ;;  %v2473_v29 = vadd.f32 %v2909_v3, %v2472_v39 }
 0x599   : > { %v2492_v40 = vadd.f32 %v2911_v15, %v2491_v30  ;;  %v2509_v45 = vmul.f32 %v2913_v36, %v2507_v50  ;;  %v2915_v5 = vpop.eup %2914  ;;  %vm2514_vm0 = vweird.f32 %v2913_v36 }
 0x59a   : > { %v2477_v14 = vsel %vm2476_vm12, %v2909_v3, %v2473_v29  ;;  %vm2515_vm2 = vmor %vm2513_vm1, %vm2514_vm0 }
 0x59b   : > { %v2482_v47 = vsel %vm2479_vm14, %v2481_v46, %v2477_v14  ;;  %v2496_v6 = vsel %vm2495_vm13, %v2911_v15, %v2492_v40  ;;  %v2510_v49 = vsub.f32 1.0, %v2509_v45 }
 0x59c   : > { %v2501_v51 = vsel %vm2498_vm15, %v2500_v11, %v2496_v6  ;;  %v2524_v53 = vmul.f32 %v2915_v5, %v2482_v47 }
 0x59d   : > { %v2523_v44 = vmul.f32 %v2501_v51, %v4107_v61  ;;  %v2511_v56 = vmul.f32 %v2913_v36, %v2510_v49 }
 0x59f   : > { %v2525_v54 = vadd.f32 %v2524_v53, %v2523_v44  ;;  %v2512_v37 = vadd.f32 %v2913_v36, %v2511_v56 }
 0x5a1   : > { %2916 = vtanh.f32 %v2525_v54  ;;  %2530 = vst [vmem:[#allocation3] sm:$0xff] %v2525_v54  ;;  %v2516_v32 = vsel %vm2515_vm2, %v2913_v36, %v2512_v37 }
 0x5a2   : > { %v2521_v59 = vsel %vm2518_vm3, %v2520_v63, %v2516_v32 }
 0x5a7   : > { %v2917_v61 = vpop.eup %2916 }
 0x5a8   : > { %v2527_v62 = vmul.f32 %v2917_v61, %v2521_v59 }
 0x5aa   : > { %2529 = vst [vmem:[#allocation2 + $0x8] sm:$0xff] %v2527_v62  ;;  %v2551_v19 = vsel %vm2550_vm4, %v2527_v62, %v4112_v28 }
 0x5ab   : > { %2552 = vst [vmem:[#allocation13] sm:$0xff] %v2551_v19 }
 0x5ac   : > { %2736 = dma.vmem_to_hbm [thread:$0]  (%p2755_p9), %s2562_s24, 128, %s2564_s26, [#allocation9]  }
 0x5ad   : > { %3057 = dma.done.wait (%p2755_p9), [#allocation9], 128  }
 0x5ae   : > { %3059 = vsyncadd (%p2755_p9), [#allocation9], 4294967168 }
 0x5af PF: > { %s21_s29 = sadd.s32 1, %s3070_s29   ;;  %s4233_s27 = smov %s3066_s28 }
 0x5b0   : > { %p18_p10 = scmp.ge.s32.totalorder %s21_s29, 4   ;;  %s4234_s28 = smov %s4236_s17 }
 0x5b2   :  { %20 = sbr.rel (!%p18_p10) target bundleno = 4 (0x4), region = 109 }
 0x5b7   :  { %2577 = vsyncpa [#allocation8], 1 }
 0x5b8   :  { %2579 = vsyncpa [#allocation8 + $0x1], 1 }
 0x5b9   :  { %2580 = vsyncpa [#allocation11], 1 }
 0x5ba   :  { %2581 = vsyncpa [#allocation9], 1 }
 0x5bb   :  { %2583 = vsyncpa [#allocation9 + $0x1], 1 }

</bundles_post_ra>
